<compile_context>
chip_gen: v6e
topology: v6e:2x2x1
jax: 0.10.0
libtpu: 0.0.40
codegen_flags: <defaults>
</compile_context>

<pallas_src>
import jax
import jax.numpy as jnp
from jax.experimental import pallas as pl
from jax.experimental.pallas import tpu as pltpu

IN_DIM = 28 * 28  # 784
H1, H2, H3, OUT = 1024, 512, 256, 1


def _round_up(n, m):
    return ((n + m - 1) // m) * m


def _cdiv(a, b):
    return -(-a // b)


def _leaky_relu(x, alpha=0.2):
    return jnp.where(x >= 0, x, alpha * x)


def _make_kernel(act_dtype):
    """Kernel factory; act_dtype = bf16 on v6e/v7x, f32 on v5e and older."""

    def kernel(x_ref,
               w1_ref, b1_ref,
               w2_ref, b2_ref,
               w3_ref, b3_ref,
               w4_ref, b4_ref,
               o_ref):
        x = x_ref[...].astype(jnp.bfloat16)                       # (TB, 784)

        # Layer 1: (TB,784) @ (784,1024) -> f32 acc -> act_dtype epilogue
        h = jnp.dot(x, w1_ref[...], preferred_element_type=jnp.float32)
        h = _leaky_relu(h.astype(act_dtype) + b1_ref[...].astype(act_dtype))

        # Layer 2: (TB,1024) @ (1024,512)
        h = jnp.dot(h.astype(jnp.bfloat16), w2_ref[...],
                    preferred_element_type=jnp.float32)
        h = _leaky_relu(h.astype(act_dtype) + b2_ref[...].astype(act_dtype))

        # Layer 3: (TB,512) @ (512,256)
        h = jnp.dot(h.astype(jnp.bfloat16), w3_ref[...],
                    preferred_element_type=jnp.float32)
        h = _leaky_relu(h.astype(act_dtype) + b3_ref[...].astype(act_dtype))

        # Layer 4: Linear(256, 1) as VPU multiply + lane reduction (no N=1 matmul).
        w4 = w4_ref[...].astype(jnp.float32)                      # (1, 256)
        logits = jnp.sum(h.astype(jnp.float32) * w4, axis=-1,
                         keepdims=True) + b4_ref[...]             # (TB, 1) f32

        # Exact sigmoid in f32 (no approx reciprocal -> output stays in [0, 1]).
        o_ref[...] = (1.0 / (1.0 + jnp.exp(-logits))).astype(o_ref.dtype)

    return kernel


def init_params(key):
    """f32 params mimicking PyTorch Linear init; weights in [in, out] layout."""
    dims = [(IN_DIM, H1), (H1, H2), (H2, H3), (H3, OUT)]
    params = {}
    keys = jax.random.split(key, 2 * len(dims))
    for i, (fan_in, fan_out) in enumerate(dims):
        bound = 1.0 / jnp.sqrt(jnp.float32(fan_in))
        w = jax.random.uniform(keys[2 * i], (fan_in, fan_out),
                               minval=-bound, maxval=bound, dtype=jnp.float32)
        b = jax.random.uniform(keys[2 * i + 1], (1, fan_out),
                               minval=-bound, maxval=bound, dtype=jnp.float32)
        params[f"w{i+1}"] = w
        params[f"b{i+1}"] = b
    return params


def prepare_params(params):
    """One-time conversion: bf16 weights, w4 as a lane row, f32 biases."""
    return {
        "w1": params["w1"].astype(jnp.bfloat16), "b1": params["b1"],
        "w2": params["w2"].astype(jnp.bfloat16), "b2": params["b2"],
        "w3": params["w3"].astype(jnp.bfloat16), "b3": params["b3"],
        "w4": params["w4"].reshape(1, H3).astype(jnp.bfloat16),  # (1, 256)
        "b4": params["b4"],                                      # (1, 1)
    }


def _act_dtype_for_device():
    """bf16 epilogue on chips with a bf16 VALU (v6e/v7x); f32 otherwise."""
    try:
        kind = jax.devices()[0].device_kind.lower()
    except Exception:
        return jnp.bfloat16
    for old in ("v2", "v3", "v4", "v5"):
        if old in kind:
            return jnp.float32
    return jnp.bfloat16


def _choose_tiling(B, tb_max):
    """Pick (TB, padded_B, n_steps): minimize padding, cap TB at tb_max, and
    use >= 2 grid steps when possible so v7x's two TensorCores both get work."""
    min_steps = 2 if B > 8 else 1
    n_steps = max(_cdiv(B, tb_max), min_steps)
    TB = _round_up(_cdiv(B, n_steps), 8)
    Bp = n_steps * TB
    return TB, Bp, n_steps


def _build_call(TB, Bp, n_steps, act_dtype, single_buffer_weights, vmem_limit):
    if single_buffer_weights:
        # Constant-index blocks are fetched once; drop the dead second buffer.
        const = lambda shape: pl.BlockSpec(shape, lambda i: (0, 0),
                                           pipeline_mode=pl.Buffered(1))
    else:
        const = lambda shape: pl.BlockSpec(shape, lambda i: (0, 0))

    return pl.pallas_call(
        _make_kernel(act_dtype),
        out_shape=jax.ShapeDtypeStruct((Bp, OUT), jnp.float32),
        grid=(n_steps,),
        in_specs=[
            pl.BlockSpec((TB, IN_DIM), lambda i: (i, 0)),   # x: batch-tiled
            const((IN_DIM, H1)), const((1, H1)),
            const((H1, H2)),     const((1, H2)),
            const((H2, H3)),     const((1, H3)),
            const((1, H3)),      const((1, OUT)),
        ],
        out_specs=pl.BlockSpec((TB, OUT), lambda i: (i, 0)),
        compiler_params=pltpu.CompilerParams(
            dimension_semantics=("parallel",),
            vmem_limit_bytes=vmem_limit,
        ),
    )


def discriminator_forward(x, kparams, tb_max=512):
    """x: [B, 784] float32 (or bfloat16); kparams: output of prepare_params().

    tb_max=512 is safe on all generations (v7x has 64 MiB VMEM per TC);
    pass tb_max=1024 on v5e/v6e for large batches.
    """
    B = x.shape[0]
    TB, Bp, n_steps = _choose_tiling(B, tb_max)
    if Bp != B:
        x = jnp.pad(x, ((0, Bp - B), (0, 0)))

    act_dtype = _act_dtype_for_device()
    vmem_limit = (64 << 20) if TB > 512 else (32 << 20)

    args = (x,
            kparams["w1"], kparams["b1"],
            kparams["w2"], kparams["b2"],
            kparams["w3"], kparams["b3"],
            kparams["w4"], kparams["b4"])

    try:
        out = _build_call(TB, Bp, n_steps, act_dtype, True, vmem_limit)(*args)
    except Exception:
        # pl.Buffered(1) not supported on this jax build -> default buffering.
        out = _build_call(TB, Bp, n_steps, act_dtype, False, vmem_limit)(*args)

    return out[:B]


def reference_forward(x, params):
    """Pure-f32 reference (eval-mode dropout = identity)."""
    h = x
    for i in range(1, 4):
        h = h @ params[f"w{i}"] + params[f"b{i}"]
        h = jnp.where(h >= 0, h, 0.2 * h)
    logits = h @ params["w4"] + params["b4"]
    return jax.nn.sigmoid(logits)


if __name__ == "__main__":
    key = jax.random.PRNGKey(0)
    k_params, k_x = jax.random.split(key)

    params = init_params(k_params)
    kparams = prepare_params(params)

    # B=6 exercises the pad-to-8, single-step path;
    # B=20 exercises the 2-step grid (megacore "parallel" axis) + padding path.
    for B in (6, 20):
        x = jax.random.normal(jax.random.fold_in(k_x, B), (B, IN_DIM),
                              dtype=jnp.float32)
        out = jax.block_until_ready(discriminator_forward(x, kparams))
        ref = reference_forward(x, params)

        assert out.shape == (B, OUT), out.shape
        # bf16 weights (+ bf16 epilogue on v6e/v7x) => relaxed tolerance.
        err = jnp.max(jnp.abs(out - ref))
        assert jnp.allclose(out, ref, atol=3e-2, rtol=0.0), (B, err)
        assert bool(jnp.all((out >= 0.0) & (out <= 1.0)))

    print("KERNEL_OK")
</pallas_src>

<mosaic_0001>
module attributes {stable_mosaic.version = 11 : i64} {
  func.func @kernel(%arg0: i32, %arg1: memref<8x784xf32, #tpu.memory_space<vmem>>, %arg2: memref<784x1024xbf16, #tpu.memory_space<vmem>>, %arg3: memref<1x1024xf32, #tpu.memory_space<vmem>>, %arg4: memref<1024x512xbf16, #tpu.memory_space<vmem>>, %arg5: memref<1x512xf32, #tpu.memory_space<vmem>>, %arg6: memref<512x256xbf16, #tpu.memory_space<vmem>>, %arg7: memref<1x256xf32, #tpu.memory_space<vmem>>, %arg8: memref<1x256xbf16, #tpu.memory_space<vmem>>, %arg9: memref<1x1xf32, #tpu.memory_space<vmem>>, %arg10: memref<8x1xf32, #tpu.memory_space<vmem>>) attributes {dimension_semantics = [#tpu.dimension_semantics<parallel>], iteration_bounds = array<i64: 1>, scalar_prefetch = 0 : i64, scratch_operands = 0 : i64, tpu.core_type = #tpu.core_type<tc>, window_params = [{transform_indices = @transform_0, window_bounds = array<i64: 8, 784>}, {pipeline_mode = #tpu.pipeline_mode<synchronous>, transform_indices = @transform_1, window_bounds = array<i64: 784, 1024>}, {pipeline_mode = #tpu.pipeline_mode<synchronous>, transform_indices = @transform_2, window_bounds = array<i64: 1, 1024>}, {pipeline_mode = #tpu.pipeline_mode<synchronous>, transform_indices = @transform_3, window_bounds = array<i64: 1024, 512>}, {pipeline_mode = #tpu.pipeline_mode<synchronous>, transform_indices = @transform_4, window_bounds = array<i64: 1, 512>}, {pipeline_mode = #tpu.pipeline_mode<synchronous>, transform_indices = @transform_5, window_bounds = array<i64: 512, 256>}, {pipeline_mode = #tpu.pipeline_mode<synchronous>, transform_indices = @transform_6, window_bounds = array<i64: 1, 256>}, {pipeline_mode = #tpu.pipeline_mode<synchronous>, transform_indices = @transform_7, window_bounds = array<i64: 1, 256>}, {pipeline_mode = #tpu.pipeline_mode<synchronous>, transform_indices = @transform_8, window_bounds = array<i64: 1, 1>}, {transform_indices = @transform_9, window_bounds = array<i64: 8, 1>}]} {
    %c0 = arith.constant 0 : index
    %c0_0 = arith.constant 0 : index
    %0 = vector.load %arg1[%c0, %c0_0] : memref<8x784xf32, #tpu.memory_space<vmem>>, vector<8x784xf32>
    %1 = arith.truncf %0 : vector<8x784xf32> to vector<8x784xbf16>
    %c0_1 = arith.constant 0 : index
    %c0_2 = arith.constant 0 : index
    %2 = vector.load %arg2[%c0_1, %c0_2] : memref<784x1024xbf16, #tpu.memory_space<vmem>>, vector<784x1024xbf16>
    %cst = arith.constant dense<0.000000e+00> : vector<8x1024xf32>
    %3 = tpu.matmul %1, %2, %cst {dimension_numbers = #tpu.dot_dimension_numbers<[1], [0], [0], [1], [0, 0, 1, 1], [], []>} : vector<8x784xbf16>, vector<784x1024xbf16>, vector<8x1024xf32> -> vector<8x1024xf32>
    %4 = arith.truncf %3 : vector<8x1024xf32> to vector<8x1024xbf16>
    %c0_3 = arith.constant 0 : index
    %c0_4 = arith.constant 0 : index
    %5 = vector.load %arg3[%c0_3, %c0_4] : memref<1x1024xf32, #tpu.memory_space<vmem>>, vector<1x1024xf32>
    %6 = arith.truncf %5 : vector<1x1024xf32> to vector<1x1024xbf16>
    %7 = vector.broadcast %6 : vector<1x1024xbf16> to vector<8x1024xbf16>
    %8 = arith.addf %4, %7 : vector<8x1024xbf16>
    %cst_5 = arith.constant 0.000000e+00 : bf16
    %9 = vector.broadcast %cst_5 : bf16 to vector<8x1024xbf16>
    %10 = arith.cmpf oge, %8, %9 : vector<8x1024xbf16>
    %cst_6 = arith.constant 2.001950e-01 : bf16
    %11 = vector.broadcast %cst_6 : bf16 to vector<8x1024xbf16>
    %12 = arith.mulf %11, %8 : vector<8x1024xbf16>
    %13 = arith.select %10, %8, %12 : vector<8x1024xi1>, vector<8x1024xbf16>
    %c0_7 = arith.constant 0 : index
    %c0_8 = arith.constant 0 : index
    %14 = vector.load %arg4[%c0_7, %c0_8] : memref<1024x512xbf16, #tpu.memory_space<vmem>>, vector<1024x512xbf16>
    %cst_9 = arith.constant dense<0.000000e+00> : vector<8x512xf32>
    %15 = tpu.matmul %13, %14, %cst_9 {dimension_numbers = #tpu.dot_dimension_numbers<[1], [0], [0], [1], [0, 0, 1, 1], [], []>} : vector<8x1024xbf16>, vector<1024x512xbf16>, vector<8x512xf32> -> vector<8x512xf32>
    %16 = arith.truncf %15 : vector<8x512xf32> to vector<8x512xbf16>
    %c0_10 = arith.constant 0 : index
    %c0_11 = arith.constant 0 : index
    %17 = vector.load %arg5[%c0_10, %c0_11] : memref<1x512xf32, #tpu.memory_space<vmem>>, vector<1x512xf32>
    %18 = arith.truncf %17 : vector<1x512xf32> to vector<1x512xbf16>
    %19 = vector.broadcast %18 : vector<1x512xbf16> to vector<8x512xbf16>
    %20 = arith.addf %16, %19 : vector<8x512xbf16>
    %cst_12 = arith.constant 0.000000e+00 : bf16
    %21 = vector.broadcast %cst_12 : bf16 to vector<8x512xbf16>
    %22 = arith.cmpf oge, %20, %21 : vector<8x512xbf16>
    %cst_13 = arith.constant 2.001950e-01 : bf16
    %23 = vector.broadcast %cst_13 : bf16 to vector<8x512xbf16>
    %24 = arith.mulf %23, %20 : vector<8x512xbf16>
    %25 = arith.select %22, %20, %24 : vector<8x512xi1>, vector<8x512xbf16>
    %c0_14 = arith.constant 0 : index
    %c0_15 = arith.constant 0 : index
    %26 = vector.load %arg6[%c0_14, %c0_15] : memref<512x256xbf16, #tpu.memory_space<vmem>>, vector<512x256xbf16>
    %cst_16 = arith.constant dense<0.000000e+00> : vector<8x256xf32>
    %27 = tpu.matmul %25, %26, %cst_16 {dimension_numbers = #tpu.dot_dimension_numbers<[1], [0], [0], [1], [0, 0, 1, 1], [], []>} : vector<8x512xbf16>, vector<512x256xbf16>, vector<8x256xf32> -> vector<8x256xf32>
    %28 = arith.truncf %27 : vector<8x256xf32> to vector<8x256xbf16>
    %c0_17 = arith.constant 0 : index
    %c0_18 = arith.constant 0 : index
    %29 = vector.load %arg7[%c0_17, %c0_18] : memref<1x256xf32, #tpu.memory_space<vmem>>, vector<1x256xf32>
    %30 = arith.truncf %29 : vector<1x256xf32> to vector<1x256xbf16>
    %31 = vector.broadcast %30 : vector<1x256xbf16> to vector<8x256xbf16>
    %32 = arith.addf %28, %31 : vector<8x256xbf16>
    %cst_19 = arith.constant 0.000000e+00 : bf16
    %33 = vector.broadcast %cst_19 : bf16 to vector<8x256xbf16>
    %34 = arith.cmpf oge, %32, %33 : vector<8x256xbf16>
    %cst_20 = arith.constant 2.001950e-01 : bf16
    %35 = vector.broadcast %cst_20 : bf16 to vector<8x256xbf16>
    %36 = arith.mulf %35, %32 : vector<8x256xbf16>
    %37 = arith.select %34, %32, %36 : vector<8x256xi1>, vector<8x256xbf16>
    %c0_21 = arith.constant 0 : index
    %c0_22 = arith.constant 0 : index
    %38 = vector.load %arg8[%c0_21, %c0_22] : memref<1x256xbf16, #tpu.memory_space<vmem>>, vector<1x256xbf16>
    %39 = arith.extf %38 : vector<1x256xbf16> to vector<1x256xf32>
    %40 = arith.extf %37 : vector<8x256xbf16> to vector<8x256xf32>
    %41 = vector.broadcast %39 : vector<1x256xf32> to vector<8x256xf32>
    %42 = arith.mulf %40, %41 : vector<8x256xf32>
    %cst_23 = arith.constant dense<0.000000e+00> : vector<8xf32>
    %43 = vector.multi_reduction <add>, %42, %cst_23 [1] : vector<8x256xf32> to vector<8xf32>
    %44 = vector.shape_cast %43 : vector<8xf32> to vector<8x1xf32>
    %c0_24 = arith.constant 0 : index
    %c0_25 = arith.constant 0 : index
    %45 = vector.load %arg9[%c0_24, %c0_25] : memref<1x1xf32, #tpu.memory_space<vmem>>, vector<1x1xf32>
    %46 = vector.broadcast %45 : vector<1x1xf32> to vector<8x1xf32>
    %47 = arith.addf %44, %46 : vector<8x1xf32>
    %cst_26 = arith.constant 0.000000e+00 : f32
    %48 = vector.broadcast %cst_26 : f32 to vector<8x1xf32>
    %49 = arith.subf %48, %47 : vector<8x1xf32>
    %50 = math.exp %49 : vector<8x1xf32>
    %cst_27 = arith.constant 1.000000e+00 : f32
    %51 = vector.broadcast %cst_27 : f32 to vector<8x1xf32>
    %52 = arith.addf %51, %50 : vector<8x1xf32>
    %cst_28 = arith.constant 1.000000e+00 : f32
    %53 = vector.broadcast %cst_28 : f32 to vector<8x1xf32>
    %54 = arith.divf %53, %52 : vector<8x1xf32>
    %c0_29 = arith.constant 0 : index
    %c0_30 = arith.constant 0 : index
    %55 = vector.load %arg10[%c0_29, %c0_30] : memref<8x1xf32, #tpu.memory_space<vmem>>, vector<8x1xf32>
    tpu.vector_store %arg10[%c0_29, %c0_30], %54 {strides = array<i32>} : memref<8x1xf32, #tpu.memory_space<vmem>>, vector<8x1xf32>,
    return
  }
  func.func @transform_0(%arg0: i32) -> (i32, i32) {
    %c0_i32 = arith.constant 0 : i32
    %c0_i32_0 = arith.constant 0 : i32
    return %arg0, %c0_i32 : i32, i32
  }
  func.func @transform_1(%arg0: i32) -> (i32, i32) {
    %c0_i32 = arith.constant 0 : i32
    %c0_i32_0 = arith.constant 0 : i32
    %c0_i32_1 = arith.constant 0 : i32
    return %c0_i32, %c0_i32_0 : i32, i32
  }
  func.func @transform_2(%arg0: i32) -> (i32, i32) {
    %c0_i32 = arith.constant 0 : i32
    %c0_i32_0 = arith.constant 0 : i32
    %c0_i32_1 = arith.constant 0 : i32
    return %c0_i32, %c0_i32_0 : i32, i32
  }
  func.func @transform_3(%arg0: i32) -> (i32, i32) {
    %c0_i32 = arith.constant 0 : i32
    %c0_i32_0 = arith.constant 0 : i32
    %c0_i32_1 = arith.constant 0 : i32
    return %c0_i32, %c0_i32_0 : i32, i32
  }
  func.func @transform_4(%arg0: i32) -> (i32, i32) {
    %c0_i32 = arith.constant 0 : i32
    %c0_i32_0 = arith.constant 0 : i32
    %c0_i32_1 = arith.constant 0 : i32
    return %c0_i32, %c0_i32_0 : i32, i32
  }
  func.func @transform_5(%arg0: i32) -> (i32, i32) {
    %c0_i32 = arith.constant 0 : i32
    %c0_i32_0 = arith.constant 0 : i32
    %c0_i32_1 = arith.constant 0 : i32
    return %c0_i32, %c0_i32_0 : i32, i32
  }
  func.func @transform_6(%arg0: i32) -> (i32, i32) {
    %c0_i32 = arith.constant 0 : i32
    %c0_i32_0 = arith.constant 0 : i32
    %c0_i32_1 = arith.constant 0 : i32
    return %c0_i32, %c0_i32_0 : i32, i32
  }
  func.func @transform_7(%arg0: i32) -> (i32, i32) {
    %c0_i32 = arith.constant 0 : i32
    %c0_i32_0 = arith.constant 0 : i32
    %c0_i32_1 = arith.constant 0 : i32
    return %c0_i32, %c0_i32_0 : i32, i32
  }
  func.func @transform_8(%arg0: i32) -> (i32, i32) {
    %c0_i32 = arith.constant 0 : i32
    %c0_i32_0 = arith.constant 0 : i32
    %c0_i32_1 = arith.constant 0 : i32
    return %c0_i32, %c0_i32_0 : i32, i32
  }
  func.func @transform_9(%arg0: i32) -> (i32, i32) {
    %c0_i32 = arith.constant 0 : i32
    %c0_i32_0 = arith.constant 0 : i32
    return %arg0, %c0_i32 : i32, i32
  }
}

module attributes {stable_mosaic.version = 11 : i64} {
  func.func @kernel(%arg0: i32, %arg1: memref<8x784xf32, #tpu.memory_space<vmem>>, %arg2: memref<784x1024xbf16, #tpu.memory_space<vmem>>, %arg3: memref<1x1024xf32, #tpu.memory_space<vmem>>, %arg4: memref<1024x512xbf16, #tpu.memory_space<vmem>>, %arg5: memref<1x512xf32, #tpu.memory_space<vmem>>, %arg6: memref<512x256xbf16, #tpu.memory_space<vmem>>, %arg7: memref<1x256xf32, #tpu.memory_space<vmem>>, %arg8: memref<1x256xbf16, #tpu.memory_space<vmem>>, %arg9: memref<1x1xf32, #tpu.memory_space<vmem>>, %arg10: memref<8x1xf32, #tpu.memory_space<vmem>>) attributes {dimension_semantics = [#tpu.dimension_semantics<parallel>], iteration_bounds = array<i64: 1>, scalar_prefetch = 0 : i64, scratch_operands = 0 : i64, tpu.core_type = #tpu.core_type<tc>, window_params = [{transform_indices = @transform_0, window_bounds = array<i64: 8, 784>}, {pipeline_mode = #tpu.pipeline_mode<synchronous>, transform_indices = @transform_1, window_bounds = array<i64: 784, 1024>}, {pipeline_mode = #tpu.pipeline_mode<synchronous>, transform_indices = @transform_2, window_bounds = array<i64: 1, 1024>}, {pipeline_mode = #tpu.pipeline_mode<synchronous>, transform_indices = @transform_3, window_bounds = array<i64: 1024, 512>}, {pipeline_mode = #tpu.pipeline_mode<synchronous>, transform_indices = @transform_4, window_bounds = array<i64: 1, 512>}, {pipeline_mode = #tpu.pipeline_mode<synchronous>, transform_indices = @transform_5, window_bounds = array<i64: 512, 256>}, {pipeline_mode = #tpu.pipeline_mode<synchronous>, transform_indices = @transform_6, window_bounds = array<i64: 1, 256>}, {pipeline_mode = #tpu.pipeline_mode<synchronous>, transform_indices = @transform_7, window_bounds = array<i64: 1, 256>}, {pipeline_mode = #tpu.pipeline_mode<synchronous>, transform_indices = @transform_8, window_bounds = array<i64: 1, 1>}, {transform_indices = @transform_9, window_bounds = array<i64: 8, 1>}]} {
    %c0 = arith.constant 0 : index
    %c0_0 = arith.constant 0 : index
    %0 = vector.load %arg1[%c0, %c0_0] : memref<8x784xf32, #tpu.memory_space<vmem>>, vector<8x784xf32>
    %1 = arith.truncf %0 : vector<8x784xf32> to vector<8x784xbf16>
    %c0_1 = arith.constant 0 : index
    %c0_2 = arith.constant 0 : index
    %2 = vector.load %arg2[%c0_1, %c0_2] : memref<784x1024xbf16, #tpu.memory_space<vmem>>, vector<784x1024xbf16>
    %cst = arith.constant dense<0.000000e+00> : vector<8x1024xf32>
    %3 = tpu.matmul %1, %2, %cst {dimension_numbers = #tpu.dot_dimension_numbers<[1], [0], [0], [1], [0, 0, 1, 1], [], []>} : vector<8x784xbf16>, vector<784x1024xbf16>, vector<8x1024xf32> -> vector<8x1024xf32>
    %4 = arith.truncf %3 : vector<8x1024xf32> to vector<8x1024xbf16>
    %c0_3 = arith.constant 0 : index
    %c0_4 = arith.constant 0 : index
    %5 = vector.load %arg3[%c0_3, %c0_4] : memref<1x1024xf32, #tpu.memory_space<vmem>>, vector<1x1024xf32>
    %6 = arith.truncf %5 : vector<1x1024xf32> to vector<1x1024xbf16>
    %7 = vector.broadcast %6 : vector<1x1024xbf16> to vector<8x1024xbf16>
    %8 = arith.addf %4, %7 : vector<8x1024xbf16>
    %cst_5 = arith.constant 0.000000e+00 : bf16
    %9 = vector.broadcast %cst_5 : bf16 to vector<8x1024xbf16>
    %10 = arith.cmpf oge, %8, %9 : vector<8x1024xbf16>
    %cst_6 = arith.constant 2.001950e-01 : bf16
    %11 = vector.broadcast %cst_6 : bf16 to vector<8x1024xbf16>
    %12 = arith.mulf %11, %8 : vector<8x1024xbf16>
    %13 = arith.select %10, %8, %12 : vector<8x1024xi1>, vector<8x1024xbf16>
    %c0_7 = arith.constant 0 : index
    %c0_8 = arith.constant 0 : index
    %14 = vector.load %arg4[%c0_7, %c0_8] : memref<1024x512xbf16, #tpu.memory_space<vmem>>, vector<1024x512xbf16>
    %cst_9 = arith.constant dense<0.000000e+00> : vector<8x512xf32>
    %15 = tpu.matmul %13, %14, %cst_9 {dimension_numbers = #tpu.dot_dimension_numbers<[1], [0], [0], [1], [0, 0, 1, 1], [], []>} : vector<8x1024xbf16>, vector<1024x512xbf16>, vector<8x512xf32> -> vector<8x512xf32>
    %16 = arith.truncf %15 : vector<8x512xf32> to vector<8x512xbf16>
    %c0_10 = arith.constant 0 : index
    %c0_11 = arith.constant 0 : index
    %17 = vector.load %arg5[%c0_10, %c0_11] : memref<1x512xf32, #tpu.memory_space<vmem>>, vector<1x512xf32>
    %18 = arith.truncf %17 : vector<1x512xf32> to vector<1x512xbf16>
    %19 = vector.broadcast %18 : vector<1x512xbf16> to vector<8x512xbf16>
    %20 = arith.addf %16, %19 : vector<8x512xbf16>
    %cst_12 = arith.constant 0.000000e+00 : bf16
    %21 = vector.broadcast %cst_12 : bf16 to vector<8x512xbf16>
    %22 = arith.cmpf oge, %20, %21 : vector<8x512xbf16>
    %cst_13 = arith.constant 2.001950e-01 : bf16
    %23 = vector.broadcast %cst_13 : bf16 to vector<8x512xbf16>
    %24 = arith.mulf %23, %20 : vector<8x512xbf16>
    %25 = arith.select %22, %20, %24 : vector<8x512xi1>, vector<8x512xbf16>
    %c0_14 = arith.constant 0 : index
    %c0_15 = arith.constant 0 : index
    %26 = vector.load %arg6[%c0_14, %c0_15] : memref<512x256xbf16, #tpu.memory_space<vmem>>, vector<512x256xbf16>
    %cst_16 = arith.constant dense<0.000000e+00> : vector<8x256xf32>
    %27 = tpu.matmul %25, %26, %cst_16 {dimension_numbers = #tpu.dot_dimension_numbers<[1], [0], [0], [1], [0, 0, 1, 1], [], []>} : vector<8x512xbf16>, vector<512x256xbf16>, vector<8x256xf32> -> vector<8x256xf32>
    %28 = arith.truncf %27 : vector<8x256xf32> to vector<8x256xbf16>
    %c0_17 = arith.constant 0 : index
    %c0_18 = arith.constant 0 : index
    %29 = vector.load %arg7[%c0_17, %c0_18] : memref<1x256xf32, #tpu.memory_space<vmem>>, vector<1x256xf32>
    %30 = arith.truncf %29 : vector<1x256xf32> to vector<1x256xbf16>
    %31 = vector.broadcast %30 : vector<1x256xbf16> to vector<8x256xbf16>
    %32 = arith.addf %28, %31 : vector<8x256xbf16>
    %cst_19 = arith.constant 0.000000e+00 : bf16
    %33 = vector.broadcast %cst_19 : bf16 to vector<8x256xbf16>
    %34 = arith.cmpf oge, %32, %33 : vector<8x256xbf16>
    %cst_20 = arith.constant 2.001950e-01 : bf16
    %35 = vector.broadcast %cst_20 : bf16 to vector<8x256xbf16>
    %36 = arith.mulf %35, %32 : vector<8x256xbf16>
    %37 = arith.select %34, %32, %36 : vector<8x256xi1>, vector<8x256xbf16>
    %c0_21 = arith.constant 0 : index
    %c0_22 = arith.constant 0 : index
    %38 = vector.load %arg8[%c0_21, %c0_22] : memref<1x256xbf16, #tpu.memory_space<vmem>>, vector<1x256xbf16>
    %39 = arith.extf %38 : vector<1x256xbf16> to vector<1x256xf32>
    %40 = arith.extf %37 : vector<8x256xbf16> to vector<8x256xf32>
    %41 = vector.broadcast %39 : vector<1x256xf32> to vector<8x256xf32>
    %42 = arith.mulf %40, %41 : vector<8x256xf32>
    %cst_23 = arith.constant dense<0.000000e+00> : vector<8xf32>
    %43 = vector.multi_reduction <add>, %42, %cst_23 [1] : vector<8x256xf32> to vector<8xf32>
    %44 = vector.shape_cast %43 : vector<8xf32> to vector<8x1xf32>
    %c0_24 = arith.constant 0 : index
    %c0_25 = arith.constant 0 : index
    %45 = vector.load %arg9[%c0_24, %c0_25] : memref<1x1xf32, #tpu.memory_space<vmem>>, vector<1x1xf32>
    %46 = vector.broadcast %45 : vector<1x1xf32> to vector<8x1xf32>
    %47 = arith.addf %44, %46 : vector<8x1xf32>
    %cst_26 = arith.constant 0.000000e+00 : f32
    %48 = vector.broadcast %cst_26 : f32 to vector<8x1xf32>
    %49 = arith.subf %48, %47 : vector<8x1xf32>
    %50 = math.exp %49 : vector<8x1xf32>
    %cst_27 = arith.constant 1.000000e+00 : f32
    %51 = vector.broadcast %cst_27 : f32 to vector<8x1xf32>
    %52 = arith.addf %51, %50 : vector<8x1xf32>
    %cst_28 = arith.constant 1.000000e+00 : f32
    %53 = vector.broadcast %cst_28 : f32 to vector<8x1xf32>
    %54 = arith.divf %53, %52 : vector<8x1xf32>
    %c0_29 = arith.constant 0 : index
    %c0_30 = arith.constant 0 : index
    %55 = vector.load %arg10[%c0_29, %c0_30] : memref<8x1xf32, #tpu.memory_space<vmem>>, vector<8x1xf32>
    tpu.vector_store %arg10[%c0_29, %c0_30], %54 {strides = array<i32>} : memref<8x1xf32, #tpu.memory_space<vmem>>, vector<8x1xf32>,
    return
  }
  func.func @transform_0(%arg0: i32) -> (i32, i32) {
    %c0_i32 = arith.constant 0 : i32
    %c0_i32_0 = arith.constant 0 : i32
    return %arg0, %c0_i32 : i32, i32
  }
  func.func @transform_1(%arg0: i32) -> (i32, i32) {
    %c0_i32 = arith.constant 0 : i32
    %c0_i32_0 = arith.constant 0 : i32
    %c0_i32_1 = arith.constant 0 : i32
    return %c0_i32, %c0_i32_0 : i32, i32
  }
  func.func @transform_2(%arg0: i32) -> (i32, i32) {
    %c0_i32 = arith.constant 0 : i32
    %c0_i32_0 = arith.constant 0 : i32
    %c0_i32_1 = arith.constant 0 : i32
    return %c0_i32, %c0_i32_0 : i32, i32
  }
  func.func @transform_3(%arg0: i32) -> (i32, i32) {
    %c0_i32 = arith.constant 0 : i32
    %c0_i32_0 = arith.constant 0 : i32
    %c0_i32_1 = arith.constant 0 : i32
    return %c0_i32, %c0_i32_0 : i32, i32
  }
  func.func @transform_4(%arg0: i32) -> (i32, i32) {
    %c0_i32 = arith.constant 0 : i32
    %c0_i32_0 = arith.constant 0 : i32
    %c0_i32_1 = arith.constant 0 : i32
    return %c0_i32, %c0_i32_0 : i32, i32
  }
  func.func @transform_5(%arg0: i32) -> (i32, i32) {
    %c0_i32 = arith.constant 0 : i32
    %c0_i32_0 = arith.constant 0 : i32
    %c0_i32_1 = arith.constant 0 : i32
    return %c0_i32, %c0_i32_0 : i32, i32
  }
  func.func @transform_6(%arg0: i32) -> (i32, i32) {
    %c0_i32 = arith.constant 0 : i32
    %c0_i32_0 = arith.constant 0 : i32
    %c0_i32_1 = arith.constant 0 : i32
    return %c0_i32, %c0_i32_0 : i32, i32
  }
  func.func @transform_7(%arg0: i32) -> (i32, i32) {
    %c0_i32 = arith.constant 0 : i32
    %c0_i32_0 = arith.constant 0 : i32
    %c0_i32_1 = arith.constant 0 : i32
    return %c0_i32, %c0_i32_0 : i32, i32
  }
  func.func @transform_8(%arg0: i32) -> (i32, i32) {
    %c0_i32 = arith.constant 0 : i32
    %c0_i32_0 = arith.constant 0 : i32
    %c0_i32_1 = arith.constant 0 : i32
    return %c0_i32, %c0_i32_0 : i32, i32
  }
  func.func @transform_9(%arg0: i32) -> (i32, i32) {
    %c0_i32 = arith.constant 0 : i32
    %c0_i32_0 = arith.constant 0 : i32
    return %arg0, %c0_i32 : i32, i32
  }
}

</mosaic_0001>

<bundles_post_ra>
// kernel: tpu_custom_call.1
= control target key start
LH: loop header
LB: loop body
LE: loop exit
PB: predicated region body
PF: predicated region fallthrough
CT: control target
= control target key end

     0   :  { %s7489_s0 = inlined_call_operand.hbm [shape: f32[8,784], index: 0, kind: input, shape index: {}]   ;;  %s7490_s1 = inlined_call_operand.hbm [shape: bf16[784,1024], index: 1, kind: input, shape index: {}]   ;;  %s7491_s2 = inlined_call_operand.hbm [shape: f32[1,1024], index: 2, kind: input, shape index: {}]   ;;  %s7492_s3 = inlined_call_operand.hbm [shape: bf16[1024,512], index: 3, kind: input, shape index: {}]   ;;  %s7493_s4 = inlined_call_operand.hbm [shape: f32[1,512], index: 4, kind: input, shape index: {}]   ;;  %s7494_s5 = inlined_call_operand.hbm [shape: bf16[512,256], index: 5, kind: input, shape index: {}]   ;;  %s7495_s6 = inlined_call_operand.hbm [shape: f32[1,256], index: 6, kind: input, shape index: {}]   ;;  %s7496_s7 = inlined_call_operand.hbm [shape: bf16[1,256], index: 7, kind: input, shape index: {}]   ;;  %s7497_s8 = inlined_call_operand.<no memory space> [shape: f32[1,1], index: 8, kind: input, shape index: {}]   ;;  %s7498_s9 = inlined_call_operand.vmem [shape: f32[8,1], index: 9, kind: output, shape index: {}]  }
   0x1   :  { %v14_v0 = vstv %s7497_s8 }
   0x2   :  { %15 = vst [vmem:[#allocation2] sm:$0x1] %v14_v0 }
   0x3   :  { %16 = vsyncpa [#allocation4], 0 }
   0x4   :  { %17 = vsyncpa [#allocation6], 0 }
   0x5   :  { %18 = vsyncpa [#allocation9], 0 }
   0x6   :  { %19 = vsyncpa [#allocation12], 0 }
   0x7   :  { %20 = vsyncpa [#allocation15], 0  ;;  %s7188_s11 = smov [#allocation5]  }
   0x8   :  { %s36_s12 = sshll.u32 %s7188_s11, 4  ;;  %s37_s12 = int_to_ptr.vmem [resolvable:$true] %s36_s12 }
   0x9   :  { %s7026_s13 = scalar_lea.vmem %s37_s12, 50176  ;;  %p7031_p1 = scmp.lt.s32.totalorder %s37_s12, %s37_s12 }
   0xa   :  { %p7027_p0 = scmp.ne.s32.totalorder %s37_s12, %s7026_s13  ;;  %p7032_p2 = scmp.lt.s32.totalorder %s7026_s13, %s7026_s13 }
   0xc   :  { %p7033_p3 = por %p7032_p2, %p7031_p1 }
   0xe   :  { %p7034_p4 = pnand %p7033_p3, %p7027_p0 }
  0x10   :  { %7037 = shalt.err (!%p7034_p4)
}
  0x11   :  { %s7189_s14 = smov 512   ;;  %s7190_s15 = smov 32  }
  0x12   :  { %42 = dma.hbm_to_vmem [thread:$0]  %s7490_s1, 50176, %s37_s12, [#allocation6], %s7189_s14, %s7189_s14, %s7190_s15  }
  0x13   :  { %s7191_s17 = smov [#allocation8]  }
  0x14   :  { %s58_s18 = sshll.u32 %s7191_s17, 4  ;;  %s59_s18 = int_to_ptr.vmem [resolvable:$true] %s58_s18 }
  0x15   :  { %s7046_s19 = scalar_lea.vmem %s59_s18, 32768  ;;  %p7051_p6 = scmp.lt.s32.totalorder %s59_s18, %s59_s18 }
  0x16   :  { %p7047_p5 = scmp.ne.s32.totalorder %s59_s18, %s7046_s19  ;;  %p7052_p7 = scmp.lt.s32.totalorder %s7046_s19, %s7046_s19 }
  0x18   :  { %p7053_p8 = por %p7052_p7, %p7051_p6 }
  0x1a   :  { %p7054_p9 = pnand %p7053_p8, %p7047_p5 }
  0x1c   :  { %7057 = shalt.err (!%p7054_p9)
}
  0x1d   :  { %s7192_s20 = smov 256   ;;  %s7193_s21 = smov 16  }
  0x1e   :  { %64 = dma.hbm_to_vmem [thread:$0]  %s7492_s3, 32768, %s59_s18, [#allocation9], %s7192_s20, %s7192_s20, %s7193_s21  }
  0x1f   :  { %s7194_s24 = smov [#allocation11]  }
  0x20   :  { %s80_s25 = sshll.u32 %s7194_s24, 4  ;;  %s81_s25 = int_to_ptr.vmem [resolvable:$true] %s80_s25 }
  0x21   :  { %s7066_s1 = scalar_lea.vmem %s81_s25, 8192  ;;  %p7071_p11 = scmp.lt.s32.totalorder %s81_s25, %s81_s25 }
  0x22   :  { %p7067_p10 = scmp.ne.s32.totalorder %s81_s25, %s7066_s1  ;;  %p7072_p12 = scmp.lt.s32.totalorder %s7066_s1, %s7066_s1 }
  0x24   :  { %p7073_p13 = por %p7072_p12, %p7071_p11 }
  0x26   :  { %p7074_p0 = pnand %p7073_p13, %p7067_p10 }
  0x28   :  { %7077 = shalt.err (!%p7074_p0)
}
  0x29   :  { %s7195_s26 = smov 128   ;;  %s7196_s27 = smov 8  }
  0x2a   :  { %86 = dma.hbm_to_vmem [thread:$0]  %s7494_s5, 8192, %s81_s25, [#allocation12], %s7195_s26, %s7195_s26, %s7196_s27  }
  0x2b   :  { %s7197_s30 = smov [#allocation3]   ;;  %s7198_s3 = smov [#allocation7]  }
  0x2c   :  { %s27_s10 = sshll.u32 %s7197_s30, 4  ;;  %s49_s11 = sshll.u32 %s7198_s3, 4  ;;  %s28_s10 = int_to_ptr.vmem [resolvable:$true] %s27_s10  ;;  %s50_s11 = int_to_ptr.vmem [resolvable:$true] %s49_s11 }
  0x2d   :  { %s7086_s12 = scalar_lea.vmem %s28_s10, 896  ;;  %p7091_p2 = scmp.lt.s32.totalorder %s28_s10, %s28_s10 }
  0x2e   :  { %p7087_p1 = scmp.ne.s32.totalorder %s28_s10, %s7086_s12  ;;  %p7092_p3 = scmp.lt.s32.totalorder %s7086_s12, %s7086_s12 }
  0x30   :  { %p7093_p4 = por %p7092_p3, %p7091_p2 }
  0x32   :  { %p7094_p5 = pnand %p7093_p4, %p7087_p1 }
  0x34   :  { %7097 = shalt.err (!%p7094_p5)
}
  0x35   :  { %30 = dma.hbm_to_vmem [thread:$0]  %s7489_s0, 896, %s28_s10, [#allocation4]  }
  0x36   :  { %s7106_s15 = scalar_lea.vmem %s50_s11, 128  ;;  %p7111_p7 = scmp.lt.s32.totalorder %s50_s11, %s50_s11 }
  0x37   :  { %p7107_p6 = scmp.ne.s32.totalorder %s50_s11, %s7106_s15  ;;  %p7112_p8 = scmp.lt.s32.totalorder %s7106_s15, %s7106_s15 }
  0x39   :  { %p7113_p9 = por %p7112_p8, %p7111_p7 }
  0x3b   :  { %p7114_p10 = pnand %p7113_p9, %p7107_p6 }
  0x3d   :  { %7117 = shalt.err (!%p7114_p10)
}
  0x3e   :  { %52 = dma.hbm_to_vmem [thread:$0]  %s7491_s2, 128, %s50_s11, [#allocation6]  }
  0x3f   :  { %s7199_s8 = smov [#allocation10]   ;;  %s7200_s18 = smov [#allocation13]  }
  0x40   :  { %s71_s17 = sshll.u32 %s7199_s8, 4  ;;  %s93_s19 = sshll.u32 %s7200_s18, 4  ;;  %s72_s17 = int_to_ptr.vmem [resolvable:$true] %s71_s17  ;;  %s94_s19 = int_to_ptr.vmem [resolvable:$true] %s93_s19 }
  0x41   :  { %s7126_s20 = scalar_lea.vmem %s72_s17, 64  ;;  %p7131_p12 = scmp.lt.s32.totalorder %s72_s17, %s72_s17 }
  0x42   :  { %p7127_p11 = scmp.ne.s32.totalorder %s72_s17, %s7126_s20  ;;  %p7132_p13 = scmp.lt.s32.totalorder %s7126_s20, %s7126_s20 }
  0x44   :  { %p7133_p0 = por %p7132_p13, %p7131_p12 }
  0x46   :  { %p7134_p1 = pnand %p7133_p0, %p7127_p11 }
  0x48   :  { %7137 = shalt.err (!%p7134_p1)
}
  0x49   :  { %74 = dma.hbm_to_vmem [thread:$0]  %s7493_s4, 64, %s72_s17, [#allocation9]  }
  0x4a   :  { %s7146_s22 = scalar_lea.vmem %s94_s19, 32  ;;  %p7151_p3 = scmp.lt.s32.totalorder %s94_s19, %s94_s19 }
  0x4b   :  { %p7147_p2 = scmp.ne.s32.totalorder %s94_s19, %s7146_s22  ;;  %p7152_p4 = scmp.lt.s32.totalorder %s7146_s22, %s7146_s22 }
  0x4d   :  { %p7153_p5 = por %p7152_p4, %p7151_p3 }
  0x4f   :  { %p7154_p6 = pnand %p7153_p5, %p7147_p2 }
  0x51   :  { %7157 = shalt.err (!%p7154_p6)
}
  0x52   :  { %96 = dma.hbm_to_vmem [thread:$0]  %s7495_s6, 32, %s94_s19, [#allocation12]  }
  0x53   :  { %s7201_s24 = smov [#allocation14]  }
  0x54   :  { %s103_s25 = sshll.u32 %s7201_s24, 4  ;;  %s104_s25 = int_to_ptr.vmem [resolvable:$true] %s103_s25 }
  0x55   :  { %s7166_s1 = scalar_lea.vmem %s104_s25, 32  ;;  %p7171_p8 = scmp.lt.s32.totalorder %s104_s25, %s104_s25 }
  0x56   :  { %p7167_p7 = scmp.ne.s32.totalorder %s104_s25, %s7166_s1  ;;  %p7172_p9 = scmp.lt.s32.totalorder %s7166_s1, %s7166_s1 }
  0x58   :  { %p7173_p10 = por %p7172_p9, %p7171_p8 }
  0x5a   :  { %p7174_p11 = pnand %p7173_p10, %p7167_p7 }
  0x5c   :  { %7177 = shalt.err (!%p7174_p11)
}
  0x5d   :  { %106 = dma.hbm_to_vmem [thread:$0]  %s7496_s7, 32, %s104_s25, [#allocation15]  }
  0x5e   :  { %7178 = dma.done.wait [#allocation4], 896  }
  0x5f   :  { %7179 = vsyncadd [#allocation4], 4294966400 }
  0x60   :  { %7180 = dma.done.wait [#allocation6], 50304  }
  0x61   :  { %7181 = vsyncadd [#allocation6], 4294916992 }
  0x62   :  { %7182 = dma.done.wait [#allocation9], 32832  }
  0x63   :  { %7183 = vsyncadd [#allocation9], 4294934464 }
  0x64   :  { %7184 = dma.done.wait [#allocation12], 8224  }
  0x65   :  { %7185 = vsyncadd [#allocation12], 4294959072 }
  0x66   :  { %7186 = dma.done.wait [#allocation15], 32  }
  0x67   :  { %7187 = vsyncadd [#allocation15], 4294967264  ;;  %v205_v1 = vld [vmem:[#allocation5 + $0x1c0] sm:$0xff]  ;;  %v136_v54 = vld [vmem:[#allocation3 + $0x8] sm:$0xff]  ;;  %vm2501_vm0 = vcmask 130048   ;;  %vm5791_vm15 = vcmask 7168  }
  0x68   :  { %v209_v2 = vld [vmem:[#allocation5 + $0x1e0] sm:$0xff]  ;;  %v7280_v59 = vpack.c.bf16 %v136_v54, %v136_v54 }
  0x69   :  { %v333_v3 = vld [vmem:[#allocation5 + $0x5c0] sm:$0xff]  ;;  %v5859_v4 = vcombine.high %v205_v1, %v209_v2  ;;  %v5858_v6 = vcombine.low %v205_v1, %v209_v2 }
  0x6a   :  { %v337_v5 = vld [vmem:[#allocation5 + $0x5e0] sm:$0xff]  ;;  %2537 = vmatprep.mubr.bf16.mxu0 %v7280_v59 }
  0x6b   :  { %v197_v7 = vld [vmem:[#allocation5 + $0x180] sm:$0xff]  ;;  %v5987_v9 = vcombine.high %v333_v3, %v337_v5  ;;  %v5986_v10 = vcombine.low %v333_v3, %v337_v5  ;;  %2505 = vmatprep.subr.bf16.mxu0 %v5859_v4 }
  0x6c   :  { %v201_v8 = vld [vmem:[#allocation5 + $0x1a0] sm:$0xff]  ;;  %2506 = vmatpush1.bf16.msra.mxu0 %v5858_v6 }
  0x6d   :  { %v5851_v11 = vcombine.high %v197_v7, %v201_v8  ;;  %v325_v12 = vld [vmem:[#allocation5 + $0x580] sm:$0xff]  ;;  %2546 = vmatprep.subr.bf16.mxu1 %v5987_v9  ;;  %v5850_v19 = vcombine.low %v197_v7, %v201_v8 }
  0x6e   :  { %v329_v13 = vld [vmem:[#allocation5 + $0x5a0] sm:$0xff]  ;;  %2547 = vmatpush1.bf16.msra.mxu1 %v5986_v10 }
  0x6f   :  { %v189_v14 = vld [vmem:[#allocation5 + $0x140] sm:$0xff]  ;;  %v5979_v15 = vcombine.high %v325_v12, %v329_v13  ;;  %2507 = vmatprep.subr.bf16.mxu0 %v5851_v11  ;;  %v5978_v20 = vcombine.low %v325_v12, %v329_v13 }
  0x70   :  { %v193_v16 = vld [vmem:[#allocation5 + $0x160] sm:$0xff]  ;;  %2508 = vmatpush1.bf16.msra.mxu0 %v5850_v19 }
  0x71   :  { %v317_v17 = vld [vmem:[#allocation5 + $0x540] sm:$0xff]  ;;  %v5843_v21 = vcombine.high %v189_v14, %v193_v16  ;;  %2548 = vmatprep.subr.bf16.mxu1 %v5979_v15  ;;  %v5842_v27 = vcombine.low %v189_v14, %v193_v16 }
  0x72   :  { %v321_v18 = vld [vmem:[#allocation5 + $0x560] sm:$0xff]  ;;  %2549 = vmatpush1.bf16.msra.mxu1 %v5978_v20 }
  0x73   :  { %v5971_v22 = vcombine.high %v317_v17, %v321_v18  ;;  %v181_v23 = vld [vmem:[#allocation5 + $0x100] sm:$0xff]  ;;  %2509 = vmatprep.subr.bf16.mxu0 %v5843_v21  ;;  %v5970_v28 = vcombine.low %v317_v17, %v321_v18 }
  0x74   :  { %v185_v24 = vld [vmem:[#allocation5 + $0x120] sm:$0xff]  ;;  %2510 = vmatpush1.bf16.msra.mxu0 %v5842_v27 }
  0x75   :  { %v309_v25 = vld [vmem:[#allocation5 + $0x500] sm:$0xff]  ;;  %v5835_v29 = vcombine.high %v181_v23, %v185_v24  ;;  %2550 = vmatprep.subr.bf16.mxu1 %v5971_v22  ;;  %v5834_v35 = vcombine.low %v181_v23, %v185_v24 }
  0x76   :  { %v313_v26 = vld [vmem:[#allocation5 + $0x520] sm:$0xff]  ;;  %2551 = vmatpush1.bf16.msra.mxu1 %v5970_v28 }
  0x77   :  { %v5963_v30 = vcombine.high %v309_v25, %v313_v26  ;;  %v173_v31 = vld [vmem:[#allocation5 + $0xc0] sm:$0xff]  ;;  %2511 = vmatprep.subr.bf16.mxu0 %v5835_v29  ;;  %v5962_v36 = vcombine.low %v309_v25, %v313_v26 }
  0x78   :  { %v177_v32 = vld [vmem:[#allocation5 + $0xe0] sm:$0xff]  ;;  %2512 = vmatpush1.bf16.msra.mxu0 %v5834_v35 }
  0x79   :  { %v301_v33 = vld [vmem:[#allocation5 + $0x4c0] sm:$0xff]  ;;  %v5827_v37 = vcombine.high %v173_v31, %v177_v32  ;;  %2552 = vmatprep.subr.bf16.mxu1 %v5963_v30  ;;  %v5826_v43 = vcombine.low %v173_v31, %v177_v32 }
  0x7a   :  { %v305_v34 = vld [vmem:[#allocation5 + $0x4e0] sm:$0xff]  ;;  %2553 = vmatpush1.bf16.msra.mxu1 %v5962_v36 }
  0x7b   :  { %v5955_v38 = vcombine.high %v301_v33, %v305_v34  ;;  %v165_v39 = vld [vmem:[#allocation5 + $0x80] sm:$0xff]  ;;  %2513 = vmatprep.subr.bf16.mxu0 %v5827_v37  ;;  %v5954_v44 = vcombine.low %v301_v33, %v305_v34 }
  0x7c   :  { %v169_v40 = vld [vmem:[#allocation5 + $0xa0] sm:$0xff]  ;;  %2514 = vmatpush1.bf16.msra.mxu0 %v5826_v43 }
  0x7d   :  { %v293_v41 = vld [vmem:[#allocation5 + $0x480] sm:$0xff]  ;;  %v5819_v45 = vcombine.high %v165_v39, %v169_v40  ;;  %2554 = vmatprep.subr.bf16.mxu1 %v5955_v38  ;;  %v5818_v51 = vcombine.low %v165_v39, %v169_v40 }
  0x7e   :  { %v297_v42 = vld [vmem:[#allocation5 + $0x4a0] sm:$0xff]  ;;  %2555 = vmatpush1.bf16.msra.mxu1 %v5954_v44 }
  0x7f   :  { %v5947_v46 = vcombine.high %v293_v41, %v297_v42  ;;  %v157_v47 = vld [vmem:[#allocation5 + $0x40] sm:$0xff]  ;;  %2515 = vmatprep.subr.bf16.mxu0 %v5819_v45  ;;  %v5946_v52 = vcombine.low %v293_v41, %v297_v42 }
  0x80   :  { %v161_v48 = vld [vmem:[#allocation5 + $0x60] sm:$0xff]  ;;  %2516 = vmatpush1.bf16.msra.mxu0 %v5818_v51 }
  0x81   :  { %v285_v49 = vld [vmem:[#allocation5 + $0x440] sm:$0xff]  ;;  %v5811_v53 = vcombine.high %v157_v47, %v161_v48  ;;  %2556 = vmatprep.subr.bf16.mxu1 %v5947_v46  ;;  %v5810_v63 = vcombine.low %v157_v47, %v161_v48 }
  0x82   :  { %v289_v50 = vld [vmem:[#allocation5 + $0x460] sm:$0xff]  ;;  %2557 = vmatpush1.bf16.msra.mxu1 %v5946_v52 }
  0x83   :  { %v138_v55 = vld [vmem:[#allocation3 + $0x18] sm:$0xff]  ;;  %v5939_v56 = vcombine.high %v285_v49, %v289_v50  ;;  %2517 = vmatprep.subr.bf16.mxu0 %v5811_v53  ;;  %v5938_v0 = vcombine.low %v285_v49, %v289_v50 }
  0x84   :  { %v149_v57 = vld [vmem:[#allocation5] sm:$0xff]  ;;  %v7282_v60 = vpack.c.bf16 %v138_v55, %v138_v55  ;;  %2518 = vmatpush1.bf16.msra.mxu0 %v5810_v63 }
  0x85   :  { %v153_v58 = vld [vmem:[#allocation5 + $0x20] sm:$0xff]  ;;  %2558 = vmatprep.subr.bf16.mxu1 %v5939_v56 }
  0x86   :  { %v277_v61 = vld [vmem:[#allocation5 + $0x400] sm:$0xff]  ;;  %v5803_v1 = vcombine.high %v149_v57, %v153_v58  ;;  %2578 = vmatprep.mubr.bf16.mxu1 %v7282_v60  ;;  %v5802_v7 = vcombine.low %v149_v57, %v153_v58  ;;  %2559 = vmatpush1.bf16.msra.mxu1 %v5938_v0 }
  0x87   :  { %v281_v62 = vld [vmem:[#allocation5 + $0x420] sm:$0xff] }
  0x88   :  { %v5931_v2 = vcombine.high %v277_v61, %v281_v62  ;;  %v269_v3 = vld [vmem:[#allocation5 + $0x3c0] sm:$0xff]  ;;  %2519 = vmatprep.subr.bf16.mxu0 %v5803_v1  ;;  %v5930_v8 = vcombine.low %v277_v61, %v281_v62 }
  0x89   :  { %v273_v4 = vld [vmem:[#allocation5 + $0x3e0] sm:$0xff]  ;;  %2520 = vmatpush1.bf16.msra.mxu0 %v5802_v7 }
  0x8a   :  { %v397_v5 = vld [vmem:[#allocation5 + $0x7c0] sm:$0xff]  ;;  %v5923_v9 = vcombine.high %v269_v3, %v273_v4  ;;  %2560 = vmatprep.subr.bf16.mxu1 %v5931_v2  ;;  %v5922_v15 = vcombine.low %v269_v3, %v273_v4 }
  0x8b   :  { %v401_v6 = vld [vmem:[#allocation5 + $0x7e0] sm:$0xff]  ;;  %2561 = vmatpush1.bf16.msra.mxu1 %v5930_v8 }
  0x8c   :  { %v6051_v10 = vcombine.high %v397_v5, %v401_v6  ;;  %v261_v11 = vld [vmem:[#allocation5 + $0x380] sm:$0xff]  ;;  %2521 = vmatprep.subr.bf16.mxu0 %v5923_v9  ;;  %v6050_v16 = vcombine.low %v397_v5, %v401_v6 }
  0x8d   :  { %v265_v12 = vld [vmem:[#allocation5 + $0x3a0] sm:$0xff]  ;;  %2522 = vmatpush2.bf16.msra.mxu0 %v5922_v15 }
  0x8e   :  { %v389_v13 = vld [vmem:[#allocation5 + $0x780] sm:$0xff]  ;;  %v5915_v17 = vcombine.high %v261_v11, %v265_v12  ;;  %2562 = vmatprep.subr.bf16.mxu1 %v6051_v10  ;;  %v5914_v23 = vcombine.low %v261_v11, %v265_v12  ;;  %v135_v10 = vld [vmem:[#allocation3] sm:$0xff]  ;;  %v137_v12 = vld [vmem:[#allocation3 + $0x10] sm:$0xff] }
  0x8f   :  { %v393_v14 = vld [vmem:[#allocation5 + $0x7a0] sm:$0xff]  ;;  %2563 = vmatpush2.bf16.msra.mxu1 %v6050_v16 }
  0x90   :  { %v6043_v18 = vcombine.high %v389_v13, %v393_v14  ;;  %v253_v19 = vld [vmem:[#allocation5 + $0x340] sm:$0xff]  ;;  %2523 = vmatprep.subr.bf16.mxu0 %v5915_v17  ;;  %v6042_v24 = vcombine.low %v389_v13, %v393_v14  ;;  %v7286_v17 = vpack.c.bf16 %v135_v10, %v135_v10 }
  0x91   :  { %v257_v20 = vld [vmem:[#allocation5 + $0x360] sm:$0xff]  ;;  %2524 = vmatpush2.bf16.msra.mxu0 %v5914_v23 }
  0x92   :  { %v381_v21 = vld [vmem:[#allocation5 + $0x740] sm:$0xff]  ;;  %v5907_v25 = vcombine.high %v253_v19, %v257_v20  ;;  %2564 = vmatprep.subr.bf16.mxu1 %v6043_v18  ;;  %v5906_v31 = vcombine.low %v253_v19, %v257_v20  ;;  %v206_v18 = vld [vmem:[#allocation5 + $0x1c8] sm:$0xff]  ;;  %v7288_v20 = vpack.c.bf16 %v137_v12, %v137_v12 }
  0x93   :  { %v385_v22 = vld [vmem:[#allocation5 + $0x760] sm:$0xff]  ;;  %2565 = vmatpush2.bf16.msra.mxu1 %v6042_v24  ;;  %v210_v19 = vld [vmem:[#allocation5 + $0x1e8] sm:$0xff] }
  0x94   :  { %v6035_v26 = vcombine.high %v381_v21, %v385_v22  ;;  %v245_v27 = vld [vmem:[#allocation5 + $0x300] sm:$0xff]  ;;  %2525 = vmatprep.subr.bf16.mxu0 %v5907_v25  ;;  %v6034_v32 = vcombine.low %v381_v21, %v385_v22  ;;  %v140_v22 = vld [vmem:[#allocation3 + $0x28] sm:$0xff]  ;;  %v162_v12 = vld [vmem:[#allocation5 + $0x68] sm:$0xff] }
  0x95   :  { %v249_v28 = vld [vmem:[#allocation5 + $0x320] sm:$0xff]  ;;  %2526 = vmatpush2.bf16.msra.mxu0 %v5906_v31 }
  0x96   :  { %v373_v29 = vld [vmem:[#allocation5 + $0x700] sm:$0xff]  ;;  %v5899_v33 = vcombine.high %v245_v27, %v249_v28  ;;  %2566 = vmatprep.subr.bf16.mxu1 %v6035_v26  ;;  %v5898_v39 = vcombine.low %v245_v27, %v249_v28  ;;  %v5861_v26 = vcombine.high %v206_v18, %v210_v19  ;;  %v141_v28 = vld [vmem:[#allocation3 + $0x30] sm:$0xff] }
  0x97   :  { %v377_v30 = vld [vmem:[#allocation5 + $0x720] sm:$0xff]  ;;  %2567 = vmatpush2.bf16.msra.mxu1 %v6034_v32  ;;  %v198_v32 = vld [vmem:[#allocation5 + $0x188] sm:$0xff] }
  0x98   :  { %v6027_v34 = vcombine.high %v373_v29, %v377_v30  ;;  %v237_v35 = vld [vmem:[#allocation5 + $0x2c0] sm:$0xff]  ;;  %2527 = vmatprep.subr.bf16.mxu0 %v5899_v33  ;;  %v6026_v40 = vcombine.low %v373_v29, %v377_v30  ;;  %v7291_v29 = vpack.c.bf16 %v140_v22, %v140_v22  ;;  %v202_v33 = vld [vmem:[#allocation5 + $0x1a8] sm:$0xff] }
  0x99   :  { %v241_v36 = vld [vmem:[#allocation5 + $0x2e0] sm:$0xff]  ;;  %2528 = vmatpush2.bf16.msra.mxu0 %v5898_v39  ;;  %v5860_v39 = vcombine.low %v206_v18, %v210_v19  ;;  %v154_v22 = vld [vmem:[#allocation5 + $0x28] sm:$0xff] }
  0x9a   :  { %v365_v37 = vld [vmem:[#allocation5 + $0x6c0] sm:$0xff]  ;;  %v5891_v41 = vcombine.high %v237_v35, %v241_v36  ;;  %2568 = vmatprep.subr.bf16.mxu1 %v6027_v34  ;;  %v5890_v47 = vcombine.low %v237_v35, %v241_v36  ;;  %v7202_v35 = vmov 0  }
  0x9b   :  { %v369_v38 = vld [vmem:[#allocation5 + $0x6e0] sm:$0xff]  ;;  %2569 = vmatpush2.bf16.msra.mxu1 %v6026_v40 }
  0x9c   :  { %v6019_v42 = vcombine.high %v365_v37, %v369_v38  ;;  %v229_v43 = vld [vmem:[#allocation5 + $0x280] sm:$0xff]  ;;  %2529 = vmatprep.subr.bf16.mxu0 %v5891_v41  ;;  %v6018_v48 = vcombine.low %v365_v37, %v369_v38  ;;  %v7296_v38 = vpack.c.bf16 %v141_v28, %v141_v28  ;;  %v190_v41 = vld [vmem:[#allocation5 + $0x148] sm:$0xff] }
  0x9d   :  { %v233_v44 = vld [vmem:[#allocation5 + $0x2a0] sm:$0xff]  ;;  %2530 = vmatpush2.bf16.msra.mxu0 %v5890_v47  ;;  %v5852_v47 = vcombine.low %v198_v32, %v202_v33 }
  0x9e   :  { %v357_v45 = vld [vmem:[#allocation5 + $0x680] sm:$0xff]  ;;  %v5883_v49 = vcombine.high %v229_v43, %v233_v44  ;;  %2570 = vmatprep.subr.bf16.mxu1 %v6019_v42  ;;  %v5882_v55 = vcombine.low %v229_v43, %v233_v44  ;;  %v194_v42 = vld [vmem:[#allocation5 + $0x168] sm:$0xff]  ;;  %v5853_v44 = vcombine.high %v198_v32, %v202_v33 }
  0x9f   :  { %v361_v46 = vld [vmem:[#allocation5 + $0x6a0] sm:$0xff]  ;;  %2571 = vmatpush2.bf16.msra.mxu1 %v6018_v48 }
  0xa0   :  { %v6011_v50 = vcombine.high %v357_v45, %v361_v46  ;;  %v221_v51 = vld [vmem:[#allocation5 + $0x240] sm:$0xff]  ;;  %2531 = vmatprep.subr.bf16.mxu0 %v5883_v49  ;;  %v6010_v56 = vcombine.low %v357_v45, %v361_v46  ;;  %v182_v49 = vld [vmem:[#allocation5 + $0x108] sm:$0xff] }
  0xa1   :  { %v225_v52 = vld [vmem:[#allocation5 + $0x260] sm:$0xff]  ;;  %2532 = vmatpush2.bf16.msra.mxu0 %v5882_v55  ;;  %v5844_v55 = vcombine.low %v190_v41, %v194_v42 }
  0xa2   :  { %v349_v53 = vld [vmem:[#allocation5 + $0x640] sm:$0xff]  ;;  %v5875_v57 = vcombine.high %v221_v51, %v225_v52  ;;  %2572 = vmatprep.subr.bf16.mxu1 %v6011_v50  ;;  %v5874_v1 = vcombine.low %v221_v51, %v225_v52  ;;  %v186_v50 = vld [vmem:[#allocation5 + $0x128] sm:$0xff]  ;;  %v5845_v52 = vcombine.high %v190_v41, %v194_v42 }
  0xa3   :  { %v353_v54 = vld [vmem:[#allocation5 + $0x660] sm:$0xff]  ;;  %2573 = vmatpush2.bf16.msra.mxu1 %v6010_v56  ;;  %v266_v41 = vld [vmem:[#allocation5 + $0x3a8] sm:$0xff] }
  0xa4   :  { %v6003_v58 = vcombine.high %v349_v53, %v353_v54  ;;  %v213_v61 = vld [vmem:[#allocation5 + $0x200] sm:$0xff]  ;;  %2533 = vmatprep.subr.bf16.mxu0 %v5875_v57  ;;  %v6002_v2 = vcombine.low %v349_v53, %v353_v54  ;;  %v174_v57 = vld [vmem:[#allocation5 + $0xc8] sm:$0xff] }
  0xa5   :  { %v217_v62 = vld [vmem:[#allocation5 + $0x220] sm:$0xff]  ;;  %2534 = vmatpush2.bf16.msra.mxu0 %v5874_v1  ;;  %v5836_v1 = vcombine.low %v182_v49, %v186_v50 }
  0xa6   :  { %v341_v63 = vld [vmem:[#allocation5 + $0x600] sm:$0xff]  ;;  %v5867_v3 = vcombine.high %v213_v61, %v217_v62  ;;  %2574 = vmatprep.subr.bf16.mxu1 %v6003_v58  ;;  %v5866_v9 = vcombine.low %v213_v61, %v217_v62  ;;  %v178_v58 = vld [vmem:[#allocation5 + $0xe8] sm:$0xff]  ;;  %v5837_v62 = vcombine.high %v182_v49, %v186_v50 }
  0xa7   :  { %v345_v0 = vld [vmem:[#allocation5 + $0x620] sm:$0xff]  ;;  %2575 = vmatpush2.bf16.msra.mxu1 %v6002_v2  ;;  %v258_v49 = vld [vmem:[#allocation5 + $0x368] sm:$0xff] }
  0xa8   :  { %v5995_v4 = vcombine.high %v341_v63, %v345_v0  ;;  %v461_v5 = vld [vmem:[#allocation5 + $0x9c0] sm:$0xff]  ;;  %2535 = vmatprep.subr.bf16.mxu0 %v5867_v3  ;;  %v5994_v11 = vcombine.low %v341_v63, %v345_v0  ;;  %v166_v3 = vld [vmem:[#allocation5 + $0x88] sm:$0xff] }
  0xa9   :  { %v465_v6 = vld [vmem:[#allocation5 + $0x9e0] sm:$0xff]  ;;  %2536 = vmatpush2.bf16.msra.mxu0 %v5866_v9  ;;  %v5828_v9 = vcombine.low %v174_v57, %v178_v58 }
  0xaa   :  { %v533_v7 = vld [vmem:[#allocation5 + $0xc00] sm:$0xff]  ;;  %v6115_v13 = vcombine.high %v461_v5, %v465_v6  ;;  %2576 = vmatprep.subr.bf16.mxu1 %v5995_v4  ;;  %v6114_v21 = vcombine.low %v461_v5, %v465_v6  ;;  %v170_v4 = vld [vmem:[#allocation5 + $0xa8] sm:$0xff]  ;;  %v5829_v6 = vcombine.high %v174_v57, %v178_v58 }
  0xab   :  { %v537_v8 = vld [vmem:[#allocation5 + $0xc20] sm:$0xff]  ;;  %2577 = vmatpush2.bf16.msra.mxu1 %v5994_v11  ;;  %v158_v11 = vld [vmem:[#allocation5 + $0x48] sm:$0xff]  ;;  %v5820_v18 = vcombine.low %v166_v3, %v170_v4 }
  0xac   :  { %v6187_v14 = vcombine.high %v533_v7, %v537_v8  ;;  %v453_v15 = vld [vmem:[#allocation5 + $0x980] sm:$0xff]  ;;  %2587 = vmatprep.subr.bf16.mxu0 %v6115_v13  ;;  %v6186_v23 = vcombine.low %v533_v7, %v537_v8  ;;  %2538 = vmatmul.mubr.bf16.vlgmr.msra.gmra.mxu0 %v7286_v17  ;;  %v250_v57 = vld [vmem:[#allocation5 + $0x328] sm:$0xff] }
  0xad   :  { %v457_v16 = vld [vmem:[#allocation5 + $0x9a0] sm:$0xff]  ;;  %2588 = vmatpush1.bf16.msra.mxu0 %v6114_v21  ;;  %2619 = vmatprep.mubr.bf16.mxu0 %v7291_v29  ;;  %v150_v21 = vld [vmem:[#allocation5 + $0x8] sm:$0xff] }
  0xae   :  { %v6107_v24 = vcombine.high %v453_v15, %v457_v16  ;;  %v445_v25 = vld [vmem:[#allocation5 + $0x940] sm:$0xff]  ;;  %2642 = vmatprep.subr.bf16.mxu1 %v6187_v14  ;;  %2579 = vmatmul.mubr.bf16.vlgmr.msra.gmra.mxu1 %v7288_v20  ;;  %v6106_v30 = vcombine.low %v453_v15, %v457_v16  ;;  %v5821_v14 = vcombine.high %v166_v3, %v170_v4  ;;  %v242_v3 = vld [vmem:[#allocation5 + $0x2e8] sm:$0xff] }
  0xaf   :  { %v449_v27 = vld [vmem:[#allocation5 + $0x960] sm:$0xff]  ;;  %2643 = vmatpush1.bf16.msra.mxu1 %v6186_v23  ;;  %2660 = vmatprep.mubr.bf16.mxu1 %v7202_v35  ;;  %v5805_v33 = vcombine.high %v150_v21, %v154_v22 }
  0xb0   :  { %2589 = vmatprep.subr.bf16.mxu0 %v6107_v24  ;;  %v6099_v31 = vcombine.high %v445_v25, %v449_v27  ;;  %v437_v34 = vld [vmem:[#allocation5 + $0x900] sm:$0xff]  ;;  %2669 = vmatprep.subr.bf16.mxu1 %v5861_v26  ;;  %v6098_v37 = vcombine.low %v445_v25, %v449_v27  ;;  %v5813_v24 = vcombine.high %v158_v11, %v162_v12 }
  0xb1   :  { %v441_v36 = vld [vmem:[#allocation5 + $0x920] sm:$0xff]  ;;  %2590 = vmatpush1.bf16.msra.mxu0 %v6106_v30  ;;  %v5812_v27 = vcombine.low %v158_v11, %v162_v12  ;;  %v270_v30 = vld [vmem:[#allocation5 + $0x3c8] sm:$0xff] }
  0xb2   :  { %2591 = vmatprep.subr.bf16.mxu0 %v6099_v31  ;;  %v6091_v40 = vcombine.high %v437_v34, %v441_v36  ;;  %v429_v43 = vld [vmem:[#allocation5 + $0x8c0] sm:$0xff]  ;;  %v6090_v46 = vcombine.low %v437_v34, %v441_v36  ;;  %v274_v31 = vld [vmem:[#allocation5 + $0x3e8] sm:$0xff] }
  0xb3   :  { %v433_v45 = vld [vmem:[#allocation5 + $0x8e0] sm:$0xff]  ;;  %v234_v11 = vld [vmem:[#allocation5 + $0x2a8] sm:$0xff] }
  0xb4   :  { %v6083_v48 = vcombine.high %v429_v43, %v433_v45  ;;  %v421_v51 = vld [vmem:[#allocation5 + $0x880] sm:$0xff]  ;;  %v6082_v54 = vcombine.low %v429_v43, %v433_v45  ;;  %v5925_v43 = vcombine.high %v270_v30, %v274_v31 }
  0xb5   :  { %2592 = vmatpush1.bf16.msra.mxu0 %v6098_v37  ;;  %v425_v53 = vld [vmem:[#allocation5 + $0x8a0] sm:$0xff]  ;;  %v5804_v37 = vcombine.low %v150_v21, %v154_v22  ;;  %v226_v21 = vld [vmem:[#allocation5 + $0x268] sm:$0xff] }
  0xb6   :  { %6194 = vmatmul.mubr.msk.bf16.vlgmr.msra.gmra.mxu1 %vm2501_vm0, %v7296_v38  ;;  %2593 = vmatprep.subr.bf16.mxu0 %v6091_v40  ;;  %v6075_v56 = vcombine.high %v421_v51, %v425_v53  ;;  %v413_v61 = vld [vmem:[#allocation5 + $0x840] sm:$0xff]  ;;  %v6074_v0 = vcombine.low %v421_v51, %v425_v53  ;;  %v262_v40 = vld [vmem:[#allocation5 + $0x388] sm:$0xff] }
  0xb7   :  { %2670 = vmatpush1.bf16.msra.mxu1 %v5860_v39  ;;  %2701 = vmatprep.mubr.bf16.mxu1 %v7280_v59  ;;  %v417_v63 = vld [vmem:[#allocation5 + $0x860] sm:$0xff]  ;;  %v5917_v51 = vcombine.high %v262_v40, %v266_v41  ;;  %v334_v22 = vld [vmem:[#allocation5 + $0x5c8] sm:$0xff] }
  0xb8   :  { %2671 = vmatprep.subr.bf16.mxu1 %v5853_v44  ;;  %v6067_v2 = vcombine.high %v413_v61, %v417_v63  ;;  %v405_v5 = vld [vmem:[#allocation5 + $0x800] sm:$0xff]  ;;  %v6066_v8 = vcombine.low %v413_v61, %v417_v63 }
  0xb9   :  { %2594 = vmatpush1.bf16.msra.mxu0 %v6090_v46  ;;  %v409_v7 = vld [vmem:[#allocation5 + $0x820] sm:$0xff]  ;;  %v5924_v46 = vcombine.low %v270_v30, %v274_v31  ;;  %v214_v30 = vld [vmem:[#allocation5 + $0x208] sm:$0xff] }
  0xba   :  { %2595 = vmatprep.subr.bf16.mxu0 %v6083_v48  ;;  %v6059_v10 = vcombine.high %v405_v5, %v409_v7  ;;  %v525_v13 = vld [vmem:[#allocation5 + $0xbc0] sm:$0xff]  ;;  %v6058_v16 = vcombine.low %v405_v5, %v409_v7  ;;  %v254_v48 = vld [vmem:[#allocation5 + $0x348] sm:$0xff] }
  0xbb   :  { %2672 = vmatpush1.bf16.msra.mxu1 %v5852_v47  ;;  %v529_v15 = vld [vmem:[#allocation5 + $0xbe0] sm:$0xff]  ;;  %v5909_v61 = vcombine.high %v254_v48, %v258_v49  ;;  %v218_v31 = vld [vmem:[#allocation5 + $0x228] sm:$0xff] }
  0xbc   :  { %2673 = vmatprep.subr.bf16.mxu1 %v5845_v52  ;;  %v6179_v19 = vcombine.high %v525_v13, %v529_v15  ;;  %v517_v23 = vld [vmem:[#allocation5 + $0xb80] sm:$0xff]  ;;  %v6178_v26 = vcombine.low %v525_v13, %v529_v15 }
  0xbd   :  { %2596 = vmatpush1.bf16.msra.mxu0 %v6082_v54  ;;  %v521_v25 = vld [vmem:[#allocation5 + $0xba0] sm:$0xff]  ;;  %v5916_v54 = vcombine.low %v262_v40, %v266_v41  ;;  %v462_v41 = vld [vmem:[#allocation5 + $0x9c8] sm:$0xff] }
  0xbe   :  { %2597 = vmatprep.subr.bf16.mxu0 %v6075_v56  ;;  %v6171_v28 = vcombine.high %v517_v23, %v521_v25  ;;  %v509_v32 = vld [vmem:[#allocation5 + $0xb40] sm:$0xff]  ;;  %v6170_v36 = vcombine.low %v517_v23, %v521_v25  ;;  %v246_v56 = vld [vmem:[#allocation5 + $0x308] sm:$0xff] }
  0xbf   :  { %2674 = vmatpush1.bf16.msra.mxu1 %v5844_v55  ;;  %v513_v34 = vld [vmem:[#allocation5 + $0xb60] sm:$0xff]  ;;  %v5901_v5 = vcombine.high %v246_v56, %v250_v57  ;;  %v338_v25 = vld [vmem:[#allocation5 + $0x5e8] sm:$0xff] }
  0xc0   :  { %2675 = vmatprep.subr.bf16.mxu1 %v5837_v62  ;;  %v6163_v39 = vcombine.high %v509_v32, %v513_v34  ;;  %v501_v42 = vld [vmem:[#allocation5 + $0xb00] sm:$0xff]  ;;  %v6162_v45 = vcombine.low %v509_v32, %v513_v34  ;;  %v326_v32 = vld [vmem:[#allocation5 + $0x588] sm:$0xff] }
  0xc1   :  { %2598 = vmatpush1.bf16.msra.mxu0 %v6074_v0  ;;  %v505_v44 = vld [vmem:[#allocation5 + $0xb20] sm:$0xff]  ;;  %v5908_v0 = vcombine.low %v254_v48, %v258_v49  ;;  %v330_v34 = vld [vmem:[#allocation5 + $0x5a8] sm:$0xff] }
  0xc2   :  { %2599 = vmatprep.subr.bf16.mxu0 %v6067_v2  ;;  %v6155_v47 = vcombine.high %v501_v42, %v505_v44  ;;  %v493_v50 = vld [vmem:[#allocation5 + $0xac0] sm:$0xff]  ;;  %v6154_v53 = vcombine.low %v501_v42, %v505_v44  ;;  %v238_v2 = vld [vmem:[#allocation5 + $0x2c8] sm:$0xff]  ;;  %v5981_v40 = vcombine.high %v326_v32, %v330_v34  ;;  %v5869_v44 = vcombine.high %v214_v30, %v218_v31 }
  0xc3   :  { %2676 = vmatpush1.bf16.msra.mxu1 %v5836_v1  ;;  %v497_v52 = vld [vmem:[#allocation5 + $0xae0] sm:$0xff]  ;;  %v5893_v13 = vcombine.high %v238_v2, %v242_v3  ;;  %v466_v42 = vld [vmem:[#allocation5 + $0x9e8] sm:$0xff] }
  0xc4   :  { %2677 = vmatprep.subr.bf16.mxu1 %v5829_v6  ;;  %v6147_v55 = vcombine.high %v493_v50, %v497_v52  ;;  %v485_v58 = vld [vmem:[#allocation5 + $0xa80] sm:$0xff]  ;;  %v6146_v63 = vcombine.low %v493_v50, %v497_v52  ;;  %v454_v49 = vld [vmem:[#allocation5 + $0x988] sm:$0xff]  ;;  %v6117_v52 = vcombine.high %v462_v41, %v466_v42 }
  0xc5   :  { %2600 = vmatpush1.bf16.msra.mxu0 %v6066_v8  ;;  %v489_v62 = vld [vmem:[#allocation5 + $0xaa0] sm:$0xff]  ;;  %v5900_v8 = vcombine.low %v246_v56, %v250_v57  ;;  %v458_v50 = vld [vmem:[#allocation5 + $0x9a8] sm:$0xff] }
  0xc6   :  { %2601 = vmatprep.subr.bf16.mxu0 %v6059_v10  ;;  %v6139_v1 = vcombine.high %v485_v58, %v489_v62  ;;  %v477_v4 = vld [vmem:[#allocation5 + $0xa40] sm:$0xff]  ;;  %v6138_v7 = vcombine.low %v485_v58, %v489_v62  ;;  %v230_v10 = vld [vmem:[#allocation5 + $0x288] sm:$0xff] }
  0xc7   :  { %2678 = vmatpush1.bf16.msra.mxu1 %v5828_v9  ;;  %v481_v6 = vld [vmem:[#allocation5 + $0xa60] sm:$0xff]  ;;  %v5885_v23 = vcombine.high %v230_v10, %v234_v11  ;;  %v446_v57 = vld [vmem:[#allocation5 + $0x948] sm:$0xff] }
  0xc8   :  { %2679 = vmatprep.subr.bf16.mxu1 %v5821_v14  ;;  %v6131_v9 = vcombine.high %v477_v4, %v481_v6  ;;  %v469_v12 = vld [vmem:[#allocation5 + $0xa00] sm:$0xff]  ;;  %v6130_v15 = vcombine.low %v477_v4, %v481_v6  ;;  %v450_v58 = vld [vmem:[#allocation5 + $0x968] sm:$0xff] }
  0xc9   :  { %2602 = vmatpush1.bf16.msra.mxu0 %v6058_v16  ;;  %v473_v14 = vld [vmem:[#allocation5 + $0xa20] sm:$0xff]  ;;  %v5892_v16 = vcombine.low %v238_v2, %v242_v3  ;;  %v306_v62 = vld [vmem:[#allocation5 + $0x4e8] sm:$0xff] }
  0xca   :  { %2603 = vmatprep.subr.bf16.mxu0 %v6179_v19  ;;  %v222_v19 = vld [vmem:[#allocation5 + $0x248] sm:$0xff] }
  0xcb   :  { %2680 = vmatpush1.bf16.msra.mxu1 %v5820_v18  ;;  %v6123_v18 = vcombine.high %v469_v12, %v473_v14  ;;  %v438_v3 = vld [vmem:[#allocation5 + $0x908] sm:$0xff] }
  0xcc   :  { %2681 = vmatprep.subr.bf16.mxu1 %v5813_v24  ;;  %v139_v24 = vld [vmem:[#allocation3 + $0x20] sm:$0xff] }
  0xcd   :  { %2604 = vmatpush2.bf16.msra.mxu0 %v6178_v26  ;;  %v6122_v26 = vcombine.low %v469_v12, %v473_v14  ;;  %v442_v4 = vld [vmem:[#allocation5 + $0x928] sm:$0xff] }
  0xce   :  { %2605 = vmatprep.subr.bf16.mxu0 %v6171_v28  ;;  %v5989_v28 = vcombine.high %v334_v22, %v338_v25  ;;  %v298_v6 = vld [vmem:[#allocation5 + $0x4a8] sm:$0xff] }
  0xcf   :  { %2682 = vmatpush1.bf16.msra.mxu1 %v5812_v27  ;;  %v5884_v27 = vcombine.low %v230_v10, %v234_v11  ;;  %v430_v11 = vld [vmem:[#allocation5 + $0x8c8] sm:$0xff] }
  0xd0   :  { %2683 = vmatprep.subr.bf16.mxu1 %v5805_v33  ;;  %v5877_v33 = vcombine.high %v222_v19, %v226_v21  ;;  %v434_v12 = vld [vmem:[#allocation5 + $0x8e8] sm:$0xff] }
  0xd1   :  { %2606 = vmatpush2.bf16.msra.mxu0 %v6170_v36  ;;  %v7301_v36 = vpack.c.bf16 %v139_v24, %v139_v24  ;;  %v290_v14 = vld [vmem:[#allocation5 + $0x468] sm:$0xff] }
  0xd2   :  { %2607 = vmatprep.subr.bf16.mxu0 %v6163_v39  ;;  %v5876_v39 = vcombine.low %v222_v19, %v226_v21  ;;  %v422_v21 = vld [vmem:[#allocation5 + $0x888] sm:$0xff] }
  0xd3   :  { %2684 = vmatpush1.bf16.msra.mxu1 %v5804_v37  ;;  %v5988_v37 = vcombine.low %v334_v22, %v338_v25  ;;  %v426_v22 = vld [vmem:[#allocation5 + $0x8a8] sm:$0xff] }
  0xd4   :  { %2685 = vmatprep.subr.bf16.mxu1 %v5925_v43  ;;  %v318_v43 = vld [vmem:[#allocation5 + $0x548] sm:$0xff] }
  0xd5   :  { %2608 = vmatpush2.bf16.msra.mxu0 %v6162_v45  ;;  %v322_v45 = vld [vmem:[#allocation5 + $0x568] sm:$0xff] }
  0xd6   :  { %2609 = vmatprep.subr.bf16.mxu0 %v6155_v47  ;;  %v5868_v47 = vcombine.low %v214_v30, %v218_v31  ;;  %v5973_v48 = vcombine.high %v318_v43, %v322_v45  ;;  %v278_v24 = vld [vmem:[#allocation5 + $0x408] sm:$0xff] }
  0xd7   :  { %2686 = vmatpush2.bf16.msra.mxu1 %v5924_v46  ;;  %v5980_v46 = vcombine.low %v326_v32, %v330_v34  ;;  %v282_v25 = vld [vmem:[#allocation5 + $0x428] sm:$0xff]  ;;  %v6077_v32 = vcombine.high %v422_v21, %v426_v22 }
  0xd8   :  { %2687 = vmatprep.subr.bf16.mxu1 %v5917_v51  ;;  %v310_v51 = vld [vmem:[#allocation5 + $0x508] sm:$0xff] }
  0xd9   :  { %2610 = vmatpush2.bf16.msra.mxu0 %v6154_v53  ;;  %v314_v53 = vld [vmem:[#allocation5 + $0x528] sm:$0xff] }
  0xda   :  { %2611 = vmatprep.subr.bf16.mxu0 %v6147_v55  ;;  %v6116_v55 = vcombine.low %v462_v41, %v466_v42  ;;  %v5965_v56 = vcombine.high %v310_v51, %v314_v53  ;;  %v414_v30 = vld [vmem:[#allocation5 + $0x848] sm:$0xff] }
  0xdb   :  { %2688 = vmatpush2.bf16.msra.mxu1 %v5916_v54  ;;  %v5972_v54 = vcombine.low %v318_v43, %v322_v45  ;;  %v418_v31 = vld [vmem:[#allocation5 + $0x868] sm:$0xff] }
  0xdc   :  { %2689 = vmatprep.subr.bf16.mxu1 %v5909_v61  ;;  %v302_v61 = vld [vmem:[#allocation5 + $0x4c8] sm:$0xff]  ;;  %v6069_v43 = vcombine.high %v414_v30, %v418_v31 }
  0xdd   :  { %2612 = vmatpush2.bf16.msra.mxu0 %v6146_v63  ;;  %v6109_v63 = vcombine.high %v454_v49, %v458_v50  ;;  %v5957_v2 = vcombine.high %v302_v61, %v306_v62  ;;  %v402_v34 = vld [vmem:[#allocation5 + $0x7e8] sm:$0xff] }
  0xde   :  { %2613 = vmatprep.subr.bf16.mxu0 %v6139_v1  ;;  %v6108_v1 = vcombine.low %v454_v49, %v458_v50  ;;  %v406_v41 = vld [vmem:[#allocation5 + $0x808] sm:$0xff] }
  0xdf   :  { %2690 = vmatpush2.bf16.msra.mxu1 %v5908_v0  ;;  %v5964_v0 = vcombine.low %v310_v51, %v314_v53  ;;  %v410_v42 = vld [vmem:[#allocation5 + $0x828] sm:$0xff] }
  0xe0   :  { %2691 = vmatprep.subr.bf16.mxu1 %v5901_v5  ;;  %v294_v5 = vld [vmem:[#allocation5 + $0x488] sm:$0xff]  ;;  %v6061_v51 = vcombine.high %v406_v41, %v410_v42 }
  0xe1   :  { %2614 = vmatpush2.bf16.msra.mxu0 %v6138_v7  ;;  %v6101_v7 = vcombine.high %v446_v57, %v450_v58  ;;  %v5949_v10 = vcombine.high %v294_v5, %v298_v6  ;;  %v394_v45 = vld [vmem:[#allocation5 + $0x7a8] sm:$0xff] }
  0xe2   :  { %2615 = vmatprep.subr.bf16.mxu0 %v6131_v9  ;;  %v6100_v9 = vcombine.low %v446_v57, %v450_v58  ;;  %v526_v49 = vld [vmem:[#allocation5 + $0xbc8] sm:$0xff] }
  0xe3   :  { %2692 = vmatpush2.bf16.msra.mxu1 %v5900_v8  ;;  %v5956_v8 = vcombine.low %v302_v61, %v306_v62  ;;  %v530_v50 = vld [vmem:[#allocation5 + $0xbe8] sm:$0xff] }
  0xe4   :  { %2693 = vmatprep.subr.bf16.mxu1 %v5893_v13  ;;  %v286_v13 = vld [vmem:[#allocation5 + $0x448] sm:$0xff]  ;;  %v6181_v61 = vcombine.high %v526_v49, %v530_v50 }
  0xe5   :  { %2616 = vmatpush2.bf16.msra.mxu0 %v6130_v15  ;;  %v6093_v15 = vcombine.high %v438_v3, %v442_v4  ;;  %v5941_v19 = vcombine.high %v286_v13, %v290_v14  ;;  %v386_v53 = vld [vmem:[#allocation5 + $0x768] sm:$0xff] }
  0xe6   :  { %2617 = vmatprep.subr.bf16.mxu0 %v6123_v18  ;;  %v6092_v18 = vcombine.low %v438_v3, %v442_v4  ;;  %v518_v57 = vld [vmem:[#allocation5 + $0xb88] sm:$0xff] }
  0xe7   :  { %2694 = vmatpush2.bf16.msra.mxu1 %v5892_v16  ;;  %v5948_v16 = vcombine.low %v294_v5, %v298_v6  ;;  %v522_v58 = vld [vmem:[#allocation5 + $0xba8] sm:$0xff] }
  0xe8   :  { %2695 = vmatprep.subr.bf16.mxu1 %v5885_v23  ;;  %v6085_v23 = vcombine.high %v430_v11, %v434_v12  ;;  %v374_v62 = vld [vmem:[#allocation5 + $0x708] sm:$0xff]  ;;  %v6173_v5 = vcombine.high %v518_v57, %v522_v58 }
  0xe9   :  { %2618 = vmatpush2.bf16.msra.mxu0 %v6122_v26  ;;  %v5940_v26 = vcombine.low %v286_v13, %v290_v14  ;;  %v510_v3 = vld [vmem:[#allocation5 + $0xb48] sm:$0xff] }
  0xea   :  { %2710 = vmatprep.subr.bf16.mxu0 %v5989_v28  ;;  %v5933_v28 = vcombine.high %v278_v24, %v282_v25  ;;  %v514_v4 = vld [vmem:[#allocation5 + $0xb68] sm:$0xff] }
  0xeb   :  { %2696 = vmatpush2.bf16.msra.mxu1 %v5884_v27  ;;  %v6084_v27 = vcombine.low %v430_v11, %v434_v12  ;;  %v366_v6 = vld [vmem:[#allocation5 + $0x6c8] sm:$0xff]  ;;  %v6165_v13 = vcombine.high %v510_v3, %v514_v4 }
  0xec   :  { %2697 = vmatprep.subr.bf16.mxu1 %v5877_v33  ;;  %2620 = vmatmul.mubr.bf16.vlgmr.msra.gmra.mxu0 %v7301_v36  ;;  %v398_v33 = vld [vmem:[#allocation5 + $0x7c8] sm:$0xff] }
  0xed   :  { %2711 = vmatpush1.bf16.msra.mxu0 %v5988_v37  ;;  %2742 = vmatprep.mubr.bf16.mxu0 %v7282_v60  ;;  %v5932_v37 = vcombine.low %v278_v24, %v282_v25  ;;  %v502_v11 = vld [vmem:[#allocation5 + $0xb08] sm:$0xff] }
  0xee   :  { %2712 = vmatprep.subr.bf16.mxu0 %v5981_v40  ;;  %v6053_v40 = vcombine.high %v398_v33, %v402_v34  ;;  %v506_v12 = vld [vmem:[#allocation5 + $0xb28] sm:$0xff] }
  0xef   :  { %2698 = vmatpush2.bf16.msra.mxu1 %v5876_v39  ;;  %v6076_v39 = vcombine.low %v422_v21, %v426_v22  ;;  %v358_v14 = vld [vmem:[#allocation5 + $0x688] sm:$0xff] }
  0xf0   :  { %2699 = vmatprep.subr.bf16.mxu1 %v5869_v44  ;;  %v390_v44 = vld [vmem:[#allocation5 + $0x788] sm:$0xff] }
  0xf1   :  { %2713 = vmatpush1.bf16.msra.mxu0 %v5980_v46  ;;  %v6052_v46 = vcombine.low %v398_v33, %v402_v34  ;;  %v494_v21 = vld [vmem:[#allocation5 + $0xac8] sm:$0xff] }
  0xf2   :  { %2714 = vmatprep.subr.bf16.mxu0 %v5973_v48  ;;  %v6045_v48 = vcombine.high %v390_v44, %v394_v45  ;;  %v498_v22 = vld [vmem:[#allocation5 + $0xae8] sm:$0xff] }
  0xf3   :  { %2700 = vmatpush2.bf16.msra.mxu1 %v5868_v47  ;;  %v6068_v47 = vcombine.low %v414_v30, %v418_v31  ;;  %v350_v24 = vld [vmem:[#allocation5 + $0x648] sm:$0xff] }
  0xf4   :  { %2751 = vmatprep.subr.bf16.mxu1 %v6117_v52  ;;  %v382_v52 = vld [vmem:[#allocation5 + $0x748] sm:$0xff] }
  0xf5   :  { %2715 = vmatpush1.bf16.msra.mxu0 %v5972_v54  ;;  %v6044_v54 = vcombine.low %v390_v44, %v394_v45  ;;  %v354_v25 = vld [vmem:[#allocation5 + $0x668] sm:$0xff] }
  0xf6   :  { %2702 = vmatmul.mubr.bf16.vlgmr.msra.gmra.mxu1 %v7286_v17  ;;  %2716 = vmatprep.subr.bf16.mxu0 %v5965_v56  ;;  %v6037_v56 = vcombine.high %v382_v52, %v386_v53  ;;  %v486_v30 = vld [vmem:[#allocation5 + $0xa88] sm:$0xff] }
  0xf7   :  { %2752 = vmatpush1.bf16.msra.mxu1 %v6116_v55  ;;  %2783 = vmatprep.mubr.bf16.mxu1 %v7291_v29  ;;  %v6060_v55 = vcombine.low %v406_v41, %v410_v42  ;;  %v490_v31 = vld [vmem:[#allocation5 + $0xaa8] sm:$0xff] }
  0xf8   :  { %2753 = vmatprep.subr.bf16.mxu1 %v6109_v63  ;;  %v378_v63 = vld [vmem:[#allocation5 + $0x728] sm:$0xff] }
  0xf9   :  { %2717 = vmatpush1.bf16.msra.mxu0 %v5964_v0  ;;  %v6036_v0 = vcombine.low %v382_v52, %v386_v53  ;;  %v342_v33 = vld [vmem:[#allocation5 + $0x608] sm:$0xff]  ;;  %v207_v52 = vld [vmem:[#allocation5 + $0x1d0] sm:$0xff] }
  0xfa   :  { %2718 = vmatprep.subr.bf16.mxu0 %v5957_v2  ;;  %v6029_v2 = vcombine.high %v374_v62, %v378_v63  ;;  %v346_v34 = vld [vmem:[#allocation5 + $0x628] sm:$0xff]  ;;  %v211_v53 = vld [vmem:[#allocation5 + $0x1f0] sm:$0xff] }
  0xfb   :  { %2754 = vmatpush1.bf16.msra.mxu1 %v6108_v1  ;;  %v6180_v1 = vcombine.low %v526_v49, %v530_v50  ;;  %v478_v41 = vld [vmem:[#allocation5 + $0xa48] sm:$0xff] }
  0xfc   :  { %2755 = vmatprep.subr.bf16.mxu1 %v6101_v7  ;;  %v370_v7 = vld [vmem:[#allocation5 + $0x6e8] sm:$0xff] }
  0xfd   :  { %2719 = vmatpush1.bf16.msra.mxu0 %v5956_v8  ;;  %v6028_v8 = vcombine.low %v374_v62, %v378_v63  ;;  %v482_v42 = vld [vmem:[#allocation5 + $0xa68] sm:$0xff]  ;;  %v199_v63 = vld [vmem:[#allocation5 + $0x190] sm:$0xff] }
  0xfe   :  { %2720 = vmatprep.subr.bf16.mxu0 %v5949_v10  ;;  %v6021_v10 = vcombine.high %v366_v6, %v370_v7  ;;  %v534_v44 = vld [vmem:[#allocation5 + $0xc08] sm:$0xff] }
  0xff   :  { %2756 = vmatpush1.bf16.msra.mxu1 %v6100_v9  ;;  %v6172_v9 = vcombine.low %v518_v57, %v522_v58  ;;  %v538_v45 = vld [vmem:[#allocation5 + $0xc28] sm:$0xff]  ;;  %v335_v58 = vld [vmem:[#allocation5 + $0x5d0] sm:$0xff] }
 0x100   :  { %2757 = vmatprep.subr.bf16.mxu1 %v6093_v15  ;;  %v362_v15 = vld [vmem:[#allocation5 + $0x6a8] sm:$0xff] }
 0x101   :  { %2721 = vmatpush1.bf16.msra.mxu0 %v5948_v16  ;;  %v6020_v16 = vcombine.low %v366_v6, %v370_v7  ;;  %v470_v49 = vld [vmem:[#allocation5 + $0xa08] sm:$0xff]  ;;  %v191_v7 = vld [vmem:[#allocation5 + $0x150] sm:$0xff] }
 0x102   :  { %2722 = vmatprep.subr.bf16.mxu0 %v5941_v19  ;;  %v6013_v19 = vcombine.high %v358_v14, %v362_v15  ;;  %v474_v50 = vld [vmem:[#allocation5 + $0xa28] sm:$0xff] }
 0x103   :  { %2758 = vmatpush1.bf16.msra.mxu1 %v6092_v18  ;;  %v6164_v18 = vcombine.low %v510_v3, %v514_v4  ;;  %v6125_v57 = vcombine.high %v470_v49, %v474_v50  ;;  %v6124_v62 = vcombine.low %v470_v49, %v474_v50  ;;  %v331_v3 = vld [vmem:[#allocation5 + $0x5b0] sm:$0xff]  ;;  %v5862_v4 = vcombine.low %v207_v52, %v211_v53 }
 0x104   :  { %2759 = vmatprep.subr.bf16.mxu1 %v6085_v23  ;;  %v6157_v23 = vcombine.high %v502_v11, %v506_v12  ;;  %v291_v49 = vld [vmem:[#allocation5 + $0x470] sm:$0xff] }
 0x105   :  { %2723 = vmatpush1.bf16.msra.mxu0 %v5940_v26  ;;  %v6012_v26 = vcombine.low %v358_v14, %v362_v15  ;;  %v183_v15 = vld [vmem:[#allocation5 + $0x110] sm:$0xff] }
 0x106   :  { %2724 = vmatprep.subr.bf16.mxu0 %v5933_v28  ;;  %v6005_v28 = vcombine.high %v350_v24, %v354_v25 }
 0x107   :  { %2760 = vmatpush1.bf16.msra.mxu1 %v6084_v27  ;;  %v6156_v27 = vcombine.low %v502_v11, %v506_v12  ;;  %v323_v11 = vld [vmem:[#allocation5 + $0x570] sm:$0xff] }
 0x108   :  { %2761 = vmatprep.subr.bf16.mxu1 %v6077_v32  ;;  %v6149_v32 = vcombine.high %v494_v21, %v498_v22 }
 0x109   :  { %2725 = vmatpush1.bf16.msra.mxu0 %v5932_v37  ;;  %v6004_v37 = vcombine.low %v350_v24, %v354_v25  ;;  %v175_v25 = vld [vmem:[#allocation5 + $0xd0] sm:$0xff] }
 0x10a   :  { %2726 = vmatprep.subr.bf16.mxu0 %v6053_v40  ;;  %v5997_v40 = vcombine.high %v342_v33, %v346_v34 }
 0x10b   :  { %2762 = vmatpush1.bf16.msra.mxu1 %v6076_v39  ;;  %v6148_v39 = vcombine.low %v494_v21, %v498_v22  ;;  %v315_v21 = vld [vmem:[#allocation5 + $0x530] sm:$0xff] }
 0x10c   :  { %2763 = vmatprep.subr.bf16.mxu1 %v6069_v43  ;;  %v6141_v43 = vcombine.high %v486_v30, %v490_v31 }
 0x10d   :  { %2727 = vmatpush2.bf16.msra.mxu0 %v6052_v46  ;;  %v5996_v46 = vcombine.low %v342_v33, %v346_v34  ;;  %v167_v34 = vld [vmem:[#allocation5 + $0x90] sm:$0xff] }
 0x10e   :  { %2728 = vmatprep.subr.bf16.mxu0 %v6045_v48  ;;  %v6189_v48 = vcombine.high %v534_v44, %v538_v45 }
 0x10f   :  { %2764 = vmatpush1.bf16.msra.mxu1 %v6068_v47  ;;  %v6140_v47 = vcombine.low %v486_v30, %v490_v31  ;;  %v307_v30 = vld [vmem:[#allocation5 + $0x4f0] sm:$0xff] }
 0x110   :  { %2765 = vmatprep.subr.bf16.mxu1 %v6061_v51  ;;  %v6133_v51 = vcombine.high %v478_v41, %v482_v42 }
 0x111   :  { %2729 = vmatpush2.bf16.msra.mxu0 %v6044_v54  ;;  %v6188_v54 = vcombine.low %v534_v44, %v538_v45  ;;  %v159_v45 = vld [vmem:[#allocation5 + $0x50] sm:$0xff] }
 0x112   :  { %2730 = vmatprep.subr.bf16.mxu0 %v6037_v56  ;;  %v5863_v56 = vcombine.high %v207_v52, %v211_v53  ;;  %v151_v53 = vld [vmem:[#allocation5 + $0x10] sm:$0xff] }
 0x113   :  { %2766 = vmatpush1.bf16.msra.mxu1 %v6060_v55  ;;  %v6132_v55 = vcombine.low %v478_v41, %v482_v42  ;;  %v299_v41 = vld [vmem:[#allocation5 + $0x4b0] sm:$0xff] }
 0x114   :  { %2767 = vmatprep.subr.bf16.mxu1 %v6181_v61  ;;  %v339_v61 = vld [vmem:[#allocation5 + $0x5f0] sm:$0xff] }
 0x115   :  { %2731 = vmatpush2.bf16.msra.mxu0 %v6036_v0  ;;  %v203_v0 = vld [vmem:[#allocation5 + $0x1b0] sm:$0xff] }
 0x116   :  { %2732 = vmatprep.subr.bf16.mxu0 %v6029_v2  ;;  %v327_v2 = vld [vmem:[#allocation5 + $0x590] sm:$0xff]  ;;  %v5855_v6 = vcombine.high %v199_v63, %v203_v0  ;;  %v5854_v12 = vcombine.low %v199_v63, %v203_v0 }
 0x117   :  { %2768 = vmatpush2.bf16.msra.mxu1 %v6180_v1  ;;  %v5991_v1 = vcombine.high %v335_v58, %v339_v61  ;;  %v271_v0 = vld [vmem:[#allocation5 + $0x3d0] sm:$0xff] }
 0x118   :  { %2769 = vmatprep.subr.bf16.mxu1 %v6173_v5  ;;  %v5990_v5 = vcombine.low %v335_v58, %v339_v61 }
 0x119   :  { %2733 = vmatpush2.bf16.msra.mxu0 %v6028_v8  ;;  %v195_v8 = vld [vmem:[#allocation5 + $0x170] sm:$0xff] }
 0x11a   :  { %2734 = vmatprep.subr.bf16.mxu0 %v6021_v10  ;;  %v319_v10 = vld [vmem:[#allocation5 + $0x550] sm:$0xff]  ;;  %v5847_v14 = vcombine.high %v191_v7, %v195_v8  ;;  %v5846_v22 = vcombine.low %v191_v7, %v195_v8 }
 0x11b   :  { %2770 = vmatpush2.bf16.msra.mxu1 %v6172_v9  ;;  %v5983_v9 = vcombine.high %v327_v2, %v331_v3  ;;  %v263_v8 = vld [vmem:[#allocation5 + $0x390] sm:$0xff] }
 0x11c   :  { %2771 = vmatprep.subr.bf16.mxu1 %v6165_v13  ;;  %v5982_v13 = vcombine.low %v327_v2, %v331_v3  ;;  %v399_v2 = vld [vmem:[#allocation5 + $0x7d0] sm:$0xff] }
 0x11d   :  { %2735 = vmatpush2.bf16.msra.mxu0 %v6020_v16  ;;  %v187_v16 = vld [vmem:[#allocation5 + $0x130] sm:$0xff] }
 0x11e   :  { %2736 = vmatprep.subr.bf16.mxu0 %v6013_v19  ;;  %v311_v19 = vld [vmem:[#allocation5 + $0x510] sm:$0xff]  ;;  %v5839_v24 = vcombine.high %v183_v15, %v187_v16  ;;  %v5838_v31 = vcombine.low %v183_v15, %v187_v16 }
 0x11f   :  { %2772 = vmatpush2.bf16.msra.mxu1 %v6164_v18  ;;  %v5975_v18 = vcombine.high %v319_v10, %v323_v11  ;;  %v403_v3 = vld [vmem:[#allocation5 + $0x7f0] sm:$0xff] }
 0x120   :  { %2773 = vmatprep.subr.bf16.mxu1 %v6157_v23  ;;  %v5974_v23 = vcombine.low %v319_v10, %v323_v11  ;;  %v6055_v7 = vcombine.high %v399_v2, %v403_v3  ;;  %v391_v10 = vld [vmem:[#allocation5 + $0x790] sm:$0xff] }
 0x121   :  { %2737 = vmatpush2.bf16.msra.mxu0 %v6012_v26  ;;  %v179_v26 = vld [vmem:[#allocation5 + $0xf0] sm:$0xff] }
 0x122   :  { %2738 = vmatprep.subr.bf16.mxu0 %v6005_v28  ;;  %v303_v28 = vld [vmem:[#allocation5 + $0x4d0] sm:$0xff]  ;;  %v5831_v33 = vcombine.high %v175_v25, %v179_v26  ;;  %v5830_v42 = vcombine.low %v175_v25, %v179_v26 }
 0x123   :  { %2774 = vmatpush2.bf16.msra.mxu1 %v6156_v27  ;;  %v5967_v27 = vcombine.high %v311_v19, %v315_v21  ;;  %v395_v11 = vld [vmem:[#allocation5 + $0x7b0] sm:$0xff] }
 0x124   :  { %2775 = vmatprep.subr.bf16.mxu1 %v6149_v32  ;;  %v5966_v32 = vcombine.low %v311_v19, %v315_v21  ;;  %v6047_v15 = vcombine.high %v391_v10, %v395_v11  ;;  %v255_v16 = vld [vmem:[#allocation5 + $0x350] sm:$0xff] }
 0x125   :  { %2739 = vmatpush2.bf16.msra.mxu0 %v6004_v37  ;;  %v171_v37 = vld [vmem:[#allocation5 + $0xb0] sm:$0xff] }
 0x126   :  { %2740 = vmatprep.subr.bf16.mxu0 %v5997_v40  ;;  %v295_v40 = vld [vmem:[#allocation5 + $0x490] sm:$0xff]  ;;  %v5823_v44 = vcombine.high %v167_v34, %v171_v37  ;;  %v5822_v50 = vcombine.low %v167_v34, %v171_v37 }
 0x127   :  { %2776 = vmatpush2.bf16.msra.mxu1 %v6148_v39  ;;  %v5959_v39 = vcombine.high %v303_v28, %v307_v30  ;;  %v383_v19 = vld [vmem:[#allocation5 + $0x750] sm:$0xff] }
 0x128   :  { %2777 = vmatprep.subr.bf16.mxu1 %v6141_v43  ;;  %v5958_v43 = vcombine.low %v303_v28, %v307_v30  ;;  %v387_v21 = vld [vmem:[#allocation5 + $0x770] sm:$0xff] }
 0x129   :  { %2741 = vmatpush2.bf16.msra.mxu0 %v5996_v46  ;;  %v163_v46 = vld [vmem:[#allocation5 + $0x70] sm:$0xff]  ;;  %v6039_v25 = vcombine.high %v383_v19, %v387_v21 }
 0x12a   :  { %2806 = vmatprep.subr.bf16.mxu0 %v6189_v48  ;;  %v287_v48 = vld [vmem:[#allocation5 + $0x450] sm:$0xff]  ;;  %v5815_v52 = vcombine.high %v159_v45, %v163_v46  ;;  %v5814_v58 = vcombine.low %v159_v45, %v163_v46 }
 0x12b   :  { %2778 = vmatpush2.bf16.msra.mxu1 %v6140_v47  ;;  %v5951_v47 = vcombine.high %v295_v40, %v299_v41  ;;  %v5942_v61 = vcombine.low %v287_v48, %v291_v49  ;;  %v247_v26 = vld [vmem:[#allocation5 + $0x310] sm:$0xff] }
 0x12c   :  { %2779 = vmatprep.subr.bf16.mxu1 %v6133_v51  ;;  %2743 = vmatmul.mubr.bf16.vlgmr.msra.gmra.mxu0 %v7288_v20  ;;  %v5950_v51 = vcombine.low %v295_v40, %v299_v41  ;;  %v375_v28 = vld [vmem:[#allocation5 + $0x710] sm:$0xff] }
 0x12d   :  { %2807 = vmatpush1.bf16.msra.mxu0 %v6188_v54  ;;  %2824 = vmatprep.mubr.bf16.mxu0 %v7202_v35  ;;  %v155_v54 = vld [vmem:[#allocation5 + $0x30] sm:$0xff] }
 0x12e   :  { %2833 = vmatprep.subr.bf16.mxu0 %v5863_v56  ;;  %v279_v56 = vld [vmem:[#allocation5 + $0x410] sm:$0xff] }
 0x12f   :  { %2780 = vmatpush2.bf16.msra.mxu1 %v6132_v55  ;;  %v5943_v55 = vcombine.high %v287_v48, %v291_v49  ;;  %v379_v30 = vld [vmem:[#allocation5 + $0x730] sm:$0xff] }
 0x130   :  { %2781 = vmatprep.subr.bf16.mxu1 %v6125_v57  ;;  %v283_v57 = vld [vmem:[#allocation5 + $0x430] sm:$0xff]  ;;  %v6031_v34 = vcombine.high %v375_v28, %v379_v30 }
 0x131   :  { %v5935_v63 = vcombine.high %v279_v56, %v283_v57  ;;  %v239_v37 = vld [vmem:[#allocation5 + $0x2d0] sm:$0xff] }
 0x132   :  { %v367_v40 = vld [vmem:[#allocation5 + $0x6d0] sm:$0xff] }
 0x133   :  { %2782 = vmatpush2.bf16.msra.mxu1 %v6124_v62  ;;  %v5807_v62 = vcombine.high %v151_v53, %v155_v54  ;;  %v371_v41 = vld [vmem:[#allocation5 + $0x6f0] sm:$0xff] }
 0x134   :  { %2874 = vmatprep.subr.bf16.mxu1 %v5991_v1  ;;  %6195 = vmatmul.mubr.msk.bf16.vlgmr.msra.gmra.mxu0 %vm2501_vm0, %v7296_v38  ;;  %v275_v1 = vld [vmem:[#allocation5 + $0x3f0] sm:$0xff]  ;;  %v6023_v45 = vcombine.high %v367_v40, %v371_v41 }
 0x135   :  { %2834 = vmatpush1.bf16.msra.mxu0 %v5862_v4  ;;  %2865 = vmatprep.mubr.bf16.mxu0 %v7280_v59  ;;  %v5806_v4 = vcombine.low %v151_v53, %v155_v54  ;;  %v231_v46 = vld [vmem:[#allocation5 + $0x290] sm:$0xff] }
 0x136   :  { %2784 = vmatmul.mubr.bf16.vlgmr.msra.gmra.mxu1 %v7301_v36  ;;  %2835 = vmatprep.subr.bf16.mxu0 %v5855_v6  ;;  %v5927_v6 = vcombine.high %v271_v0, %v275_v1  ;;  %v359_v48 = vld [vmem:[#allocation5 + $0x690] sm:$0xff] }
 0x137   :  { %2875 = vmatpush1.bf16.msra.mxu1 %v5990_v5  ;;  %2906 = vmatprep.mubr.bf16.mxu1 %v7282_v60  ;;  %v5934_v5 = vcombine.low %v279_v56, %v283_v57  ;;  %v363_v49 = vld [vmem:[#allocation5 + $0x6b0] sm:$0xff] }
 0x138   :  { %2876 = vmatprep.subr.bf16.mxu1 %v5983_v9  ;;  %v267_v9 = vld [vmem:[#allocation5 + $0x3b0] sm:$0xff]  ;;  %v6015_v53 = vcombine.high %v359_v48, %v363_v49 }
 0x139   :  { %2836 = vmatpush1.bf16.msra.mxu0 %v5854_v12  ;;  %v5926_v12 = vcombine.low %v271_v0, %v275_v1  ;;  %v223_v54 = vld [vmem:[#allocation5 + $0x250] sm:$0xff] }
 0x13a   :  { %2837 = vmatprep.subr.bf16.mxu0 %v5847_v14  ;;  %v5919_v14 = vcombine.high %v263_v8, %v267_v9  ;;  %v351_v56 = vld [vmem:[#allocation5 + $0x650] sm:$0xff] }
 0x13b   :  { %2877 = vmatpush1.bf16.msra.mxu1 %v5982_v13  ;;  %v6054_v13 = vcombine.low %v399_v2, %v403_v3  ;;  %v355_v57 = vld [vmem:[#allocation5 + $0x670] sm:$0xff] }
 0x13c   :  { %2878 = vmatprep.subr.bf16.mxu1 %v5975_v18  ;;  %v259_v18 = vld [vmem:[#allocation5 + $0x370] sm:$0xff] }
 0x13d   :  { %2838 = vmatpush1.bf16.msra.mxu0 %v5846_v22  ;;  %v5918_v22 = vcombine.low %v263_v8, %v267_v9  ;;  %v215_v0 = vld [vmem:[#allocation5 + $0x210] sm:$0xff] }
 0x13e   :  { %2839 = vmatprep.subr.bf16.mxu0 %v5839_v24  ;;  %v5911_v24 = vcombine.high %v255_v16, %v259_v18  ;;  %v219_v1 = vld [vmem:[#allocation5 + $0x230] sm:$0xff] }
 0x13f   :  { %2879 = vmatpush1.bf16.msra.mxu1 %v5974_v23  ;;  %v6046_v23 = vcombine.low %v391_v10, %v395_v11  ;;  %v343_v2 = vld [vmem:[#allocation5 + $0x610] sm:$0xff] }
 0x140   :  { %2880 = vmatprep.subr.bf16.mxu1 %v5967_v27  ;;  %v251_v27 = vld [vmem:[#allocation5 + $0x330] sm:$0xff] }
 0x141   :  { %2840 = vmatpush1.bf16.msra.mxu0 %v5838_v31  ;;  %v5910_v31 = vcombine.low %v255_v16, %v259_v18  ;;  %v347_v3 = vld [vmem:[#allocation5 + $0x630] sm:$0xff] }
 0x142   :  { %2841 = vmatprep.subr.bf16.mxu0 %v5831_v33  ;;  %v5903_v33 = vcombine.high %v247_v26, %v251_v27  ;;  %v463_v8 = vld [vmem:[#allocation5 + $0x9d0] sm:$0xff]  ;;  %v5998_v18 = vcombine.low %v343_v2, %v347_v3 }
 0x143   :  { %2881 = vmatpush1.bf16.msra.mxu1 %v5966_v32  ;;  %v6038_v32 = vcombine.low %v383_v19, %v387_v21  ;;  %v467_v9 = vld [vmem:[#allocation5 + $0x9f0] sm:$0xff] }
 0x144   :  { %2882 = vmatprep.subr.bf16.mxu1 %v5959_v39  ;;  %v243_v39 = vld [vmem:[#allocation5 + $0x2f0] sm:$0xff]  ;;  %v6119_v19 = vcombine.high %v463_v8, %v467_v9 }
 0x145   :  { %2842 = vmatpush1.bf16.msra.mxu0 %v5830_v42  ;;  %v5902_v42 = vcombine.low %v247_v26, %v251_v27  ;;  %v535_v11 = vld [vmem:[#allocation5 + $0xc10] sm:$0xff]  ;;  %v208_v27 = vld [vmem:[#allocation5 + $0x1d8] sm:$0xff] }
 0x146   :  { %2843 = vmatprep.subr.bf16.mxu0 %v5823_v44  ;;  %v5895_v44 = vcombine.high %v239_v37, %v243_v39 }
 0x147   :  { %2883 = vmatpush1.bf16.msra.mxu1 %v5958_v43  ;;  %v6030_v43 = vcombine.low %v375_v28, %v379_v30  ;;  %v212_v28 = vld [vmem:[#allocation5 + $0x1f8] sm:$0xff] }
 0x148   :  { %2884 = vmatprep.subr.bf16.mxu1 %v5951_v47  ;;  %v235_v47 = vld [vmem:[#allocation5 + $0x2b0] sm:$0xff] }
 0x149   :  { %2844 = vmatpush1.bf16.msra.mxu0 %v5822_v50  ;;  %v5894_v50 = vcombine.low %v239_v37, %v243_v39  ;;  %v5865_v39 = vcombine.high %v208_v27, %v212_v28 }
 0x14a   :  { %2845 = vmatprep.subr.bf16.mxu0 %v5815_v52  ;;  %v5887_v52 = vcombine.high %v231_v46, %v235_v47 }
 0x14b   :  { %2885 = vmatpush1.bf16.msra.mxu1 %v5950_v51  ;;  %v6022_v51 = vcombine.low %v367_v40, %v371_v41  ;;  %v447_v40 = vld [vmem:[#allocation5 + $0x950] sm:$0xff] }
 0x14c   :  { %2886 = vmatprep.subr.bf16.mxu1 %v5943_v55  ;;  %v227_v55 = vld [vmem:[#allocation5 + $0x270] sm:$0xff] }
 0x14d   :  { %2846 = vmatpush1.bf16.msra.mxu0 %v5814_v58  ;;  %v5886_v58 = vcombine.low %v231_v46, %v235_v47  ;;  %v451_v41 = vld [vmem:[#allocation5 + $0x970] sm:$0xff] }
 0x14e   :  { %2847 = vmatprep.subr.bf16.mxu0 %v5807_v62  ;;  %v5879_v62 = vcombine.high %v223_v54, %v227_v55  ;;  %v439_v46 = vld [vmem:[#allocation5 + $0x910] sm:$0xff] }
 0x14f   :  { %2887 = vmatpush1.bf16.msra.mxu1 %v5942_v61  ;;  %v6014_v61 = vcombine.low %v359_v48, %v363_v49  ;;  %v443_v47 = vld [vmem:[#allocation5 + $0x930] sm:$0xff]  ;;  %v200_v48 = vld [vmem:[#allocation5 + $0x198] sm:$0xff] }
 0x150   :  { %2888 = vmatprep.subr.bf16.mxu1 %v5935_v63  ;;  %v6007_v63 = vcombine.high %v351_v56, %v355_v57  ;;  %v204_v49 = vld [vmem:[#allocation5 + $0x1b8] sm:$0xff] }
 0x151   :  { %2848 = vmatpush1.bf16.msra.mxu0 %v5806_v4  ;;  %v5878_v4 = vcombine.low %v223_v54, %v227_v55  ;;  %v5857_v55 = vcombine.high %v200_v48, %v204_v49 }
 0x152   :  { %2849 = vmatprep.subr.bf16.mxu0 %v5927_v6  ;;  %v5871_v6 = vcombine.high %v215_v0, %v219_v1 }
 0x153   :  { %2889 = vmatpush1.bf16.msra.mxu1 %v5934_v5  ;;  %v6006_v5 = vcombine.low %v351_v56, %v355_v57  ;;  %v431_v56 = vld [vmem:[#allocation5 + $0x8d0] sm:$0xff] }
 0x154   :  { %2890 = vmatprep.subr.bf16.mxu1 %v6055_v7  ;;  %v5999_v7 = vcombine.high %v343_v2, %v347_v3  ;;  %v435_v57 = vld [vmem:[#allocation5 + $0x8f0] sm:$0xff] }
 0x155   :  { %2850 = vmatpush2.bf16.msra.mxu0 %v5926_v12  ;;  %v539_v12 = vld [vmem:[#allocation5 + $0xc30] sm:$0xff] }
 0x156   :  { %2851 = vmatprep.subr.bf16.mxu0 %v5919_v14  ;;  %v5870_v14 = vcombine.low %v215_v0, %v219_v1  ;;  %v6087_v0 = vcombine.high %v431_v56, %v435_v57  ;;  %v423_v2 = vld [vmem:[#allocation5 + $0x890] sm:$0xff] }
 0x157   :  { %2891 = vmatpush2.bf16.msra.mxu1 %v6054_v13  ;;  %v427_v3 = vld [vmem:[#allocation5 + $0x8b0] sm:$0xff] }
 0x158   :  { %2892 = vmatprep.subr.bf16.mxu1 %v6047_v15 }
 0x159   :  { %2852 = vmatpush2.bf16.msra.mxu0 %v5918_v22  ;;  %v6191_v22 = vcombine.high %v535_v11, %v539_v12 }
 0x15a   :  { %2853 = vmatprep.subr.bf16.mxu0 %v5911_v24  ;;  %v459_v24 = vld [vmem:[#allocation5 + $0x9b0] sm:$0xff] }
 0x15b   :  { %2893 = vmatpush2.bf16.msra.mxu1 %v6046_v23  ;;  %v455_v23 = vld [vmem:[#allocation5 + $0x990] sm:$0xff] }
 0x15c   :  { %2894 = vmatprep.subr.bf16.mxu1 %v6039_v25 }
 0x15d   :  { %2854 = vmatpush2.bf16.msra.mxu0 %v5910_v31  ;;  %v6118_v31 = vcombine.low %v463_v8, %v467_v9  ;;  %v6079_v8 = vcombine.high %v423_v2, %v427_v3 }
 0x15e   :  { %2855 = vmatprep.subr.bf16.mxu0 %v5903_v33  ;;  %v6190_v33 = vcombine.low %v535_v11, %v539_v12  ;;  %v419_v11 = vld [vmem:[#allocation5 + $0x870] sm:$0xff]  ;;  %v176_v12 = vld [vmem:[#allocation5 + $0xd8] sm:$0xff] }
 0x15f   :  { %2895 = vmatpush2.bf16.msra.mxu1 %v6038_v32 }
 0x160   :  { %2896 = vmatprep.subr.bf16.mxu1 %v6031_v34  ;;  %v6111_v34 = vcombine.high %v455_v23, %v459_v24 }
 0x161   :  { %2856 = vmatpush2.bf16.msra.mxu0 %v5902_v42 }
 0x162   :  { %2857 = vmatprep.subr.bf16.mxu0 %v5895_v44  ;;  %v6103_v44 = vcombine.high %v447_v40, %v451_v41 }
 0x163   :  { %2897 = vmatpush2.bf16.msra.mxu1 %v6030_v43  ;;  %v6110_v43 = vcombine.low %v455_v23, %v459_v24  ;;  %v172_v23 = vld [vmem:[#allocation5 + $0xb8] sm:$0xff] }
 0x164   :  { %2898 = vmatprep.subr.bf16.mxu1 %v6023_v45 }
 0x165   :  { %2858 = vmatpush2.bf16.msra.mxu0 %v5894_v50 }
 0x166   :  { %2859 = vmatprep.subr.bf16.mxu0 %v5887_v52  ;;  %v5864_v52 = vcombine.low %v208_v27, %v212_v28 }
 0x167   :  { %2899 = vmatpush2.bf16.msra.mxu1 %v6022_v51  ;;  %v6102_v51 = vcombine.low %v447_v40, %v451_v41  ;;  %v519_v41 = vld [vmem:[#allocation5 + $0xb90] sm:$0xff] }
 0x168   :  { %2900 = vmatprep.subr.bf16.mxu1 %v6015_v53  ;;  %v6095_v53 = vcombine.high %v439_v46, %v443_v47 }
 0x169   :  { %2860 = vmatpush2.bf16.msra.mxu0 %v5886_v58  ;;  %v192_v58 = vld [vmem:[#allocation5 + $0x158] sm:$0xff] }
 0x16a   :  { %2861 = vmatprep.subr.bf16.mxu0 %v5879_v62  ;;  %v6094_v62 = vcombine.low %v439_v46, %v443_v47  ;;  %v156_v46 = vld [vmem:[#allocation5 + $0x38] sm:$0xff] }
 0x16b   :  { %2901 = vmatpush2.bf16.msra.mxu1 %v6014_v61  ;;  %v196_v61 = vld [vmem:[#allocation5 + $0x178] sm:$0xff] }
 0x16c   :  { %2902 = vmatprep.subr.bf16.mxu1 %v6007_v63  ;;  %v2539_v10 = vpop.f32.mrf.mxu0  ;;  %v5856_v63 = vcombine.low %v200_v48, %v204_v49  ;;  %v5849_v1 = vcombine.high %v192_v58, %v196_v61 }
 0x16d   :  { %2862 = vmatpush2.bf16.msra.mxu0 %v5878_v4  ;;  %v184_v4 = vld [vmem:[#allocation5 + $0x118] sm:$0xff] }
 0x16e   :  { %v2580_v13 = vpop.f32.mrf.mxu1  ;;  %v2541_v16 = vpop.f32.mrf.mxu0  ;;  %2863 = vmatprep.subr.bf16.mxu0 %v5871_v6  ;;  %v6086_v6 = vcombine.low %v431_v56, %v435_v57 }
 0x16f   :  { %v7314_v15 = vadd.f32 %v2580_v13, %v2539_v10  ;;  %2903 = vmatpush2.bf16.msra.mxu1 %v6006_v5  ;;  %v188_v5 = vld [vmem:[#allocation5 + $0x138] sm:$0xff]  ;;  %v415_v10 = vld [vmem:[#allocation5 + $0x850] sm:$0xff] }
 0x170   :  { %v2582_v21 = vpop.f32.mrf.mxu1  ;;  %2904 = vmatprep.subr.bf16.mxu1 %v5999_v7  ;;  %v2543_v26 = vpop.f32.mrf.mxu0  ;;  %v5848_v7 = vcombine.low %v192_v58, %v196_v61  ;;  %v5841_v9 = vcombine.high %v184_v4, %v188_v5  ;;  %v180_v13 = vld [vmem:[#allocation5 + $0xf8] sm:$0xff]  ;;  %v6070_v24 = vcombine.low %v415_v10, %v419_v11  ;;  %v503_v61 = vld [vmem:[#allocation5 + $0xb10] sm:$0xff] }
 0x171   :  { %v7316_v25 = vadd.f32 %v2582_v21, %v2541_v16  ;;  %2864 = vmatpush2.bf16.msra.mxu0 %v5870_v14  ;;  %v6078_v14 = vcombine.low %v423_v2, %v427_v3  ;;  %v5840_v16 = vcombine.low %v184_v4, %v188_v5  ;;  %v411_v21 = vld [vmem:[#allocation5 + $0x830] sm:$0xff]  ;;  %v5832_v26 = vcombine.low %v176_v12, %v180_v13 }
 0x172   :  { %v2584_v30 = vpop.f32.mrf.mxu1  ;;  %v2544_v32 = vpop.f32.mrf.mxu0  ;;  %2915 = vmatprep.subr.bf16.mxu0 %v6119_v19  ;;  %v407_v19 = vld [vmem:[#allocation5 + $0x810] sm:$0xff] }
 0x173   :  { %2905 = vmatpush2.bf16.msra.mxu1 %v5998_v18  ;;  %v5833_v18 = vcombine.high %v176_v12, %v180_v13  ;;  %v6063_v27 = vcombine.high %v407_v19, %v411_v21  ;;  %v527_v30 = vld [vmem:[#allocation5 + $0xbd0] sm:$0xff]  ;;  %v160_v32 = vld [vmem:[#allocation5 + $0x58] sm:$0xff] }
 0x174   :  { %v2585_v37 = vpop.f32.mrf.mxu1  ;;  %2970 = vmatprep.subr.bf16.mxu1 %v6191_v22  ;;  %2866 = vmatmul.mubr.bf16.vlgmr.msra.gmra.mxu0 %v7286_v17  ;;  %v168_v22 = vld [vmem:[#allocation5 + $0x98] sm:$0xff]  ;;  %v495_v5 = vld [vmem:[#allocation5 + $0xad0] sm:$0xff] }
 0x175   :  { %2916 = vmatpush1.bf16.msra.mxu0 %v6118_v31  ;;  %2947 = vmatprep.mubr.bf16.mxu0 %v7291_v29  ;;  %v5825_v28 = vcombine.high %v168_v22, %v172_v23  ;;  %v531_v31 = vld [vmem:[#allocation5 + $0xbf0] sm:$0xff]  ;;  %v5824_v37 = vcombine.low %v168_v22, %v172_v23 }
 0x176   :  { %2907 = vmatmul.mubr.bf16.vlgmr.msra.gmra.mxu1 %v7288_v20  ;;  %v7320_v42 = vpop.f32.mrf.mxu1  ;;  %2917 = vmatprep.subr.bf16.mxu0 %v6111_v34  ;;  %v6062_v34 = vcombine.low %v407_v19, %v411_v21  ;;  %v6182_v47 = vcombine.low %v527_v30, %v531_v31  ;;  %v487_v13 = vld [vmem:[#allocation5 + $0xa90] sm:$0xff] }
 0x177   :  { %2971 = vmatpush1.bf16.msra.mxu1 %v6190_v33  ;;  %2988 = vmatprep.mubr.bf16.mxu1 %v7202_v35  ;;  %v164_v33 = vld [vmem:[#allocation5 + $0x78] sm:$0xff]  ;;  %v479_v23 = vld [vmem:[#allocation5 + $0xa50] sm:$0xff] }
 0x178   :  { %v7322_v45 = vpop.f32.mrf.mxu1  ;;  %2997 = vmatprep.subr.bf16.mxu1 %v5865_v39  ;;  %v6183_v39 = vcombine.high %v527_v30, %v531_v31  ;;  %v5817_v40 = vcombine.high %v160_v32, %v164_v33  ;;  %v5816_v48 = vcombine.low %v160_v32, %v164_v33  ;;  %v471_v33 = vld [vmem:[#allocation5 + $0xa10] sm:$0xff] }
 0x179   :  { %2918 = vmatpush1.bf16.msra.mxu0 %v6110_v43  ;;  %v523_v43 = vld [vmem:[#allocation5 + $0xbb0] sm:$0xff] }
 0x17a   :  { %v2666_v50 = vpop.f32.mrf.mxu1  ;;  %2919 = vmatprep.subr.bf16.mxu0 %v6103_v44  ;;  %v152_v44 = vld [vmem:[#allocation5 + $0x18] sm:$0xff]  ;;  %v6175_v49 = vcombine.high %v519_v41, %v523_v43 }
 0x17b   :  { %v5809_v50 = vcombine.high %v152_v44, %v156_v46  ;;  %v5808_v56 = vcombine.low %v152_v44, %v156_v46  ;;  %v336_v46 = vld [vmem:[#allocation5 + $0x5d8] sm:$0xff] }
 0x17c   :  { %v2667_v54 = vpop.f32.mrf.mxu1 }
 0x17d   :  { %2920 = vmatpush1.bf16.msra.mxu0 %v6102_v51  ;;  %v511_v51 = vld [vmem:[#allocation5 + $0xb50] sm:$0xff]  ;;  %v276_v54 = vld [vmem:[#allocation5 + $0x3f8] sm:$0xff] }
 0x17e   :  { %6196 = vmatmul.mubr.msk.bf16.vlgmr.msra.gmra.mxu1 %vm2501_vm0, %v7296_v38  ;;  %2921 = vmatprep.subr.bf16.mxu0 %v6095_v53  ;;  %v272_v53 = vld [vmem:[#allocation5 + $0x3d8] sm:$0xff] }
 0x17f   :  { %2998 = vmatpush1.bf16.msra.mxu1 %v5864_v52  ;;  %3029 = vmatprep.mubr.bf16.mxu1 %v7280_v59  ;;  %v6071_v59 = vcombine.high %v415_v10, %v419_v11  ;;  %v515_v52 = vld [vmem:[#allocation5 + $0xb70] sm:$0xff]  ;;  %v5929_v58 = vcombine.high %v272_v53, %v276_v54  ;;  %v5928_v2 = vcombine.low %v272_v53, %v276_v54 }
 0x180   :  { %2999 = vmatprep.subr.bf16.mxu1 %v5857_v55  ;;  %v6174_v55 = vcombine.low %v519_v41, %v523_v43  ;;  %v6167_v57 = vcombine.high %v511_v51, %v515_v52 }
 0x181   :  { %2922 = vmatpush1.bf16.msra.mxu0 %v6094_v62  ;;  %v507_v62 = vld [vmem:[#allocation5 + $0xb30] sm:$0xff] }
 0x182   :  { %2923 = vmatprep.subr.bf16.mxu0 %v6087_v0  ;;  %v268_v0 = vld [vmem:[#allocation5 + $0x3b8] sm:$0xff]  ;;  %v6159_v3 = vcombine.high %v503_v61, %v507_v62 }
 0x183   :  { %3000 = vmatpush1.bf16.msra.mxu1 %v5856_v63  ;;  %v264_v63 = vld [vmem:[#allocation5 + $0x398] sm:$0xff] }
 0x184   :  { %3001 = vmatprep.subr.bf16.mxu1 %v5849_v1  ;;  %v6166_v1 = vcombine.low %v511_v51, %v515_v52  ;;  %v5921_v4 = vcombine.high %v264_v63, %v268_v0  ;;  %v5920_v10 = vcombine.low %v264_v63, %v268_v0  ;;  %v216_v0 = vld [vmem:[#allocation5 + $0x218] sm:$0xff] }
 0x185   :  { %2924 = vmatpush1.bf16.msra.mxu0 %v6086_v6  ;;  %v499_v6 = vld [vmem:[#allocation5 + $0xaf0] sm:$0xff] }
 0x186   :  { %2925 = vmatprep.subr.bf16.mxu0 %v6079_v8  ;;  %v260_v8 = vld [vmem:[#allocation5 + $0x378] sm:$0xff]  ;;  %v6151_v11 = vcombine.high %v495_v5, %v499_v6 }
 0x187   :  { %3002 = vmatpush1.bf16.msra.mxu1 %v5848_v7  ;;  %v256_v7 = vld [vmem:[#allocation5 + $0x358] sm:$0xff] }
 0x188   :  { %3003 = vmatprep.subr.bf16.mxu1 %v5841_v9  ;;  %v6158_v9 = vcombine.low %v503_v61, %v507_v62  ;;  %v5913_v12 = vcombine.high %v256_v7, %v260_v8  ;;  %v5912_v19 = vcombine.low %v256_v7, %v260_v8  ;;  %v328_v61 = vld [vmem:[#allocation5 + $0x598] sm:$0xff] }
 0x189   :  { %2926 = vmatpush1.bf16.msra.mxu0 %v6078_v14  ;;  %v491_v14 = vld [vmem:[#allocation5 + $0xab0] sm:$0xff]  ;;  %v332_v62 = vld [vmem:[#allocation5 + $0x5b8] sm:$0xff] }
 0x18a   :  { %2927 = vmatprep.subr.bf16.mxu0 %v6071_v59  ;;  %v252_v59 = vld [vmem:[#allocation5 + $0x338] sm:$0xff]  ;;  %v6143_v21 = vcombine.high %v487_v13, %v491_v14 }
 0x18b   :  { %3004 = vmatpush1.bf16.msra.mxu1 %v5840_v16  ;;  %v248_v16 = vld [vmem:[#allocation5 + $0x318] sm:$0xff] }
 0x18c   :  { %3005 = vmatprep.subr.bf16.mxu1 %v5833_v18  ;;  %v6150_v18 = vcombine.low %v495_v5, %v499_v6  ;;  %v5905_v22 = vcombine.high %v248_v16, %v252_v59  ;;  %v5904_v30 = vcombine.low %v248_v16, %v252_v59  ;;  %v324_v6 = vld [vmem:[#allocation5 + $0x578] sm:$0xff] }
 0x18d   :  { %2928 = vmatpush1.bf16.msra.mxu0 %v6070_v24  ;;  %v483_v24 = vld [vmem:[#allocation5 + $0xa70] sm:$0xff]  ;;  %v464_v7 = vld [vmem:[#allocation5 + $0x9d8] sm:$0xff] }
 0x18e   :  { %2929 = vmatprep.subr.bf16.mxu0 %v6063_v27  ;;  %v244_v27 = vld [vmem:[#allocation5 + $0x2f8] sm:$0xff]  ;;  %v6135_v31 = vcombine.high %v479_v23, %v483_v24 }
 0x18f   :  { %3006 = vmatpush1.bf16.msra.mxu1 %v5832_v26  ;;  %v240_v26 = vld [vmem:[#allocation5 + $0x2d8] sm:$0xff] }
 0x190   :  { %3007 = vmatprep.subr.bf16.mxu1 %v5825_v28  ;;  %v6142_v28 = vcombine.low %v487_v13, %v491_v14  ;;  %v5897_v32 = vcombine.high %v240_v26, %v244_v27  ;;  %v5896_v41 = vcombine.low %v240_v26, %v244_v27  ;;  %v468_v8 = vld [vmem:[#allocation5 + $0x9f8] sm:$0xff] }
 0x191   :  { %2930 = vmatpush1.bf16.msra.mxu0 %v6062_v34  ;;  %v475_v34 = vld [vmem:[#allocation5 + $0xa30] sm:$0xff]  ;;  %v6121_v13 = vcombine.high %v464_v7, %v468_v8  ;;  %v312_v14 = vld [vmem:[#allocation5 + $0x518] sm:$0xff] }
 0x192   :  { %2931 = vmatprep.subr.bf16.mxu0 %v6183_v39  ;;  %v236_v39 = vld [vmem:[#allocation5 + $0x2b8] sm:$0xff]  ;;  %v6127_v43 = vcombine.high %v471_v33, %v475_v34  ;;  %v6126_v52 = vcombine.low %v471_v33, %v475_v34 }
 0x193   :  { %3008 = vmatpush1.bf16.msra.mxu1 %v5824_v37  ;;  %v232_v37 = vld [vmem:[#allocation5 + $0x298] sm:$0xff] }
 0x194   :  { %3009 = vmatprep.subr.bf16.mxu1 %v5817_v40  ;;  %v6134_v40 = vcombine.low %v479_v23, %v483_v24  ;;  %v5889_v44 = vcombine.high %v232_v37, %v236_v39  ;;  %v5888_v54 = vcombine.low %v232_v37, %v236_v39  ;;  %v316_v16 = vld [vmem:[#allocation5 + $0x538] sm:$0xff] }
 0x195   :  { %2932 = vmatpush2.bf16.msra.mxu0 %v6182_v47  ;;  %v340_v47 = vld [vmem:[#allocation5 + $0x5f8] sm:$0xff]  ;;  %v5969_v23 = vcombine.high %v312_v14, %v316_v16 }
 0x196   :  { %2933 = vmatprep.subr.bf16.mxu0 %v6175_v49  ;;  %v224_v49 = vld [vmem:[#allocation5 + $0x258] sm:$0xff] }
 0x197   :  { %3010 = vmatpush1.bf16.msra.mxu1 %v5816_v48  ;;  %v456_v59 = vld [vmem:[#allocation5 + $0x998] sm:$0xff] }
 0x198   :  { %3011 = vmatprep.subr.bf16.mxu1 %v5809_v50  ;;  %v228_v50 = vld [vmem:[#allocation5 + $0x278] sm:$0xff] }
 0x199   :  { %2934 = vmatpush2.bf16.msra.mxu0 %v6174_v55  ;;  %v5993_v55 = vcombine.high %v336_v46, %v340_v47  ;;  %v304_v26 = vld [vmem:[#allocation5 + $0x4d8] sm:$0xff] }
 0x19a   :  { %2935 = vmatprep.subr.bf16.mxu0 %v6167_v57  ;;  %v308_v27 = vld [vmem:[#allocation5 + $0x4f8] sm:$0xff] }
 0x19b   :  { %3012 = vmatpush1.bf16.msra.mxu1 %v5808_v56  ;;  %v5961_v33 = vcombine.high %v304_v26, %v308_v27  ;;  %v296_v37 = vld [vmem:[#allocation5 + $0x498] sm:$0xff] }
 0x19c   :  { %3013 = vmatprep.subr.bf16.mxu1 %v5929_v58  ;;  %v5881_v58 = vcombine.high %v224_v49, %v228_v50  ;;  %v300_v39 = vld [vmem:[#allocation5 + $0x4b8] sm:$0xff] }
 0x19d   :  { %2936 = vmatpush2.bf16.msra.mxu0 %v6166_v1  ;;  %v220_v1 = vld [vmem:[#allocation5 + $0x238] sm:$0xff] }
 0x19e   :  { %2937 = vmatprep.subr.bf16.mxu0 %v6159_v3  ;;  %v5873_v5 = vcombine.high %v216_v0, %v220_v1 }
 0x19f   :  { %3014 = vmatpush2.bf16.msra.mxu1 %v5928_v2  ;;  %v5992_v2 = vcombine.low %v336_v46, %v340_v47  ;;  %v288_v47 = vld [vmem:[#allocation5 + $0x458] sm:$0xff] }
 0x1a0   :  { %3015 = vmatprep.subr.bf16.mxu1 %v5921_v4  ;;  %v5880_v4 = vcombine.low %v224_v49, %v228_v50  ;;  %v432_v49 = vld [vmem:[#allocation5 + $0x8d8] sm:$0xff] }
 0x1a1   :  { %2938 = vmatpush2.bf16.msra.mxu0 %v6158_v9  ;;  %v436_v50 = vld [vmem:[#allocation5 + $0x8f8] sm:$0xff] }
 0x1a2   :  { %2939 = vmatprep.subr.bf16.mxu0 %v6151_v11 }
 0x1a3   :  { %3016 = vmatpush2.bf16.msra.mxu1 %v5920_v10  ;;  %v5872_v10 = vcombine.low %v216_v0, %v220_v1  ;;  %v400_v1 = vld [vmem:[#allocation5 + $0x7d8] sm:$0xff] }
 0x1a4   :  { %3017 = vmatprep.subr.bf16.mxu1 %v5913_v12 }
 0x1a5   :  { %2940 = vmatpush2.bf16.msra.mxu0 %v6150_v18  ;;  %v460_v18 = vld [vmem:[#allocation5 + $0x9b8] sm:$0xff] }
 0x1a6   :  { %2941 = vmatprep.subr.bf16.mxu0 %v6143_v21  ;;  %v6113_v24 = vcombine.high %v456_v59, %v460_v18 }
 0x1a7   :  { %3018 = vmatpush2.bf16.msra.mxu1 %v5912_v19 }
 0x1a8   :  { %3019 = vmatprep.subr.bf16.mxu1 %v5905_v22  ;;  %v6120_v22 = vcombine.low %v464_v7, %v468_v8  ;;  %v392_v7 = vld [vmem:[#allocation5 + $0x798] sm:$0xff] }
 0x1a9   :  { %2942 = vmatpush2.bf16.msra.mxu0 %v6142_v28  ;;  %v448_v28 = vld [vmem:[#allocation5 + $0x958] sm:$0xff] }
 0x1aa   :  { %2943 = vmatprep.subr.bf16.mxu0 %v6135_v31  ;;  %v5968_v31 = vcombine.low %v312_v14, %v316_v16  ;;  %v396_v8 = vld [vmem:[#allocation5 + $0x7b8] sm:$0xff] }
 0x1ab   :  { %3020 = vmatpush2.bf16.msra.mxu1 %v5904_v30  ;;  %v452_v30 = vld [vmem:[#allocation5 + $0x978] sm:$0xff]  ;;  %v6049_v14 = vcombine.high %v392_v7, %v396_v8 }
 0x1ac   :  { %3021 = vmatprep.subr.bf16.mxu1 %v5897_v32  ;;  %v2621_v48 = vpop.f32.mrf.mxu0  ;;  %v6112_v32 = vcombine.low %v456_v59, %v460_v18  ;;  %v6105_v34 = vcombine.high %v448_v28, %v452_v30  ;;  %v384_v59 = vld [vmem:[#allocation5 + $0x758] sm:$0xff] }
 0x1ad   :  { %v2622_v51 = vadd.f32 %v2621_v48, %v7314_v15  ;;  %2944 = vmatpush2.bf16.msra.mxu0 %v6134_v40  ;;  %v440_v40 = vld [vmem:[#allocation5 + $0x918] sm:$0xff] }
 0x1ae   :  { %v2623_v53 = vpop.f32.mrf.mxu0  ;;  %2945 = vmatprep.subr.bf16.mxu0 %v6127_v43  ;;  %v5960_v43 = vcombine.low %v304_v26, %v308_v27  ;;  %v292_v48 = vld [vmem:[#allocation5 + $0x478] sm:$0xff] }
 0x1af   :  { %3022 = vmatpush2.bf16.msra.mxu1 %v5896_v41  ;;  %v7331_v56 = vadd.f32 %v7320_v42, %v2622_v51  ;;  %v2624_v57 = vadd.f32 %v2623_v53, %v7316_v25  ;;  %v5985_v42 = vcombine.high %v328_v61, %v332_v62  ;;  %v320_v25 = vld [vmem:[#allocation5 + $0x558] sm:$0xff]  ;;  %v5952_v51 = vcombine.low %v296_v37, %v300_v39 }
 0x1b0   :  { %3023 = vmatprep.subr.bf16.mxu1 %v5889_v44  ;;  %v2625_v63 = vpop.f32.mrf.mxu0  ;;  %v5977_v11 = vcombine.high %v320_v25, %v324_v6  ;;  %v5976_v21 = vcombine.low %v320_v25, %v324_v6  ;;  %v444_v41 = vld [vmem:[#allocation5 + $0x938] sm:$0xff]  ;;  %v6104_v44 = vcombine.low %v448_v28, %v452_v30  ;;  %v6089_v53 = vcombine.high %v432_v49, %v436_v50 }
 0x1b1   :  { %v7335_v15 = vadd.f32 %v7322_v45, %v2624_v57  ;;  %2946 = vmatpush2.bf16.msra.mxu0 %v6126_v52  ;;  %v5984_v45 = vcombine.low %v328_v61, %v332_v62  ;;  %v6097_v46 = vcombine.high %v440_v40, %v444_v41  ;;  %v6096_v52 = vcombine.low %v440_v40, %v444_v41  ;;  %v424_v57 = vld [vmem:[#allocation5 + $0x898] sm:$0xff] }
 0x1b2   :  { %v2626_v3 = vpop.f32.mrf.mxu0  ;;  %3038 = vmatprep.subr.bf16.mxu0 %v5993_v55  ;;  %v284_v55 = vld [vmem:[#allocation5 + $0x438] sm:$0xff]  ;;  %v5944_v61 = vcombine.low %v288_v47, %v292_v48  ;;  %v6088_v62 = vcombine.low %v432_v49, %v436_v50 }
 0x1b3   :  { %3024 = vmatpush2.bf16.msra.mxu1 %v5888_v54  ;;  %v280_v54 = vld [vmem:[#allocation5 + $0x418] sm:$0xff] }
 0x1b4   :  { %3025 = vmatprep.subr.bf16.mxu1 %v5881_v58  ;;  %2948 = vmatmul.mubr.bf16.vlgmr.msra.gmra.mxu0 %v7301_v36  ;;  %v428_v58 = vld [vmem:[#allocation5 + $0x8b8] sm:$0xff]  ;;  %v5937_v63 = vcombine.high %v280_v54, %v284_v55 }
 0x1b5   :  { %3039 = vmatpush1.bf16.msra.mxu0 %v5992_v2  ;;  %3070 = vmatprep.mubr.bf16.mxu0 %v7282_v60  ;;  %v6081_v0 = vcombine.high %v424_v57, %v428_v58  ;;  %v404_v2 = vld [vmem:[#allocation5 + $0x7f8] sm:$0xff] }
 0x1b6   :  { %v7338_v9 = vpop.f32.mrf.mxu1  ;;  %3040 = vmatprep.subr.bf16.mxu0 %v5985_v42  ;;  %v416_v3 = vld [vmem:[#allocation5 + $0x858] sm:$0xff]  ;;  %v5936_v42 = vcombine.low %v280_v54, %v284_v55  ;;  %v6057_v25 = vcombine.high %v400_v1, %v404_v2 }
 0x1b7   :  { %3026 = vmatpush2.bf16.msra.mxu1 %v5880_v4  ;;  %v420_v4 = vld [vmem:[#allocation5 + $0x878] sm:$0xff] }
 0x1b8   :  { %v7341_v12 = vpop.f32.mrf.mxu1  ;;  %3027 = vmatprep.subr.bf16.mxu1 %v5873_v5  ;;  %v6080_v5 = vcombine.low %v424_v57, %v428_v58  ;;  %v6073_v6 = vcombine.high %v416_v3, %v420_v4  ;;  %v388_v18 = vld [vmem:[#allocation5 + $0x778] sm:$0xff] }
 0x1b9   :  { %3041 = vmatpush1.bf16.msra.mxu0 %v5984_v45  ;;  %v408_v45 = vld [vmem:[#allocation5 + $0x818] sm:$0xff] }
 0x1ba   :  { %v2707_v19 = vpop.f32.mrf.mxu1  ;;  %3042 = vmatprep.subr.bf16.mxu0 %v5977_v11  ;;  %v6056_v11 = vcombine.low %v400_v1, %v404_v2  ;;  %v376_v26 = vld [vmem:[#allocation5 + $0x718] sm:$0xff] }
 0x1bb   :  { %3028 = vmatpush2.bf16.msra.mxu1 %v5872_v10  ;;  %v412_v10 = vld [vmem:[#allocation5 + $0x838] sm:$0xff] }
 0x1bc   :  { %v2708_v60 = vpop.f32.mrf.mxu1  ;;  %3079 = vmatprep.subr.bf16.mxu1 %v6121_v13  ;;  %v6072_v13 = vcombine.low %v416_v3, %v420_v4  ;;  %v6065_v16 = vcombine.high %v408_v45, %v412_v10  ;;  %v528_v19 = vld [vmem:[#allocation5 + $0xbd8] sm:$0xff] }
 0x1bd   :  { %3043 = vmatpush1.bf16.msra.mxu0 %v5976_v21  ;;  %v532_v21 = vld [vmem:[#allocation5 + $0xbf8] sm:$0xff]  ;;  %v6041_v60 = vcombine.high %v384_v59, %v388_v18 }
 0x1be   :  { %3030 = vmatmul.mubr.bf16.vlgmr.msra.gmra.mxu1 %v7286_v17  ;;  %3044 = vmatprep.subr.bf16.mxu0 %v5969_v23  ;;  %v5953_v17 = vcombine.high %v296_v37, %v300_v39  ;;  %v6064_v23 = vcombine.low %v408_v45, %v412_v10  ;;  %v380_v27 = vld [vmem:[#allocation5 + $0x738] sm:$0xff] }
 0x1bf   :  { %3080 = vmatpush1.bf16.msra.mxu1 %v6120_v22  ;;  %3111 = vmatprep.mubr.bf16.mxu1 %v7291_v29  ;;  %v5945_v29 = vcombine.high %v288_v47, %v292_v48  ;;  %v6048_v22 = vcombine.low %v392_v7, %v396_v8  ;;  %v520_v28 = vld [vmem:[#allocation5 + $0xb98] sm:$0xff] }
 0x1c0   :  { %3081 = vmatprep.subr.bf16.mxu1 %v6113_v24  ;;  %v6185_v24 = vcombine.high %v528_v19, %v532_v21  ;;  %v524_v30 = vld [vmem:[#allocation5 + $0xbb8] sm:$0xff] }
 0x1c1   :  { %3045 = vmatpush1.bf16.msra.mxu0 %v5968_v31  ;;  %v6040_v31 = vcombine.low %v384_v59, %v388_v18  ;;  %v6177_v37 = vcombine.high %v520_v28, %v524_v30  ;;  %v368_v39 = vld [vmem:[#allocation5 + $0x6d8] sm:$0xff] }
 0x1c2   :  { %3046 = vmatprep.subr.bf16.mxu0 %v5961_v33  ;;  %v6033_v33 = vcombine.high %v376_v26, %v380_v27  ;;  %v372_v40 = vld [vmem:[#allocation5 + $0x6f8] sm:$0xff] }
 0x1c3   :  { %3082 = vmatpush1.bf16.msra.mxu1 %v6112_v32  ;;  %v6184_v32 = vcombine.low %v528_v19, %v532_v21  ;;  %v512_v41 = vld [vmem:[#allocation5 + $0xb58] sm:$0xff] }
 0x1c4   :  { %3083 = vmatprep.subr.bf16.mxu1 %v6105_v34  ;;  %v3171_v34 = vlaneseq  ;;  %v360_v49 = vld [vmem:[#allocation5 + $0x698] sm:$0xff] }
 0x1c5   :  { %3047 = vmatpush1.bf16.msra.mxu0 %v5960_v43  ;;  %v516_v43 = vld [vmem:[#allocation5 + $0xb78] sm:$0xff] }
 0x1c6   :  { %3048 = vmatprep.subr.bf16.mxu0 %v5953_v17  ;;  %v6176_v17 = vcombine.low %v520_v28, %v524_v30  ;;  %v7345_v47 = vshrl.u32 %v3171_v34, 7  ;;  %v6169_v48 = vcombine.high %v512_v41, %v516_v43  ;;  %v364_v50 = vld [vmem:[#allocation5 + $0x6b8] sm:$0xff]  ;;  %v6168_v54 = vcombine.low %v512_v41, %v516_v43 }
 0x1c7   :  { %3084 = vmatpush1.bf16.msra.mxu1 %v6104_v44  ;;  %v6032_v44 = vcombine.low %v376_v26, %v380_v27  ;;  %v6017_v55 = vcombine.high %v360_v49, %v364_v50  ;;  %v352_v58 = vld [vmem:[#allocation5 + $0x658] sm:$0xff]  ;;  %v6016_v2 = vcombine.low %v360_v49, %v364_v50  ;;  %v3162_v34 = vpack.c.bf16 %v7335_v15, %v7335_v15 }
 0x1c8   :  { %3085 = vmatprep.subr.bf16.mxu1 %v6097_v46  ;;  %v6025_v46 = vcombine.high %v368_v39, %v372_v40  ;;  %v492_v7 = vld [vmem:[#allocation5 + $0xab8] sm:$0xff]  ;;  %v7362_v30 = vsub.s32 0, %v7345_v47 }
 0x1c9   :  { %3049 = vmatpush1.bf16.msra.mxu0 %v5952_v51  ;;  %v504_v51 = vld [vmem:[#allocation5 + $0xb18] sm:$0xff] }
 0x1ca   :  { %3050 = vmatprep.subr.bf16.mxu0 %v5945_v29  ;;  %v7348_v29 = vsub.s32 1, %v7345_v47  ;;  %v540_v59 = vld [vmem:[#allocation5 + $0xc38] sm:$0xff] }
 0x1cb   :  { %3086 = vmatpush1.bf16.msra.mxu1 %v6096_v52  ;;  %v508_v52 = vld [vmem:[#allocation5 + $0xb38] sm:$0xff] }
 0x1cc   :  { %3087 = vmatprep.subr.bf16.mxu1 %v6089_v53  ;;  %v6024_v53 = vcombine.low %v368_v39, %v372_v40  ;;  %v6161_v57 = vcombine.high %v504_v51, %v508_v52  ;;  %v6160_v3 = vcombine.low %v504_v51, %v508_v52  ;;  %v480_v19 = vld [vmem:[#allocation5 + $0xa58] sm:$0xff] }
 0x1cd   :  { %3051 = vmatpush1.bf16.msra.mxu0 %v5944_v61  ;;  %v356_v61 = vld [vmem:[#allocation5 + $0x678] sm:$0xff] }
 0x1ce   :  { %3052 = vmatprep.subr.bf16.mxu0 %v5937_v63  ;;  %v496_v63 = vld [vmem:[#allocation5 + $0xad8] sm:$0xff]  ;;  %v6009_v4 = vcombine.high %v352_v58, %v356_v61  ;;  %v6008_v45 = vcombine.low %v352_v58, %v356_v61 }
 0x1cf   :  { %3088 = vmatpush1.bf16.msra.mxu1 %v6088_v62  ;;  %v7350_v62 = vld [vmem:[#allocation7] sm:$0xff]  ;;  %v484_v21 = vld [vmem:[#allocation5 + $0xa78] sm:$0xff] }
 0x1d0   :  { %3089 = vmatprep.subr.bf16.mxu1 %v6081_v0  ;;  %v500_v0 = vld [vmem:[#allocation5 + $0xaf8] sm:$0xff]  ;;  %v3178_v1 = vrot.slane %v7350_v62, %v7348_v29  ;;  %v6136_v41 = vcombine.low %v480_v19, %v484_v21 }
 0x1d1   :  { %3053 = vmatpush1.bf16.msra.mxu0 %v5936_v42  ;;  %v6153_v42 = vcombine.high %v496_v63, %v500_v0  ;;  %v6152_v10 = vcombine.low %v496_v63, %v500_v0  ;;  %v6534_v58 = vld [vmem:[#allocation8 + $0xe0] ss:$16 sps:$4 sm:$0xff]  }
 0x1d2   :  { %3054 = vmatprep.subr.bf16.mxu0 %v6057_v25  ;;  %v348_v25 = vld [vmem:[#allocation5 + $0x638] sm:$0xff]  ;;  %v3212_v8 = vpack.c.bf16 %v3178_v1, %v3178_v1 }
 0x1d3   :  { %3090 = vmatpush1.bf16.msra.mxu1 %v6080_v5  ;;  %v344_v5 = vld [vmem:[#allocation5 + $0x618] sm:$0xff] }
 0x1d4   :  { %3091 = vmatprep.subr.bf16.mxu1 %v6073_v6  ;;  %v488_v6 = vld [vmem:[#allocation5 + $0xa98] sm:$0xff] }
 0x1d5   :  { %3055 = vmatpush2.bf16.msra.mxu0 %v6056_v11  ;;  %v6001_v11 = vcombine.high %v344_v5, %v348_v25  ;;  %v6144_v26 = vcombine.low %v488_v6, %v492_v7  ;;  %v6537_v1 = vld [vmem:[#allocation8 + $0x2e0] ss:$16 sps:$4 sm:$0xff]  }
 0x1d6   :  { %3056 = vmatprep.subr.bf16.mxu0 %v6049_v14  ;;  %v6145_v14 = vcombine.high %v488_v6, %v492_v7  ;;  %v6543_v6 = vld [vmem:[#allocation8 + $0x2c0] ss:$16 sps:$4 sm:$0xff]   ;;  %v6548_v7 = vld [vmem:[#allocation8 + $0xa4] ss:$16 sps:$4 sm:$0xff]  }
 0x1d7   :  { %3092 = vmatpush1.bf16.msra.mxu1 %v6072_v13  ;;  %v3185_v13 = vsub.s32 3, %v7345_v47 }
 0x1d8   :  { %3093 = vmatprep.subr.bf16.mxu1 %v6065_v16  ;;  %v536_v16 = vld [vmem:[#allocation5 + $0xc18] sm:$0xff] }
 0x1d9   :  { %3057 = vmatpush2.bf16.msra.mxu0 %v6048_v22  ;;  %v3227_v22 = vpack.i.b16 %v3212_v8, %v3212_v8  ;;  %v6193_v27 = vcombine.high %v536_v16, %v540_v59  ;;  %v3186_v28 = vrot.slane %v7350_v62, %v3185_v13  ;;  %v6192_v39 = vcombine.low %v536_v16, %v540_v59  ;;  %v6551_v8 = vld [vmem:[#allocation8 + $0x2a4] ss:$16 sps:$4 sm:$0xff]   ;;  %v6552_v16 = vld [vmem:[#allocation8 + $0x80] ss:$16 sps:$4 sm:$0xff]  }
 0x1da   :  { %3058 = vmatprep.subr.bf16.mxu0 %v6041_v60  ;;  %v6000_v60 = vcombine.low %v344_v5, %v348_v25  ;;  %v6540_v5 = vld [vmem:[#allocation8 + $0xc0] ss:$16 sps:$4 sm:$0xff]  }
 0x1db   :  { %3094 = vmatpush1.bf16.msra.mxu1 %v6064_v23  ;;  %v3214_v43 = vpack.c.bf16 %v3186_v28, %v3186_v28  ;;  %v6555_v59 = vld [vmem:[#allocation8 + $0x280] ss:$16 sps:$4 sm:$0xff]   ;;  %v6572_v28 = vld [vmem:[#allocation8 + $0x24] ss:$16 sps:$4 sm:$0xff]  }
 0x1dc   :  { %3095 = vmatprep.subr.bf16.mxu1 %v6185_v24 }
 0x1dd   :  { %3059 = vmatpush2.bf16.msra.mxu0 %v6040_v31  ;;  %v6137_v31 = vcombine.high %v480_v19, %v484_v21  ;;  %v3241_v51 = vpack.i.b16 %v3214_v43, %v3214_v43  ;;  %v6563_v19 = vld [vmem:[#allocation8 + $0x264] ss:$16 sps:$4 sm:$0xff]   ;;  %v6558_v21 = vld [vmem:[#allocation8 + $0x60] ss:$16 sps:$4 sm:$0xff]  }
 0x1de   :  { %3060 = vmatprep.subr.bf16.mxu0 %v6033_v33  ;;  %v472_v33 = vld [vmem:[#allocation5 + $0xa18] sm:$0xff] }
 0x1df   :  { %3096 = vmatpush2.bf16.msra.mxu1 %v6184_v32  ;;  %v3246_v0 = vrot.slane %v3241_v51, %v7362_v30  ;;  %v6582_v43 = vld [vmem:[#allocation8 + $0x1e0] ss:$16 sps:$4 sm:$0xff]   ;;  %v6596_v51 = vld [vmem:[#allocation8 + $0x1a4] ss:$16 sps:$4 sm:$0xff]  }
 0x1e0   :  { %3097 = vmatprep.subr.bf16.mxu1 %v6177_v37  ;;  %v3232_v37 = vrot.slane %v3227_v22, %v7362_v30  ;;  %v6561_v22 = vld [vmem:[#allocation8 + $0x260] ss:$16 sps:$4 sm:$0xff]  }
 0x1e1   :  { %3061 = vmatpush2.bf16.msra.mxu0 %v6032_v44  ;;  %v6536_v44 = vld [vmem:[#allocation8 + $0xe4] ss:$16 sps:$4 sm:$0xff]  }
 0x1e2   :  { %3062 = vmatprep.subr.bf16.mxu0 %v6025_v46 }
 0x1e3   :  { %3098 = vmatpush2.bf16.msra.mxu1 %v6176_v17 }
 0x1e4   :  { %3099 = vmatprep.subr.bf16.mxu1 %v6169_v48  ;;  %v3276_v48 = vadd.bf16 %v3232_v37, %v3162_v34  ;;  %v6581_v34 = vld [vmem:[#allocation8 + $0x204] ss:$16 sps:$4 sm:$0xff]   ;;  %v6576_v37 = vld [vmem:[#allocation8] ss:$16 sps:$4 sm:$0xff]  }
 0x1e5   :  { %3063 = vmatpush2.bf16.msra.mxu0 %v6024_v53 }
 0x1e6   :  { %3064 = vmatprep.subr.bf16.mxu0 %v6017_v55  ;;  %v3292_v61 = vmul.bf16 1045249613, %v3276_v48  ;;  %vm3284_vm1 = vcmp.ge.bf16.partialorder %v3276_v48, 0 }
 0x1e7   :  { %3100 = vmatpush2.bf16.msra.mxu1 %v6168_v54  ;;  %v6539_v54 = vld [vmem:[#allocation8 + $0x2e4] ss:$16 sps:$4 sm:$0xff]  }
 0x1e8   :  { %3101 = vmatprep.subr.bf16.mxu1 %v6161_v57 }
 0x1e9   :  { %3065 = vmatpush2.bf16.msra.mxu0 %v6016_v2  ;;  %v6542_v2 = vld [vmem:[#allocation8 + $0xc4] ss:$16 sps:$4 sm:$0xff]  }
 0x1ea   :  { %3066 = vmatprep.subr.bf16.mxu0 %v6009_v4 }
 0x1eb   :  { %3102 = vmatpush2.bf16.msra.mxu1 %v6160_v3  ;;  %v6545_v3 = vld [vmem:[#allocation8 + $0x2c4] ss:$16 sps:$4 sm:$0xff]  }
 0x1ec   :  { %3103 = vmatprep.subr.bf16.mxu1 %v6153_v42  ;;  %v2744_v18 = vpop.f32.mrf.mxu0  ;;  %v7378_v42 = vsel %vm3284_vm1, %v3276_v48, %v3292_v61  ;;  %v6593_v48 = vld [vmem:[#allocation8 + $0x3c4] ss:$16 sps:$4 sm:$0xff]  }
 0x1ed   :  { %v7356_v23 = vadd.f32 %v2744_v18, %v7338_v9  ;;  %3067 = vmatpush2.bf16.msra.mxu0 %v6008_v45  ;;  %v476_v9 = vld [vmem:[#allocation5 + $0xa38] sm:$0xff] }
 0x1ee   :  { %v2746_v24 = vpop.f32.mrf.mxu0  ;;  %3068 = vmatprep.subr.bf16.mxu0 %v6001_v11  ;;  %v6129_v17 = vcombine.high %v472_v33, %v476_v9  ;;  %v6128_v52 = vcombine.low %v472_v33, %v476_v9  ;;  %v6554_v11 = vld [vmem:[#allocation8 + $0x84] ss:$16 sps:$4 sm:$0xff]   ;;  %v6573_v33 = vld [vmem:[#allocation8 + $0x220] ss:$16 sps:$4 sm:$0xff]  }
 0x1ef   :  { %3104 = vmatpush2.bf16.msra.mxu1 %v6152_v10  ;;  %v2747_v15 = vadd.f32 %v2746_v24, %v7341_v12  ;;  %v6546_v10 = vld [vmem:[#allocation8 + $0xa0] ss:$16 sps:$4 sm:$0xff]   ;;  %v6560_v18 = vld [vmem:[#allocation8 + $0x64] ss:$16 sps:$4 sm:$0xff]  }
 0x1f0   :  { %3105 = vmatprep.subr.bf16.mxu1 %v6145_v14  ;;  %v2748_v32 = vpop.f32.mrf.mxu0  ;;  %v6557_v14 = vld [vmem:[#allocation8 + $0x284] ss:$16 sps:$4 sm:$0xff]  }
 0x1f1   :  { %3069 = vmatpush2.bf16.msra.mxu0 %v6000_v60  ;;  %v6566_v60 = vld [vmem:[#allocation8 + $0x44] ss:$16 sps:$4 sm:$0xff]   ;;  %v6570_v32 = vld [vmem:[#allocation8 + $0x20] ss:$16 sps:$4 sm:$0xff]  }
 0x1f2   :  { %v2749_v40 = vpop.f32.mrf.mxu0  ;;  %3134 = vmatprep.subr.bf16.mxu0 %v6193_v27  ;;  %v6569_v24 = vld [vmem:[#allocation8 + $0x244] ss:$16 sps:$4 sm:$0xff]   ;;  %v6567_v27 = vld [vmem:[#allocation8 + $0x240] ss:$16 sps:$4 sm:$0xff]  }
 0x1f3   :  { %3106 = vmatpush2.bf16.msra.mxu1 %v6144_v26  ;;  %v6564_v26 = vld [vmem:[#allocation8 + $0x40] ss:$16 sps:$4 sm:$0xff]   ;;  %v6578_v9 = vld [vmem:[#allocation8 + $0x4] ss:$16 sps:$4 sm:$0xff]  }
 0x1f4   :  { %3107 = vmatprep.subr.bf16.mxu1 %v6137_v31  ;;  %3071 = vmatmul.mubr.bf16.vlgmr.msra.gmra.mxu0 %v7288_v20  ;;  %v7368_v46 = vpop.f32.mrf.mxu0  ;;  %v6575_v31 = vld [vmem:[#allocation8 + $0x224] ss:$16 sps:$4 sm:$0xff]  }
 0x1f5   :  { %3135 = vmatpush1.bf16.msra.mxu0 %v6192_v39  ;;  %3152 = vmatprep.mubr.bf16.mxu0 %v7202_v35  ;;  %v6579_v39 = vld [vmem:[#allocation8 + $0x200] ss:$16 sps:$4 sm:$0xff]   ;;  %v6584_v40 = vld [vmem:[#allocation8 + $0x1e4] ss:$16 sps:$4 sm:$0xff]  }
 0x1f6   :  { %v7370_v49 = vpop.f32.mrf.mxu1  ;;  %v2828_v50 = vpop.f32.mrf.mxu0  ;;  %4843 = vmatprep.subr.bf16.mxu0 %v6536_v44  ;;  %v6585_v44 = vld [vmem:[#allocation8 + $0x3e0] ss:$16 sps:$4 sm:$0xff]  }
 0x1f7   :  { %3108 = vmatpush2.bf16.msra.mxu1 %v6136_v41  ;;  %v6587_v41 = vld [vmem:[#allocation8 + $0x3e4] ss:$16 sps:$4 sm:$0xff]  }
 0x1f8   :  { %v2787_v53 = vpop.f32.mrf.mxu1  ;;  %3109 = vmatprep.subr.bf16.mxu1 %v6129_v17  ;;  %v2830_v20 = vpop.f32.mrf.mxu0  ;;  %v6590_v17 = vld [vmem:[#allocation8 + $0x1c4] ss:$16 sps:$4 sm:$0xff]  }
 0x1f9   :  { %v2788_v55 = vadd.f32 %v2787_v53, %v2747_v15  ;;  %v6588_v15 = vld [vmem:[#allocation8 + $0x1c0] ss:$16 sps:$4 sm:$0xff]   ;;  %v7385_v53 = vsub.s32 2, %v7345_v47  ;;  %v6602_v20 = vld [vmem:[#allocation8 + $0x184] ss:$16 sps:$4 sm:$0xff]  }
 0x1fa   :  { %v2789_v57 = vpop.f32.mrf.mxu1  ;;  %v2831_v35 = vpop.f32.mrf.mxu0 }
 0x1fb   :  { %v2829_v63 = vadd.f32 %v2828_v50, %v2788_v55  ;;  %3110 = vmatpush2.bf16.msra.mxu1 %v6128_v52  ;;  %v6591_v50 = vld [vmem:[#allocation8 + $0x3c0] ss:$16 sps:$4 sm:$0xff]   ;;  %v6599_v52 = vld [vmem:[#allocation8 + $0x3a4] ss:$16 sps:$4 sm:$0xff]   ;;  %v3174_v57 = vrot.slane %v7350_v62, %v7362_v30  ;;  %v3182_v61 = vrot.slane %v7350_v62, %v7385_v53 }
 0x1fc   :  { %v2790_v12 = vpop.f32.mrf.mxu1  ;;  %4884 = vmatprep.subr.bf16.mxu1 %v6539_v54  ;;  %6197 = vmatmul.mubr.msk.bf16.vlgmr.msra.gmra.mxu0 %vm2501_vm0, %v7296_v38  ;;  %v6594_v54 = vld [vmem:[#allocation8 + $0x1a0] ss:$16 sps:$4 sm:$0xff]   ;;  %v6608_v35 = vld [vmem:[#allocation8 + $0x164] ss:$16 sps:$4 sm:$0xff]  }
 0x1fd   :  { %v3164_v4 = vpack.c.bf16 %v2829_v63, %v2829_v63  ;;  %4844 = vmatpush1.bf16.msra.mxu0 %v6534_v58  ;;  %4875 = vmatprep.mubr.bf16.mxu0 %v7378_v42  ;;  %v6597_v55 = vld [vmem:[#allocation8 + $0x3a0] ss:$16 sps:$4 sm:$0xff]   ;;  %v6605_v58 = vld [vmem:[#allocation8 + $0x384] ss:$16 sps:$4 sm:$0xff]  }
 0x1fe   :  { %3112 = vmatmul.mubr.bf16.vlgmr.msra.gmra.mxu1 %v7301_v36  ;;  %4845 = vmatprep.subr.bf16.mxu0 %v6542_v2  ;;  %v6549_v36 = vld [vmem:[#allocation8 + $0x2a0] ss:$16 sps:$4 sm:$0xff]   ;;  %v6611_v12 = vld [vmem:[#allocation8 + $0x364] ss:$16 sps:$4 sm:$0xff]   ;;  %v2786_v2 = vadd.f32 %v7370_v49, %v7356_v23  ;;  %v3161_v23 = vpack.c.bf16 %v7331_v56, %v7331_v56 }
 0x1ff   :  { %v3278_v25 = vadd.bf16 %v3246_v0, %v3164_v4  ;;  %4885 = vmatpush1.bf16.msra.mxu1 %v6537_v1  ;;  %v6600_v63 = vld [vmem:[#allocation8 + $0x180] ss:$16 sps:$4 sm:$0xff]   ;;  %v3211_v1 = vpack.c.bf16 %v3174_v57, %v3174_v57 }
 0x200   :  { %4886 = vmatprep.subr.bf16.mxu1 %v6545_v3  ;;  %v6603_v0 = vld [vmem:[#allocation8 + $0x380] ss:$16 sps:$4 sm:$0xff]   ;;  %v3213_v3 = vpack.c.bf16 %v3182_v61, %v3182_v61 }
 0x201   :  { %vm3286_vm2 = vcmp.ge.bf16.partialorder %v3278_v25, 0  ;;  %v3294_v45 = vmul.bf16 1045249613, %v3278_v25  ;;  %4846 = vmatpush1.bf16.msra.mxu0 %v6540_v5  ;;  %v6606_v4 = vld [vmem:[#allocation8 + $0x160] ss:$16 sps:$4 sm:$0xff]  }
 0x202   :  { %4847 = vmatprep.subr.bf16.mxu0 %v6548_v7  ;;  %v6609_v5 = vld [vmem:[#allocation8 + $0x360] ss:$16 sps:$4 sm:$0xff]   ;;  %v6617_v7 = vld [vmem:[#allocation8 + $0x344] ss:$16 sps:$4 sm:$0xff]  }
 0x203   :  { %4887 = vmatpush1.bf16.msra.mxu1 %v6543_v6  ;;  %v7381_v38 = vsel %vm3286_vm2, %v3278_v25, %v3294_v45  ;;  %v6614_v25 = vld [vmem:[#allocation8 + $0x144] ss:$16 sps:$4 sm:$0xff]   ;;  %v3220_v6 = vpack.i.b16 %v3211_v1, %v3211_v1  ;;  %v3234_v45 = vpack.i.b16 %v3213_v3, %v3213_v3  ;;  %v6624_v56 = vld [vmem:[#allocation8 + $0x100] ss:$16 sps:$4 sm:$0xff]  }
 0x204   :  { %4916 = vmatprep.mubr.bf16.mxu1 %v7381_v38  ;;  %4888 = vmatprep.subr.bf16.mxu1 %v6551_v8  ;;  %v2827_v8 = vadd.f32 %v7368_v46, %v2786_v2  ;;  %v6621_v46 = vld [vmem:[#allocation8 + $0x320] ss:$16 sps:$4 sm:$0xff]   ;;  %v6644_v3 = vld [vmem:[#allocation8 + $0x464] ss:$16 sps:$4 sm:$0xff]  }
 0x205   :  { %4848 = vmatpush1.bf16.msra.mxu0 %v6546_v10  ;;  %v6612_v10 = vld [vmem:[#allocation8 + $0x140] ss:$16 sps:$4 sm:$0xff]   ;;  %v3225_v49 = vrot.slane %v3220_v6, %v7362_v30  ;;  %v6647_v6 = vld [vmem:[#allocation8 + $0x444] ss:$16 sps:$4 sm:$0xff]  }
 0x206   :  { %4849 = vmatprep.subr.bf16.mxu0 %v6554_v11  ;;  %v6620_v11 = vld [vmem:[#allocation8 + $0x124] ss:$16 sps:$4 sm:$0xff]   ;;  %v6639_v2 = vld [vmem:[#allocation8 + $0x480] ss:$16 sps:$4 sm:$0xff]  }
 0x207   :  { %4889 = vmatpush1.bf16.msra.mxu1 %v6549_v36  ;;  %v6615_v36 = vld [vmem:[#allocation8 + $0x340] ss:$16 sps:$4 sm:$0xff]  }
 0x208   :  { %4890 = vmatprep.subr.bf16.mxu1 %v6557_v14  ;;  %v6623_v14 = vld [vmem:[#allocation8 + $0x324] ss:$16 sps:$4 sm:$0xff]  }
 0x209   :  { %4850 = vmatpush1.bf16.msra.mxu0 %v6552_v16  ;;  %v3163_v16 = vpack.c.bf16 %v2827_v8, %v2827_v8  ;;  %v6716_v8 = vld [vmem:[#allocation8 + $0x644] ss:$16 sps:$4 sm:$0xff]  }
 0x20a   :  { %4851 = vmatprep.subr.bf16.mxu0 %v6560_v18  ;;  %v6618_v18 = vld [vmem:[#allocation8 + $0x120] ss:$16 sps:$4 sm:$0xff]  }
 0x20b   :  { %4891 = vmatpush1.bf16.msra.mxu1 %v6555_v59  ;;  %v3239_v59 = vrot.slane %v3234_v45, %v7362_v30  ;;  %v6645_v45 = vld [vmem:[#allocation8 + $0x440] ss:$16 sps:$4 sm:$0xff]  }
 0x20c   :  { %4892 = vmatprep.subr.bf16.mxu1 %v6563_v19  ;;  %v6626_v19 = vld [vmem:[#allocation8 + $0x104] ss:$16 sps:$4 sm:$0xff]  }
 0x20d   :  { %4852 = vmatpush1.bf16.msra.mxu0 %v6558_v21  ;;  %v3275_v21 = vadd.bf16 %v3225_v49, %v3161_v23  ;;  %v6648_v23 = vld [vmem:[#allocation8 + $0x420] ss:$16 sps:$4 sm:$0xff]   ;;  %v6653_v49 = vld [vmem:[#allocation8 + $0x404] ss:$16 sps:$4 sm:$0xff]  }
 0x20e   :  { %4853 = vmatprep.subr.bf16.mxu0 %v6566_v60  ;;  %v3277_v60 = vadd.bf16 %v3239_v59, %v3163_v16  ;;  %v6728_v16 = vld [vmem:[#allocation8 + $0x604] ss:$16 sps:$4 sm:$0xff]   ;;  %v6651_v59 = vld [vmem:[#allocation8 + $0x400] ss:$16 sps:$4 sm:$0xff]  }
 0x20f   :  { %4893 = vmatpush1.bf16.msra.mxu1 %v6561_v22  ;;  %v6629_v22 = vld [vmem:[#allocation8 + $0x304] ss:$16 sps:$4 sm:$0xff]   ;;  %vm3283_vm3 = vcmp.ge.bf16.partialorder %v3275_v21, 0 }
 0x210   :  { %4894 = vmatprep.subr.bf16.mxu1 %v6569_v24  ;;  %vm3285_vm4 = vcmp.ge.bf16.partialorder %v3277_v60, 0 }
 0x211   :  { %4854 = vmatpush1.bf16.msra.mxu0 %v6564_v26 }
 0x212   :  { %4855 = vmatprep.subr.bf16.mxu0 %v6572_v28 }
 0x213   :  { %4895 = vmatpush1.bf16.msra.mxu1 %v6567_v27 }
 0x214   :  { %4896 = vmatprep.subr.bf16.mxu1 %v6575_v31  ;;  %v6627_v31 = vld [vmem:[#allocation8 + $0x300] ss:$16 sps:$4 sm:$0xff]  }
 0x215   :  { %4856 = vmatpush1.bf16.msra.mxu0 %v6570_v32  ;;  %v6632_v32 = vld [vmem:[#allocation8 + $0x4e4] ss:$16 sps:$4 sm:$0xff]  }
 0x216   :  { %4857 = vmatprep.subr.bf16.mxu0 %v6578_v9  ;;  %v3291_v9 = vmul.bf16 1045249613, %v3275_v21 }
 0x217   :  { %4897 = vmatpush1.bf16.msra.mxu1 %v6573_v33 }
 0x218   :  { %4898 = vmatprep.subr.bf16.mxu1 %v6581_v34  ;;  %v6686_v34 = vld [vmem:[#allocation8 + $0x6e4] ss:$16 sps:$4 sm:$0xff]  }
 0x219   :  { %4858 = vmatpush1.bf16.msra.mxu0 %v6576_v37  ;;  %v3293_v37 = vmul.bf16 1045249613, %v3277_v60 }
 0x21a   :  { %4859 = vmatprep.subr.bf16.mxu0 %v6584_v40 }
 0x21b   :  { %4899 = vmatpush1.bf16.msra.mxu1 %v6579_v39 }
 0x21c   :  { %4900 = vmatprep.subr.bf16.mxu1 %v6587_v41  ;;  %v6630_v41 = vld [vmem:[#allocation8 + $0x4e0] ss:$16 sps:$4 sm:$0xff]  }
 0x21d   :  { %4860 = vmatpush2.bf16.msra.mxu0 %v6582_v43 }
 0x21e   :  { %4861 = vmatprep.subr.bf16.mxu0 %v6590_v17  ;;  %v6684_v17 = vld [vmem:[#allocation8 + $0x6e0] ss:$16 sps:$4 sm:$0xff]  }
 0x21f   :  { %4901 = vmatpush2.bf16.msra.mxu1 %v6585_v44  ;;  %v6635_v44 = vld [vmem:[#allocation8 + $0x4c4] ss:$16 sps:$4 sm:$0xff]  }
 0x220   :  { %4902 = vmatprep.subr.bf16.mxu1 %v6593_v48 }
 0x221   :  { %4862 = vmatpush2.bf16.msra.mxu0 %v6588_v15  ;;  %v7404_v15 = vsel %vm3283_vm3, %v3275_v21, %v3291_v9  ;;  %v6654_v21 = vld [vmem:[#allocation8 + $0x5e0] ss:$16 sps:$4 sm:$0xff]  }
 0x222   :  { %4863 = vmatprep.subr.bf16.mxu0 %v6596_v51  ;;  %v7407_v51 = vsel %vm3285_vm4, %v3277_v60, %v3293_v37  ;;  %v6732_v60 = vld [vmem:[#allocation8 + $0x7e0] ss:$16 sps:$4 sm:$0xff]  }
 0x223   :  { %4903 = vmatpush2.bf16.msra.mxu1 %v6591_v50  ;;  %v6692_v50 = vld [vmem:[#allocation8 + $0x6c4] ss:$16 sps:$4 sm:$0xff]   ;;  %v6660_v9 = vld [vmem:[#allocation8 + $0x5a0] ss:$16 sps:$4 sm:$0xff]  }
 0x224   :  { %4904 = vmatprep.subr.bf16.mxu1 %v6599_v52  ;;  %v6744_v37 = vld [vmem:[#allocation8 + $0x7a0] ss:$16 sps:$4 sm:$0xff]  }
 0x225   :  { %4864 = vmatpush2.bf16.msra.mxu0 %v6594_v54  ;;  %v6633_v54 = vld [vmem:[#allocation8 + $0x4c0] ss:$16 sps:$4 sm:$0xff]  }
 0x226   :  { %4865 = vmatprep.subr.bf16.mxu0 %v6602_v20  ;;  %v6690_v20 = vld [vmem:[#allocation8 + $0x6c0] ss:$16 sps:$4 sm:$0xff]  }
 0x227   :  { %4905 = vmatpush2.bf16.msra.mxu1 %v6597_v55  ;;  %v6638_v55 = vld [vmem:[#allocation8 + $0x4a4] ss:$16 sps:$4 sm:$0xff]  }
 0x228   :  { %4906 = vmatprep.subr.bf16.mxu1 %v6605_v58  ;;  %v6698_v58 = vld [vmem:[#allocation8 + $0x6a4] ss:$16 sps:$4 sm:$0xff]  }
 0x229   :  { %4866 = vmatpush2.bf16.msra.mxu0 %v6600_v63  ;;  %v6636_v63 = vld [vmem:[#allocation8 + $0x4a0] ss:$16 sps:$4 sm:$0xff]  }
 0x22a   :  { %4867 = vmatprep.subr.bf16.mxu0 %v6608_v35  ;;  %v6696_v35 = vld [vmem:[#allocation8 + $0x6a0] ss:$16 sps:$4 sm:$0xff]  }
 0x22b   :  { %4907 = vmatpush2.bf16.msra.mxu1 %v6603_v0  ;;  %v6641_v0 = vld [vmem:[#allocation8 + $0x484] ss:$16 sps:$4 sm:$0xff]  }
 0x22c   :  { %4908 = vmatprep.subr.bf16.mxu1 %v6611_v12  ;;  %v6704_v12 = vld [vmem:[#allocation8 + $0x684] ss:$16 sps:$4 sm:$0xff]  }
 0x22d   :  { %4868 = vmatpush2.bf16.msra.mxu0 %v6606_v4  ;;  %v6702_v4 = vld [vmem:[#allocation8 + $0x680] ss:$16 sps:$4 sm:$0xff]  }
 0x22e   :  { %4869 = vmatprep.subr.bf16.mxu0 %v6614_v25  ;;  %v6642_v25 = vld [vmem:[#allocation8 + $0x460] ss:$16 sps:$4 sm:$0xff]  }
 0x22f   :  { %4909 = vmatpush2.bf16.msra.mxu1 %v6609_v5  ;;  %v6710_v5 = vld [vmem:[#allocation8 + $0x664] ss:$16 sps:$4 sm:$0xff]  }
 0x230   :  { %4910 = vmatprep.subr.bf16.mxu1 %v6617_v7  ;;  %v6708_v7 = vld [vmem:[#allocation8 + $0x660] ss:$16 sps:$4 sm:$0xff]  }
 0x231   :  { %4870 = vmatpush2.bf16.msra.mxu0 %v6612_v10  ;;  %v6650_v10 = vld [vmem:[#allocation8 + $0x424] ss:$16 sps:$4 sm:$0xff]  }
 0x232   :  { %4871 = vmatprep.subr.bf16.mxu0 %v6620_v11  ;;  %v6722_v11 = vld [vmem:[#allocation8 + $0x624] ss:$16 sps:$4 sm:$0xff]  }
 0x233   :  { %4911 = vmatpush2.bf16.msra.mxu1 %v6615_v36  ;;  %v6714_v36 = vld [vmem:[#allocation8 + $0x640] ss:$16 sps:$4 sm:$0xff]  }
 0x234   :  { %4912 = vmatprep.subr.bf16.mxu1 %v6623_v14  ;;  %v2867_v24 = vpop.f32.mrf.mxu0  ;;  %v6720_v14 = vld [vmem:[#allocation8 + $0x620] ss:$16 sps:$4 sm:$0xff]  }
 0x235   :  { %4872 = vmatpush2.bf16.msra.mxu0 %v6618_v18  ;;  %v6656_v18 = vld [vmem:[#allocation8 + $0x5e4] ss:$16 sps:$4 sm:$0xff]  }
 0x236   :  { %v2908_v26 = vpop.f32.mrf.mxu1  ;;  %v7400_v28 = vpop.f32.mrf.mxu0  ;;  %4873 = vmatprep.subr.bf16.mxu0 %v6626_v19  ;;  %v6734_v19 = vld [vmem:[#allocation8 + $0x7e4] ss:$16 sps:$4 sm:$0xff]  }
 0x237   :  { %v7398_v27 = vadd.f32 %v2908_v26, %v2867_v24  ;;  %4913 = vmatpush2.bf16.msra.mxu1 %v6621_v46  ;;  %v6726_v46 = vld [vmem:[#allocation8 + $0x600] ss:$16 sps:$4 sm:$0xff]   ;;  %v6740_v24 = vld [vmem:[#allocation8 + $0x7c4] ss:$16 sps:$4 sm:$0xff]  }
 0x238   :  { %v7402_v33 = vpop.f32.mrf.mxu1  ;;  %4914 = vmatprep.subr.bf16.mxu1 %v6629_v22  ;;  %v2871_v39 = vpop.f32.mrf.mxu0  ;;  %v6659_v22 = vld [vmem:[#allocation8 + $0x5c4] ss:$16 sps:$4 sm:$0xff]   ;;  %v6657_v26 = vld [vmem:[#allocation8 + $0x5c0] ss:$16 sps:$4 sm:$0xff]  }
 0x239   :  { %4874 = vmatpush2.bf16.msra.mxu0 %v6624_v56  ;;  %v6662_v56 = vld [vmem:[#allocation8 + $0x5a4] ss:$16 sps:$4 sm:$0xff]  }
 0x23a   :  { %v2912_v40 = vpop.f32.mrf.mxu1  ;;  %v2872_v43 = vpop.f32.mrf.mxu0  ;;  %4925 = vmatprep.subr.bf16.mxu0 %v6632_v32  ;;  %v6746_v32 = vld [vmem:[#allocation8 + $0x7a4] ss:$16 sps:$4 sm:$0xff]  }
 0x23b   :  { %4915 = vmatpush2.bf16.msra.mxu1 %v6627_v31  ;;  %v6738_v31 = vld [vmem:[#allocation8 + $0x7c0] ss:$16 sps:$4 sm:$0xff]   ;;  %v6752_v39 = vld [vmem:[#allocation8 + $0x784] ss:$16 sps:$4 sm:$0xff]  }
 0x23c   :  { %v2913_v48 = vpop.f32.mrf.mxu1  ;;  %4966 = vmatprep.subr.bf16.mxu1 %v6686_v34  ;;  %4876 = vmatmul.mubr.bf16.vlgmr.msra.gmra.mxu0 %v7404_v15  ;;  %v6665_v34 = vld [vmem:[#allocation8 + $0x584] ss:$16 sps:$4 sm:$0xff]   ;;  %v6663_v40 = vld [vmem:[#allocation8 + $0x580] ss:$16 sps:$4 sm:$0xff]  }
 0x23d   :  { %4926 = vmatpush1.bf16.msra.mxu0 %v6630_v41  ;;  %v6668_v41 = vld [vmem:[#allocation8 + $0x564] ss:$16 sps:$4 sm:$0xff]   ;;  %v6750_v43 = vld [vmem:[#allocation8 + $0x780] ss:$16 sps:$4 sm:$0xff]  }
 0x23e   :  { %4917 = vmatmul.mubr.bf16.vlgmr.msra.gmra.mxu1 %v7407_v51  ;;  %v7410_v52 = vpop.f32.mrf.mxu1  ;;  %4927 = vmatprep.subr.bf16.mxu0 %v6635_v44  ;;  %v3189_v44 = vsub.s32 4, %v7345_v47  ;;  %v6666_v48 = vld [vmem:[#allocation8 + $0x560] ss:$16 sps:$4 sm:$0xff]  }
 0x23f   :  { %4967 = vmatpush1.bf16.msra.mxu1 %v6684_v17  ;;  %v6758_v17 = vld [vmem:[#allocation8 + $0x764] ss:$16 sps:$4 sm:$0xff]  }
 0x240   :  { %v7412_v57 = vpop.f32.mrf.mxu1  ;;  %4968 = vmatprep.subr.bf16.mxu1 %v6692_v50  ;;  %v3193_v50 = vsub.s32 5, %v7345_v47 }
 0x241   :  { %4928 = vmatpush1.bf16.msra.mxu0 %v6633_v54  ;;  %v6671_v54 = vld [vmem:[#allocation8 + $0x544] ss:$16 sps:$4 sm:$0xff]  }
 0x242   :  { %v2994_v61 = vpop.f32.mrf.mxu1  ;;  %4929 = vmatprep.subr.bf16.mxu0 %v6638_v55  ;;  %v6756_v55 = vld [vmem:[#allocation8 + $0x760] ss:$16 sps:$4 sm:$0xff]  }
 0x243   :  { %4969 = vmatpush1.bf16.msra.mxu1 %v6690_v20  ;;  %v3190_v20 = vrot.slane %v7350_v62, %v3189_v44  ;;  %v3194_v61 = vrot.slane %v7350_v62, %v3193_v50  ;;  %v6693_v44 = vld [vmem:[#allocation8 + $0x88] ss:$16 sps:$4 sm:$0xff]   ;;  %v6707_v50 = vld [vmem:[#allocation8 + $0x4c] ss:$16 sps:$4 sm:$0xff]  }
 0x244   :  { %v2995_v1 = vpop.f32.mrf.mxu1  ;;  %4970 = vmatprep.subr.bf16.mxu1 %v6698_v58  ;;  %v6764_v58 = vld [vmem:[#allocation8 + $0x744] ss:$16 sps:$4 sm:$0xff]  }
 0x245   :  { %4930 = vmatpush1.bf16.msra.mxu0 %v6636_v63  ;;  %v6669_v63 = vld [vmem:[#allocation8 + $0x540] ss:$16 sps:$4 sm:$0xff]   ;;  %v3215_v1 = vpack.c.bf16 %v3190_v20, %v3190_v20  ;;  %v6719_v20 = vld [vmem:[#allocation8 + $0xc] ss:$16 sps:$4 sm:$0xff]  }
 0x246   :  { %4931 = vmatprep.subr.bf16.mxu0 %v6641_v0  ;;  %v6674_v0 = vld [vmem:[#allocation8 + $0x524] ss:$16 sps:$4 sm:$0xff]  }
 0x247   :  { %4971 = vmatpush1.bf16.msra.mxu1 %v6696_v35  ;;  %v6762_v35 = vld [vmem:[#allocation8 + $0x740] ss:$16 sps:$4 sm:$0xff]  }
 0x248   :  { %4972 = vmatprep.subr.bf16.mxu1 %v6704_v12  ;;  %v6770_v12 = vld [vmem:[#allocation8 + $0x724] ss:$16 sps:$4 sm:$0xff]  }
 0x249   :  { %4932 = vmatpush1.bf16.msra.mxu0 %v6639_v2  ;;  %v3216_v2 = vpack.c.bf16 %v3194_v61, %v3194_v61  ;;  %v6725_v61 = vld [vmem:[#allocation8 + $0x1ec] ss:$16 sps:$4 sm:$0xff]  }
 0x24a   :  { %4933 = vmatprep.subr.bf16.mxu0 %v6644_v3  ;;  %v6672_v3 = vld [vmem:[#allocation8 + $0x520] ss:$16 sps:$4 sm:$0xff]  }
 0x24b   :  { %4973 = vmatpush1.bf16.msra.mxu1 %v6702_v4  ;;  %v6677_v4 = vld [vmem:[#allocation8 + $0x504] ss:$16 sps:$4 sm:$0xff]  }
 0x24c   :  { %4974 = vmatprep.subr.bf16.mxu1 %v6710_v5  ;;  %v6768_v5 = vld [vmem:[#allocation8 + $0x720] ss:$16 sps:$4 sm:$0xff]  }
 0x24d   :  { %4934 = vmatpush1.bf16.msra.mxu0 %v6642_v25  ;;  %v3248_v25 = vpack.i.b16 %v3215_v1, %v3215_v1  ;;  %v6737_v1 = vld [vmem:[#allocation8 + $0x1ac] ss:$16 sps:$4 sm:$0xff]  }
 0x24e   :  { %4935 = vmatprep.subr.bf16.mxu0 %v6647_v6  ;;  %v6776_v6 = vld [vmem:[#allocation8 + $0x704] ss:$16 sps:$4 sm:$0xff]  }
 0x24f   :  { %4975 = vmatpush1.bf16.msra.mxu1 %v6708_v7 }
 0x250   :  { %4976 = vmatprep.subr.bf16.mxu1 %v6716_v8  ;;  %v2911_v8 = vadd.f32 %v7402_v33, %v7400_v28 }
 0x251   :  { %4936 = vmatpush1.bf16.msra.mxu0 %v6645_v45 }
 0x252   :  { %4937 = vmatprep.subr.bf16.mxu0 %v6650_v10  ;;  %v3255_v10 = vpack.i.b16 %v3216_v2, %v3216_v2  ;;  %v6743_v2 = vld [vmem:[#allocation8 + $0x18c] ss:$16 sps:$4 sm:$0xff]  }
 0x253   :  { %4977 = vmatpush1.bf16.msra.mxu1 %v6714_v36  ;;  %v6675_v36 = vld [vmem:[#allocation8 + $0x500] ss:$16 sps:$4 sm:$0xff]  }
 0x254   :  { %4978 = vmatprep.subr.bf16.mxu1 %v6722_v11 }
 0x255   :  { %4938 = vmatpush1.bf16.msra.mxu0 %v6648_v23  ;;  %v6680_v23 = vld [vmem:[#allocation8 + $0xec] ss:$16 sps:$4 sm:$0xff]  }
 0x256   :  { %4939 = vmatprep.subr.bf16.mxu0 %v6653_v49  ;;  %v6774_v49 = vld [vmem:[#allocation8 + $0x700] ss:$16 sps:$4 sm:$0xff]  }
 0x257   :  { %4979 = vmatpush1.bf16.msra.mxu1 %v6720_v14 }
 0x258   :  { %4980 = vmatprep.subr.bf16.mxu1 %v6728_v16  ;;  %v3253_v16 = vrot.slane %v3248_v25, %v7362_v30  ;;  %v3197_v25 = vsub.s32 6, %v7345_v47 }
 0x259   :  { %4940 = vmatpush1.bf16.msra.mxu0 %v6651_v59 }
 0x25a   :  { %4941 = vmatprep.subr.bf16.mxu0 %v6656_v18  ;;  %v6782_v18 = vld [vmem:[#allocation8 + $0x2ec] ss:$16 sps:$4 sm:$0xff]  }
 0x25b   :  { %4981 = vmatpush1.bf16.msra.mxu1 %v6726_v46 }
 0x25c   :  { %4982 = vmatprep.subr.bf16.mxu1 %v6734_v19 }
 0x25d   :  { %4942 = vmatpush2.bf16.msra.mxu0 %v6654_v21 }
 0x25e   :  { %4943 = vmatprep.subr.bf16.mxu0 %v6659_v22 }
 0x25f   :  { %4983 = vmatpush2.bf16.msra.mxu1 %v6732_v60 }
 0x260   :  { %4984 = vmatprep.subr.bf16.mxu1 %v6740_v24 }
 0x261   :  { %4944 = vmatpush2.bf16.msra.mxu0 %v6657_v26 }
 0x262   :  { %4945 = vmatprep.subr.bf16.mxu0 %v6662_v56 }
 0x263   :  { %4985 = vmatpush2.bf16.msra.mxu1 %v6738_v31  ;;  %v6678_v31 = vld [vmem:[#allocation8 + $0xe8] ss:$16 sps:$4 sm:$0xff]  }
 0x264   :  { %4986 = vmatprep.subr.bf16.mxu1 %v6746_v32 }
 0x265   :  { %4946 = vmatpush2.bf16.msra.mxu0 %v6660_v9  ;;  %v6683_v9 = vld [vmem:[#allocation8 + $0xcc] ss:$16 sps:$4 sm:$0xff]  }
 0x266   :  { %4947 = vmatprep.subr.bf16.mxu0 %v6665_v34 }
 0x267   :  { %4987 = vmatpush2.bf16.msra.mxu1 %v6744_v37 }
 0x268   :  { %4988 = vmatprep.subr.bf16.mxu1 %v6752_v39  ;;  %v6681_v39 = vld [vmem:[#allocation8 + $0xc8] ss:$16 sps:$4 sm:$0xff]  }
 0x269   :  { %4948 = vmatpush2.bf16.msra.mxu0 %v6663_v40  ;;  %v6689_v40 = vld [vmem:[#allocation8 + $0xac] ss:$16 sps:$4 sm:$0xff]  }
 0x26a   :  { %4949 = vmatprep.subr.bf16.mxu0 %v6668_v41  ;;  %v6687_v41 = vld [vmem:[#allocation8 + $0xa8] ss:$16 sps:$4 sm:$0xff]  }
 0x26b   :  { %4989 = vmatpush2.bf16.msra.mxu1 %v6750_v43  ;;  %v6695_v43 = vld [vmem:[#allocation8 + $0x8c] ss:$16 sps:$4 sm:$0xff]  }
 0x26c   :  { %4990 = vmatprep.subr.bf16.mxu1 %v6758_v17  ;;  %v6701_v17 = vld [vmem:[#allocation8 + $0x6c] ss:$16 sps:$4 sm:$0xff]  }
 0x26d   :  { %4950 = vmatpush2.bf16.msra.mxu0 %v6666_v48  ;;  %v6699_v48 = vld [vmem:[#allocation8 + $0x68] ss:$16 sps:$4 sm:$0xff]  }
 0x26e   :  { %4951 = vmatprep.subr.bf16.mxu0 %v6671_v54  ;;  %v6705_v54 = vld [vmem:[#allocation8 + $0x48] ss:$16 sps:$4 sm:$0xff]  }
 0x26f   :  { %4991 = vmatpush2.bf16.msra.mxu1 %v6756_v55  ;;  %v6713_v55 = vld [vmem:[#allocation8 + $0x2c] ss:$16 sps:$4 sm:$0xff]  }
 0x270   :  { %4992 = vmatprep.subr.bf16.mxu1 %v6764_v58  ;;  %v6717_v58 = vld [vmem:[#allocation8 + $0x8] ss:$16 sps:$4 sm:$0xff]  }
 0x271   :  { %4952 = vmatpush2.bf16.msra.mxu0 %v6669_v63  ;;  %v6723_v63 = vld [vmem:[#allocation8 + $0x1e8] ss:$16 sps:$4 sm:$0xff]  }
 0x272   :  { %4953 = vmatprep.subr.bf16.mxu0 %v6674_v0  ;;  %v6731_v0 = vld [vmem:[#allocation8 + $0x1cc] ss:$16 sps:$4 sm:$0xff]  }
 0x273   :  { %4993 = vmatpush2.bf16.msra.mxu1 %v6762_v35  ;;  %v6729_v35 = vld [vmem:[#allocation8 + $0x1c8] ss:$16 sps:$4 sm:$0xff]  }
 0x274   :  { %4994 = vmatprep.subr.bf16.mxu1 %v6770_v12  ;;  %v2949_v7 = vpop.f32.mrf.mxu0  ;;  %v6735_v12 = vld [vmem:[#allocation8 + $0x1a8] ss:$16 sps:$4 sm:$0xff]  }
 0x275   :  { %v2950_v45 = vadd.f32 %v2949_v7, %v7398_v27  ;;  %4954 = vmatpush2.bf16.msra.mxu0 %v6672_v3  ;;  %v3260_v27 = vrot.slane %v3255_v10, %v7362_v30  ;;  %v6741_v3 = vld [vmem:[#allocation8 + $0x188] ss:$16 sps:$4 sm:$0xff]   ;;  %v3201_v7 = vsub.s32 7, %v7345_v47  ;;  %v3198_v10 = vrot.slane %v7350_v62, %v3197_v25 }
 0x276   :  { %v2951_v11 = vpop.f32.mrf.mxu0  ;;  %4955 = vmatprep.subr.bf16.mxu0 %v6677_v4  ;;  %v6749_v4 = vld [vmem:[#allocation8 + $0x16c] ss:$16 sps:$4 sm:$0xff]   ;;  %v6792_v25 = vld [vmem:[#allocation8 + $0x2a8] ss:$16 sps:$4 sm:$0xff]  }
 0x277   :  { %4995 = vmatpush2.bf16.msra.mxu1 %v6768_v5  ;;  %v2991_v14 = vadd.f32 %v7410_v52, %v2950_v45  ;;  %v2952_v59 = vadd.f32 %v2951_v11, %v2911_v8  ;;  %v6747_v5 = vld [vmem:[#allocation8 + $0x168] ss:$16 sps:$4 sm:$0xff]  }
 0x278   :  { %4996 = vmatprep.subr.bf16.mxu1 %v6776_v6  ;;  %v2953_v46 = vpop.f32.mrf.mxu0  ;;  %v6755_v6 = vld [vmem:[#allocation8 + $0x14c] ss:$16 sps:$4 sm:$0xff]   ;;  %v6753_v45 = vld [vmem:[#allocation8 + $0x148] ss:$16 sps:$4 sm:$0xff]  }
 0x279   :  { %v3165_v19 = vpack.c.bf16 %v2991_v14, %v2991_v14  ;;  %v2993_v28 = vadd.f32 %v7412_v57, %v2952_v59  ;;  %4956 = vmatpush2.bf16.msra.mxu0 %v6675_v36  ;;  %v6761_v36 = vld [vmem:[#allocation8 + $0x12c] ss:$16 sps:$4 sm:$0xff]   ;;  %v6759_v14 = vld [vmem:[#allocation8 + $0x128] ss:$16 sps:$4 sm:$0xff]  }
 0x27a   :  { %v2954_v33 = vpop.f32.mrf.mxu0  ;;  %5007 = vmatprep.subr.bf16.mxu0 %v6680_v23  ;;  %v3202_v23 = vrot.slane %v7350_v62, %v3201_v7  ;;  %v6767_v59 = vld [vmem:[#allocation8 + $0x10c] ss:$16 sps:$4 sm:$0xff]  }
 0x27b   :  { %4997 = vmatpush2.bf16.msra.mxu1 %v6774_v49  ;;  %v3279_v21 = vadd.bf16 %v3253_v16, %v3165_v19  ;;  %v3166_v22 = vpack.c.bf16 %v2993_v28, %v2993_v28  ;;  %v3217_v16 = vpack.c.bf16 %v3198_v10, %v3198_v10  ;;  %v6765_v33 = vld [vmem:[#allocation8 + $0x108] ss:$16 sps:$4 sm:$0xff]   ;;  %v6800_v7 = vld [vmem:[#allocation8 + $0x28c] ss:$16 sps:$4 sm:$0xff]  }
 0x27c   :  { %5048 = vmatprep.subr.bf16.mxu1 %v6782_v18  ;;  %v3218_v46 = vpack.c.bf16 %v3202_v23, %v3202_v23  ;;  %v6809_v10 = vld [vmem:[#allocation8 + $0x42c] ss:$16 sps:$4 sm:$0xff]  }
 0x27d   :  { %v3280_v60 = vadd.bf16 %v3260_v27, %v3166_v22  ;;  %v3295_v24 = vmul.bf16 1045249613, %v3279_v21  ;;  %vm3287_vm6 = vcmp.ge.bf16.partialorder %v3279_v21, 0  ;;  %v3262_v27 = vpack.i.b16 %v3217_v16, %v3217_v16  ;;  %v6773_v22 = vld [vmem:[#allocation8 + $0x4ec] ss:$16 sps:$4 sm:$0xff]  }
 0x27e   :  { %v7425_v52 = vpop.f32.mrf.mxu1  ;;  %v6815_v23 = vld [vmem:[#allocation8 + $0x40c] ss:$16 sps:$4 sm:$0xff]   ;;  %v6810_v16 = vld [vmem:[#allocation8 + $0x248] ss:$16 sps:$4 sm:$0xff]  }
 0x27f   :  { %vm3288_vm5 = vcmp.ge.bf16.partialorder %v3280_v60, 0  ;;  %v3296_v56 = vmul.bf16 1045249613, %v3280_v60  ;;  %v7432_v34 = vsel %vm3287_vm6, %v3279_v21, %v3295_v24 }
 0x280   :  { %v7427_v26 = vpop.f32.mrf.mxu1 }
 0x281   :  { %v7429_v32 = vsel %vm3288_vm5, %v3280_v60, %v3296_v56  ;;  %v3269_v56 = vpack.i.b16 %v3218_v46, %v3218_v46  ;;  %v6819_v46 = vld [vmem:[#allocation8 + $0x5e8] ss:$16 sps:$4 sm:$0xff]  }
 0x282   :  { %v3035_v57 = vpop.f32.mrf.mxu1  ;;  %4957 = vmatprep.mubr.bf16.mxu0 %v7429_v32 }
 0x283   :  { %4958 = vmatmul.mubr.bf16.vlgmr.msra.gmra.mxu0 %v7432_v34 }
 0x284   :  { %v3036_v37 = vpop.f32.mrf.mxu1  ;;  %5008 = vmatpush1.bf16.msra.mxu0 %v6678_v31  ;;  %5039 = vmatprep.mubr.bf16.mxu0 %v7378_v42  ;;  %v6711_v42 = vld [vmem:[#allocation8 + $0x28] ss:$16 sps:$4 sm:$0xff]  }
 0x285   :  { %5009 = vmatprep.subr.bf16.mxu0 %v6683_v9  ;;  %v3267_v9 = vrot.slane %v3262_v27, %v7362_v30  ;;  %v6824_v27 = vld [vmem:[#allocation8 + $0x20c] ss:$16 sps:$4 sm:$0xff]  }
 0x288   :  { %5010 = vmatpush1.bf16.msra.mxu0 %v6681_v39 }
 0x289   :  { %5011 = vmatprep.subr.bf16.mxu0 %v6689_v40 }
 0x28c   :  { %5012 = vmatpush1.bf16.msra.mxu0 %v6687_v41  ;;  %v6779_v41 = vld [vmem:[#allocation8 + $0x4cc] ss:$16 sps:$4 sm:$0xff]  }
 0x28d   :  { %5013 = vmatprep.subr.bf16.mxu0 %v6695_v43 }
 0x290   :  { %5014 = vmatpush1.bf16.msra.mxu0 %v6693_v44 }
 0x291   :  { %5015 = vmatprep.subr.bf16.mxu0 %v6701_v17  ;;  %v3274_v17 = vrot.slane %v3269_v56, %v7362_v30  ;;  %v6839_v56 = vld [vmem:[#allocation8 + $0x58c] ss:$16 sps:$4 sm:$0xff]  }
 0x294   :  { %5016 = vmatpush1.bf16.msra.mxu0 %v6699_v48 }
 0x295   :  { %5017 = vmatprep.subr.bf16.mxu0 %v6707_v50 }
 0x298   :  { %5018 = vmatpush1.bf16.msra.mxu0 %v6705_v54 }
 0x299   :  { %5019 = vmatprep.subr.bf16.mxu0 %v6713_v55  ;;  %v6777_v55 = vld [vmem:[#allocation8 + $0x4c8] ss:$16 sps:$4 sm:$0xff]  }
 0x29c   :  { %5020 = vmatpush1.bf16.msra.mxu0 %v6711_v42  ;;  %v6785_v42 = vld [vmem:[#allocation8 + $0x4ac] ss:$16 sps:$4 sm:$0xff]  }
 0x29d   :  { %5021 = vmatprep.subr.bf16.mxu0 %v6719_v20 }
 0x2a0   :  { %5022 = vmatpush1.bf16.msra.mxu0 %v6717_v58 }
 0x2a1   :  { %5023 = vmatprep.subr.bf16.mxu0 %v6725_v61 }
 0x2a4   :  { %5024 = vmatpush2.bf16.msra.mxu0 %v6723_v63  ;;  %v6783_v63 = vld [vmem:[#allocation8 + $0x4a8] ss:$16 sps:$4 sm:$0xff]  }
 0x2a5   :  { %5025 = vmatprep.subr.bf16.mxu0 %v6731_v0  ;;  %v6780_v0 = vld [vmem:[#allocation8 + $0x2e8] ss:$16 sps:$4 sm:$0xff]  }
 0x2a8   :  { %5026 = vmatpush2.bf16.msra.mxu0 %v6729_v35 }
 0x2a9   :  { %5027 = vmatprep.subr.bf16.mxu0 %v6737_v1  ;;  %v6791_v1 = vld [vmem:[#allocation8 + $0x48c] ss:$16 sps:$4 sm:$0xff]  }
 0x2ac   :  { %5028 = vmatpush2.bf16.msra.mxu0 %v6735_v12 }
 0x2ad   :  { %5029 = vmatprep.subr.bf16.mxu0 %v6743_v2  ;;  %v6786_v2 = vld [vmem:[#allocation8 + $0x2c8] ss:$16 sps:$4 sm:$0xff]  }
 0x2b0   :  { %5030 = vmatpush2.bf16.msra.mxu0 %v6741_v3  ;;  %v6797_v3 = vld [vmem:[#allocation8 + $0x46c] ss:$16 sps:$4 sm:$0xff]  }
 0x2b1   :  { %5031 = vmatprep.subr.bf16.mxu0 %v6749_v4  ;;  %v6794_v4 = vld [vmem:[#allocation8 + $0x2ac] ss:$16 sps:$4 sm:$0xff]  }
 0x2b4   :  { %5032 = vmatpush2.bf16.msra.mxu0 %v6747_v5  ;;  %v3072_v8 = vpop.f32.mrf.mxu0  ;;  %v6795_v5 = vld [vmem:[#allocation8 + $0x468] ss:$16 sps:$4 sm:$0xff]  }
 0x2b5   :  { %5033 = vmatprep.subr.bf16.mxu0 %v6755_v6  ;;  %v3073_v19 = vadd.f32 %v3072_v8, %v7425_v52  ;;  %v6771_v52 = vld [vmem:[#allocation8 + $0x4e8] ss:$16 sps:$4 sm:$0xff]   ;;  %v6803_v6 = vld [vmem:[#allocation8 + $0x44c] ss:$16 sps:$4 sm:$0xff]  }
 0x2b6   :  { %v3074_v11 = vpop.f32.mrf.mxu0  ;;  %v6801_v8 = vld [vmem:[#allocation8 + $0x448] ss:$16 sps:$4 sm:$0xff]  }
 0x2b7   :  { %v3075_v60 = vadd.f32 %v3074_v11, %v7427_v26  ;;  %v6804_v11 = vld [vmem:[#allocation8 + $0x268] ss:$16 sps:$4 sm:$0xff]  }
 0x2b8   :  { %5034 = vmatpush2.bf16.msra.mxu0 %v6753_v45  ;;  %v3076_v49 = vpop.f32.mrf.mxu0  ;;  %v6798_v45 = vld [vmem:[#allocation8 + $0x288] ss:$16 sps:$4 sm:$0xff]  }
 0x2b9   :  { %5035 = vmatprep.subr.bf16.mxu0 %v6761_v36  ;;  %v6807_v36 = vld [vmem:[#allocation8 + $0x428] ss:$16 sps:$4 sm:$0xff]   ;;  %v6812_v49 = vld [vmem:[#allocation8 + $0x24c] ss:$16 sps:$4 sm:$0xff]  }
 0x2ba   :  { %v3077_v18 = vpop.f32.mrf.mxu0 }
 0x2bb   :  { %v6818_v18 = vld [vmem:[#allocation8 + $0x22c] ss:$16 sps:$4 sm:$0xff]  }
 0x2bc   :  { %5036 = vmatpush2.bf16.msra.mxu0 %v6759_v14  ;;  %v3154_v28 = vpop.f32.mrf.mxu0  ;;  %v6813_v14 = vld [vmem:[#allocation8 + $0x408] ss:$16 sps:$4 sm:$0xff]  }
 0x2bd   :  { %5037 = vmatprep.subr.bf16.mxu0 %v6767_v59  ;;  %v6821_v59 = vld [vmem:[#allocation8 + $0x5ec] ss:$16 sps:$4 sm:$0xff]  }
 0x2be   :  { %v3113_v21 = vpop.f32.mrf.mxu1  ;;  %v3156_v24 = vpop.f32.mrf.mxu0 }
 0x2bf   :  { %v3114_v62 = vadd.f32 %v3113_v21, %v3073_v19  ;;  %v6816_v19 = vld [vmem:[#allocation8 + $0x228] ss:$16 sps:$4 sm:$0xff]  }
 0x2c0   :  { %v3115_v31 = vpop.f32.mrf.mxu1  ;;  %5038 = vmatpush2.bf16.msra.mxu0 %v6765_v33  ;;  %v3158_v39 = vpop.f32.mrf.mxu0  ;;  %v6825_v33 = vld [vmem:[#allocation8 + $0x5c8] ss:$16 sps:$4 sm:$0xff]  }
 0x2c1   :  { %v3155_v57 = vadd.f32 %v3154_v28, %v3114_v62  ;;  %v3116_v37 = vadd.f32 %v3115_v31, %v3075_v60  ;;  %5089 = vmatprep.subr.bf16.mxu0 %v6773_v22  ;;  %v6827_v28 = vld [vmem:[#allocation8 + $0x5cc] ss:$16 sps:$4 sm:$0xff]   ;;  %v6822_v21 = vld [vmem:[#allocation8 + $0x208] ss:$16 sps:$4 sm:$0xff]  }
 0x2c2   :  { %v3117_v40 = vpop.f32.mrf.mxu1  ;;  %v3159_v48 = vpop.f32.mrf.mxu0  ;;  %v6833_v22 = vld [vmem:[#allocation8 + $0x5ac] ss:$16 sps:$4 sm:$0xff]   ;;  %v6831_v62 = vld [vmem:[#allocation8 + $0x5a8] ss:$16 sps:$4 sm:$0xff]  }
 0x2c3   :  { %v3167_v43 = vpack.c.bf16 %v3155_v57, %v3155_v57  ;;  %v3157_v44 = vadd.f32 %v3156_v24, %v3116_v37  ;;  %5040 = vmatmul.mubr.bf16.vlgmr.msra.gmra.mxu0 %v7404_v15  ;;  %v6788_v15 = vld [vmem:[#allocation8 + $0x2cc] ss:$16 sps:$4 sm:$0xff]   ;;  %v6828_v24 = vld [vmem:[#allocation8 + $0x3e8] ss:$16 sps:$4 sm:$0xff]  }
 0x2c4   :  { %v3118_v26 = vpop.f32.mrf.mxu1  ;;  %5090 = vmatpush1.bf16.msra.mxu0 %v6771_v52  ;;  %5121 = vmatprep.mubr.bf16.mxu0 %v7429_v32  ;;  %v6789_v32 = vld [vmem:[#allocation8 + $0x488] ss:$16 sps:$4 sm:$0xff]   ;;  %v6830_v60 = vld [vmem:[#allocation8 + $0x3ec] ss:$16 sps:$4 sm:$0xff]  }
 0x2c5   :  { %v3281_v50 = vadd.bf16 %v3267_v9, %v3167_v43  ;;  %v3168_v54 = vpack.c.bf16 %v3157_v44, %v3157_v44  ;;  %5091 = vmatprep.subr.bf16.mxu0 %v6779_v41  ;;  %v6836_v31 = vld [vmem:[#allocation8 + $0x3cc] ss:$16 sps:$4 sm:$0xff]   ;;  %v6837_v57 = vld [vmem:[#allocation8 + $0x588] ss:$16 sps:$4 sm:$0xff]  }
 0x2c6   :  { %v6834_v9 = vld [vmem:[#allocation8 + $0x3c8] ss:$16 sps:$4 sm:$0xff]   ;;  %v6845_v37 = vld [vmem:[#allocation8 + $0x56c] ss:$16 sps:$4 sm:$0xff]  }
 0x2c7   :  { %v3282_v20 = vadd.bf16 %v3274_v17, %v3168_v54  ;;  %v3297_v58 = vmul.bf16 1045249613, %v3281_v50  ;;  %vm3289_vm8 = vcmp.ge.bf16.partialorder %v3281_v50, 0  ;;  %v6842_v39 = vld [vmem:[#allocation8 + $0x3ac] ss:$16 sps:$4 sm:$0xff]  }
 0x2c8   :  { %5092 = vmatpush1.bf16.msra.mxu0 %v6777_v55  ;;  %v6843_v52 = vld [vmem:[#allocation8 + $0x568] ss:$16 sps:$4 sm:$0xff]   ;;  %v6851_v41 = vld [vmem:[#allocation8 + $0x54c] ss:$16 sps:$4 sm:$0xff]  }
 0x2c9   :  { %vm3290_vm7 = vcmp.ge.bf16.partialorder %v3282_v20, 0  ;;  %v3298_v61 = vmul.bf16 1045249613, %v3282_v20  ;;  %5093 = vmatprep.subr.bf16.mxu0 %v6785_v42  ;;  %v7449_v12 = vsel %vm3289_vm8, %v3281_v50, %v3297_v58  ;;  %v6840_v40 = vld [vmem:[#allocation8 + $0x3a8] ss:$16 sps:$4 sm:$0xff]  }
 0x2ca   :  { %v6848_v43 = vld [vmem:[#allocation8 + $0x38c] ss:$16 sps:$4 sm:$0xff]   ;;  %v6849_v44 = vld [vmem:[#allocation8 + $0x548] ss:$16 sps:$4 sm:$0xff]  }
 0x2cb   :  { %v7446_v35 = vsel %vm3290_vm7, %v3282_v20, %v3298_v61  ;;  %v6846_v17 = vld [vmem:[#allocation8 + $0x388] ss:$16 sps:$4 sm:$0xff]   ;;  %v6857_v48 = vld [vmem:[#allocation8 + $0x52c] ss:$16 sps:$4 sm:$0xff]  }
 0x2cc   :  { %4998 = vmatprep.mubr.bf16.mxu1 %v7446_v35  ;;  %5094 = vmatpush1.bf16.msra.mxu0 %v6783_v63  ;;  %v6854_v26 = vld [vmem:[#allocation8 + $0x36c] ss:$16 sps:$4 sm:$0xff]   ;;  %v6855_v50 = vld [vmem:[#allocation8 + $0x528] ss:$16 sps:$4 sm:$0xff]  }
 0x2cd   :  { %4999 = vmatmul.mubr.bf16.vlgmr.msra.gmra.mxu1 %v7449_v12  ;;  %5095 = vmatprep.subr.bf16.mxu0 %v6791_v1  ;;  %v6852_v54 = vld [vmem:[#allocation8 + $0x368] ss:$16 sps:$4 sm:$0xff]   ;;  %v6863_v55 = vld [vmem:[#allocation8 + $0x50c] ss:$16 sps:$4 sm:$0xff]  }
 0x2ce   :  { %5049 = vmatpush1.bf16.msra.mxu1 %v6780_v0  ;;  %5080 = vmatprep.mubr.bf16.mxu1 %v7381_v38  ;;  %v6806_v38 = vld [vmem:[#allocation8 + $0x26c] ss:$16 sps:$4 sm:$0xff]   ;;  %v6861_v58 = vld [vmem:[#allocation8 + $0x508] ss:$16 sps:$4 sm:$0xff]  }
 0x2cf   :  { %5050 = vmatprep.subr.bf16.mxu1 %v6788_v15  ;;  %v6860_v42 = vld [vmem:[#allocation8 + $0x34c] ss:$16 sps:$4 sm:$0xff]   ;;  %v6858_v63 = vld [vmem:[#allocation8 + $0x348] ss:$16 sps:$4 sm:$0xff]  }
 0x2d0   :  { %5096 = vmatpush1.bf16.msra.mxu0 %v6789_v32  ;;  %v6920_v0 = vld [vmem:[#allocation11 + $0x74] ss:$8 sps:$4 sm:$0xff]   ;;  %v6866_v32 = vld [vmem:[#allocation8 + $0x32c] ss:$16 sps:$4 sm:$0xff]  }
 0x2d1   :  { %5097 = vmatprep.subr.bf16.mxu0 %v6797_v3 }
 0x2d2   :  { %5051 = vmatpush1.bf16.msra.mxu1 %v6786_v2 }
 0x2d3   :  { %5052 = vmatprep.subr.bf16.mxu1 %v6794_v4 }
 0x2d4   :  { %5098 = vmatpush1.bf16.msra.mxu0 %v6795_v5  ;;  %v6918_v5 = vld [vmem:[#allocation11 + $0x70] ss:$8 sps:$4 sm:$0xff]  }
 0x2d5   :  { %5099 = vmatprep.subr.bf16.mxu0 %v6803_v6  ;;  %v6864_v6 = vld [vmem:[#allocation8 + $0x328] ss:$16 sps:$4 sm:$0xff]  }
 0x2d6   :  { %5053 = vmatpush1.bf16.msra.mxu1 %v6792_v25 }
 0x2d7   :  { %5054 = vmatprep.subr.bf16.mxu1 %v6800_v7  ;;  %v6923_v7 = vld [vmem:[#allocation11 + $0x64] ss:$8 sps:$4 sm:$0xff]  }
 0x2d8   :  { %5100 = vmatpush1.bf16.msra.mxu0 %v6801_v8 }
 0x2d9   :  { %5101 = vmatprep.subr.bf16.mxu0 %v6809_v10 }
 0x2da   :  { %5055 = vmatpush1.bf16.msra.mxu1 %v6798_v45  ;;  %v6869_v45 = vld [vmem:[#allocation8 + $0x30c] ss:$16 sps:$4 sm:$0xff]  }
 0x2db   :  { %5056 = vmatprep.subr.bf16.mxu1 %v6806_v38  ;;  %v6921_v38 = vld [vmem:[#allocation11 + $0x60] ss:$8 sps:$4 sm:$0xff]  }
 0x2dc   :  { %5102 = vmatpush1.bf16.msra.mxu0 %v6807_v36  ;;  %v6867_v36 = vld [vmem:[#allocation8 + $0x308] ss:$16 sps:$4 sm:$0xff]  }
 0x2dd   :  { %5103 = vmatprep.subr.bf16.mxu0 %v6815_v23  ;;  %v6872_v23 = vld [vmem:[#allocation8 + $0x6ec] ss:$16 sps:$4 sm:$0xff]  }
 0x2de   :  { %5057 = vmatpush1.bf16.msra.mxu1 %v6804_v11  ;;  %v6926_v11 = vld [vmem:[#allocation11 + $0x54] ss:$8 sps:$4 sm:$0xff]  }
 0x2df   :  { %5058 = vmatprep.subr.bf16.mxu1 %v6812_v49  ;;  %v6924_v49 = vld [vmem:[#allocation11 + $0x50] ss:$8 sps:$4 sm:$0xff]  }
 0x2e0   :  { %5104 = vmatpush1.bf16.msra.mxu0 %v6813_v14  ;;  %v6870_v14 = vld [vmem:[#allocation8 + $0x6e8] ss:$16 sps:$4 sm:$0xff]  }
 0x2e1   :  { %5105 = vmatprep.subr.bf16.mxu0 %v6821_v59  ;;  %v6929_v59 = vld [vmem:[#allocation11 + $0x44] ss:$8 sps:$4 sm:$0xff]  }
 0x2e2   :  { %5059 = vmatpush1.bf16.msra.mxu1 %v6810_v16  ;;  %v6875_v16 = vld [vmem:[#allocation8 + $0x6cc] ss:$16 sps:$4 sm:$0xff]  }
 0x2e3   :  { %5060 = vmatprep.subr.bf16.mxu1 %v6818_v18  ;;  %v6873_v18 = vld [vmem:[#allocation8 + $0x6c8] ss:$16 sps:$4 sm:$0xff]  }
 0x2e4   :  { %5106 = vmatpush2.bf16.msra.mxu0 %v6819_v46  ;;  %v6932_v46 = vld [vmem:[#allocation11 + $0x34] ss:$8 sps:$4 sm:$0xff]  }
 0x2e5   :  { %5107 = vmatprep.subr.bf16.mxu0 %v6827_v28  ;;  %v6930_v28 = vld [vmem:[#allocation11 + $0x30] ss:$8 sps:$4 sm:$0xff]  }
 0x2e6   :  { %5061 = vmatpush1.bf16.msra.mxu1 %v6816_v19  ;;  %v6878_v19 = vld [vmem:[#allocation8 + $0x6ac] ss:$16 sps:$4 sm:$0xff]  }
 0x2e7   :  { %5062 = vmatprep.subr.bf16.mxu1 %v6824_v27  ;;  %v6876_v27 = vld [vmem:[#allocation8 + $0x6a8] ss:$16 sps:$4 sm:$0xff]  }
 0x2e8   :  { %5108 = vmatpush2.bf16.msra.mxu0 %v6825_v33  ;;  %v6935_v33 = vld [vmem:[#allocation11 + $0x24] ss:$8 sps:$4 sm:$0xff]  }
 0x2e9   :  { %5109 = vmatprep.subr.bf16.mxu0 %v6833_v22  ;;  %v6879_v22 = vld [vmem:[#allocation8 + $0x688] ss:$16 sps:$4 sm:$0xff]  }
 0x2ea   :  { %5063 = vmatpush1.bf16.msra.mxu1 %v6822_v21  ;;  %v6881_v21 = vld [vmem:[#allocation8 + $0x68c] ss:$16 sps:$4 sm:$0xff]  }
 0x2eb   :  { %5064 = vmatprep.subr.bf16.mxu1 %v6830_v60  ;;  %v6938_v60 = vld [vmem:[#allocation11 + $0x14] ss:$8 sps:$4 sm:$0xff]  }
 0x2ec   :  { %5110 = vmatpush2.bf16.msra.mxu0 %v6831_v62  ;;  %v6936_v62 = vld [vmem:[#allocation11 + $0x10] ss:$8 sps:$4 sm:$0xff]  }
 0x2ed   :  { %5111 = vmatprep.subr.bf16.mxu0 %v6839_v56  ;;  %v6941_v56 = vld [vmem:[#allocation11 + $0x4] ss:$8 sps:$4 sm:$0xff]  }
 0x2ee   :  { %5065 = vmatpush2.bf16.msra.mxu1 %v6828_v24  ;;  %v6882_v24 = vld [vmem:[#allocation8 + $0x668] ss:$16 sps:$4 sm:$0xff]  }
 0x2ef   :  { %5066 = vmatprep.subr.bf16.mxu1 %v6836_v31  ;;  %v6887_v31 = vld [vmem:[#allocation8 + $0x64c] ss:$16 sps:$4 sm:$0xff]  }
 0x2f0   :  { %5112 = vmatpush2.bf16.msra.mxu0 %v6837_v57  ;;  %v6939_v57 = vld [vmem:[#allocation11] ss:$8 sps:$4 sm:$0xff]  }
 0x2f1   :  { %5113 = vmatprep.subr.bf16.mxu0 %v6845_v37  ;;  %v6944_v37 = vld [vmem:[#allocation11 + $0xf4] ss:$8 sps:$4 sm:$0xff]  }
 0x2f2   :  { %5067 = vmatpush2.bf16.msra.mxu1 %v6834_v9  ;;  %v6885_v9 = vld [vmem:[#allocation8 + $0x648] ss:$16 sps:$4 sm:$0xff]  }
 0x2f3   :  { %5068 = vmatprep.subr.bf16.mxu1 %v6842_v39  ;;  %v6890_v39 = vld [vmem:[#allocation8 + $0x62c] ss:$16 sps:$4 sm:$0xff]  }
 0x2f4   :  { %5114 = vmatpush2.bf16.msra.mxu0 %v6843_v52  ;;  %v6942_v52 = vld [vmem:[#allocation11 + $0xf0] ss:$8 sps:$4 sm:$0xff]  }
 0x2f5   :  { %5115 = vmatprep.subr.bf16.mxu0 %v6851_v41  ;;  %v6947_v41 = vld [vmem:[#allocation11 + $0xe4] ss:$8 sps:$4 sm:$0xff]  }
 0x2f6   :  { %5069 = vmatpush2.bf16.msra.mxu1 %v6840_v40  ;;  %v6888_v40 = vld [vmem:[#allocation8 + $0x628] ss:$16 sps:$4 sm:$0xff]  }
 0x2f7   :  { %5070 = vmatprep.subr.bf16.mxu1 %v6848_v43  ;;  %v6893_v43 = vld [vmem:[#allocation8 + $0x60c] ss:$16 sps:$4 sm:$0xff]  }
 0x2f8   :  { %5116 = vmatpush2.bf16.msra.mxu0 %v6849_v44  ;;  %v6945_v44 = vld [vmem:[#allocation11 + $0xe0] ss:$8 sps:$4 sm:$0xff]  }
 0x2f9   :  { %5117 = vmatprep.subr.bf16.mxu0 %v6857_v48  ;;  %v6950_v48 = vld [vmem:[#allocation11 + $0xd4] ss:$8 sps:$4 sm:$0xff]  }
 0x2fa   :  { %5071 = vmatpush2.bf16.msra.mxu1 %v6846_v17  ;;  %v6891_v17 = vld [vmem:[#allocation8 + $0x608] ss:$16 sps:$4 sm:$0xff]  }
 0x2fb   :  { %5072 = vmatprep.subr.bf16.mxu1 %v6854_v26  ;;  %v6896_v26 = vld [vmem:[#allocation8 + $0x7ec] ss:$16 sps:$4 sm:$0xff]  }
 0x2fc   :  { %v4877_v20 = vpop.f32.mrf.mxu0  ;;  %5118 = vmatpush2.bf16.msra.mxu0 %v6855_v50  ;;  %v6948_v50 = vld [vmem:[#allocation11 + $0xd0] ss:$8 sps:$4 sm:$0xff]  }
 0x2fd   :  { %5119 = vmatprep.subr.bf16.mxu0 %v6863_v55  ;;  %v6953_v55 = vld [vmem:[#allocation11 + $0xc4] ss:$8 sps:$4 sm:$0xff]  }
 0x2fe   :  { %5073 = vmatpush2.bf16.msra.mxu1 %v6852_v54  ;;  %v4918_v61 = vpop.f32.mrf.mxu1  ;;  %v4879_v1 = vpop.f32.mrf.mxu0  ;;  %v6894_v54 = vld [vmem:[#allocation8 + $0x7e8] ss:$16 sps:$4 sm:$0xff]  }
 0x2ff   :  { %v7453_v15 = vadd.f32 %v4918_v61, %v4877_v20  ;;  %5074 = vmatprep.subr.bf16.mxu1 %v6860_v42  ;;  %v6899_v42 = vld [vmem:[#allocation8 + $0x7cc] ss:$16 sps:$4 sm:$0xff]   ;;  %v6956_v61 = vld [vmem:[#allocation11 + $0xb4] ss:$8 sps:$4 sm:$0xff]  }
 0x300   :  { %v4920_v2 = vpop.f32.mrf.mxu1  ;;  %v4881_v4 = vpop.f32.mrf.mxu0  ;;  %5120 = vmatpush2.bf16.msra.mxu0 %v6861_v58  ;;  %v6951_v20 = vld [vmem:[#allocation11 + $0xc0] ss:$8 sps:$4 sm:$0xff]   ;;  %v6897_v58 = vld [vmem:[#allocation8 + $0x7c8] ss:$16 sps:$4 sm:$0xff]  }
 0x301   :  { %v7455_v3 = vadd.f32 %v4920_v2, %v4879_v1  ;;  %5629 = vmatprep.subr.bf16.mxu0 %v6920_v0  ;;  %v6954_v0 = vld [vmem:[#allocation11 + $0xb0] ss:$8 sps:$4 sm:$0xff]   ;;  %v6900_v1 = vld [vmem:[#allocation8 + $0x7a8] ss:$16 sps:$4 sm:$0xff]   ;;  %v6957_v4 = vld [vmem:[#allocation11 + $0xa0] ss:$8 sps:$4 sm:$0xff]  }
 0x302   :  { %5075 = vmatpush2.bf16.msra.mxu1 %v6858_v63  ;;  %v4922_v25 = vpop.f32.mrf.mxu1  ;;  %v4882_v8 = vpop.f32.mrf.mxu0  ;;  %v6902_v63 = vld [vmem:[#allocation8 + $0x7ac] ss:$16 sps:$4 sm:$0xff]  }
 0x303   :  { %5076 = vmatprep.subr.bf16.mxu1 %v6866_v32  ;;  %5122 = vmatmul.mubr.bf16.vlgmr.msra.gmra.mxu0 %v7432_v34  ;;  %v6927_v34 = vld [vmem:[#allocation11 + $0x40] ss:$8 sps:$4 sm:$0xff]   ;;  %v6959_v32 = vld [vmem:[#allocation11 + $0xa4] ss:$8 sps:$4 sm:$0xff]   ;;  %v6962_v25 = vld [vmem:[#allocation11 + $0x94] ss:$8 sps:$4 sm:$0xff]  }
 0x304   :  { %v4923_v10 = vpop.f32.mrf.mxu1  ;;  %5630 = vmatpush1.bf16.msra.mxu0 %v6918_v5  ;;  %v6905_v2 = vld [vmem:[#allocation8 + $0x78c] ss:$16 sps:$4 sm:$0xff]   ;;  %v6903_v5 = vld [vmem:[#allocation8 + $0x788] ss:$16 sps:$4 sm:$0xff]  }
 0x305   :  { %5631 = vmatprep.subr.bf16.mxu0 %v6923_v7  ;;  %v6960_v7 = vld [vmem:[#allocation11 + $0x90] ss:$8 sps:$4 sm:$0xff]   ;;  %v6906_v8 = vld [vmem:[#allocation8 + $0x768] ss:$16 sps:$4 sm:$0xff]  }
 0x306   :  { %5077 = vmatpush2.bf16.msra.mxu1 %v6864_v6  ;;  %v6908_v6 = vld [vmem:[#allocation8 + $0x76c] ss:$16 sps:$4 sm:$0xff]  }
 0x307   :  { %5078 = vmatprep.subr.bf16.mxu1 %v6869_v45  ;;  %v6965_v45 = vld [vmem:[#allocation11 + $0x84] ss:$8 sps:$4 sm:$0xff]   ;;  %v6911_v10 = vld [vmem:[#allocation8 + $0x74c] ss:$16 sps:$4 sm:$0xff]  }
 0x308   :  { %5632 = vmatpush1.bf16.msra.mxu0 %v6921_v38  ;;  %v6963_v38 = vld [vmem:[#allocation11 + $0x80] ss:$8 sps:$4 sm:$0xff]  }
 0x309   :  { %5633 = vmatprep.subr.bf16.mxu0 %v6926_v11  ;;  %v6914_v11 = vld [vmem:[#allocation8 + $0x72c] ss:$16 sps:$4 sm:$0xff]  }
 0x30a   :  { %5079 = vmatpush2.bf16.msra.mxu1 %v6867_v36  ;;  %v6909_v36 = vld [vmem:[#allocation8 + $0x748] ss:$16 sps:$4 sm:$0xff]  }
 0x30b   :  { %5130 = vmatprep.subr.bf16.mxu1 %v6872_v23  ;;  %v6912_v23 = vld [vmem:[#allocation8 + $0x728] ss:$16 sps:$4 sm:$0xff]  }
 0x30c   :  { %5634 = vmatpush1.bf16.msra.mxu0 %v6924_v49  ;;  %v6917_v49 = vld [vmem:[#allocation8 + $0x70c] ss:$16 sps:$4 sm:$0xff]  }
 0x30d   :  { %5081 = vmatmul.mubr.bf16.vlgmr.msra.gmra.mxu1 %v7407_v51  ;;  %5635 = vmatprep.subr.bf16.mxu0 %v6929_v59  ;;  %v6933_v51 = vld [vmem:[#allocation11 + $0x20] ss:$8 sps:$4 sm:$0xff]  }
 0x30e   :  { %5131 = vmatpush1.bf16.msra.mxu1 %v6870_v14  ;;  %5162 = vmatprep.mubr.bf16.mxu1 %v7446_v35  ;;  %v6884_v35 = vld [vmem:[#allocation8 + $0x66c] ss:$16 sps:$4 sm:$0xff]  }
 0x30f   :  { %5132 = vmatprep.subr.bf16.mxu1 %v6875_v16 }
 0x310   :  { %5636 = vmatpush1.bf16.msra.mxu0 %v6927_v34  ;;  %v6915_v34 = vld [vmem:[#allocation8 + $0x708] ss:$16 sps:$4 sm:$0xff]  }
 0x311   :  { %5637 = vmatprep.subr.bf16.mxu0 %v6932_v46 }
 0x312   :  { %5133 = vmatpush1.bf16.msra.mxu1 %v6873_v18 }
 0x313   :  { %5134 = vmatprep.subr.bf16.mxu1 %v6878_v19 }
 0x314   :  { %5638 = vmatpush1.bf16.msra.mxu0 %v6930_v28  ;;  %v6966_v28 = vld [vmem:[#allocation11 + $0x170] ss:$8 sps:$4 sm:$0xff]  }
 0x315   :  { %5639 = vmatprep.subr.bf16.mxu0 %v6935_v33  ;;  %v6971_v33 = vld [vmem:[#allocation11 + $0x164] ss:$8 sps:$4 sm:$0xff]  }
 0x316   :  { %5135 = vmatpush1.bf16.msra.mxu1 %v6876_v27  ;;  %v6968_v27 = vld [vmem:[#allocation11 + $0x174] ss:$8 sps:$4 sm:$0xff]  }
 0x317   :  { %5136 = vmatprep.subr.bf16.mxu1 %v6881_v21  ;;  %v6969_v21 = vld [vmem:[#allocation11 + $0x160] ss:$8 sps:$4 sm:$0xff]  }
 0x318   :  { %5640 = vmatpush1.bf16.msra.mxu0 %v6933_v51  ;;  %v6972_v51 = vld [vmem:[#allocation11 + $0x150] ss:$8 sps:$4 sm:$0xff]  }
 0x319   :  { %5641 = vmatprep.subr.bf16.mxu0 %v6938_v60  ;;  %v6980_v60 = vld [vmem:[#allocation11 + $0x134] ss:$8 sps:$4 sm:$0xff]  }
 0x31a   :  { %5137 = vmatpush1.bf16.msra.mxu1 %v6879_v22  ;;  %v6977_v22 = vld [vmem:[#allocation11 + $0x144] ss:$8 sps:$4 sm:$0xff]  }
 0x31b   :  { %5138 = vmatprep.subr.bf16.mxu1 %v6884_v35  ;;  %v6978_v35 = vld [vmem:[#allocation11 + $0x130] ss:$8 sps:$4 sm:$0xff]  }
 0x31c   :  { %5642 = vmatpush1.bf16.msra.mxu0 %v6936_v62  ;;  %v6981_v62 = vld [vmem:[#allocation11 + $0x120] ss:$8 sps:$4 sm:$0xff]  }
 0x31d   :  { %5643 = vmatprep.subr.bf16.mxu0 %v6941_v56  ;;  %v6984_v56 = vld [vmem:[#allocation11 + $0x110] ss:$8 sps:$4 sm:$0xff]  }
 0x31e   :  { %5139 = vmatpush1.bf16.msra.mxu1 %v6882_v24  ;;  %v6986_v24 = vld [vmem:[#allocation11 + $0x114] ss:$8 sps:$4 sm:$0xff]  }
 0x31f   :  { %5140 = vmatprep.subr.bf16.mxu1 %v6887_v31  ;;  %v6989_v31 = vld [vmem:[#allocation11 + $0x104] ss:$8 sps:$4 sm:$0xff]  }
 0x320   :  { %5644 = vmatpush1.bf16.msra.mxu0 %v6939_v57  ;;  %v6987_v57 = vld [vmem:[#allocation11 + $0x100] ss:$8 sps:$4 sm:$0xff]  }
 0x321   :  { %5645 = vmatprep.subr.bf16.mxu0 %v6944_v37  ;;  %v6990_v37 = vld [vmem:[#allocation11 + $0x1f0] ss:$8 sps:$4 sm:$0xff]  }
 0x322   :  { %5141 = vmatpush1.bf16.msra.mxu1 %v6885_v9  ;;  %v6992_v9 = vld [vmem:[#allocation11 + $0x1f4] ss:$8 sps:$4 sm:$0xff]  }
 0x323   :  { %5142 = vmatprep.subr.bf16.mxu1 %v6890_v39  ;;  %v6995_v39 = vld [vmem:[#allocation11 + $0x1e4] ss:$8 sps:$4 sm:$0xff]  }
 0x324   :  { %5646 = vmatpush2.bf16.msra.mxu0 %v6942_v52  ;;  %v6993_v52 = vld [vmem:[#allocation11 + $0x1e0] ss:$8 sps:$4 sm:$0xff]  }
 0x325   :  { %5647 = vmatprep.subr.bf16.mxu0 %v6947_v41  ;;  %v6996_v41 = vld [vmem:[#allocation11 + $0x1d0] ss:$8 sps:$4 sm:$0xff]  }
 0x326   :  { %5143 = vmatpush1.bf16.msra.mxu1 %v6888_v40  ;;  %v6998_v40 = vld [vmem:[#allocation11 + $0x1d4] ss:$8 sps:$4 sm:$0xff]  }
 0x327   :  { %5144 = vmatprep.subr.bf16.mxu1 %v6893_v43  ;;  %v7001_v43 = vld [vmem:[#allocation11 + $0x1c4] ss:$8 sps:$4 sm:$0xff]  }
 0x328   :  { %5648 = vmatpush2.bf16.msra.mxu0 %v6945_v44  ;;  %v6999_v44 = vld [vmem:[#allocation11 + $0x1c0] ss:$8 sps:$4 sm:$0xff]  }
 0x329   :  { %5649 = vmatprep.subr.bf16.mxu0 %v6950_v48  ;;  %v7004_v48 = vld [vmem:[#allocation11 + $0x1b4] ss:$8 sps:$4 sm:$0xff]  }
 0x32a   :  { %5145 = vmatpush1.bf16.msra.mxu1 %v6891_v17  ;;  %v5175_v17 = vld [vmem:[#allocation10] sm:$0xf] }
 0x32b   :  { %5146 = vmatprep.subr.bf16.mxu1 %v6896_v26  ;;  %v5180_v26 = vrot.slane %v5175_v17, %v7362_v30 }
 0x32c   :  { %5650 = vmatpush2.bf16.msra.mxu0 %v6948_v50  ;;  %v7002_v50 = vld [vmem:[#allocation11 + $0x1b0] ss:$8 sps:$4 sm:$0xff]  }
 0x32d   :  { %5651 = vmatprep.subr.bf16.mxu0 %v6953_v55  ;;  %v5184_v55 = vrot.slane %v5175_v17, %v7348_v29 }
 0x32e   :  { %5147 = vmatpush2.bf16.msra.mxu1 %v6894_v54 }
 0x32f   :  { %5148 = vmatprep.subr.bf16.mxu1 %v6899_v42 }
 0x330   :  { %5652 = vmatpush2.bf16.msra.mxu0 %v6951_v20  ;;  %v5197_v20 = vpack.c.bf16 %v5180_v26, %v5180_v26 }
 0x331   :  { %5653 = vmatprep.subr.bf16.mxu0 %v6956_v61  ;;  %v5198_v61 = vpack.c.bf16 %v5184_v55, %v5184_v55 }
 0x332   :  { %5149 = vmatpush2.bf16.msra.mxu1 %v6897_v58 }
 0x333   :  { %5150 = vmatprep.subr.bf16.mxu1 %v6902_v63 }
 0x334   :  { %5654 = vmatpush2.bf16.msra.mxu0 %v6954_v0  ;;  %v5202_v0 = vpack.i.b16 %v5197_v20, %v5197_v20 }
 0x335   :  { %5655 = vmatprep.subr.bf16.mxu0 %v6959_v32  ;;  %v7007_v32 = vld [vmem:[#allocation11 + $0x1a4] ss:$8 sps:$4 sm:$0xff]  }
 0x336   :  { %5151 = vmatpush2.bf16.msra.mxu1 %v6900_v1  ;;  %v5209_v1 = vpack.i.b16 %v5198_v61, %v5198_v61 }
 0x337   :  { %5152 = vmatprep.subr.bf16.mxu1 %v6905_v2 }
 0x338   :  { %5656 = vmatpush2.bf16.msra.mxu0 %v6957_v4  ;;  %v7005_v4 = vld [vmem:[#allocation11 + $0x1a0] ss:$8 sps:$4 sm:$0xff]  }
 0x339   :  { %5657 = vmatprep.subr.bf16.mxu0 %v6962_v25  ;;  %v5207_v25 = vrot.slane %v5202_v0, %v7362_v30 }
 0x33a   :  { %5153 = vmatpush2.bf16.msra.mxu1 %v6903_v5 }
 0x33b   :  { %5154 = vmatprep.subr.bf16.mxu1 %v6908_v6 }
 0x33c   :  { %5658 = vmatpush2.bf16.msra.mxu0 %v6960_v7 }
 0x33d   :  { %5659 = vmatprep.subr.bf16.mxu0 %v6965_v45  ;;  %v5214_v45 = vrot.slane %v5209_v1, %v7362_v30  ;;  %v5713_v1 = vld [vmem:[#allocation13] sm:$0x3] }
 0x33e   :  { %5155 = vmatpush2.bf16.msra.mxu1 %v6906_v8 }
 0x33f   :  { %5156 = vmatprep.subr.bf16.mxu1 %v6911_v10  ;;  %v7010_v10 = vld [vmem:[#allocation11 + $0x194] ss:$8 sps:$4 sm:$0xff]  }
 0x340   :  { %5660 = vmatpush2.bf16.msra.mxu0 %v6963_v38 }
 0x342   :  { %5157 = vmatpush2.bf16.msra.mxu1 %v6909_v36  ;;  %v7008_v36 = vld [vmem:[#allocation11 + $0x190] ss:$8 sps:$4 sm:$0xff]  }
 0x343   :  { %5158 = vmatprep.subr.bf16.mxu1 %v6914_v11  ;;  %v4959_v14 = vpop.f32.mrf.mxu0 }
 0x344   :  { %v7461_v16 = vadd.f32 %v4959_v14, %v7453_v15  ;;  %v6974_v15 = vld [vmem:[#allocation11 + $0x154] ss:$8 sps:$4 sm:$0xff]  }
 0x345   :  { %v4961_v59 = vpop.f32.mrf.mxu0 }
 0x346   :  { %5159 = vmatpush2.bf16.msra.mxu1 %v6912_v23  ;;  %v7464_v18 = vadd.f32 %v4961_v59, %v7455_v3  ;;  %v6975_v3 = vld [vmem:[#allocation11 + $0x140] ss:$8 sps:$4 sm:$0xff]  }
 0x347   :  { %5160 = vmatprep.subr.bf16.mxu1 %v6917_v49  ;;  %v4963_v46 = vpop.f32.mrf.mxu0 }
 0x349   :  { %v4964_v19 = vpop.f32.mrf.mxu0 }
 0x34a   :  { %5161 = vmatpush2.bf16.msra.mxu1 %v6915_v34  ;;  %v7013_v34 = vld [vmem:[#allocation11 + $0x184] ss:$8 sps:$4 sm:$0xff]  }
 0x34b   :  { %5670 = vmatprep.subr.bf16.mxu1 %v6968_v27 }
 0x34d   :  { %5163 = vmatmul.mubr.bf16.vlgmr.msra.gmra.mxu1 %v7449_v12  ;;  %v6983_v12 = vld [vmem:[#allocation11 + $0x124] ss:$8 sps:$4 sm:$0xff]  }
 0x34e   :  { %5671 = vmatpush1.bf16.msra.mxu1 %v6966_v28 }
 0x34f   :  { %5672 = vmatprep.subr.bf16.mxu1 %v6971_v33 }
 0x352   :  { %5673 = vmatpush1.bf16.msra.mxu1 %v6969_v21 }
 0x353   :  { %5674 = vmatprep.subr.bf16.mxu1 %v6974_v15 }
 0x356   :  { %5675 = vmatpush1.bf16.msra.mxu1 %v6972_v51 }
 0x357   :  { %5676 = vmatprep.subr.bf16.mxu1 %v6977_v22 }
 0x35a   :  { %5677 = vmatpush1.bf16.msra.mxu1 %v6975_v3 }
 0x35b   :  { %5678 = vmatprep.subr.bf16.mxu1 %v6980_v60  ;;  %v5188_v60 = vrot.slane %v5175_v17, %v7385_v53 }
 0x35e   :  { %5679 = vmatpush1.bf16.msra.mxu1 %v6978_v35  ;;  %v5192_v35 = vrot.slane %v5175_v17, %v3185_v13 }
 0x35f   :  { %5680 = vmatprep.subr.bf16.mxu1 %v6983_v12  ;;  %v5199_v12 = vpack.c.bf16 %v5188_v60, %v5188_v60 }
 0x362   :  { %5681 = vmatpush1.bf16.msra.mxu1 %v6981_v62 }
 0x363   :  { %5682 = vmatprep.subr.bf16.mxu1 %v6986_v24  ;;  %v5200_v24 = vpack.c.bf16 %v5192_v35, %v5192_v35 }
 0x366   :  { %5683 = vmatpush1.bf16.msra.mxu1 %v6984_v56 }
 0x367   :  { %5684 = vmatprep.subr.bf16.mxu1 %v6989_v31  ;;  %v5216_v31 = vpack.i.b16 %v5199_v12, %v5199_v12  ;;  %v6518_v12 = vld [vmem:[#allocation2] ss:$0 sm:$0xff] }
 0x36a   :  { %5685 = vmatpush1.bf16.msra.mxu1 %v6987_v57 }
 0x36b   :  { %5686 = vmatprep.subr.bf16.mxu1 %v6992_v9  ;;  %v5223_v9 = vpack.i.b16 %v5200_v24, %v5200_v24 }
 0x36e   :  { %5687 = vmatpush2.bf16.msra.mxu1 %v6990_v37 }
 0x36f   :  { %5688 = vmatprep.subr.bf16.mxu1 %v6995_v39 }
 0x372   :  { %5689 = vmatpush2.bf16.msra.mxu1 %v6993_v52  ;;  %v5221_v52 = vrot.slane %v5216_v31, %v7362_v30 }
 0x373   :  { %5690 = vmatprep.subr.bf16.mxu1 %v6998_v40 }
 0x376   :  { %5691 = vmatpush2.bf16.msra.mxu1 %v6996_v41 }
 0x377   :  { %5692 = vmatprep.subr.bf16.mxu1 %v7001_v43 }
 0x37a   :  { %5693 = vmatpush2.bf16.msra.mxu1 %v6999_v44 }
 0x37b   :  { %5694 = vmatprep.subr.bf16.mxu1 %v7004_v48  ;;  %v5228_v48 = vrot.slane %v5223_v9, %v7362_v30 }
 0x37e   :  { %5695 = vmatpush2.bf16.msra.mxu1 %v7002_v50 }
 0x37f   :  { %5696 = vmatprep.subr.bf16.mxu1 %v7007_v32  ;;  %v5718_v32 = vrot.slane %v5713_v1, %v7362_v30 }
 0x382   :  { %5697 = vmatpush2.bf16.msra.mxu1 %v7005_v4  ;;  %v5725_v4 = vpack.c.bf16 %v5718_v32, %v5718_v32 }
 0x383   :  { %v5041_v54 = vpop.f32.mrf.mxu0  ;;  %5698 = vmatprep.subr.bf16.mxu1 %v7010_v10 }
 0x385   :  { %v5043_v42 = vpop.f32.mrf.mxu0 }
 0x386   :  { %5699 = vmatpush2.bf16.msra.mxu1 %v7008_v36 }
 0x387   :  { %v5045_v58 = vpop.f32.mrf.mxu0  ;;  %5700 = vmatprep.subr.bf16.mxu1 %v7013_v34 }
 0x389   :  { %v5046_v63 = vpop.f32.mrf.mxu0 }
 0x38d   :  { %v5000_v2 = vpop.f32.mrf.mxu1 }
 0x38e   :  { %v5001_v5 = vadd.f32 %v5000_v2, %v7461_v16  ;;  %v7011_v16 = vld [vmem:[#allocation11 + $0x180] ss:$8 sps:$4 sm:$0xff]   ;;  %v5722_v2 = vrot.slane %v5713_v1, %v7348_v29 }
 0x38f   :  { %v5002_v6 = vpop.f32.mrf.mxu1  ;;  %5701 = vmatpush2.bf16.msra.mxu1 %v7011_v16 }
 0x390   :  { %v5171_v7 = vpack.c.bf16 %v5001_v5, %v5001_v5  ;;  %v5003_v8 = vadd.f32 %v5002_v6, %v7464_v18  ;;  %v5726_v5 = vpack.c.bf16 %v5722_v2, %v5722_v2 }
 0x391   :  { %v5004_v38 = vpop.f32.mrf.mxu1 }
 0x392   :  { %v5229_v11 = vadd.bf16 %v5207_v25, %v5171_v7  ;;  %v5172_v23 = vpack.c.bf16 %v5003_v8, %v5003_v8  ;;  %v5728_v25 = vpack.i.b16 %v5725_v4, %v5725_v4  ;;  %v5735_v6 = vpack.i.b16 %v5726_v5, %v5726_v5  ;;  %v5749_v7 = vld [vmem:[#allocation14] sm:$0x3] }
 0x393   :  { %v5005_v49 = vpop.f32.mrf.mxu1  ;;  %v5750_v36 = vunpack.c.l.bf16 %v5749_v7 }
 0x394   :  { %v5230_v14 = vadd.bf16 %v5214_v45, %v5172_v23  ;;  %v5237_v59 = vmul.bf16 1045249613, %v5229_v11  ;;  %vm5233_vm10 = vcmp.ge.bf16.partialorder %v5229_v11, 0  ;;  %v5733_v10 = vrot.slane %v5728_v25, %v7362_v30 }
 0x395   :  { %v5740_v49 = vrot.slane %v5735_v6, %v7362_v30  ;;  %v5757_v29 = vrot.slane %v5750_v36, %v7362_v30 }
 0x396   :  { %vm5234_vm9 = vcmp.ge.bf16.partialorder %v5230_v14, 0  ;;  %v5238_v46 = vmul.bf16 1045249613, %v5230_v14  ;;  %v5241_v18 = vsel %vm5233_vm10, %v5229_v11, %v5237_v59 }
 0x398   :  { %v5242_v19 = vsel %vm5234_vm9, %v5230_v14, %v5238_v46  ;;  %v5761_v46 = vrot.slane %v5750_v36, %v7385_v53 }
 0x399   :  { %5661 = vmatprep.mubr.bf16.mxu0 %v5242_v19 }
 0x39a   :  { %5662 = vmatmul.mubr.bf16.vlgmr.msra.gmra.mxu0 %v5241_v18 }
 0x3c3   :  { %v5123_v28 = vpop.f32.mrf.mxu0 }
 0x3c5   :  { %v5125_v27 = vpop.f32.mrf.mxu0 }
 0x3c7   :  { %v5127_v33 = vpop.f32.mrf.mxu0 }
 0x3c9   :  { %v5128_v21 = vpop.f32.mrf.mxu0 }
 0x3ca   :  { %v5767_v21 = vrot.slane %v5757_v29, %v7362_v30 }
 0x3cd   :  { %v5082_v15 = vpop.f32.mrf.mxu1 }
 0x3ce   :  { %v5083_v62 = vadd.f32 %v5082_v15, %v5041_v54  ;;  %v5771_v15 = vrot.slane %v5761_v46, %v7362_v30 }
 0x3cf   :  { %v5084_v51 = vpop.f32.mrf.mxu1 }
 0x3d0   :  { %v5085_v56 = vadd.f32 %v5084_v51, %v5043_v42  ;;  %v5124_v57 = vadd.f32 %v5123_v28, %v5083_v62 }
 0x3d1   :  { %v5086_v22 = vpop.f32.mrf.mxu1 }
 0x3d2   :  { %v5126_v40 = vadd.f32 %v5125_v27, %v5085_v56 }
 0x3d3   :  { %v5087_v3 = vpop.f32.mrf.mxu1 }
 0x40d   :  { %v5164_v37 = vpop.f32.mrf.mxu1 }
 0x40e   :  { %v5165_v39 = vadd.f32 %v5164_v37, %v5124_v57 }
 0x40f   :  { %v5166_v41 = vpop.f32.mrf.mxu1 }
 0x410   :  { %v5173_v43 = vpack.c.bf16 %v5165_v39, %v5165_v39  ;;  %v5167_v44 = vadd.f32 %v5166_v41, %v5126_v40 }
 0x411   :  { %v5168_v26 = vpop.f32.mrf.mxu1 }
 0x412   :  { %v5231_v47 = vadd.bf16 %v5221_v52, %v5173_v43  ;;  %v5174_v13 = vpack.c.bf16 %v5167_v44, %v5167_v44 }
 0x413   :  { %v5169_v17 = vpop.f32.mrf.mxu1 }
 0x414   :  { %v5232_v50 = vadd.bf16 %v5228_v48, %v5174_v13  ;;  %v5239_v54 = vmul.bf16 1045249613, %v5231_v47  ;;  %vm5235_vm12 = vcmp.ge.bf16.partialorder %v5231_v47, 0 }
 0x416   :  { %vm5236_vm11 = vcmp.ge.bf16.partialorder %v5232_v50, 0  ;;  %v5240_v55 = vmul.bf16 1045249613, %v5232_v50  ;;  %v5243_v20 = vsel %vm5235_vm12, %v5231_v47, %v5239_v54 }
 0x418   :  { %v5244_v42 = vsel %vm5236_vm11, %v5232_v50, %v5240_v55 }
 0x419   :  { %5702 = vmatprep.mubr.bf16.mxu1 %v5244_v42 }
 0x41a   :  { %5703 = vmatmul.mubr.bf16.vlgmr.msra.gmra.mxu1 %v5243_v20 }
 0x45a   :  { %v5663_v58 = vpop.f32.mrf.mxu0 }
 0x45c   :  { %v5665_v61 = vpop.f32.mrf.mxu0 }
 0x45e   :  { %v5667_v63 = vpop.f32.mrf.mxu0 }
 0x460   :  { %v5668_v0 = vpop.f32.mrf.mxu0 }
 0x4da   :  { %v5704_v8 = vpop.f32.mrf.mxu1 }
 0x4db   :  { %v5705_v45 = vadd.f32 %v5704_v8, %v5663_v58 }
 0x4dc   :  { %v5706_v38 = vpop.f32.mrf.mxu1 }
 0x4dd   :  { %v5711_v11 = vpack.c.bf16 %v5705_v45, %v5705_v45  ;;  %v5707_v23 = vadd.f32 %v5706_v38, %v5665_v61 }
 0x4de   :  { %v5708_v14 = vpop.f32.mrf.mxu1 }
 0x4df   :  { %v5741_v16 = vadd.bf16 %v5733_v10, %v5711_v11  ;;  %v5712_v59 = vpack.c.bf16 %v5707_v23, %v5707_v23 }
 0x4e0   :  { %v5709_v34 = vpop.f32.mrf.mxu1 }
 0x4e1   :  { %v5745_v19 = vmul.bf16 1045249613, %v5741_v16  ;;  %v5742_v18 = vadd.bf16 %v5740_v49, %v5712_v59  ;;  %vm5743_vm13 = vcmp.ge.bf16.partialorder %v5741_v16, 0 }
 0x4e3   :  { %v5746_v28 = vmul.bf16 1045249613, %v5742_v18  ;;  %vm5744_vm14 = vcmp.ge.bf16.partialorder %v5742_v18, 0  ;;  %v5747_v27 = vsel %vm5743_vm13, %v5741_v16, %v5745_v19 }
 0x4e4   :  { %v5751_v33 = vunpack.c.l.bf16 %v5747_v27 }
 0x4e5   :  { %v5748_v51 = vsel %vm5744_vm14, %v5742_v18, %v5746_v28 }
 0x4e6   :  { %v5752_v22 = vunpack.c.l.bf16 %v5748_v51  ;;  %v5772_v3 = vmul.f32 %v5767_v21, %v5751_v33 }
 0x4e8   :  { %v5773_v60 = vmul.f32 %v5771_v15, %v5752_v22 }
 0x4ea   :  { %v5774_v35 = vadd.f32 %v5773_v60, %v5772_v3 }
 0x4ec   :  { %5775 = vadd.xlane.f32.xlu0 %v5774_v35 }
 0x575   :  { %v5776_v62 = vpop.xlane.xlu0 %5775 }
 0x576   :  { %v5784_v53 = vadd.f32 %v6518_v12, %v5776_v62 }
 0x578   :  { %v5785_v24 = vsub.f32 0.0, %v5784_v53 }
 0x57a   :  { %v5786_v56 = vmul.f32 1.442695, %v5785_v24 }
 0x57c   :  { %7014 = vpow2.f32 %v5786_v56 }
 0x589   :  { %v7015_v31 = vpop.eup %7014 }
 0x58a   :  { %v5788_v57 = vadd.f32 1.0, %v7015_v31 }
 0x58c   :  { %7016 = vrcp.f32 %v5788_v57 }
 0x599   :  { %v7017_v9 = vpop.eup %7016 }
 0x59a   :  { %5792 = vst.msk [vmem:[%s7498_s9] sm:$0xff] %vm5791_vm15, %v7017_v9 }
 0x59b   :  { %5797 = vsyncpa [#allocation4], 1 }
 0x59c   :  { %5798 = vsyncpa [#allocation6], 1 }
 0x59d   :  { %5799 = vsyncpa [#allocation9], 1 }
 0x59e   :  { %5800 = vsyncpa [#allocation12], 1 }
 0x59f   :  { %5801 = vsyncpa [#allocation15], 1 }

// kernel: tpu_custom_call.1
= control target key start
LH: loop header
LB: loop body
LE: loop exit
PB: predicated region body
PF: predicated region fallthrough
CT: control target
= control target key end

     0   :  { %s7489_s0 = inlined_call_operand.hbm [shape: f32[8,784], index: 0, kind: input, shape index: {}]   ;;  %s7490_s1 = inlined_call_operand.hbm [shape: bf16[784,1024], index: 1, kind: input, shape index: {}]   ;;  %s7491_s2 = inlined_call_operand.hbm [shape: f32[1,1024], index: 2, kind: input, shape index: {}]   ;;  %s7492_s3 = inlined_call_operand.hbm [shape: bf16[1024,512], index: 3, kind: input, shape index: {}]   ;;  %s7493_s4 = inlined_call_operand.hbm [shape: f32[1,512], index: 4, kind: input, shape index: {}]   ;;  %s7494_s5 = inlined_call_operand.hbm [shape: bf16[512,256], index: 5, kind: input, shape index: {}]   ;;  %s7495_s6 = inlined_call_operand.hbm [shape: f32[1,256], index: 6, kind: input, shape index: {}]   ;;  %s7496_s7 = inlined_call_operand.hbm [shape: bf16[1,256], index: 7, kind: input, shape index: {}]   ;;  %s7497_s8 = inlined_call_operand.<no memory space> [shape: f32[1,1], index: 8, kind: input, shape index: {}]   ;;  %s7498_s9 = inlined_call_operand.vmem [shape: f32[8,1], index: 9, kind: output, shape index: {}]  }
   0x1   :  { %v14_v0 = vstv %s7497_s8 }
   0x2   :  { %15 = vst [vmem:[#allocation2] sm:$0x1] %v14_v0 }
   0x3   :  { %16 = vsyncpa [#allocation4], 0 }
   0x4   :  { %17 = vsyncpa [#allocation6], 0 }
   0x5   :  { %18 = vsyncpa [#allocation9], 0 }
   0x6   :  { %19 = vsyncpa [#allocation12], 0 }
   0x7   :  { %20 = vsyncpa [#allocation15], 0  ;;  %s7188_s11 = smov [#allocation5]  }
   0x8   :  { %s36_s12 = sshll.u32 %s7188_s11, 4  ;;  %s37_s12 = int_to_ptr.vmem [resolvable:$true] %s36_s12 }
   0x9   :  { %s7026_s13 = scalar_lea.vmem %s37_s12, 50176  ;;  %p7031_p1 = scmp.lt.s32.totalorder %s37_s12, %s37_s12 }
   0xa   :  { %p7027_p0 = scmp.ne.s32.totalorder %s37_s12, %s7026_s13  ;;  %p7032_p2 = scmp.lt.s32.totalorder %s7026_s13, %s7026_s13 }
   0xc   :  { %p7033_p3 = por %p7032_p2, %p7031_p1 }
   0xe   :  { %p7034_p4 = pnand %p7033_p3, %p7027_p0 }
  0x10   :  { %7037 = shalt.err (!%p7034_p4)
}
  0x11   :  { %s7189_s14 = smov 512   ;;  %s7190_s15 = smov 32  }
  0x12   :  { %42 = dma.hbm_to_vmem [thread:$0]  %s7490_s1, 50176, %s37_s12, [#allocation6], %s7189_s14, %s7189_s14, %s7190_s15  }
  0x13   :  { %s7191_s17 = smov [#allocation8]  }
  0x14   :  { %s58_s18 = sshll.u32 %s7191_s17, 4  ;;  %s59_s18 = int_to_ptr.vmem [resolvable:$true] %s58_s18 }
  0x15   :  { %s7046_s19 = scalar_lea.vmem %s59_s18, 32768  ;;  %p7051_p6 = scmp.lt.s32.totalorder %s59_s18, %s59_s18 }
  0x16   :  { %p7047_p5 = scmp.ne.s32.totalorder %s59_s18, %s7046_s19  ;;  %p7052_p7 = scmp.lt.s32.totalorder %s7046_s19, %s7046_s19 }
  0x18   :  { %p7053_p8 = por %p7052_p7, %p7051_p6 }
  0x1a   :  { %p7054_p9 = pnand %p7053_p8, %p7047_p5 }
  0x1c   :  { %7057 = shalt.err (!%p7054_p9)
}
  0x1d   :  { %s7192_s20 = smov 256   ;;  %s7193_s21 = smov 16  }
  0x1e   :  { %64 = dma.hbm_to_vmem [thread:$0]  %s7492_s3, 32768, %s59_s18, [#allocation9], %s7192_s20, %s7192_s20, %s7193_s21  }
  0x1f   :  { %s7194_s24 = smov [#allocation11]  }
  0x20   :  { %s80_s25 = sshll.u32 %s7194_s24, 4  ;;  %s81_s25 = int_to_ptr.vmem [resolvable:$true] %s80_s25 }
  0x21   :  { %s7066_s1 = scalar_lea.vmem %s81_s25, 8192  ;;  %p7071_p11 = scmp.lt.s32.totalorder %s81_s25, %s81_s25 }
  0x22   :  { %p7067_p10 = scmp.ne.s32.totalorder %s81_s25, %s7066_s1  ;;  %p7072_p12 = scmp.lt.s32.totalorder %s7066_s1, %s7066_s1 }
  0x24   :  { %p7073_p13 = por %p7072_p12, %p7071_p11 }
  0x26   :  { %p7074_p0 = pnand %p7073_p13, %p7067_p10 }
  0x28   :  { %7077 = shalt.err (!%p7074_p0)
}
  0x29   :  { %s7195_s26 = smov 128   ;;  %s7196_s27 = smov 8  }
  0x2a   :  { %86 = dma.hbm_to_vmem [thread:$0]  %s7494_s5, 8192, %s81_s25, [#allocation12], %s7195_s26, %s7195_s26, %s7196_s27  }
  0x2b   :  { %s7197_s30 = smov [#allocation3]   ;;  %s7198_s3 = smov [#allocation7]  }
  0x2c   :  { %s27_s10 = sshll.u32 %s7197_s30, 4  ;;  %s49_s11 = sshll.u32 %s7198_s3, 4  ;;  %s28_s10 = int_to_ptr.vmem [resolvable:$true] %s27_s10  ;;  %s50_s11 = int_to_ptr.vmem [resolvable:$true] %s49_s11 }
  0x2d   :  { %s7086_s12 = scalar_lea.vmem %s28_s10, 896  ;;  %p7091_p2 = scmp.lt.s32.totalorder %s28_s10, %s28_s10 }
  0x2e   :  { %p7087_p1 = scmp.ne.s32.totalorder %s28_s10, %s7086_s12  ;;  %p7092_p3 = scmp.lt.s32.totalorder %s7086_s12, %s7086_s12 }
  0x30   :  { %p7093_p4 = por %p7092_p3, %p7091_p2 }
  0x32   :  { %p7094_p5 = pnand %p7093_p4, %p7087_p1 }
  0x34   :  { %7097 = shalt.err (!%p7094_p5)
}
  0x35   :  { %30 = dma.hbm_to_vmem [thread:$0]  %s7489_s0, 896, %s28_s10, [#allocation4]  }
  0x36   :  { %s7106_s15 = scalar_lea.vmem %s50_s11, 128  ;;  %p7111_p7 = scmp.lt.s32.totalorder %s50_s11, %s50_s11 }
  0x37   :  { %p7107_p6 = scmp.ne.s32.totalorder %s50_s11, %s7106_s15  ;;  %p7112_p8 = scmp.lt.s32.totalorder %s7106_s15, %s7106_s15 }
  0x39   :  { %p7113_p9 = por %p7112_p8, %p7111_p7 }
  0x3b   :  { %p7114_p10 = pnand %p7113_p9, %p7107_p6 }
  0x3d   :  { %7117 = shalt.err (!%p7114_p10)
}
  0x3e   :  { %52 = dma.hbm_to_vmem [thread:$0]  %s7491_s2, 128, %s50_s11, [#allocation6]  }
  0x3f   :  { %s7199_s8 = smov [#allocation10]   ;;  %s7200_s18 = smov [#allocation13]  }
  0x40   :  { %s71_s17 = sshll.u32 %s7199_s8, 4  ;;  %s93_s19 = sshll.u32 %s7200_s18, 4  ;;  %s72_s17 = int_to_ptr.vmem [resolvable:$true] %s71_s17  ;;  %s94_s19 = int_to_ptr.vmem [resolvable:$true] %s93_s19 }
  0x41   :  { %s7126_s20 = scalar_lea.vmem %s72_s17, 64  ;;  %p7131_p12 = scmp.lt.s32.totalorder %s72_s17, %s72_s17 }
  0x42   :  { %p7127_p11 = scmp.ne.s32.totalorder %s72_s17, %s7126_s20  ;;  %p7132_p13 = scmp.lt.s32.totalorder %s7126_s20, %s7126_s20 }
  0x44   :  { %p7133_p0 = por %p7132_p13, %p7131_p12 }
  0x46   :  { %p7134_p1 = pnand %p7133_p0, %p7127_p11 }
  0x48   :  { %7137 = shalt.err (!%p7134_p1)
}
  0x49   :  { %74 = dma.hbm_to_vmem [thread:$0]  %s7493_s4, 64, %s72_s17, [#allocation9]  }
  0x4a   :  { %s7146_s22 = scalar_lea.vmem %s94_s19, 32  ;;  %p7151_p3 = scmp.lt.s32.totalorder %s94_s19, %s94_s19 }
  0x4b   :  { %p7147_p2 = scmp.ne.s32.totalorder %s94_s19, %s7146_s22  ;;  %p7152_p4 = scmp.lt.s32.totalorder %s7146_s22, %s7146_s22 }
  0x4d   :  { %p7153_p5 = por %p7152_p4, %p7151_p3 }
  0x4f   :  { %p7154_p6 = pnand %p7153_p5, %p7147_p2 }
  0x51   :  { %7157 = shalt.err (!%p7154_p6)
}
  0x52   :  { %96 = dma.hbm_to_vmem [thread:$0]  %s7495_s6, 32, %s94_s19, [#allocation12]  }
  0x53   :  { %s7201_s24 = smov [#allocation14]  }
  0x54   :  { %s103_s25 = sshll.u32 %s7201_s24, 4  ;;  %s104_s25 = int_to_ptr.vmem [resolvable:$true] %s103_s25 }
  0x55   :  { %s7166_s1 = scalar_lea.vmem %s104_s25, 32  ;;  %p7171_p8 = scmp.lt.s32.totalorder %s104_s25, %s104_s25 }
  0x56   :  { %p7167_p7 = scmp.ne.s32.totalorder %s104_s25, %s7166_s1  ;;  %p7172_p9 = scmp.lt.s32.totalorder %s7166_s1, %s7166_s1 }
  0x58   :  { %p7173_p10 = por %p7172_p9, %p7171_p8 }
  0x5a   :  { %p7174_p11 = pnand %p7173_p10, %p7167_p7 }
  0x5c   :  { %7177 = shalt.err (!%p7174_p11)
}
  0x5d   :  { %106 = dma.hbm_to_vmem [thread:$0]  %s7496_s7, 32, %s104_s25, [#allocation15]  }
  0x5e   :  { %7178 = dma.done.wait [#allocation4], 896  }
  0x5f   :  { %7179 = vsyncadd [#allocation4], 4294966400 }
  0x60   :  { %7180 = dma.done.wait [#allocation6], 50304  }
  0x61   :  { %7181 = vsyncadd [#allocation6], 4294916992 }
  0x62   :  { %7182 = dma.done.wait [#allocation9], 32832  }
  0x63   :  { %7183 = vsyncadd [#allocation9], 4294934464 }
  0x64   :  { %7184 = dma.done.wait [#allocation12], 8224  }
  0x65   :  { %7185 = vsyncadd [#allocation12], 4294959072 }
  0x66   :  { %7186 = dma.done.wait [#allocation15], 32  }
  0x67   :  { %7187 = vsyncadd [#allocation15], 4294967264  ;;  %v205_v1 = vld [vmem:[#allocation5 + $0x1c0] sm:$0xff]  ;;  %v136_v54 = vld [vmem:[#allocation3 + $0x8] sm:$0xff]  ;;  %vm2501_vm0 = vcmask 130048   ;;  %vm5791_vm15 = vcmask 7168  }
  0x68   :  { %v209_v2 = vld [vmem:[#allocation5 + $0x1e0] sm:$0xff]  ;;  %v7280_v59 = vpack.c.bf16 %v136_v54, %v136_v54 }
  0x69   :  { %v333_v3 = vld [vmem:[#allocation5 + $0x5c0] sm:$0xff]  ;;  %v5859_v4 = vcombine.high %v205_v1, %v209_v2  ;;  %v5858_v6 = vcombine.low %v205_v1, %v209_v2 }
  0x6a   :  { %v337_v5 = vld [vmem:[#allocation5 + $0x5e0] sm:$0xff]  ;;  %2537 = vmatprep.mubr.bf16.mxu0 %v7280_v59 }
  0x6b   :  { %v197_v7 = vld [vmem:[#allocation5 + $0x180] sm:$0xff]  ;;  %v5987_v9 = vcombine.high %v333_v3, %v337_v5  ;;  %v5986_v10 = vcombine.low %v333_v3, %v337_v5  ;;  %2505 = vmatprep.subr.bf16.mxu0 %v5859_v4 }
  0x6c   :  { %v201_v8 = vld [vmem:[#allocation5 + $0x1a0] sm:$0xff]  ;;  %2506 = vmatpush1.bf16.msra.mxu0 %v5858_v6 }
  0x6d   :  { %v5851_v11 = vcombine.high %v197_v7, %v201_v8  ;;  %v325_v12 = vld [vmem:[#allocation5 + $0x580] sm:$0xff]  ;;  %2546 = vmatprep.subr.bf16.mxu1 %v5987_v9  ;;  %v5850_v19 = vcombine.low %v197_v7, %v201_v8 }
  0x6e   :  { %v329_v13 = vld [vmem:[#allocation5 + $0x5a0] sm:$0xff]  ;;  %2547 = vmatpush1.bf16.msra.mxu1 %v5986_v10 }
  0x6f   :  { %v189_v14 = vld [vmem:[#allocation5 + $0x140] sm:$0xff]  ;;  %v5979_v15 = vcombine.high %v325_v12, %v329_v13  ;;  %2507 = vmatprep.subr.bf16.mxu0 %v5851_v11  ;;  %v5978_v20 = vcombine.low %v325_v12, %v329_v13 }
  0x70   :  { %v193_v16 = vld [vmem:[#allocation5 + $0x160] sm:$0xff]  ;;  %2508 = vmatpush1.bf16.msra.mxu0 %v5850_v19 }
  0x71   :  { %v317_v17 = vld [vmem:[#allocation5 + $0x540] sm:$0xff]  ;;  %v5843_v21 = vcombine.high %v189_v14, %v193_v16  ;;  %2548 = vmatprep.subr.bf16.mxu1 %v5979_v15  ;;  %v5842_v27 = vcombine.low %v189_v14, %v193_v16 }
  0x72   :  { %v321_v18 = vld [vmem:[#allocation5 + $0x560] sm:$0xff]  ;;  %2549 = vmatpush1.bf16.msra.mxu1 %v5978_v20 }
  0x73   :  { %v5971_v22 = vcombine.high %v317_v17, %v321_v18  ;;  %v181_v23 = vld [vmem:[#allocation5 + $0x100] sm:$0xff]  ;;  %2509 = vmatprep.subr.bf16.mxu0 %v5843_v21  ;;  %v5970_v28 = vcombine.low %v317_v17, %v321_v18 }
  0x74   :  { %v185_v24 = vld [vmem:[#allocation5 + $0x120] sm:$0xff]  ;;  %2510 = vmatpush1.bf16.msra.mxu0 %v5842_v27 }
  0x75   :  { %v309_v25 = vld [vmem:[#allocation5 + $0x500] sm:$0xff]  ;;  %v5835_v29 = vcombine.high %v181_v23, %v185_v24  ;;  %2550 = vmatprep.subr.bf16.mxu1 %v5971_v22  ;;  %v5834_v35 = vcombine.low %v181_v23, %v185_v24 }
  0x76   :  { %v313_v26 = vld [vmem:[#allocation5 + $0x520] sm:$0xff]  ;;  %2551 = vmatpush1.bf16.msra.mxu1 %v5970_v28 }
  0x77   :  { %v5963_v30 = vcombine.high %v309_v25, %v313_v26  ;;  %v173_v31 = vld [vmem:[#allocation5 + $0xc0] sm:$0xff]  ;;  %2511 = vmatprep.subr.bf16.mxu0 %v5835_v29  ;;  %v5962_v36 = vcombine.low %v309_v25, %v313_v26 }
  0x78   :  { %v177_v32 = vld [vmem:[#allocation5 + $0xe0] sm:$0xff]  ;;  %2512 = vmatpush1.bf16.msra.mxu0 %v5834_v35 }
  0x79   :  { %v301_v33 = vld [vmem:[#allocation5 + $0x4c0] sm:$0xff]  ;;  %v5827_v37 = vcombine.high %v173_v31, %v177_v32  ;;  %2552 = vmatprep.subr.bf16.mxu1 %v5963_v30  ;;  %v5826_v43 = vcombine.low %v173_v31, %v177_v32 }
  0x7a   :  { %v305_v34 = vld [vmem:[#allocation5 + $0x4e0] sm:$0xff]  ;;  %2553 = vmatpush1.bf16.msra.mxu1 %v5962_v36 }
  0x7b   :  { %v5955_v38 = vcombine.high %v301_v33, %v305_v34  ;;  %v165_v39 = vld [vmem:[#allocation5 + $0x80] sm:$0xff]  ;;  %2513 = vmatprep.subr.bf16.mxu0 %v5827_v37  ;;  %v5954_v44 = vcombine.low %v301_v33, %v305_v34 }
  0x7c   :  { %v169_v40 = vld [vmem:[#allocation5 + $0xa0] sm:$0xff]  ;;  %2514 = vmatpush1.bf16.msra.mxu0 %v5826_v43 }
  0x7d   :  { %v293_v41 = vld [vmem:[#allocation5 + $0x480] sm:$0xff]  ;;  %v5819_v45 = vcombine.high %v165_v39, %v169_v40  ;;  %2554 = vmatprep.subr.bf16.mxu1 %v5955_v38  ;;  %v5818_v51 = vcombine.low %v165_v39, %v169_v40 }
  0x7e   :  { %v297_v42 = vld [vmem:[#allocation5 + $0x4a0] sm:$0xff]  ;;  %2555 = vmatpush1.bf16.msra.mxu1 %v5954_v44 }
  0x7f   :  { %v5947_v46 = vcombine.high %v293_v41, %v297_v42  ;;  %v157_v47 = vld [vmem:[#allocation5 + $0x40] sm:$0xff]  ;;  %2515 = vmatprep.subr.bf16.mxu0 %v5819_v45  ;;  %v5946_v52 = vcombine.low %v293_v41, %v297_v42 }
  0x80   :  { %v161_v48 = vld [vmem:[#allocation5 + $0x60] sm:$0xff]  ;;  %2516 = vmatpush1.bf16.msra.mxu0 %v5818_v51 }
  0x81   :  { %v285_v49 = vld [vmem:[#allocation5 + $0x440] sm:$0xff]  ;;  %v5811_v53 = vcombine.high %v157_v47, %v161_v48  ;;  %2556 = vmatprep.subr.bf16.mxu1 %v5947_v46  ;;  %v5810_v63 = vcombine.low %v157_v47, %v161_v48 }
  0x82   :  { %v289_v50 = vld [vmem:[#allocation5 + $0x460] sm:$0xff]  ;;  %2557 = vmatpush1.bf16.msra.mxu1 %v5946_v52 }
  0x83   :  { %v138_v55 = vld [vmem:[#allocation3 + $0x18] sm:$0xff]  ;;  %v5939_v56 = vcombine.high %v285_v49, %v289_v50  ;;  %2517 = vmatprep.subr.bf16.mxu0 %v5811_v53  ;;  %v5938_v0 = vcombine.low %v285_v49, %v289_v50 }
  0x84   :  { %v149_v57 = vld [vmem:[#allocation5] sm:$0xff]  ;;  %v7282_v60 = vpack.c.bf16 %v138_v55, %v138_v55  ;;  %2518 = vmatpush1.bf16.msra.mxu0 %v5810_v63 }
  0x85   :  { %v153_v58 = vld [vmem:[#allocation5 + $0x20] sm:$0xff]  ;;  %2558 = vmatprep.subr.bf16.mxu1 %v5939_v56 }
  0x86   :  { %v277_v61 = vld [vmem:[#allocation5 + $0x400] sm:$0xff]  ;;  %v5803_v1 = vcombine.high %v149_v57, %v153_v58  ;;  %2578 = vmatprep.mubr.bf16.mxu1 %v7282_v60  ;;  %v5802_v7 = vcombine.low %v149_v57, %v153_v58  ;;  %2559 = vmatpush1.bf16.msra.mxu1 %v5938_v0 }
  0x87   :  { %v281_v62 = vld [vmem:[#allocation5 + $0x420] sm:$0xff] }
  0x88   :  { %v5931_v2 = vcombine.high %v277_v61, %v281_v62  ;;  %v269_v3 = vld [vmem:[#allocation5 + $0x3c0] sm:$0xff]  ;;  %2519 = vmatprep.subr.bf16.mxu0 %v5803_v1  ;;  %v5930_v8 = vcombine.low %v277_v61, %v281_v62 }
  0x89   :  { %v273_v4 = vld [vmem:[#allocation5 + $0x3e0] sm:$0xff]  ;;  %2520 = vmatpush1.bf16.msra.mxu0 %v5802_v7 }
  0x8a   :  { %v397_v5 = vld [vmem:[#allocation5 + $0x7c0] sm:$0xff]  ;;  %v5923_v9 = vcombine.high %v269_v3, %v273_v4  ;;  %2560 = vmatprep.subr.bf16.mxu1 %v5931_v2  ;;  %v5922_v15 = vcombine.low %v269_v3, %v273_v4 }
  0x8b   :  { %v401_v6 = vld [vmem:[#allocation5 + $0x7e0] sm:$0xff]  ;;  %2561 = vmatpush1.bf16.msra.mxu1 %v5930_v8 }
  0x8c   :  { %v6051_v10 = vcombine.high %v397_v5, %v401_v6  ;;  %v261_v11 = vld [vmem:[#allocation5 + $0x380] sm:$0xff]  ;;  %2521 = vmatprep.subr.bf16.mxu0 %v5923_v9  ;;  %v6050_v16 = vcombine.low %v397_v5, %v401_v6 }
  0x8d   :  { %v265_v12 = vld [vmem:[#allocation5 + $0x3a0] sm:$0xff]  ;;  %2522 = vmatpush2.bf16.msra.mxu0 %v5922_v15 }
  0x8e   :  { %v389_v13 = vld [vmem:[#allocation5 + $0x780] sm:$0xff]  ;;  %v5915_v17 = vcombine.high %v261_v11, %v265_v12  ;;  %2562 = vmatprep.subr.bf16.mxu1 %v6051_v10  ;;  %v5914_v23 = vcombine.low %v261_v11, %v265_v12  ;;  %v135_v10 = vld [vmem:[#allocation3] sm:$0xff]  ;;  %v137_v12 = vld [vmem:[#allocation3 + $0x10] sm:$0xff] }
  0x8f   :  { %v393_v14 = vld [vmem:[#allocation5 + $0x7a0] sm:$0xff]  ;;  %2563 = vmatpush2.bf16.msra.mxu1 %v6050_v16 }
  0x90   :  { %v6043_v18 = vcombine.high %v389_v13, %v393_v14  ;;  %v253_v19 = vld [vmem:[#allocation5 + $0x340] sm:$0xff]  ;;  %2523 = vmatprep.subr.bf16.mxu0 %v5915_v17  ;;  %v6042_v24 = vcombine.low %v389_v13, %v393_v14  ;;  %v7286_v17 = vpack.c.bf16 %v135_v10, %v135_v10 }
  0x91   :  { %v257_v20 = vld [vmem:[#allocation5 + $0x360] sm:$0xff]  ;;  %2524 = vmatpush2.bf16.msra.mxu0 %v5914_v23 }
  0x92   :  { %v381_v21 = vld [vmem:[#allocation5 + $0x740] sm:$0xff]  ;;  %v5907_v25 = vcombine.high %v253_v19, %v257_v20  ;;  %2564 = vmatprep.subr.bf16.mxu1 %v6043_v18  ;;  %v5906_v31 = vcombine.low %v253_v19, %v257_v20  ;;  %v206_v18 = vld [vmem:[#allocation5 + $0x1c8] sm:$0xff]  ;;  %v7288_v20 = vpack.c.bf16 %v137_v12, %v137_v12 }
  0x93   :  { %v385_v22 = vld [vmem:[#allocation5 + $0x760] sm:$0xff]  ;;  %2565 = vmatpush2.bf16.msra.mxu1 %v6042_v24  ;;  %v210_v19 = vld [vmem:[#allocation5 + $0x1e8] sm:$0xff] }
  0x94   :  { %v6035_v26 = vcombine.high %v381_v21, %v385_v22  ;;  %v245_v27 = vld [vmem:[#allocation5 + $0x300] sm:$0xff]  ;;  %2525 = vmatprep.subr.bf16.mxu0 %v5907_v25  ;;  %v6034_v32 = vcombine.low %v381_v21, %v385_v22  ;;  %v140_v22 = vld [vmem:[#allocation3 + $0x28] sm:$0xff]  ;;  %v162_v12 = vld [vmem:[#allocation5 + $0x68] sm:$0xff] }
  0x95   :  { %v249_v28 = vld [vmem:[#allocation5 + $0x320] sm:$0xff]  ;;  %2526 = vmatpush2.bf16.msra.mxu0 %v5906_v31 }
  0x96   :  { %v373_v29 = vld [vmem:[#allocation5 + $0x700] sm:$0xff]  ;;  %v5899_v33 = vcombine.high %v245_v27, %v249_v28  ;;  %2566 = vmatprep.subr.bf16.mxu1 %v6035_v26  ;;  %v5898_v39 = vcombine.low %v245_v27, %v249_v28  ;;  %v5861_v26 = vcombine.high %v206_v18, %v210_v19  ;;  %v141_v28 = vld [vmem:[#allocation3 + $0x30] sm:$0xff] }
  0x97   :  { %v377_v30 = vld [vmem:[#allocation5 + $0x720] sm:$0xff]  ;;  %2567 = vmatpush2.bf16.msra.mxu1 %v6034_v32  ;;  %v198_v32 = vld [vmem:[#allocation5 + $0x188] sm:$0xff] }
  0x98   :  { %v6027_v34 = vcombine.high %v373_v29, %v377_v30  ;;  %v237_v35 = vld [vmem:[#allocation5 + $0x2c0] sm:$0xff]  ;;  %2527 = vmatprep.subr.bf16.mxu0 %v5899_v33  ;;  %v6026_v40 = vcombine.low %v373_v29, %v377_v30  ;;  %v7291_v29 = vpack.c.bf16 %v140_v22, %v140_v22  ;;  %v202_v33 = vld [vmem:[#allocation5 + $0x1a8] sm:$0xff] }
  0x99   :  { %v241_v36 = vld [vmem:[#allocation5 + $0x2e0] sm:$0xff]  ;;  %2528 = vmatpush2.bf16.msra.mxu0 %v5898_v39  ;;  %v5860_v39 = vcombine.low %v206_v18, %v210_v19  ;;  %v154_v22 = vld [vmem:[#allocation5 + $0x28] sm:$0xff] }
  0x9a   :  { %v365_v37 = vld [vmem:[#allocation5 + $0x6c0] sm:$0xff]  ;;  %v5891_v41 = vcombine.high %v237_v35, %v241_v36  ;;  %2568 = vmatprep.subr.bf16.mxu1 %v6027_v34  ;;  %v5890_v47 = vcombine.low %v237_v35, %v241_v36  ;;  %v7202_v35 = vmov 0  }
  0x9b   :  { %v369_v38 = vld [vmem:[#allocation5 + $0x6e0] sm:$0xff]  ;;  %2569 = vmatpush2.bf16.msra.mxu1 %v6026_v40 }
  0x9c   :  { %v6019_v42 = vcombine.high %v365_v37, %v369_v38  ;;  %v229_v43 = vld [vmem:[#allocation5 + $0x280] sm:$0xff]  ;;  %2529 = vmatprep.subr.bf16.mxu0 %v5891_v41  ;;  %v6018_v48 = vcombine.low %v365_v37, %v369_v38  ;;  %v7296_v38 = vpack.c.bf16 %v141_v28, %v141_v28  ;;  %v190_v41 = vld [vmem:[#allocation5 + $0x148] sm:$0xff] }
  0x9d   :  { %v233_v44 = vld [vmem:[#allocation5 + $0x2a0] sm:$0xff]  ;;  %2530 = vmatpush2.bf16.msra.mxu0 %v5890_v47  ;;  %v5852_v47 = vcombine.low %v198_v32, %v202_v33 }
  0x9e   :  { %v357_v45 = vld [vmem:[#allocation5 + $0x680] sm:$0xff]  ;;  %v5883_v49 = vcombine.high %v229_v43, %v233_v44  ;;  %2570 = vmatprep.subr.bf16.mxu1 %v6019_v42  ;;  %v5882_v55 = vcombine.low %v229_v43, %v233_v44  ;;  %v194_v42 = vld [vmem:[#allocation5 + $0x168] sm:$0xff]  ;;  %v5853_v44 = vcombine.high %v198_v32, %v202_v33 }
  0x9f   :  { %v361_v46 = vld [vmem:[#allocation5 + $0x6a0] sm:$0xff]  ;;  %2571 = vmatpush2.bf16.msra.mxu1 %v6018_v48 }
  0xa0   :  { %v6011_v50 = vcombine.high %v357_v45, %v361_v46  ;;  %v221_v51 = vld [vmem:[#allocation5 + $0x240] sm:$0xff]  ;;  %2531 = vmatprep.subr.bf16.mxu0 %v5883_v49  ;;  %v6010_v56 = vcombine.low %v357_v45, %v361_v46  ;;  %v182_v49 = vld [vmem:[#allocation5 + $0x108] sm:$0xff] }
  0xa1   :  { %v225_v52 = vld [vmem:[#allocation5 + $0x260] sm:$0xff]  ;;  %2532 = vmatpush2.bf16.msra.mxu0 %v5882_v55  ;;  %v5844_v55 = vcombine.low %v190_v41, %v194_v42 }
  0xa2   :  { %v349_v53 = vld [vmem:[#allocation5 + $0x640] sm:$0xff]  ;;  %v5875_v57 = vcombine.high %v221_v51, %v225_v52  ;;  %2572 = vmatprep.subr.bf16.mxu1 %v6011_v50  ;;  %v5874_v1 = vcombine.low %v221_v51, %v225_v52  ;;  %v186_v50 = vld [vmem:[#allocation5 + $0x128] sm:$0xff]  ;;  %v5845_v52 = vcombine.high %v190_v41, %v194_v42 }
  0xa3   :  { %v353_v54 = vld [vmem:[#allocation5 + $0x660] sm:$0xff]  ;;  %2573 = vmatpush2.bf16.msra.mxu1 %v6010_v56  ;;  %v266_v41 = vld [vmem:[#allocation5 + $0x3a8] sm:$0xff] }
  0xa4   :  { %v6003_v58 = vcombine.high %v349_v53, %v353_v54  ;;  %v213_v61 = vld [vmem:[#allocation5 + $0x200] sm:$0xff]  ;;  %2533 = vmatprep.subr.bf16.mxu0 %v5875_v57  ;;  %v6002_v2 = vcombine.low %v349_v53, %v353_v54  ;;  %v174_v57 = vld [vmem:[#allocation5 + $0xc8] sm:$0xff] }
  0xa5   :  { %v217_v62 = vld [vmem:[#allocation5 + $0x220] sm:$0xff]  ;;  %2534 = vmatpush2.bf16.msra.mxu0 %v5874_v1  ;;  %v5836_v1 = vcombine.low %v182_v49, %v186_v50 }
  0xa6   :  { %v341_v63 = vld [vmem:[#allocation5 + $0x600] sm:$0xff]  ;;  %v5867_v3 = vcombine.high %v213_v61, %v217_v62  ;;  %2574 = vmatprep.subr.bf16.mxu1 %v6003_v58  ;;  %v5866_v9 = vcombine.low %v213_v61, %v217_v62  ;;  %v178_v58 = vld [vmem:[#allocation5 + $0xe8] sm:$0xff]  ;;  %v5837_v62 = vcombine.high %v182_v49, %v186_v50 }
  0xa7   :  { %v345_v0 = vld [vmem:[#allocation5 + $0x620] sm:$0xff]  ;;  %2575 = vmatpush2.bf16.msra.mxu1 %v6002_v2  ;;  %v258_v49 = vld [vmem:[#allocation5 + $0x368] sm:$0xff] }
  0xa8   :  { %v5995_v4 = vcombine.high %v341_v63, %v345_v0  ;;  %v461_v5 = vld [vmem:[#allocation5 + $0x9c0] sm:$0xff]  ;;  %2535 = vmatprep.subr.bf16.mxu0 %v5867_v3  ;;  %v5994_v11 = vcombine.low %v341_v63, %v345_v0  ;;  %v166_v3 = vld [vmem:[#allocation5 + $0x88] sm:$0xff] }
  0xa9   :  { %v465_v6 = vld [vmem:[#allocation5 + $0x9e0] sm:$0xff]  ;;  %2536 = vmatpush2.bf16.msra.mxu0 %v5866_v9  ;;  %v5828_v9 = vcombine.low %v174_v57, %v178_v58 }
  0xaa   :  { %v533_v7 = vld [vmem:[#allocation5 + $0xc00] sm:$0xff]  ;;  %v6115_v13 = vcombine.high %v461_v5, %v465_v6  ;;  %2576 = vmatprep.subr.bf16.mxu1 %v5995_v4  ;;  %v6114_v21 = vcombine.low %v461_v5, %v465_v6  ;;  %v170_v4 = vld [vmem:[#allocation5 + $0xa8] sm:$0xff]  ;;  %v5829_v6 = vcombine.high %v174_v57, %v178_v58 }
  0xab   :  { %v537_v8 = vld [vmem:[#allocation5 + $0xc20] sm:$0xff]  ;;  %2577 = vmatpush2.bf16.msra.mxu1 %v5994_v11  ;;  %v158_v11 = vld [vmem:[#allocation5 + $0x48] sm:$0xff]  ;;  %v5820_v18 = vcombine.low %v166_v3, %v170_v4 }
  0xac   :  { %v6187_v14 = vcombine.high %v533_v7, %v537_v8  ;;  %v453_v15 = vld [vmem:[#allocation5 + $0x980] sm:$0xff]  ;;  %2587 = vmatprep.subr.bf16.mxu0 %v6115_v13  ;;  %v6186_v23 = vcombine.low %v533_v7, %v537_v8  ;;  %2538 = vmatmul.mubr.bf16.vlgmr.msra.gmra.mxu0 %v7286_v17  ;;  %v250_v57 = vld [vmem:[#allocation5 + $0x328] sm:$0xff] }
  0xad   :  { %v457_v16 = vld [vmem:[#allocation5 + $0x9a0] sm:$0xff]  ;;  %2588 = vmatpush1.bf16.msra.mxu0 %v6114_v21  ;;  %2619 = vmatprep.mubr.bf16.mxu0 %v7291_v29  ;;  %v150_v21 = vld [vmem:[#allocation5 + $0x8] sm:$0xff] }
  0xae   :  { %v6107_v24 = vcombine.high %v453_v15, %v457_v16  ;;  %v445_v25 = vld [vmem:[#allocation5 + $0x940] sm:$0xff]  ;;  %2642 = vmatprep.subr.bf16.mxu1 %v6187_v14  ;;  %2579 = vmatmul.mubr.bf16.vlgmr.msra.gmra.mxu1 %v7288_v20  ;;  %v6106_v30 = vcombine.low %v453_v15, %v457_v16  ;;  %v5821_v14 = vcombine.high %v166_v3, %v170_v4  ;;  %v242_v3 = vld [vmem:[#allocation5 + $0x2e8] sm:$0xff] }
  0xaf   :  { %v449_v27 = vld [vmem:[#allocation5 + $0x960] sm:$0xff]  ;;  %2643 = vmatpush1.bf16.msra.mxu1 %v6186_v23  ;;  %2660 = vmatprep.mubr.bf16.mxu1 %v7202_v35  ;;  %v5805_v33 = vcombine.high %v150_v21, %v154_v22 }
  0xb0   :  { %2589 = vmatprep.subr.bf16.mxu0 %v6107_v24  ;;  %v6099_v31 = vcombine.high %v445_v25, %v449_v27  ;;  %v437_v34 = vld [vmem:[#allocation5 + $0x900] sm:$0xff]  ;;  %2669 = vmatprep.subr.bf16.mxu1 %v5861_v26  ;;  %v6098_v37 = vcombine.low %v445_v25, %v449_v27  ;;  %v5813_v24 = vcombine.high %v158_v11, %v162_v12 }
  0xb1   :  { %v441_v36 = vld [vmem:[#allocation5 + $0x920] sm:$0xff]  ;;  %2590 = vmatpush1.bf16.msra.mxu0 %v6106_v30  ;;  %v5812_v27 = vcombine.low %v158_v11, %v162_v12  ;;  %v270_v30 = vld [vmem:[#allocation5 + $0x3c8] sm:$0xff] }
  0xb2   :  { %2591 = vmatprep.subr.bf16.mxu0 %v6099_v31  ;;  %v6091_v40 = vcombine.high %v437_v34, %v441_v36  ;;  %v429_v43 = vld [vmem:[#allocation5 + $0x8c0] sm:$0xff]  ;;  %v6090_v46 = vcombine.low %v437_v34, %v441_v36  ;;  %v274_v31 = vld [vmem:[#allocation5 + $0x3e8] sm:$0xff] }
  0xb3   :  { %v433_v45 = vld [vmem:[#allocation5 + $0x8e0] sm:$0xff]  ;;  %v234_v11 = vld [vmem:[#allocation5 + $0x2a8] sm:$0xff] }
  0xb4   :  { %v6083_v48 = vcombine.high %v429_v43, %v433_v45  ;;  %v421_v51 = vld [vmem:[#allocation5 + $0x880] sm:$0xff]  ;;  %v6082_v54 = vcombine.low %v429_v43, %v433_v45  ;;  %v5925_v43 = vcombine.high %v270_v30, %v274_v31 }
  0xb5   :  { %2592 = vmatpush1.bf16.msra.mxu0 %v6098_v37  ;;  %v425_v53 = vld [vmem:[#allocation5 + $0x8a0] sm:$0xff]  ;;  %v5804_v37 = vcombine.low %v150_v21, %v154_v22  ;;  %v226_v21 = vld [vmem:[#allocation5 + $0x268] sm:$0xff] }
  0xb6   :  { %6194 = vmatmul.mubr.msk.bf16.vlgmr.msra.gmra.mxu1 %vm2501_vm0, %v7296_v38  ;;  %2593 = vmatprep.subr.bf16.mxu0 %v6091_v40  ;;  %v6075_v56 = vcombine.high %v421_v51, %v425_v53  ;;  %v413_v61 = vld [vmem:[#allocation5 + $0x840] sm:$0xff]  ;;  %v6074_v0 = vcombine.low %v421_v51, %v425_v53  ;;  %v262_v40 = vld [vmem:[#allocation5 + $0x388] sm:$0xff] }
  0xb7   :  { %2670 = vmatpush1.bf16.msra.mxu1 %v5860_v39  ;;  %2701 = vmatprep.mubr.bf16.mxu1 %v7280_v59  ;;  %v417_v63 = vld [vmem:[#allocation5 + $0x860] sm:$0xff]  ;;  %v5917_v51 = vcombine.high %v262_v40, %v266_v41  ;;  %v334_v22 = vld [vmem:[#allocation5 + $0x5c8] sm:$0xff] }
  0xb8   :  { %2671 = vmatprep.subr.bf16.mxu1 %v5853_v44  ;;  %v6067_v2 = vcombine.high %v413_v61, %v417_v63  ;;  %v405_v5 = vld [vmem:[#allocation5 + $0x800] sm:$0xff]  ;;  %v6066_v8 = vcombine.low %v413_v61, %v417_v63 }
  0xb9   :  { %2594 = vmatpush1.bf16.msra.mxu0 %v6090_v46  ;;  %v409_v7 = vld [vmem:[#allocation5 + $0x820] sm:$0xff]  ;;  %v5924_v46 = vcombine.low %v270_v30, %v274_v31  ;;  %v214_v30 = vld [vmem:[#allocation5 + $0x208] sm:$0xff] }
  0xba   :  { %2595 = vmatprep.subr.bf16.mxu0 %v6083_v48  ;;  %v6059_v10 = vcombine.high %v405_v5, %v409_v7  ;;  %v525_v13 = vld [vmem:[#allocation5 + $0xbc0] sm:$0xff]  ;;  %v6058_v16 = vcombine.low %v405_v5, %v409_v7  ;;  %v254_v48 = vld [vmem:[#allocation5 + $0x348] sm:$0xff] }
  0xbb   :  { %2672 = vmatpush1.bf16.msra.mxu1 %v5852_v47  ;;  %v529_v15 = vld [vmem:[#allocation5 + $0xbe0] sm:$0xff]  ;;  %v5909_v61 = vcombine.high %v254_v48, %v258_v49  ;;  %v218_v31 = vld [vmem:[#allocation5 + $0x228] sm:$0xff] }
  0xbc   :  { %2673 = vmatprep.subr.bf16.mxu1 %v5845_v52  ;;  %v6179_v19 = vcombine.high %v525_v13, %v529_v15  ;;  %v517_v23 = vld [vmem:[#allocation5 + $0xb80] sm:$0xff]  ;;  %v6178_v26 = vcombine.low %v525_v13, %v529_v15 }
  0xbd   :  { %2596 = vmatpush1.bf16.msra.mxu0 %v6082_v54  ;;  %v521_v25 = vld [vmem:[#allocation5 + $0xba0] sm:$0xff]  ;;  %v5916_v54 = vcombine.low %v262_v40, %v266_v41  ;;  %v462_v41 = vld [vmem:[#allocation5 + $0x9c8] sm:$0xff] }
  0xbe   :  { %2597 = vmatprep.subr.bf16.mxu0 %v6075_v56  ;;  %v6171_v28 = vcombine.high %v517_v23, %v521_v25  ;;  %v509_v32 = vld [vmem:[#allocation5 + $0xb40] sm:$0xff]  ;;  %v6170_v36 = vcombine.low %v517_v23, %v521_v25  ;;  %v246_v56 = vld [vmem:[#allocation5 + $0x308] sm:$0xff] }
  0xbf   :  { %2674 = vmatpush1.bf16.msra.mxu1 %v5844_v55  ;;  %v513_v34 = vld [vmem:[#allocation5 + $0xb60] sm:$0xff]  ;;  %v5901_v5 = vcombine.high %v246_v56, %v250_v57  ;;  %v338_v25 = vld [vmem:[#allocation5 + $0x5e8] sm:$0xff] }
  0xc0   :  { %2675 = vmatprep.subr.bf16.mxu1 %v5837_v62  ;;  %v6163_v39 = vcombine.high %v509_v32, %v513_v34  ;;  %v501_v42 = vld [vmem:[#allocation5 + $0xb00] sm:$0xff]  ;;  %v6162_v45 = vcombine.low %v509_v32, %v513_v34  ;;  %v326_v32 = vld [vmem:[#allocation5 + $0x588] sm:$0xff] }
  0xc1   :  { %2598 = vmatpush1.bf16.msra.mxu0 %v6074_v0  ;;  %v505_v44 = vld [vmem:[#allocation5 + $0xb20] sm:$0xff]  ;;  %v5908_v0 = vcombine.low %v254_v48, %v258_v49  ;;  %v330_v34 = vld [vmem:[#allocation5 + $0x5a8] sm:$0xff] }
  0xc2   :  { %2599 = vmatprep.subr.bf16.mxu0 %v6067_v2  ;;  %v6155_v47 = vcombine.high %v501_v42, %v505_v44  ;;  %v493_v50 = vld [vmem:[#allocation5 + $0xac0] sm:$0xff]  ;;  %v6154_v53 = vcombine.low %v501_v42, %v505_v44  ;;  %v238_v2 = vld [vmem:[#allocation5 + $0x2c8] sm:$0xff]  ;;  %v5981_v40 = vcombine.high %v326_v32, %v330_v34  ;;  %v5869_v44 = vcombine.high %v214_v30, %v218_v31 }
  0xc3   :  { %2676 = vmatpush1.bf16.msra.mxu1 %v5836_v1  ;;  %v497_v52 = vld [vmem:[#allocation5 + $0xae0] sm:$0xff]  ;;  %v5893_v13 = vcombine.high %v238_v2, %v242_v3  ;;  %v466_v42 = vld [vmem:[#allocation5 + $0x9e8] sm:$0xff] }
  0xc4   :  { %2677 = vmatprep.subr.bf16.mxu1 %v5829_v6  ;;  %v6147_v55 = vcombine.high %v493_v50, %v497_v52  ;;  %v485_v58 = vld [vmem:[#allocation5 + $0xa80] sm:$0xff]  ;;  %v6146_v63 = vcombine.low %v493_v50, %v497_v52  ;;  %v454_v49 = vld [vmem:[#allocation5 + $0x988] sm:$0xff]  ;;  %v6117_v52 = vcombine.high %v462_v41, %v466_v42 }
  0xc5   :  { %2600 = vmatpush1.bf16.msra.mxu0 %v6066_v8  ;;  %v489_v62 = vld [vmem:[#allocation5 + $0xaa0] sm:$0xff]  ;;  %v5900_v8 = vcombine.low %v246_v56, %v250_v57  ;;  %v458_v50 = vld [vmem:[#allocation5 + $0x9a8] sm:$0xff] }
  0xc6   :  { %2601 = vmatprep.subr.bf16.mxu0 %v6059_v10  ;;  %v6139_v1 = vcombine.high %v485_v58, %v489_v62  ;;  %v477_v4 = vld [vmem:[#allocation5 + $0xa40] sm:$0xff]  ;;  %v6138_v7 = vcombine.low %v485_v58, %v489_v62  ;;  %v230_v10 = vld [vmem:[#allocation5 + $0x288] sm:$0xff] }
  0xc7   :  { %2678 = vmatpush1.bf16.msra.mxu1 %v5828_v9  ;;  %v481_v6 = vld [vmem:[#allocation5 + $0xa60] sm:$0xff]  ;;  %v5885_v23 = vcombine.high %v230_v10, %v234_v11  ;;  %v446_v57 = vld [vmem:[#allocation5 + $0x948] sm:$0xff] }
  0xc8   :  { %2679 = vmatprep.subr.bf16.mxu1 %v5821_v14  ;;  %v6131_v9 = vcombine.high %v477_v4, %v481_v6  ;;  %v469_v12 = vld [vmem:[#allocation5 + $0xa00] sm:$0xff]  ;;  %v6130_v15 = vcombine.low %v477_v4, %v481_v6  ;;  %v450_v58 = vld [vmem:[#allocation5 + $0x968] sm:$0xff] }
  0xc9   :  { %2602 = vmatpush1.bf16.msra.mxu0 %v6058_v16  ;;  %v473_v14 = vld [vmem:[#allocation5 + $0xa20] sm:$0xff]  ;;  %v5892_v16 = vcombine.low %v238_v2, %v242_v3  ;;  %v306_v62 = vld [vmem:[#allocation5 + $0x4e8] sm:$0xff] }
  0xca   :  { %2603 = vmatprep.subr.bf16.mxu0 %v6179_v19  ;;  %v222_v19 = vld [vmem:[#allocation5 + $0x248] sm:$0xff] }
  0xcb   :  { %2680 = vmatpush1.bf16.msra.mxu1 %v5820_v18  ;;  %v6123_v18 = vcombine.high %v469_v12, %v473_v14  ;;  %v438_v3 = vld [vmem:[#allocation5 + $0x908] sm:$0xff] }
  0xcc   :  { %2681 = vmatprep.subr.bf16.mxu1 %v5813_v24  ;;  %v139_v24 = vld [vmem:[#allocation3 + $0x20] sm:$0xff] }
  0xcd   :  { %2604 = vmatpush2.bf16.msra.mxu0 %v6178_v26  ;;  %v6122_v26 = vcombine.low %v469_v12, %v473_v14  ;;  %v442_v4 = vld [vmem:[#allocation5 + $0x928] sm:$0xff] }
  0xce   :  { %2605 = vmatprep.subr.bf16.mxu0 %v6171_v28  ;;  %v5989_v28 = vcombine.high %v334_v22, %v338_v25  ;;  %v298_v6 = vld [vmem:[#allocation5 + $0x4a8] sm:$0xff] }
  0xcf   :  { %2682 = vmatpush1.bf16.msra.mxu1 %v5812_v27  ;;  %v5884_v27 = vcombine.low %v230_v10, %v234_v11  ;;  %v430_v11 = vld [vmem:[#allocation5 + $0x8c8] sm:$0xff] }
  0xd0   :  { %2683 = vmatprep.subr.bf16.mxu1 %v5805_v33  ;;  %v5877_v33 = vcombine.high %v222_v19, %v226_v21  ;;  %v434_v12 = vld [vmem:[#allocation5 + $0x8e8] sm:$0xff] }
  0xd1   :  { %2606 = vmatpush2.bf16.msra.mxu0 %v6170_v36  ;;  %v7301_v36 = vpack.c.bf16 %v139_v24, %v139_v24  ;;  %v290_v14 = vld [vmem:[#allocation5 + $0x468] sm:$0xff] }
  0xd2   :  { %2607 = vmatprep.subr.bf16.mxu0 %v6163_v39  ;;  %v5876_v39 = vcombine.low %v222_v19, %v226_v21  ;;  %v422_v21 = vld [vmem:[#allocation5 + $0x888] sm:$0xff] }
  0xd3   :  { %2684 = vmatpush1.bf16.msra.mxu1 %v5804_v37  ;;  %v5988_v37 = vcombine.low %v334_v22, %v338_v25  ;;  %v426_v22 = vld [vmem:[#allocation5 + $0x8a8] sm:$0xff] }
  0xd4   :  { %2685 = vmatprep.subr.bf16.mxu1 %v5925_v43  ;;  %v318_v43 = vld [vmem:[#allocation5 + $0x548] sm:$0xff] }
  0xd5   :  { %2608 = vmatpush2.bf16.msra.mxu0 %v6162_v45  ;;  %v322_v45 = vld [vmem:[#allocation5 + $0x568] sm:$0xff] }
  0xd6   :  { %2609 = vmatprep.subr.bf16.mxu0 %v6155_v47  ;;  %v5868_v47 = vcombine.low %v214_v30, %v218_v31  ;;  %v5973_v48 = vcombine.high %v318_v43, %v322_v45  ;;  %v278_v24 = vld [vmem:[#allocation5 + $0x408] sm:$0xff] }
  0xd7   :  { %2686 = vmatpush2.bf16.msra.mxu1 %v5924_v46  ;;  %v5980_v46 = vcombine.low %v326_v32, %v330_v34  ;;  %v282_v25 = vld [vmem:[#allocation5 + $0x428] sm:$0xff]  ;;  %v6077_v32 = vcombine.high %v422_v21, %v426_v22 }
  0xd8   :  { %2687 = vmatprep.subr.bf16.mxu1 %v5917_v51  ;;  %v310_v51 = vld [vmem:[#allocation5 + $0x508] sm:$0xff] }
  0xd9   :  { %2610 = vmatpush2.bf16.msra.mxu0 %v6154_v53  ;;  %v314_v53 = vld [vmem:[#allocation5 + $0x528] sm:$0xff] }
  0xda   :  { %2611 = vmatprep.subr.bf16.mxu0 %v6147_v55  ;;  %v6116_v55 = vcombine.low %v462_v41, %v466_v42  ;;  %v5965_v56 = vcombine.high %v310_v51, %v314_v53  ;;  %v414_v30 = vld [vmem:[#allocation5 + $0x848] sm:$0xff] }
  0xdb   :  { %2688 = vmatpush2.bf16.msra.mxu1 %v5916_v54  ;;  %v5972_v54 = vcombine.low %v318_v43, %v322_v45  ;;  %v418_v31 = vld [vmem:[#allocation5 + $0x868] sm:$0xff] }
  0xdc   :  { %2689 = vmatprep.subr.bf16.mxu1 %v5909_v61  ;;  %v302_v61 = vld [vmem:[#allocation5 + $0x4c8] sm:$0xff]  ;;  %v6069_v43 = vcombine.high %v414_v30, %v418_v31 }
  0xdd   :  { %2612 = vmatpush2.bf16.msra.mxu0 %v6146_v63  ;;  %v6109_v63 = vcombine.high %v454_v49, %v458_v50  ;;  %v5957_v2 = vcombine.high %v302_v61, %v306_v62  ;;  %v402_v34 = vld [vmem:[#allocation5 + $0x7e8] sm:$0xff] }
  0xde   :  { %2613 = vmatprep.subr.bf16.mxu0 %v6139_v1  ;;  %v6108_v1 = vcombine.low %v454_v49, %v458_v50  ;;  %v406_v41 = vld [vmem:[#allocation5 + $0x808] sm:$0xff] }
  0xdf   :  { %2690 = vmatpush2.bf16.msra.mxu1 %v5908_v0  ;;  %v5964_v0 = vcombine.low %v310_v51, %v314_v53  ;;  %v410_v42 = vld [vmem:[#allocation5 + $0x828] sm:$0xff] }
  0xe0   :  { %2691 = vmatprep.subr.bf16.mxu1 %v5901_v5  ;;  %v294_v5 = vld [vmem:[#allocation5 + $0x488] sm:$0xff]  ;;  %v6061_v51 = vcombine.high %v406_v41, %v410_v42 }
  0xe1   :  { %2614 = vmatpush2.bf16.msra.mxu0 %v6138_v7  ;;  %v6101_v7 = vcombine.high %v446_v57, %v450_v58  ;;  %v5949_v10 = vcombine.high %v294_v5, %v298_v6  ;;  %v394_v45 = vld [vmem:[#allocation5 + $0x7a8] sm:$0xff] }
  0xe2   :  { %2615 = vmatprep.subr.bf16.mxu0 %v6131_v9  ;;  %v6100_v9 = vcombine.low %v446_v57, %v450_v58  ;;  %v526_v49 = vld [vmem:[#allocation5 + $0xbc8] sm:$0xff] }
  0xe3   :  { %2692 = vmatpush2.bf16.msra.mxu1 %v5900_v8  ;;  %v5956_v8 = vcombine.low %v302_v61, %v306_v62  ;;  %v530_v50 = vld [vmem:[#allocation5 + $0xbe8] sm:$0xff] }
  0xe4   :  { %2693 = vmatprep.subr.bf16.mxu1 %v5893_v13  ;;  %v286_v13 = vld [vmem:[#allocation5 + $0x448] sm:$0xff]  ;;  %v6181_v61 = vcombine.high %v526_v49, %v530_v50 }
  0xe5   :  { %2616 = vmatpush2.bf16.msra.mxu0 %v6130_v15  ;;  %v6093_v15 = vcombine.high %v438_v3, %v442_v4  ;;  %v5941_v19 = vcombine.high %v286_v13, %v290_v14  ;;  %v386_v53 = vld [vmem:[#allocation5 + $0x768] sm:$0xff] }
  0xe6   :  { %2617 = vmatprep.subr.bf16.mxu0 %v6123_v18  ;;  %v6092_v18 = vcombine.low %v438_v3, %v442_v4  ;;  %v518_v57 = vld [vmem:[#allocation5 + $0xb88] sm:$0xff] }
  0xe7   :  { %2694 = vmatpush2.bf16.msra.mxu1 %v5892_v16  ;;  %v5948_v16 = vcombine.low %v294_v5, %v298_v6  ;;  %v522_v58 = vld [vmem:[#allocation5 + $0xba8] sm:$0xff] }
  0xe8   :  { %2695 = vmatprep.subr.bf16.mxu1 %v5885_v23  ;;  %v6085_v23 = vcombine.high %v430_v11, %v434_v12  ;;  %v374_v62 = vld [vmem:[#allocation5 + $0x708] sm:$0xff]  ;;  %v6173_v5 = vcombine.high %v518_v57, %v522_v58 }
  0xe9   :  { %2618 = vmatpush2.bf16.msra.mxu0 %v6122_v26  ;;  %v5940_v26 = vcombine.low %v286_v13, %v290_v14  ;;  %v510_v3 = vld [vmem:[#allocation5 + $0xb48] sm:$0xff] }
  0xea   :  { %2710 = vmatprep.subr.bf16.mxu0 %v5989_v28  ;;  %v5933_v28 = vcombine.high %v278_v24, %v282_v25  ;;  %v514_v4 = vld [vmem:[#allocation5 + $0xb68] sm:$0xff] }
  0xeb   :  { %2696 = vmatpush2.bf16.msra.mxu1 %v5884_v27  ;;  %v6084_v27 = vcombine.low %v430_v11, %v434_v12  ;;  %v366_v6 = vld [vmem:[#allocation5 + $0x6c8] sm:$0xff]  ;;  %v6165_v13 = vcombine.high %v510_v3, %v514_v4 }
  0xec   :  { %2697 = vmatprep.subr.bf16.mxu1 %v5877_v33  ;;  %2620 = vmatmul.mubr.bf16.vlgmr.msra.gmra.mxu0 %v7301_v36  ;;  %v398_v33 = vld [vmem:[#allocation5 + $0x7c8] sm:$0xff] }
  0xed   :  { %2711 = vmatpush1.bf16.msra.mxu0 %v5988_v37  ;;  %2742 = vmatprep.mubr.bf16.mxu0 %v7282_v60  ;;  %v5932_v37 = vcombine.low %v278_v24, %v282_v25  ;;  %v502_v11 = vld [vmem:[#allocation5 + $0xb08] sm:$0xff] }
  0xee   :  { %2712 = vmatprep.subr.bf16.mxu0 %v5981_v40  ;;  %v6053_v40 = vcombine.high %v398_v33, %v402_v34  ;;  %v506_v12 = vld [vmem:[#allocation5 + $0xb28] sm:$0xff] }
  0xef   :  { %2698 = vmatpush2.bf16.msra.mxu1 %v5876_v39  ;;  %v6076_v39 = vcombine.low %v422_v21, %v426_v22  ;;  %v358_v14 = vld [vmem:[#allocation5 + $0x688] sm:$0xff] }
  0xf0   :  { %2699 = vmatprep.subr.bf16.mxu1 %v5869_v44  ;;  %v390_v44 = vld [vmem:[#allocation5 + $0x788] sm:$0xff] }
  0xf1   :  { %2713 = vmatpush1.bf16.msra.mxu0 %v5980_v46  ;;  %v6052_v46 = vcombine.low %v398_v33, %v402_v34  ;;  %v494_v21 = vld [vmem:[#allocation5 + $0xac8] sm:$0xff] }
  0xf2   :  { %2714 = vmatprep.subr.bf16.mxu0 %v5973_v48  ;;  %v6045_v48 = vcombine.high %v390_v44, %v394_v45  ;;  %v498_v22 = vld [vmem:[#allocation5 + $0xae8] sm:$0xff] }
  0xf3   :  { %2700 = vmatpush2.bf16.msra.mxu1 %v5868_v47  ;;  %v6068_v47 = vcombine.low %v414_v30, %v418_v31  ;;  %v350_v24 = vld [vmem:[#allocation5 + $0x648] sm:$0xff] }
  0xf4   :  { %2751 = vmatprep.subr.bf16.mxu1 %v6117_v52  ;;  %v382_v52 = vld [vmem:[#allocation5 + $0x748] sm:$0xff] }
  0xf5   :  { %2715 = vmatpush1.bf16.msra.mxu0 %v5972_v54  ;;  %v6044_v54 = vcombine.low %v390_v44, %v394_v45  ;;  %v354_v25 = vld [vmem:[#allocation5 + $0x668] sm:$0xff] }
  0xf6   :  { %2702 = vmatmul.mubr.bf16.vlgmr.msra.gmra.mxu1 %v7286_v17  ;;  %2716 = vmatprep.subr.bf16.mxu0 %v5965_v56  ;;  %v6037_v56 = vcombine.high %v382_v52, %v386_v53  ;;  %v486_v30 = vld [vmem:[#allocation5 + $0xa88] sm:$0xff] }
  0xf7   :  { %2752 = vmatpush1.bf16.msra.mxu1 %v6116_v55  ;;  %2783 = vmatprep.mubr.bf16.mxu1 %v7291_v29  ;;  %v6060_v55 = vcombine.low %v406_v41, %v410_v42  ;;  %v490_v31 = vld [vmem:[#allocation5 + $0xaa8] sm:$0xff] }
  0xf8   :  { %2753 = vmatprep.subr.bf16.mxu1 %v6109_v63  ;;  %v378_v63 = vld [vmem:[#allocation5 + $0x728] sm:$0xff] }
  0xf9   :  { %2717 = vmatpush1.bf16.msra.mxu0 %v5964_v0  ;;  %v6036_v0 = vcombine.low %v382_v52, %v386_v53  ;;  %v342_v33 = vld [vmem:[#allocation5 + $0x608] sm:$0xff]  ;;  %v207_v52 = vld [vmem:[#allocation5 + $0x1d0] sm:$0xff] }
  0xfa   :  { %2718 = vmatprep.subr.bf16.mxu0 %v5957_v2  ;;  %v6029_v2 = vcombine.high %v374_v62, %v378_v63  ;;  %v346_v34 = vld [vmem:[#allocation5 + $0x628] sm:$0xff]  ;;  %v211_v53 = vld [vmem:[#allocation5 + $0x1f0] sm:$0xff] }
  0xfb   :  { %2754 = vmatpush1.bf16.msra.mxu1 %v6108_v1  ;;  %v6180_v1 = vcombine.low %v526_v49, %v530_v50  ;;  %v478_v41 = vld [vmem:[#allocation5 + $0xa48] sm:$0xff] }
  0xfc   :  { %2755 = vmatprep.subr.bf16.mxu1 %v6101_v7  ;;  %v370_v7 = vld [vmem:[#allocation5 + $0x6e8] sm:$0xff] }
  0xfd   :  { %2719 = vmatpush1.bf16.msra.mxu0 %v5956_v8  ;;  %v6028_v8 = vcombine.low %v374_v62, %v378_v63  ;;  %v482_v42 = vld [vmem:[#allocation5 + $0xa68] sm:$0xff]  ;;  %v199_v63 = vld [vmem:[#allocation5 + $0x190] sm:$0xff] }
  0xfe   :  { %2720 = vmatprep.subr.bf16.mxu0 %v5949_v10  ;;  %v6021_v10 = vcombine.high %v366_v6, %v370_v7  ;;  %v534_v44 = vld [vmem:[#allocation5 + $0xc08] sm:$0xff] }
  0xff   :  { %2756 = vmatpush1.bf16.msra.mxu1 %v6100_v9  ;;  %v6172_v9 = vcombine.low %v518_v57, %v522_v58  ;;  %v538_v45 = vld [vmem:[#allocation5 + $0xc28] sm:$0xff]  ;;  %v335_v58 = vld [vmem:[#allocation5 + $0x5d0] sm:$0xff] }
 0x100   :  { %2757 = vmatprep.subr.bf16.mxu1 %v6093_v15  ;;  %v362_v15 = vld [vmem:[#allocation5 + $0x6a8] sm:$0xff] }
 0x101   :  { %2721 = vmatpush1.bf16.msra.mxu0 %v5948_v16  ;;  %v6020_v16 = vcombine.low %v366_v6, %v370_v7  ;;  %v470_v49 = vld [vmem:[#allocation5 + $0xa08] sm:$0xff]  ;;  %v191_v7 = vld [vmem:[#allocation5 + $0x150] sm:$0xff] }
 0x102   :  { %2722 = vmatprep.subr.bf16.mxu0 %v5941_v19  ;;  %v6013_v19 = vcombine.high %v358_v14, %v362_v15  ;;  %v474_v50 = vld [vmem:[#allocation5 + $0xa28] sm:$0xff] }
 0x103   :  { %2758 = vmatpush1.bf16.msra.mxu1 %v6092_v18  ;;  %v6164_v18 = vcombine.low %v510_v3, %v514_v4  ;;  %v6125_v57 = vcombine.high %v470_v49, %v474_v50  ;;  %v6124_v62 = vcombine.low %v470_v49, %v474_v50  ;;  %v331_v3 = vld [vmem:[#allocation5 + $0x5b0] sm:$0xff]  ;;  %v5862_v4 = vcombine.low %v207_v52, %v211_v53 }
 0x104   :  { %2759 = vmatprep.subr.bf16.mxu1 %v6085_v23  ;;  %v6157_v23 = vcombine.high %v502_v11, %v506_v12  ;;  %v291_v49 = vld [vmem:[#allocation5 + $0x470] sm:$0xff] }
 0x105   :  { %2723 = vmatpush1.bf16.msra.mxu0 %v5940_v26  ;;  %v6012_v26 = vcombine.low %v358_v14, %v362_v15  ;;  %v183_v15 = vld [vmem:[#allocation5 + $0x110] sm:$0xff] }
 0x106   :  { %2724 = vmatprep.subr.bf16.mxu0 %v5933_v28  ;;  %v6005_v28 = vcombine.high %v350_v24, %v354_v25 }
 0x107   :  { %2760 = vmatpush1.bf16.msra.mxu1 %v6084_v27  ;;  %v6156_v27 = vcombine.low %v502_v11, %v506_v12  ;;  %v323_v11 = vld [vmem:[#allocation5 + $0x570] sm:$0xff] }
 0x108   :  { %2761 = vmatprep.subr.bf16.mxu1 %v6077_v32  ;;  %v6149_v32 = vcombine.high %v494_v21, %v498_v22 }
 0x109   :  { %2725 = vmatpush1.bf16.msra.mxu0 %v5932_v37  ;;  %v6004_v37 = vcombine.low %v350_v24, %v354_v25  ;;  %v175_v25 = vld [vmem:[#allocation5 + $0xd0] sm:$0xff] }
 0x10a   :  { %2726 = vmatprep.subr.bf16.mxu0 %v6053_v40  ;;  %v5997_v40 = vcombine.high %v342_v33, %v346_v34 }
 0x10b   :  { %2762 = vmatpush1.bf16.msra.mxu1 %v6076_v39  ;;  %v6148_v39 = vcombine.low %v494_v21, %v498_v22  ;;  %v315_v21 = vld [vmem:[#allocation5 + $0x530] sm:$0xff] }
 0x10c   :  { %2763 = vmatprep.subr.bf16.mxu1 %v6069_v43  ;;  %v6141_v43 = vcombine.high %v486_v30, %v490_v31 }
 0x10d   :  { %2727 = vmatpush2.bf16.msra.mxu0 %v6052_v46  ;;  %v5996_v46 = vcombine.low %v342_v33, %v346_v34  ;;  %v167_v34 = vld [vmem:[#allocation5 + $0x90] sm:$0xff] }
 0x10e   :  { %2728 = vmatprep.subr.bf16.mxu0 %v6045_v48  ;;  %v6189_v48 = vcombine.high %v534_v44, %v538_v45 }
 0x10f   :  { %2764 = vmatpush1.bf16.msra.mxu1 %v6068_v47  ;;  %v6140_v47 = vcombine.low %v486_v30, %v490_v31  ;;  %v307_v30 = vld [vmem:[#allocation5 + $0x4f0] sm:$0xff] }
 0x110   :  { %2765 = vmatprep.subr.bf16.mxu1 %v6061_v51  ;;  %v6133_v51 = vcombine.high %v478_v41, %v482_v42 }
 0x111   :  { %2729 = vmatpush2.bf16.msra.mxu0 %v6044_v54  ;;  %v6188_v54 = vcombine.low %v534_v44, %v538_v45  ;;  %v159_v45 = vld [vmem:[#allocation5 + $0x50] sm:$0xff] }
 0x112   :  { %2730 = vmatprep.subr.bf16.mxu0 %v6037_v56  ;;  %v5863_v56 = vcombine.high %v207_v52, %v211_v53  ;;  %v151_v53 = vld [vmem:[#allocation5 + $0x10] sm:$0xff] }
 0x113   :  { %2766 = vmatpush1.bf16.msra.mxu1 %v6060_v55  ;;  %v6132_v55 = vcombine.low %v478_v41, %v482_v42  ;;  %v299_v41 = vld [vmem:[#allocation5 + $0x4b0] sm:$0xff] }
 0x114   :  { %2767 = vmatprep.subr.bf16.mxu1 %v6181_v61  ;;  %v339_v61 = vld [vmem:[#allocation5 + $0x5f0] sm:$0xff] }
 0x115   :  { %2731 = vmatpush2.bf16.msra.mxu0 %v6036_v0  ;;  %v203_v0 = vld [vmem:[#allocation5 + $0x1b0] sm:$0xff] }
 0x116   :  { %2732 = vmatprep.subr.bf16.mxu0 %v6029_v2  ;;  %v327_v2 = vld [vmem:[#allocation5 + $0x590] sm:$0xff]  ;;  %v5855_v6 = vcombine.high %v199_v63, %v203_v0  ;;  %v5854_v12 = vcombine.low %v199_v63, %v203_v0 }
 0x117   :  { %2768 = vmatpush2.bf16.msra.mxu1 %v6180_v1  ;;  %v5991_v1 = vcombine.high %v335_v58, %v339_v61  ;;  %v271_v0 = vld [vmem:[#allocation5 + $0x3d0] sm:$0xff] }
 0x118   :  { %2769 = vmatprep.subr.bf16.mxu1 %v6173_v5  ;;  %v5990_v5 = vcombine.low %v335_v58, %v339_v61 }
 0x119   :  { %2733 = vmatpush2.bf16.msra.mxu0 %v6028_v8  ;;  %v195_v8 = vld [vmem:[#allocation5 + $0x170] sm:$0xff] }
 0x11a   :  { %2734 = vmatprep.subr.bf16.mxu0 %v6021_v10  ;;  %v319_v10 = vld [vmem:[#allocation5 + $0x550] sm:$0xff]  ;;  %v5847_v14 = vcombine.high %v191_v7, %v195_v8  ;;  %v5846_v22 = vcombine.low %v191_v7, %v195_v8 }
 0x11b   :  { %2770 = vmatpush2.bf16.msra.mxu1 %v6172_v9  ;;  %v5983_v9 = vcombine.high %v327_v2, %v331_v3  ;;  %v263_v8 = vld [vmem:[#allocation5 + $0x390] sm:$0xff] }
 0x11c   :  { %2771 = vmatprep.subr.bf16.mxu1 %v6165_v13  ;;  %v5982_v13 = vcombine.low %v327_v2, %v331_v3  ;;  %v399_v2 = vld [vmem:[#allocation5 + $0x7d0] sm:$0xff] }
 0x11d   :  { %2735 = vmatpush2.bf16.msra.mxu0 %v6020_v16  ;;  %v187_v16 = vld [vmem:[#allocation5 + $0x130] sm:$0xff] }
 0x11e   :  { %2736 = vmatprep.subr.bf16.mxu0 %v6013_v19  ;;  %v311_v19 = vld [vmem:[#allocation5 + $0x510] sm:$0xff]  ;;  %v5839_v24 = vcombine.high %v183_v15, %v187_v16  ;;  %v5838_v31 = vcombine.low %v183_v15, %v187_v16 }
 0x11f   :  { %2772 = vmatpush2.bf16.msra.mxu1 %v6164_v18  ;;  %v5975_v18 = vcombine.high %v319_v10, %v323_v11  ;;  %v403_v3 = vld [vmem:[#allocation5 + $0x7f0] sm:$0xff] }
 0x120   :  { %2773 = vmatprep.subr.bf16.mxu1 %v6157_v23  ;;  %v5974_v23 = vcombine.low %v319_v10, %v323_v11  ;;  %v6055_v7 = vcombine.high %v399_v2, %v403_v3  ;;  %v391_v10 = vld [vmem:[#allocation5 + $0x790] sm:$0xff] }
 0x121   :  { %2737 = vmatpush2.bf16.msra.mxu0 %v6012_v26  ;;  %v179_v26 = vld [vmem:[#allocation5 + $0xf0] sm:$0xff] }
 0x122   :  { %2738 = vmatprep.subr.bf16.mxu0 %v6005_v28  ;;  %v303_v28 = vld [vmem:[#allocation5 + $0x4d0] sm:$0xff]  ;;  %v5831_v33 = vcombine.high %v175_v25, %v179_v26  ;;  %v5830_v42 = vcombine.low %v175_v25, %v179_v26 }
 0x123   :  { %2774 = vmatpush2.bf16.msra.mxu1 %v6156_v27  ;;  %v5967_v27 = vcombine.high %v311_v19, %v315_v21  ;;  %v395_v11 = vld [vmem:[#allocation5 + $0x7b0] sm:$0xff] }
 0x124   :  { %2775 = vmatprep.subr.bf16.mxu1 %v6149_v32  ;;  %v5966_v32 = vcombine.low %v311_v19, %v315_v21  ;;  %v6047_v15 = vcombine.high %v391_v10, %v395_v11  ;;  %v255_v16 = vld [vmem:[#allocation5 + $0x350] sm:$0xff] }
 0x125   :  { %2739 = vmatpush2.bf16.msra.mxu0 %v6004_v37  ;;  %v171_v37 = vld [vmem:[#allocation5 + $0xb0] sm:$0xff] }
 0x126   :  { %2740 = vmatprep.subr.bf16.mxu0 %v5997_v40  ;;  %v295_v40 = vld [vmem:[#allocation5 + $0x490] sm:$0xff]  ;;  %v5823_v44 = vcombine.high %v167_v34, %v171_v37  ;;  %v5822_v50 = vcombine.low %v167_v34, %v171_v37 }
 0x127   :  { %2776 = vmatpush2.bf16.msra.mxu1 %v6148_v39  ;;  %v5959_v39 = vcombine.high %v303_v28, %v307_v30  ;;  %v383_v19 = vld [vmem:[#allocation5 + $0x750] sm:$0xff] }
 0x128   :  { %2777 = vmatprep.subr.bf16.mxu1 %v6141_v43  ;;  %v5958_v43 = vcombine.low %v303_v28, %v307_v30  ;;  %v387_v21 = vld [vmem:[#allocation5 + $0x770] sm:$0xff] }
 0x129   :  { %2741 = vmatpush2.bf16.msra.mxu0 %v5996_v46  ;;  %v163_v46 = vld [vmem:[#allocation5 + $0x70] sm:$0xff]  ;;  %v6039_v25 = vcombine.high %v383_v19, %v387_v21 }
 0x12a   :  { %2806 = vmatprep.subr.bf16.mxu0 %v6189_v48  ;;  %v287_v48 = vld [vmem:[#allocation5 + $0x450] sm:$0xff]  ;;  %v5815_v52 = vcombine.high %v159_v45, %v163_v46  ;;  %v5814_v58 = vcombine.low %v159_v45, %v163_v46 }
 0x12b   :  { %2778 = vmatpush2.bf16.msra.mxu1 %v6140_v47  ;;  %v5951_v47 = vcombine.high %v295_v40, %v299_v41  ;;  %v5942_v61 = vcombine.low %v287_v48, %v291_v49  ;;  %v247_v26 = vld [vmem:[#allocation5 + $0x310] sm:$0xff] }
 0x12c   :  { %2779 = vmatprep.subr.bf16.mxu1 %v6133_v51  ;;  %2743 = vmatmul.mubr.bf16.vlgmr.msra.gmra.mxu0 %v7288_v20  ;;  %v5950_v51 = vcombine.low %v295_v40, %v299_v41  ;;  %v375_v28 = vld [vmem:[#allocation5 + $0x710] sm:$0xff] }
 0x12d   :  { %2807 = vmatpush1.bf16.msra.mxu0 %v6188_v54  ;;  %2824 = vmatprep.mubr.bf16.mxu0 %v7202_v35  ;;  %v155_v54 = vld [vmem:[#allocation5 + $0x30] sm:$0xff] }
 0x12e   :  { %2833 = vmatprep.subr.bf16.mxu0 %v5863_v56  ;;  %v279_v56 = vld [vmem:[#allocation5 + $0x410] sm:$0xff] }
 0x12f   :  { %2780 = vmatpush2.bf16.msra.mxu1 %v6132_v55  ;;  %v5943_v55 = vcombine.high %v287_v48, %v291_v49  ;;  %v379_v30 = vld [vmem:[#allocation5 + $0x730] sm:$0xff] }
 0x130   :  { %2781 = vmatprep.subr.bf16.mxu1 %v6125_v57  ;;  %v283_v57 = vld [vmem:[#allocation5 + $0x430] sm:$0xff]  ;;  %v6031_v34 = vcombine.high %v375_v28, %v379_v30 }
 0x131   :  { %v5935_v63 = vcombine.high %v279_v56, %v283_v57  ;;  %v239_v37 = vld [vmem:[#allocation5 + $0x2d0] sm:$0xff] }
 0x132   :  { %v367_v40 = vld [vmem:[#allocation5 + $0x6d0] sm:$0xff] }
 0x133   :  { %2782 = vmatpush2.bf16.msra.mxu1 %v6124_v62  ;;  %v5807_v62 = vcombine.high %v151_v53, %v155_v54  ;;  %v371_v41 = vld [vmem:[#allocation5 + $0x6f0] sm:$0xff] }
 0x134   :  { %2874 = vmatprep.subr.bf16.mxu1 %v5991_v1  ;;  %6195 = vmatmul.mubr.msk.bf16.vlgmr.msra.gmra.mxu0 %vm2501_vm0, %v7296_v38  ;;  %v275_v1 = vld [vmem:[#allocation5 + $0x3f0] sm:$0xff]  ;;  %v6023_v45 = vcombine.high %v367_v40, %v371_v41 }
 0x135   :  { %2834 = vmatpush1.bf16.msra.mxu0 %v5862_v4  ;;  %2865 = vmatprep.mubr.bf16.mxu0 %v7280_v59  ;;  %v5806_v4 = vcombine.low %v151_v53, %v155_v54  ;;  %v231_v46 = vld [vmem:[#allocation5 + $0x290] sm:$0xff] }
 0x136   :  { %2784 = vmatmul.mubr.bf16.vlgmr.msra.gmra.mxu1 %v7301_v36  ;;  %2835 = vmatprep.subr.bf16.mxu0 %v5855_v6  ;;  %v5927_v6 = vcombine.high %v271_v0, %v275_v1  ;;  %v359_v48 = vld [vmem:[#allocation5 + $0x690] sm:$0xff] }
 0x137   :  { %2875 = vmatpush1.bf16.msra.mxu1 %v5990_v5  ;;  %2906 = vmatprep.mubr.bf16.mxu1 %v7282_v60  ;;  %v5934_v5 = vcombine.low %v279_v56, %v283_v57  ;;  %v363_v49 = vld [vmem:[#allocation5 + $0x6b0] sm:$0xff] }
 0x138   :  { %2876 = vmatprep.subr.bf16.mxu1 %v5983_v9  ;;  %v267_v9 = vld [vmem:[#allocation5 + $0x3b0] sm:$0xff]  ;;  %v6015_v53 = vcombine.high %v359_v48, %v363_v49 }
 0x139   :  { %2836 = vmatpush1.bf16.msra.mxu0 %v5854_v12  ;;  %v5926_v12 = vcombine.low %v271_v0, %v275_v1  ;;  %v223_v54 = vld [vmem:[#allocation5 + $0x250] sm:$0xff] }
 0x13a   :  { %2837 = vmatprep.subr.bf16.mxu0 %v5847_v14  ;;  %v5919_v14 = vcombine.high %v263_v8, %v267_v9  ;;  %v351_v56 = vld [vmem:[#allocation5 + $0x650] sm:$0xff] }
 0x13b   :  { %2877 = vmatpush1.bf16.msra.mxu1 %v5982_v13  ;;  %v6054_v13 = vcombine.low %v399_v2, %v403_v3  ;;  %v355_v57 = vld [vmem:[#allocation5 + $0x670] sm:$0xff] }
 0x13c   :  { %2878 = vmatprep.subr.bf16.mxu1 %v5975_v18  ;;  %v259_v18 = vld [vmem:[#allocation5 + $0x370] sm:$0xff] }
 0x13d   :  { %2838 = vmatpush1.bf16.msra.mxu0 %v5846_v22  ;;  %v5918_v22 = vcombine.low %v263_v8, %v267_v9  ;;  %v215_v0 = vld [vmem:[#allocation5 + $0x210] sm:$0xff] }
 0x13e   :  { %2839 = vmatprep.subr.bf16.mxu0 %v5839_v24  ;;  %v5911_v24 = vcombine.high %v255_v16, %v259_v18  ;;  %v219_v1 = vld [vmem:[#allocation5 + $0x230] sm:$0xff] }
 0x13f   :  { %2879 = vmatpush1.bf16.msra.mxu1 %v5974_v23  ;;  %v6046_v23 = vcombine.low %v391_v10, %v395_v11  ;;  %v343_v2 = vld [vmem:[#allocation5 + $0x610] sm:$0xff] }
 0x140   :  { %2880 = vmatprep.subr.bf16.mxu1 %v5967_v27  ;;  %v251_v27 = vld [vmem:[#allocation5 + $0x330] sm:$0xff] }
 0x141   :  { %2840 = vmatpush1.bf16.msra.mxu0 %v5838_v31  ;;  %v5910_v31 = vcombine.low %v255_v16, %v259_v18  ;;  %v347_v3 = vld [vmem:[#allocation5 + $0x630] sm:$0xff] }
 0x142   :  { %2841 = vmatprep.subr.bf16.mxu0 %v5831_v33  ;;  %v5903_v33 = vcombine.high %v247_v26, %v251_v27  ;;  %v463_v8 = vld [vmem:[#allocation5 + $0x9d0] sm:$0xff]  ;;  %v5998_v18 = vcombine.low %v343_v2, %v347_v3 }
 0x143   :  { %2881 = vmatpush1.bf16.msra.mxu1 %v5966_v32  ;;  %v6038_v32 = vcombine.low %v383_v19, %v387_v21  ;;  %v467_v9 = vld [vmem:[#allocation5 + $0x9f0] sm:$0xff] }
 0x144   :  { %2882 = vmatprep.subr.bf16.mxu1 %v5959_v39  ;;  %v243_v39 = vld [vmem:[#allocation5 + $0x2f0] sm:$0xff]  ;;  %v6119_v19 = vcombine.high %v463_v8, %v467_v9 }
 0x145   :  { %2842 = vmatpush1.bf16.msra.mxu0 %v5830_v42  ;;  %v5902_v42 = vcombine.low %v247_v26, %v251_v27  ;;  %v535_v11 = vld [vmem:[#allocation5 + $0xc10] sm:$0xff]  ;;  %v208_v27 = vld [vmem:[#allocation5 + $0x1d8] sm:$0xff] }
 0x146   :  { %2843 = vmatprep.subr.bf16.mxu0 %v5823_v44  ;;  %v5895_v44 = vcombine.high %v239_v37, %v243_v39 }
 0x147   :  { %2883 = vmatpush1.bf16.msra.mxu1 %v5958_v43  ;;  %v6030_v43 = vcombine.low %v375_v28, %v379_v30  ;;  %v212_v28 = vld [vmem:[#allocation5 + $0x1f8] sm:$0xff] }
 0x148   :  { %2884 = vmatprep.subr.bf16.mxu1 %v5951_v47  ;;  %v235_v47 = vld [vmem:[#allocation5 + $0x2b0] sm:$0xff] }
 0x149   :  { %2844 = vmatpush1.bf16.msra.mxu0 %v5822_v50  ;;  %v5894_v50 = vcombine.low %v239_v37, %v243_v39  ;;  %v5865_v39 = vcombine.high %v208_v27, %v212_v28 }
 0x14a   :  { %2845 = vmatprep.subr.bf16.mxu0 %v5815_v52  ;;  %v5887_v52 = vcombine.high %v231_v46, %v235_v47 }
 0x14b   :  { %2885 = vmatpush1.bf16.msra.mxu1 %v5950_v51  ;;  %v6022_v51 = vcombine.low %v367_v40, %v371_v41  ;;  %v447_v40 = vld [vmem:[#allocation5 + $0x950] sm:$0xff] }
 0x14c   :  { %2886 = vmatprep.subr.bf16.mxu1 %v5943_v55  ;;  %v227_v55 = vld [vmem:[#allocation5 + $0x270] sm:$0xff] }
 0x14d   :  { %2846 = vmatpush1.bf16.msra.mxu0 %v5814_v58  ;;  %v5886_v58 = vcombine.low %v231_v46, %v235_v47  ;;  %v451_v41 = vld [vmem:[#allocation5 + $0x970] sm:$0xff] }
 0x14e   :  { %2847 = vmatprep.subr.bf16.mxu0 %v5807_v62  ;;  %v5879_v62 = vcombine.high %v223_v54, %v227_v55  ;;  %v439_v46 = vld [vmem:[#allocation5 + $0x910] sm:$0xff] }
 0x14f   :  { %2887 = vmatpush1.bf16.msra.mxu1 %v5942_v61  ;;  %v6014_v61 = vcombine.low %v359_v48, %v363_v49  ;;  %v443_v47 = vld [vmem:[#allocation5 + $0x930] sm:$0xff]  ;;  %v200_v48 = vld [vmem:[#allocation5 + $0x198] sm:$0xff] }
 0x150   :  { %2888 = vmatprep.subr.bf16.mxu1 %v5935_v63  ;;  %v6007_v63 = vcombine.high %v351_v56, %v355_v57  ;;  %v204_v49 = vld [vmem:[#allocation5 + $0x1b8] sm:$0xff] }
 0x151   :  { %2848 = vmatpush1.bf16.msra.mxu0 %v5806_v4  ;;  %v5878_v4 = vcombine.low %v223_v54, %v227_v55  ;;  %v5857_v55 = vcombine.high %v200_v48, %v204_v49 }
 0x152   :  { %2849 = vmatprep.subr.bf16.mxu0 %v5927_v6  ;;  %v5871_v6 = vcombine.high %v215_v0, %v219_v1 }
 0x153   :  { %2889 = vmatpush1.bf16.msra.mxu1 %v5934_v5  ;;  %v6006_v5 = vcombine.low %v351_v56, %v355_v57  ;;  %v431_v56 = vld [vmem:[#allocation5 + $0x8d0] sm:$0xff] }
 0x154   :  { %2890 = vmatprep.subr.bf16.mxu1 %v6055_v7  ;;  %v5999_v7 = vcombine.high %v343_v2, %v347_v3  ;;  %v435_v57 = vld [vmem:[#allocation5 + $0x8f0] sm:$0xff] }
 0x155   :  { %2850 = vmatpush2.bf16.msra.mxu0 %v5926_v12  ;;  %v539_v12 = vld [vmem:[#allocation5 + $0xc30] sm:$0xff] }
 0x156   :  { %2851 = vmatprep.subr.bf16.mxu0 %v5919_v14  ;;  %v5870_v14 = vcombine.low %v215_v0, %v219_v1  ;;  %v6087_v0 = vcombine.high %v431_v56, %v435_v57  ;;  %v423_v2 = vld [vmem:[#allocation5 + $0x890] sm:$0xff] }
 0x157   :  { %2891 = vmatpush2.bf16.msra.mxu1 %v6054_v13  ;;  %v427_v3 = vld [vmem:[#allocation5 + $0x8b0] sm:$0xff] }
 0x158   :  { %2892 = vmatprep.subr.bf16.mxu1 %v6047_v15 }
 0x159   :  { %2852 = vmatpush2.bf16.msra.mxu0 %v5918_v22  ;;  %v6191_v22 = vcombine.high %v535_v11, %v539_v12 }
 0x15a   :  { %2853 = vmatprep.subr.bf16.mxu0 %v5911_v24  ;;  %v459_v24 = vld [vmem:[#allocation5 + $0x9b0] sm:$0xff] }
 0x15b   :  { %2893 = vmatpush2.bf16.msra.mxu1 %v6046_v23  ;;  %v455_v23 = vld [vmem:[#allocation5 + $0x990] sm:$0xff] }
 0x15c   :  { %2894 = vmatprep.subr.bf16.mxu1 %v6039_v25 }
 0x15d   :  { %2854 = vmatpush2.bf16.msra.mxu0 %v5910_v31  ;;  %v6118_v31 = vcombine.low %v463_v8, %v467_v9  ;;  %v6079_v8 = vcombine.high %v423_v2, %v427_v3 }
 0x15e   :  { %2855 = vmatprep.subr.bf16.mxu0 %v5903_v33  ;;  %v6190_v33 = vcombine.low %v535_v11, %v539_v12  ;;  %v419_v11 = vld [vmem:[#allocation5 + $0x870] sm:$0xff]  ;;  %v176_v12 = vld [vmem:[#allocation5 + $0xd8] sm:$0xff] }
 0x15f   :  { %2895 = vmatpush2.bf16.msra.mxu1 %v6038_v32 }
 0x160   :  { %2896 = vmatprep.subr.bf16.mxu1 %v6031_v34  ;;  %v6111_v34 = vcombine.high %v455_v23, %v459_v24 }
 0x161   :  { %2856 = vmatpush2.bf16.msra.mxu0 %v5902_v42 }
 0x162   :  { %2857 = vmatprep.subr.bf16.mxu0 %v5895_v44  ;;  %v6103_v44 = vcombine.high %v447_v40, %v451_v41 }
 0x163   :  { %2897 = vmatpush2.bf16.msra.mxu1 %v6030_v43  ;;  %v6110_v43 = vcombine.low %v455_v23, %v459_v24  ;;  %v172_v23 = vld [vmem:[#allocation5 + $0xb8] sm:$0xff] }
 0x164   :  { %2898 = vmatprep.subr.bf16.mxu1 %v6023_v45 }
 0x165   :  { %2858 = vmatpush2.bf16.msra.mxu0 %v5894_v50 }
 0x166   :  { %2859 = vmatprep.subr.bf16.mxu0 %v5887_v52  ;;  %v5864_v52 = vcombine.low %v208_v27, %v212_v28 }
 0x167   :  { %2899 = vmatpush2.bf16.msra.mxu1 %v6022_v51  ;;  %v6102_v51 = vcombine.low %v447_v40, %v451_v41  ;;  %v519_v41 = vld [vmem:[#allocation5 + $0xb90] sm:$0xff] }
 0x168   :  { %2900 = vmatprep.subr.bf16.mxu1 %v6015_v53  ;;  %v6095_v53 = vcombine.high %v439_v46, %v443_v47 }
 0x169   :  { %2860 = vmatpush2.bf16.msra.mxu0 %v5886_v58  ;;  %v192_v58 = vld [vmem:[#allocation5 + $0x158] sm:$0xff] }
 0x16a   :  { %2861 = vmatprep.subr.bf16.mxu0 %v5879_v62  ;;  %v6094_v62 = vcombine.low %v439_v46, %v443_v47  ;;  %v156_v46 = vld [vmem:[#allocation5 + $0x38] sm:$0xff] }
 0x16b   :  { %2901 = vmatpush2.bf16.msra.mxu1 %v6014_v61  ;;  %v196_v61 = vld [vmem:[#allocation5 + $0x178] sm:$0xff] }
 0x16c   :  { %2902 = vmatprep.subr.bf16.mxu1 %v6007_v63  ;;  %v2539_v10 = vpop.f32.mrf.mxu0  ;;  %v5856_v63 = vcombine.low %v200_v48, %v204_v49  ;;  %v5849_v1 = vcombine.high %v192_v58, %v196_v61 }
 0x16d   :  { %2862 = vmatpush2.bf16.msra.mxu0 %v5878_v4  ;;  %v184_v4 = vld [vmem:[#allocation5 + $0x118] sm:$0xff] }
 0x16e   :  { %v2580_v13 = vpop.f32.mrf.mxu1  ;;  %v2541_v16 = vpop.f32.mrf.mxu0  ;;  %2863 = vmatprep.subr.bf16.mxu0 %v5871_v6  ;;  %v6086_v6 = vcombine.low %v431_v56, %v435_v57 }
 0x16f   :  { %v7314_v15 = vadd.f32 %v2580_v13, %v2539_v10  ;;  %2903 = vmatpush2.bf16.msra.mxu1 %v6006_v5  ;;  %v188_v5 = vld [vmem:[#allocation5 + $0x138] sm:$0xff]  ;;  %v415_v10 = vld [vmem:[#allocation5 + $0x850] sm:$0xff] }
 0x170   :  { %v2582_v21 = vpop.f32.mrf.mxu1  ;;  %2904 = vmatprep.subr.bf16.mxu1 %v5999_v7  ;;  %v2543_v26 = vpop.f32.mrf.mxu0  ;;  %v5848_v7 = vcombine.low %v192_v58, %v196_v61  ;;  %v5841_v9 = vcombine.high %v184_v4, %v188_v5  ;;  %v180_v13 = vld [vmem:[#allocation5 + $0xf8] sm:$0xff]  ;;  %v6070_v24 = vcombine.low %v415_v10, %v419_v11  ;;  %v503_v61 = vld [vmem:[#allocation5 + $0xb10] sm:$0xff] }
 0x171   :  { %v7316_v25 = vadd.f32 %v2582_v21, %v2541_v16  ;;  %2864 = vmatpush2.bf16.msra.mxu0 %v5870_v14  ;;  %v6078_v14 = vcombine.low %v423_v2, %v427_v3  ;;  %v5840_v16 = vcombine.low %v184_v4, %v188_v5  ;;  %v411_v21 = vld [vmem:[#allocation5 + $0x830] sm:$0xff]  ;;  %v5832_v26 = vcombine.low %v176_v12, %v180_v13 }
 0x172   :  { %v2584_v30 = vpop.f32.mrf.mxu1  ;;  %v2544_v32 = vpop.f32.mrf.mxu0  ;;  %2915 = vmatprep.subr.bf16.mxu0 %v6119_v19  ;;  %v407_v19 = vld [vmem:[#allocation5 + $0x810] sm:$0xff] }
 0x173   :  { %2905 = vmatpush2.bf16.msra.mxu1 %v5998_v18  ;;  %v5833_v18 = vcombine.high %v176_v12, %v180_v13  ;;  %v6063_v27 = vcombine.high %v407_v19, %v411_v21  ;;  %v527_v30 = vld [vmem:[#allocation5 + $0xbd0] sm:$0xff]  ;;  %v160_v32 = vld [vmem:[#allocation5 + $0x58] sm:$0xff] }
 0x174   :  { %v2585_v37 = vpop.f32.mrf.mxu1  ;;  %2970 = vmatprep.subr.bf16.mxu1 %v6191_v22  ;;  %2866 = vmatmul.mubr.bf16.vlgmr.msra.gmra.mxu0 %v7286_v17  ;;  %v168_v22 = vld [vmem:[#allocation5 + $0x98] sm:$0xff]  ;;  %v495_v5 = vld [vmem:[#allocation5 + $0xad0] sm:$0xff] }
 0x175   :  { %2916 = vmatpush1.bf16.msra.mxu0 %v6118_v31  ;;  %2947 = vmatprep.mubr.bf16.mxu0 %v7291_v29  ;;  %v5825_v28 = vcombine.high %v168_v22, %v172_v23  ;;  %v531_v31 = vld [vmem:[#allocation5 + $0xbf0] sm:$0xff]  ;;  %v5824_v37 = vcombine.low %v168_v22, %v172_v23 }
 0x176   :  { %2907 = vmatmul.mubr.bf16.vlgmr.msra.gmra.mxu1 %v7288_v20  ;;  %v7320_v42 = vpop.f32.mrf.mxu1  ;;  %2917 = vmatprep.subr.bf16.mxu0 %v6111_v34  ;;  %v6062_v34 = vcombine.low %v407_v19, %v411_v21  ;;  %v6182_v47 = vcombine.low %v527_v30, %v531_v31  ;;  %v487_v13 = vld [vmem:[#allocation5 + $0xa90] sm:$0xff] }
 0x177   :  { %2971 = vmatpush1.bf16.msra.mxu1 %v6190_v33  ;;  %2988 = vmatprep.mubr.bf16.mxu1 %v7202_v35  ;;  %v164_v33 = vld [vmem:[#allocation5 + $0x78] sm:$0xff]  ;;  %v479_v23 = vld [vmem:[#allocation5 + $0xa50] sm:$0xff] }
 0x178   :  { %v7322_v45 = vpop.f32.mrf.mxu1  ;;  %2997 = vmatprep.subr.bf16.mxu1 %v5865_v39  ;;  %v6183_v39 = vcombine.high %v527_v30, %v531_v31  ;;  %v5817_v40 = vcombine.high %v160_v32, %v164_v33  ;;  %v5816_v48 = vcombine.low %v160_v32, %v164_v33  ;;  %v471_v33 = vld [vmem:[#allocation5 + $0xa10] sm:$0xff] }
 0x179   :  { %2918 = vmatpush1.bf16.msra.mxu0 %v6110_v43  ;;  %v523_v43 = vld [vmem:[#allocation5 + $0xbb0] sm:$0xff] }
 0x17a   :  { %v2666_v50 = vpop.f32.mrf.mxu1  ;;  %2919 = vmatprep.subr.bf16.mxu0 %v6103_v44  ;;  %v152_v44 = vld [vmem:[#allocation5 + $0x18] sm:$0xff]  ;;  %v6175_v49 = vcombine.high %v519_v41, %v523_v43 }
 0x17b   :  { %v5809_v50 = vcombine.high %v152_v44, %v156_v46  ;;  %v5808_v56 = vcombine.low %v152_v44, %v156_v46  ;;  %v336_v46 = vld [vmem:[#allocation5 + $0x5d8] sm:$0xff] }
 0x17c   :  { %v2667_v54 = vpop.f32.mrf.mxu1 }
 0x17d   :  { %2920 = vmatpush1.bf16.msra.mxu0 %v6102_v51  ;;  %v511_v51 = vld [vmem:[#allocation5 + $0xb50] sm:$0xff]  ;;  %v276_v54 = vld [vmem:[#allocation5 + $0x3f8] sm:$0xff] }
 0x17e   :  { %6196 = vmatmul.mubr.msk.bf16.vlgmr.msra.gmra.mxu1 %vm2501_vm0, %v7296_v38  ;;  %2921 = vmatprep.subr.bf16.mxu0 %v6095_v53  ;;  %v272_v53 = vld [vmem:[#allocation5 + $0x3d8] sm:$0xff] }
 0x17f   :  { %2998 = vmatpush1.bf16.msra.mxu1 %v5864_v52  ;;  %3029 = vmatprep.mubr.bf16.mxu1 %v7280_v59  ;;  %v6071_v59 = vcombine.high %v415_v10, %v419_v11  ;;  %v515_v52 = vld [vmem:[#allocation5 + $0xb70] sm:$0xff]  ;;  %v5929_v58 = vcombine.high %v272_v53, %v276_v54  ;;  %v5928_v2 = vcombine.low %v272_v53, %v276_v54 }
 0x180   :  { %2999 = vmatprep.subr.bf16.mxu1 %v5857_v55  ;;  %v6174_v55 = vcombine.low %v519_v41, %v523_v43  ;;  %v6167_v57 = vcombine.high %v511_v51, %v515_v52 }
 0x181   :  { %2922 = vmatpush1.bf16.msra.mxu0 %v6094_v62  ;;  %v507_v62 = vld [vmem:[#allocation5 + $0xb30] sm:$0xff] }
 0x182   :  { %2923 = vmatprep.subr.bf16.mxu0 %v6087_v0  ;;  %v268_v0 = vld [vmem:[#allocation5 + $0x3b8] sm:$0xff]  ;;  %v6159_v3 = vcombine.high %v503_v61, %v507_v62 }
 0x183   :  { %3000 = vmatpush1.bf16.msra.mxu1 %v5856_v63  ;;  %v264_v63 = vld [vmem:[#allocation5 + $0x398] sm:$0xff] }
 0x184   :  { %3001 = vmatprep.subr.bf16.mxu1 %v5849_v1  ;;  %v6166_v1 = vcombine.low %v511_v51, %v515_v52  ;;  %v5921_v4 = vcombine.high %v264_v63, %v268_v0  ;;  %v5920_v10 = vcombine.low %v264_v63, %v268_v0  ;;  %v216_v0 = vld [vmem:[#allocation5 + $0x218] sm:$0xff] }
 0x185   :  { %2924 = vmatpush1.bf16.msra.mxu0 %v6086_v6  ;;  %v499_v6 = vld [vmem:[#allocation5 + $0xaf0] sm:$0xff] }
 0x186   :  { %2925 = vmatprep.subr.bf16.mxu0 %v6079_v8  ;;  %v260_v8 = vld [vmem:[#allocation5 + $0x378] sm:$0xff]  ;;  %v6151_v11 = vcombine.high %v495_v5, %v499_v6 }
 0x187   :  { %3002 = vmatpush1.bf16.msra.mxu1 %v5848_v7  ;;  %v256_v7 = vld [vmem:[#allocation5 + $0x358] sm:$0xff] }
 0x188   :  { %3003 = vmatprep.subr.bf16.mxu1 %v5841_v9  ;;  %v6158_v9 = vcombine.low %v503_v61, %v507_v62  ;;  %v5913_v12 = vcombine.high %v256_v7, %v260_v8  ;;  %v5912_v19 = vcombine.low %v256_v7, %v260_v8  ;;  %v328_v61 = vld [vmem:[#allocation5 + $0x598] sm:$0xff] }
 0x189   :  { %2926 = vmatpush1.bf16.msra.mxu0 %v6078_v14  ;;  %v491_v14 = vld [vmem:[#allocation5 + $0xab0] sm:$0xff]  ;;  %v332_v62 = vld [vmem:[#allocation5 + $0x5b8] sm:$0xff] }
 0x18a   :  { %2927 = vmatprep.subr.bf16.mxu0 %v6071_v59  ;;  %v252_v59 = vld [vmem:[#allocation5 + $0x338] sm:$0xff]  ;;  %v6143_v21 = vcombine.high %v487_v13, %v491_v14 }
 0x18b   :  { %3004 = vmatpush1.bf16.msra.mxu1 %v5840_v16  ;;  %v248_v16 = vld [vmem:[#allocation5 + $0x318] sm:$0xff] }
 0x18c   :  { %3005 = vmatprep.subr.bf16.mxu1 %v5833_v18  ;;  %v6150_v18 = vcombine.low %v495_v5, %v499_v6  ;;  %v5905_v22 = vcombine.high %v248_v16, %v252_v59  ;;  %v5904_v30 = vcombine.low %v248_v16, %v252_v59  ;;  %v324_v6 = vld [vmem:[#allocation5 + $0x578] sm:$0xff] }
 0x18d   :  { %2928 = vmatpush1.bf16.msra.mxu0 %v6070_v24  ;;  %v483_v24 = vld [vmem:[#allocation5 + $0xa70] sm:$0xff]  ;;  %v464_v7 = vld [vmem:[#allocation5 + $0x9d8] sm:$0xff] }
 0x18e   :  { %2929 = vmatprep.subr.bf16.mxu0 %v6063_v27  ;;  %v244_v27 = vld [vmem:[#allocation5 + $0x2f8] sm:$0xff]  ;;  %v6135_v31 = vcombine.high %v479_v23, %v483_v24 }
 0x18f   :  { %3006 = vmatpush1.bf16.msra.mxu1 %v5832_v26  ;;  %v240_v26 = vld [vmem:[#allocation5 + $0x2d8] sm:$0xff] }
 0x190   :  { %3007 = vmatprep.subr.bf16.mxu1 %v5825_v28  ;;  %v6142_v28 = vcombine.low %v487_v13, %v491_v14  ;;  %v5897_v32 = vcombine.high %v240_v26, %v244_v27  ;;  %v5896_v41 = vcombine.low %v240_v26, %v244_v27  ;;  %v468_v8 = vld [vmem:[#allocation5 + $0x9f8] sm:$0xff] }
 0x191   :  { %2930 = vmatpush1.bf16.msra.mxu0 %v6062_v34  ;;  %v475_v34 = vld [vmem:[#allocation5 + $0xa30] sm:$0xff]  ;;  %v6121_v13 = vcombine.high %v464_v7, %v468_v8  ;;  %v312_v14 = vld [vmem:[#allocation5 + $0x518] sm:$0xff] }
 0x192   :  { %2931 = vmatprep.subr.bf16.mxu0 %v6183_v39  ;;  %v236_v39 = vld [vmem:[#allocation5 + $0x2b8] sm:$0xff]  ;;  %v6127_v43 = vcombine.high %v471_v33, %v475_v34  ;;  %v6126_v52 = vcombine.low %v471_v33, %v475_v34 }
 0x193   :  { %3008 = vmatpush1.bf16.msra.mxu1 %v5824_v37  ;;  %v232_v37 = vld [vmem:[#allocation5 + $0x298] sm:$0xff] }
 0x194   :  { %3009 = vmatprep.subr.bf16.mxu1 %v5817_v40  ;;  %v6134_v40 = vcombine.low %v479_v23, %v483_v24  ;;  %v5889_v44 = vcombine.high %v232_v37, %v236_v39  ;;  %v5888_v54 = vcombine.low %v232_v37, %v236_v39  ;;  %v316_v16 = vld [vmem:[#allocation5 + $0x538] sm:$0xff] }
 0x195   :  { %2932 = vmatpush2.bf16.msra.mxu0 %v6182_v47  ;;  %v340_v47 = vld [vmem:[#allocation5 + $0x5f8] sm:$0xff]  ;;  %v5969_v23 = vcombine.high %v312_v14, %v316_v16 }
 0x196   :  { %2933 = vmatprep.subr.bf16.mxu0 %v6175_v49  ;;  %v224_v49 = vld [vmem:[#allocation5 + $0x258] sm:$0xff] }
 0x197   :  { %3010 = vmatpush1.bf16.msra.mxu1 %v5816_v48  ;;  %v456_v59 = vld [vmem:[#allocation5 + $0x998] sm:$0xff] }
 0x198   :  { %3011 = vmatprep.subr.bf16.mxu1 %v5809_v50  ;;  %v228_v50 = vld [vmem:[#allocation5 + $0x278] sm:$0xff] }
 0x199   :  { %2934 = vmatpush2.bf16.msra.mxu0 %v6174_v55  ;;  %v5993_v55 = vcombine.high %v336_v46, %v340_v47  ;;  %v304_v26 = vld [vmem:[#allocation5 + $0x4d8] sm:$0xff] }
 0x19a   :  { %2935 = vmatprep.subr.bf16.mxu0 %v6167_v57  ;;  %v308_v27 = vld [vmem:[#allocation5 + $0x4f8] sm:$0xff] }
 0x19b   :  { %3012 = vmatpush1.bf16.msra.mxu1 %v5808_v56  ;;  %v5961_v33 = vcombine.high %v304_v26, %v308_v27  ;;  %v296_v37 = vld [vmem:[#allocation5 + $0x498] sm:$0xff] }
 0x19c   :  { %3013 = vmatprep.subr.bf16.mxu1 %v5929_v58  ;;  %v5881_v58 = vcombine.high %v224_v49, %v228_v50  ;;  %v300_v39 = vld [vmem:[#allocation5 + $0x4b8] sm:$0xff] }
 0x19d   :  { %2936 = vmatpush2.bf16.msra.mxu0 %v6166_v1  ;;  %v220_v1 = vld [vmem:[#allocation5 + $0x238] sm:$0xff] }
 0x19e   :  { %2937 = vmatprep.subr.bf16.mxu0 %v6159_v3  ;;  %v5873_v5 = vcombine.high %v216_v0, %v220_v1 }
 0x19f   :  { %3014 = vmatpush2.bf16.msra.mxu1 %v5928_v2  ;;  %v5992_v2 = vcombine.low %v336_v46, %v340_v47  ;;  %v288_v47 = vld [vmem:[#allocation5 + $0x458] sm:$0xff] }
 0x1a0   :  { %3015 = vmatprep.subr.bf16.mxu1 %v5921_v4  ;;  %v5880_v4 = vcombine.low %v224_v49, %v228_v50  ;;  %v432_v49 = vld [vmem:[#allocation5 + $0x8d8] sm:$0xff] }
 0x1a1   :  { %2938 = vmatpush2.bf16.msra.mxu0 %v6158_v9  ;;  %v436_v50 = vld [vmem:[#allocation5 + $0x8f8] sm:$0xff] }
 0x1a2   :  { %2939 = vmatprep.subr.bf16.mxu0 %v6151_v11 }
 0x1a3   :  { %3016 = vmatpush2.bf16.msra.mxu1 %v5920_v10  ;;  %v5872_v10 = vcombine.low %v216_v0, %v220_v1  ;;  %v400_v1 = vld [vmem:[#allocation5 + $0x7d8] sm:$0xff] }
 0x1a4   :  { %3017 = vmatprep.subr.bf16.mxu1 %v5913_v12 }
 0x1a5   :  { %2940 = vmatpush2.bf16.msra.mxu0 %v6150_v18  ;;  %v460_v18 = vld [vmem:[#allocation5 + $0x9b8] sm:$0xff] }
 0x1a6   :  { %2941 = vmatprep.subr.bf16.mxu0 %v6143_v21  ;;  %v6113_v24 = vcombine.high %v456_v59, %v460_v18 }
 0x1a7   :  { %3018 = vmatpush2.bf16.msra.mxu1 %v5912_v19 }
 0x1a8   :  { %3019 = vmatprep.subr.bf16.mxu1 %v5905_v22  ;;  %v6120_v22 = vcombine.low %v464_v7, %v468_v8  ;;  %v392_v7 = vld [vmem:[#allocation5 + $0x798] sm:$0xff] }
 0x1a9   :  { %2942 = vmatpush2.bf16.msra.mxu0 %v6142_v28  ;;  %v448_v28 = vld [vmem:[#allocation5 + $0x958] sm:$0xff] }
 0x1aa   :  { %2943 = vmatprep.subr.bf16.mxu0 %v6135_v31  ;;  %v5968_v31 = vcombine.low %v312_v14, %v316_v16  ;;  %v396_v8 = vld [vmem:[#allocation5 + $0x7b8] sm:$0xff] }
 0x1ab   :  { %3020 = vmatpush2.bf16.msra.mxu1 %v5904_v30  ;;  %v452_v30 = vld [vmem:[#allocation5 + $0x978] sm:$0xff]  ;;  %v6049_v14 = vcombine.high %v392_v7, %v396_v8 }
 0x1ac   :  { %3021 = vmatprep.subr.bf16.mxu1 %v5897_v32  ;;  %v2621_v48 = vpop.f32.mrf.mxu0  ;;  %v6112_v32 = vcombine.low %v456_v59, %v460_v18  ;;  %v6105_v34 = vcombine.high %v448_v28, %v452_v30  ;;  %v384_v59 = vld [vmem:[#allocation5 + $0x758] sm:$0xff] }
 0x1ad   :  { %v2622_v51 = vadd.f32 %v2621_v48, %v7314_v15  ;;  %2944 = vmatpush2.bf16.msra.mxu0 %v6134_v40  ;;  %v440_v40 = vld [vmem:[#allocation5 + $0x918] sm:$0xff] }
 0x1ae   :  { %v2623_v53 = vpop.f32.mrf.mxu0  ;;  %2945 = vmatprep.subr.bf16.mxu0 %v6127_v43  ;;  %v5960_v43 = vcombine.low %v304_v26, %v308_v27  ;;  %v292_v48 = vld [vmem:[#allocation5 + $0x478] sm:$0xff] }
 0x1af   :  { %3022 = vmatpush2.bf16.msra.mxu1 %v5896_v41  ;;  %v7331_v56 = vadd.f32 %v7320_v42, %v2622_v51  ;;  %v2624_v57 = vadd.f32 %v2623_v53, %v7316_v25  ;;  %v5985_v42 = vcombine.high %v328_v61, %v332_v62  ;;  %v320_v25 = vld [vmem:[#allocation5 + $0x558] sm:$0xff]  ;;  %v5952_v51 = vcombine.low %v296_v37, %v300_v39 }
 0x1b0   :  { %3023 = vmatprep.subr.bf16.mxu1 %v5889_v44  ;;  %v2625_v63 = vpop.f32.mrf.mxu0  ;;  %v5977_v11 = vcombine.high %v320_v25, %v324_v6  ;;  %v5976_v21 = vcombine.low %v320_v25, %v324_v6  ;;  %v444_v41 = vld [vmem:[#allocation5 + $0x938] sm:$0xff]  ;;  %v6104_v44 = vcombine.low %v448_v28, %v452_v30  ;;  %v6089_v53 = vcombine.high %v432_v49, %v436_v50 }
 0x1b1   :  { %v7335_v15 = vadd.f32 %v7322_v45, %v2624_v57  ;;  %2946 = vmatpush2.bf16.msra.mxu0 %v6126_v52  ;;  %v5984_v45 = vcombine.low %v328_v61, %v332_v62  ;;  %v6097_v46 = vcombine.high %v440_v40, %v444_v41  ;;  %v6096_v52 = vcombine.low %v440_v40, %v444_v41  ;;  %v424_v57 = vld [vmem:[#allocation5 + $0x898] sm:$0xff] }
 0x1b2   :  { %v2626_v3 = vpop.f32.mrf.mxu0  ;;  %3038 = vmatprep.subr.bf16.mxu0 %v5993_v55  ;;  %v284_v55 = vld [vmem:[#allocation5 + $0x438] sm:$0xff]  ;;  %v5944_v61 = vcombine.low %v288_v47, %v292_v48  ;;  %v6088_v62 = vcombine.low %v432_v49, %v436_v50 }
 0x1b3   :  { %3024 = vmatpush2.bf16.msra.mxu1 %v5888_v54  ;;  %v280_v54 = vld [vmem:[#allocation5 + $0x418] sm:$0xff] }
 0x1b4   :  { %3025 = vmatprep.subr.bf16.mxu1 %v5881_v58  ;;  %2948 = vmatmul.mubr.bf16.vlgmr.msra.gmra.mxu0 %v7301_v36  ;;  %v428_v58 = vld [vmem:[#allocation5 + $0x8b8] sm:$0xff]  ;;  %v5937_v63 = vcombine.high %v280_v54, %v284_v55 }
 0x1b5   :  { %3039 = vmatpush1.bf16.msra.mxu0 %v5992_v2  ;;  %3070 = vmatprep.mubr.bf16.mxu0 %v7282_v60  ;;  %v6081_v0 = vcombine.high %v424_v57, %v428_v58  ;;  %v404_v2 = vld [vmem:[#allocation5 + $0x7f8] sm:$0xff] }
 0x1b6   :  { %v7338_v9 = vpop.f32.mrf.mxu1  ;;  %3040 = vmatprep.subr.bf16.mxu0 %v5985_v42  ;;  %v416_v3 = vld [vmem:[#allocation5 + $0x858] sm:$0xff]  ;;  %v5936_v42 = vcombine.low %v280_v54, %v284_v55  ;;  %v6057_v25 = vcombine.high %v400_v1, %v404_v2 }
 0x1b7   :  { %3026 = vmatpush2.bf16.msra.mxu1 %v5880_v4  ;;  %v420_v4 = vld [vmem:[#allocation5 + $0x878] sm:$0xff] }
 0x1b8   :  { %v7341_v12 = vpop.f32.mrf.mxu1  ;;  %3027 = vmatprep.subr.bf16.mxu1 %v5873_v5  ;;  %v6080_v5 = vcombine.low %v424_v57, %v428_v58  ;;  %v6073_v6 = vcombine.high %v416_v3, %v420_v4  ;;  %v388_v18 = vld [vmem:[#allocation5 + $0x778] sm:$0xff] }
 0x1b9   :  { %3041 = vmatpush1.bf16.msra.mxu0 %v5984_v45  ;;  %v408_v45 = vld [vmem:[#allocation5 + $0x818] sm:$0xff] }
 0x1ba   :  { %v2707_v19 = vpop.f32.mrf.mxu1  ;;  %3042 = vmatprep.subr.bf16.mxu0 %v5977_v11  ;;  %v6056_v11 = vcombine.low %v400_v1, %v404_v2  ;;  %v376_v26 = vld [vmem:[#allocation5 + $0x718] sm:$0xff] }
 0x1bb   :  { %3028 = vmatpush2.bf16.msra.mxu1 %v5872_v10  ;;  %v412_v10 = vld [vmem:[#allocation5 + $0x838] sm:$0xff] }
 0x1bc   :  { %v2708_v60 = vpop.f32.mrf.mxu1  ;;  %3079 = vmatprep.subr.bf16.mxu1 %v6121_v13  ;;  %v6072_v13 = vcombine.low %v416_v3, %v420_v4  ;;  %v6065_v16 = vcombine.high %v408_v45, %v412_v10  ;;  %v528_v19 = vld [vmem:[#allocation5 + $0xbd8] sm:$0xff] }
 0x1bd   :  { %3043 = vmatpush1.bf16.msra.mxu0 %v5976_v21  ;;  %v532_v21 = vld [vmem:[#allocation5 + $0xbf8] sm:$0xff]  ;;  %v6041_v60 = vcombine.high %v384_v59, %v388_v18 }
 0x1be   :  { %3030 = vmatmul.mubr.bf16.vlgmr.msra.gmra.mxu1 %v7286_v17  ;;  %3044 = vmatprep.subr.bf16.mxu0 %v5969_v23  ;;  %v5953_v17 = vcombine.high %v296_v37, %v300_v39  ;;  %v6064_v23 = vcombine.low %v408_v45, %v412_v10  ;;  %v380_v27 = vld [vmem:[#allocation5 + $0x738] sm:$0xff] }
 0x1bf   :  { %3080 = vmatpush1.bf16.msra.mxu1 %v6120_v22  ;;  %3111 = vmatprep.mubr.bf16.mxu1 %v7291_v29  ;;  %v5945_v29 = vcombine.high %v288_v47, %v292_v48  ;;  %v6048_v22 = vcombine.low %v392_v7, %v396_v8  ;;  %v520_v28 = vld [vmem:[#allocation5 + $0xb98] sm:$0xff] }
 0x1c0   :  { %3081 = vmatprep.subr.bf16.mxu1 %v6113_v24  ;;  %v6185_v24 = vcombine.high %v528_v19, %v532_v21  ;;  %v524_v30 = vld [vmem:[#allocation5 + $0xbb8] sm:$0xff] }
 0x1c1   :  { %3045 = vmatpush1.bf16.msra.mxu0 %v5968_v31  ;;  %v6040_v31 = vcombine.low %v384_v59, %v388_v18  ;;  %v6177_v37 = vcombine.high %v520_v28, %v524_v30  ;;  %v368_v39 = vld [vmem:[#allocation5 + $0x6d8] sm:$0xff] }
 0x1c2   :  { %3046 = vmatprep.subr.bf16.mxu0 %v5961_v33  ;;  %v6033_v33 = vcombine.high %v376_v26, %v380_v27  ;;  %v372_v40 = vld [vmem:[#allocation5 + $0x6f8] sm:$0xff] }
 0x1c3   :  { %3082 = vmatpush1.bf16.msra.mxu1 %v6112_v32  ;;  %v6184_v32 = vcombine.low %v528_v19, %v532_v21  ;;  %v512_v41 = vld [vmem:[#allocation5 + $0xb58] sm:$0xff] }
 0x1c4   :  { %3083 = vmatprep.subr.bf16.mxu1 %v6105_v34  ;;  %v3171_v34 = vlaneseq  ;;  %v360_v49 = vld [vmem:[#allocation5 + $0x698] sm:$0xff] }
 0x1c5   :  { %3047 = vmatpush1.bf16.msra.mxu0 %v5960_v43  ;;  %v516_v43 = vld [vmem:[#allocation5 + $0xb78] sm:$0xff] }
 0x1c6   :  { %3048 = vmatprep.subr.bf16.mxu0 %v5953_v17  ;;  %v6176_v17 = vcombine.low %v520_v28, %v524_v30  ;;  %v7345_v47 = vshrl.u32 %v3171_v34, 7  ;;  %v6169_v48 = vcombine.high %v512_v41, %v516_v43  ;;  %v364_v50 = vld [vmem:[#allocation5 + $0x6b8] sm:$0xff]  ;;  %v6168_v54 = vcombine.low %v512_v41, %v516_v43 }
 0x1c7   :  { %3084 = vmatpush1.bf16.msra.mxu1 %v6104_v44  ;;  %v6032_v44 = vcombine.low %v376_v26, %v380_v27  ;;  %v6017_v55 = vcombine.high %v360_v49, %v364_v50  ;;  %v352_v58 = vld [vmem:[#allocation5 + $0x658] sm:$0xff]  ;;  %v6016_v2 = vcombine.low %v360_v49, %v364_v50  ;;  %v3162_v34 = vpack.c.bf16 %v7335_v15, %v7335_v15 }
 0x1c8   :  { %3085 = vmatprep.subr.bf16.mxu1 %v6097_v46  ;;  %v6025_v46 = vcombine.high %v368_v39, %v372_v40  ;;  %v492_v7 = vld [vmem:[#allocation5 + $0xab8] sm:$0xff]  ;;  %v7362_v30 = vsub.s32 0, %v7345_v47 }
 0x1c9   :  { %3049 = vmatpush1.bf16.msra.mxu0 %v5952_v51  ;;  %v504_v51 = vld [vmem:[#allocation5 + $0xb18] sm:$0xff] }
 0x1ca   :  { %3050 = vmatprep.subr.bf16.mxu0 %v5945_v29  ;;  %v7348_v29 = vsub.s32 1, %v7345_v47  ;;  %v540_v59 = vld [vmem:[#allocation5 + $0xc38] sm:$0xff] }
 0x1cb   :  { %3086 = vmatpush1.bf16.msra.mxu1 %v6096_v52  ;;  %v508_v52 = vld [vmem:[#allocation5 + $0xb38] sm:$0xff] }
 0x1cc   :  { %3087 = vmatprep.subr.bf16.mxu1 %v6089_v53  ;;  %v6024_v53 = vcombine.low %v368_v39, %v372_v40  ;;  %v6161_v57 = vcombine.high %v504_v51, %v508_v52  ;;  %v6160_v3 = vcombine.low %v504_v51, %v508_v52  ;;  %v480_v19 = vld [vmem:[#allocation5 + $0xa58] sm:$0xff] }
 0x1cd   :  { %3051 = vmatpush1.bf16.msra.mxu0 %v5944_v61  ;;  %v356_v61 = vld [vmem:[#allocation5 + $0x678] sm:$0xff] }
 0x1ce   :  { %3052 = vmatprep.subr.bf16.mxu0 %v5937_v63  ;;  %v496_v63 = vld [vmem:[#allocation5 + $0xad8] sm:$0xff]  ;;  %v6009_v4 = vcombine.high %v352_v58, %v356_v61  ;;  %v6008_v45 = vcombine.low %v352_v58, %v356_v61 }
 0x1cf   :  { %3088 = vmatpush1.bf16.msra.mxu1 %v6088_v62  ;;  %v7350_v62 = vld [vmem:[#allocation7] sm:$0xff]  ;;  %v484_v21 = vld [vmem:[#allocation5 + $0xa78] sm:$0xff] }
 0x1d0   :  { %3089 = vmatprep.subr.bf16.mxu1 %v6081_v0  ;;  %v500_v0 = vld [vmem:[#allocation5 + $0xaf8] sm:$0xff]  ;;  %v3178_v1 = vrot.slane %v7350_v62, %v7348_v29  ;;  %v6136_v41 = vcombine.low %v480_v19, %v484_v21 }
 0x1d1   :  { %3053 = vmatpush1.bf16.msra.mxu0 %v5936_v42  ;;  %v6153_v42 = vcombine.high %v496_v63, %v500_v0  ;;  %v6152_v10 = vcombine.low %v496_v63, %v500_v0  ;;  %v6534_v58 = vld [vmem:[#allocation8 + $0xe0] ss:$16 sps:$4 sm:$0xff]  }
 0x1d2   :  { %3054 = vmatprep.subr.bf16.mxu0 %v6057_v25  ;;  %v348_v25 = vld [vmem:[#allocation5 + $0x638] sm:$0xff]  ;;  %v3212_v8 = vpack.c.bf16 %v3178_v1, %v3178_v1 }
 0x1d3   :  { %3090 = vmatpush1.bf16.msra.mxu1 %v6080_v5  ;;  %v344_v5 = vld [vmem:[#allocation5 + $0x618] sm:$0xff] }
 0x1d4   :  { %3091 = vmatprep.subr.bf16.mxu1 %v6073_v6  ;;  %v488_v6 = vld [vmem:[#allocation5 + $0xa98] sm:$0xff] }
 0x1d5   :  { %3055 = vmatpush2.bf16.msra.mxu0 %v6056_v11  ;;  %v6001_v11 = vcombine.high %v344_v5, %v348_v25  ;;  %v6144_v26 = vcombine.low %v488_v6, %v492_v7  ;;  %v6537_v1 = vld [vmem:[#allocation8 + $0x2e0] ss:$16 sps:$4 sm:$0xff]  }
 0x1d6   :  { %3056 = vmatprep.subr.bf16.mxu0 %v6049_v14  ;;  %v6145_v14 = vcombine.high %v488_v6, %v492_v7  ;;  %v6543_v6 = vld [vmem:[#allocation8 + $0x2c0] ss:$16 sps:$4 sm:$0xff]   ;;  %v6548_v7 = vld [vmem:[#allocation8 + $0xa4] ss:$16 sps:$4 sm:$0xff]  }
 0x1d7   :  { %3092 = vmatpush1.bf16.msra.mxu1 %v6072_v13  ;;  %v3185_v13 = vsub.s32 3, %v7345_v47 }
 0x1d8   :  { %3093 = vmatprep.subr.bf16.mxu1 %v6065_v16  ;;  %v536_v16 = vld [vmem:[#allocation5 + $0xc18] sm:$0xff] }
 0x1d9   :  { %3057 = vmatpush2.bf16.msra.mxu0 %v6048_v22  ;;  %v3227_v22 = vpack.i.b16 %v3212_v8, %v3212_v8  ;;  %v6193_v27 = vcombine.high %v536_v16, %v540_v59  ;;  %v3186_v28 = vrot.slane %v7350_v62, %v3185_v13  ;;  %v6192_v39 = vcombine.low %v536_v16, %v540_v59  ;;  %v6551_v8 = vld [vmem:[#allocation8 + $0x2a4] ss:$16 sps:$4 sm:$0xff]   ;;  %v6552_v16 = vld [vmem:[#allocation8 + $0x80] ss:$16 sps:$4 sm:$0xff]  }
 0x1da   :  { %3058 = vmatprep.subr.bf16.mxu0 %v6041_v60  ;;  %v6000_v60 = vcombine.low %v344_v5, %v348_v25  ;;  %v6540_v5 = vld [vmem:[#allocation8 + $0xc0] ss:$16 sps:$4 sm:$0xff]  }
 0x1db   :  { %3094 = vmatpush1.bf16.msra.mxu1 %v6064_v23  ;;  %v3214_v43 = vpack.c.bf16 %v3186_v28, %v3186_v28  ;;  %v6555_v59 = vld [vmem:[#allocation8 + $0x280] ss:$16 sps:$4 sm:$0xff]   ;;  %v6572_v28 = vld [vmem:[#allocation8 + $0x24] ss:$16 sps:$4 sm:$0xff]  }
 0x1dc   :  { %3095 = vmatprep.subr.bf16.mxu1 %v6185_v24 }
 0x1dd   :  { %3059 = vmatpush2.bf16.msra.mxu0 %v6040_v31  ;;  %v6137_v31 = vcombine.high %v480_v19, %v484_v21  ;;  %v3241_v51 = vpack.i.b16 %v3214_v43, %v3214_v43  ;;  %v6563_v19 = vld [vmem:[#allocation8 + $0x264] ss:$16 sps:$4 sm:$0xff]   ;;  %v6558_v21 = vld [vmem:[#allocation8 + $0x60] ss:$16 sps:$4 sm:$0xff]  }
 0x1de   :  { %3060 = vmatprep.subr.bf16.mxu0 %v6033_v33  ;;  %v472_v33 = vld [vmem:[#allocation5 + $0xa18] sm:$0xff] }
 0x1df   :  { %3096 = vmatpush2.bf16.msra.mxu1 %v6184_v32  ;;  %v3246_v0 = vrot.slane %v3241_v51, %v7362_v30  ;;  %v6582_v43 = vld [vmem:[#allocation8 + $0x1e0] ss:$16 sps:$4 sm:$0xff]   ;;  %v6596_v51 = vld [vmem:[#allocation8 + $0x1a4] ss:$16 sps:$4 sm:$0xff]  }
 0x1e0   :  { %3097 = vmatprep.subr.bf16.mxu1 %v6177_v37  ;;  %v3232_v37 = vrot.slane %v3227_v22, %v7362_v30  ;;  %v6561_v22 = vld [vmem:[#allocation8 + $0x260] ss:$16 sps:$4 sm:$0xff]  }
 0x1e1   :  { %3061 = vmatpush2.bf16.msra.mxu0 %v6032_v44  ;;  %v6536_v44 = vld [vmem:[#allocation8 + $0xe4] ss:$16 sps:$4 sm:$0xff]  }
 0x1e2   :  { %3062 = vmatprep.subr.bf16.mxu0 %v6025_v46 }
 0x1e3   :  { %3098 = vmatpush2.bf16.msra.mxu1 %v6176_v17 }
 0x1e4   :  { %3099 = vmatprep.subr.bf16.mxu1 %v6169_v48  ;;  %v3276_v48 = vadd.bf16 %v3232_v37, %v3162_v34  ;;  %v6581_v34 = vld [vmem:[#allocation8 + $0x204] ss:$16 sps:$4 sm:$0xff]   ;;  %v6576_v37 = vld [vmem:[#allocation8] ss:$16 sps:$4 sm:$0xff]  }
 0x1e5   :  { %3063 = vmatpush2.bf16.msra.mxu0 %v6024_v53 }
 0x1e6   :  { %3064 = vmatprep.subr.bf16.mxu0 %v6017_v55  ;;  %v3292_v61 = vmul.bf16 1045249613, %v3276_v48  ;;  %vm3284_vm1 = vcmp.ge.bf16.partialorder %v3276_v48, 0 }
 0x1e7   :  { %3100 = vmatpush2.bf16.msra.mxu1 %v6168_v54  ;;  %v6539_v54 = vld [vmem:[#allocation8 + $0x2e4] ss:$16 sps:$4 sm:$0xff]  }
 0x1e8   :  { %3101 = vmatprep.subr.bf16.mxu1 %v6161_v57 }
 0x1e9   :  { %3065 = vmatpush2.bf16.msra.mxu0 %v6016_v2  ;;  %v6542_v2 = vld [vmem:[#allocation8 + $0xc4] ss:$16 sps:$4 sm:$0xff]  }
 0x1ea   :  { %3066 = vmatprep.subr.bf16.mxu0 %v6009_v4 }
 0x1eb   :  { %3102 = vmatpush2.bf16.msra.mxu1 %v6160_v3  ;;  %v6545_v3 = vld [vmem:[#allocation8 + $0x2c4] ss:$16 sps:$4 sm:$0xff]  }
 0x1ec   :  { %3103 = vmatprep.subr.bf16.mxu1 %v6153_v42  ;;  %v2744_v18 = vpop.f32.mrf.mxu0  ;;  %v7378_v42 = vsel %vm3284_vm1, %v3276_v48, %v3292_v61  ;;  %v6593_v48 = vld [vmem:[#allocation8 + $0x3c4] ss:$16 sps:$4 sm:$0xff]  }
 0x1ed   :  { %v7356_v23 = vadd.f32 %v2744_v18, %v7338_v9  ;;  %3067 = vmatpush2.bf16.msra.mxu0 %v6008_v45  ;;  %v476_v9 = vld [vmem:[#allocation5 + $0xa38] sm:$0xff] }
 0x1ee   :  { %v2746_v24 = vpop.f32.mrf.mxu0  ;;  %3068 = vmatprep.subr.bf16.mxu0 %v6001_v11  ;;  %v6129_v17 = vcombine.high %v472_v33, %v476_v9  ;;  %v6128_v52 = vcombine.low %v472_v33, %v476_v9  ;;  %v6554_v11 = vld [vmem:[#allocation8 + $0x84] ss:$16 sps:$4 sm:$0xff]   ;;  %v6573_v33 = vld [vmem:[#allocation8 + $0x220] ss:$16 sps:$4 sm:$0xff]  }
 0x1ef   :  { %3104 = vmatpush2.bf16.msra.mxu1 %v6152_v10  ;;  %v2747_v15 = vadd.f32 %v2746_v24, %v7341_v12  ;;  %v6546_v10 = vld [vmem:[#allocation8 + $0xa0] ss:$16 sps:$4 sm:$0xff]   ;;  %v6560_v18 = vld [vmem:[#allocation8 + $0x64] ss:$16 sps:$4 sm:$0xff]  }
 0x1f0   :  { %3105 = vmatprep.subr.bf16.mxu1 %v6145_v14  ;;  %v2748_v32 = vpop.f32.mrf.mxu0  ;;  %v6557_v14 = vld [vmem:[#allocation8 + $0x284] ss:$16 sps:$4 sm:$0xff]  }
 0x1f1   :  { %3069 = vmatpush2.bf16.msra.mxu0 %v6000_v60  ;;  %v6566_v60 = vld [vmem:[#allocation8 + $0x44] ss:$16 sps:$4 sm:$0xff]   ;;  %v6570_v32 = vld [vmem:[#allocation8 + $0x20] ss:$16 sps:$4 sm:$0xff]  }
 0x1f2   :  { %v2749_v40 = vpop.f32.mrf.mxu0  ;;  %3134 = vmatprep.subr.bf16.mxu0 %v6193_v27  ;;  %v6569_v24 = vld [vmem:[#allocation8 + $0x244] ss:$16 sps:$4 sm:$0xff]   ;;  %v6567_v27 = vld [vmem:[#allocation8 + $0x240] ss:$16 sps:$4 sm:$0xff]  }
 0x1f3   :  { %3106 = vmatpush2.bf16.msra.mxu1 %v6144_v26  ;;  %v6564_v26 = vld [vmem:[#allocation8 + $0x40] ss:$16 sps:$4 sm:$0xff]   ;;  %v6578_v9 = vld [vmem:[#allocation8 + $0x4] ss:$16 sps:$4 sm:$0xff]  }
 0x1f4   :  { %3107 = vmatprep.subr.bf16.mxu1 %v6137_v31  ;;  %3071 = vmatmul.mubr.bf16.vlgmr.msra.gmra.mxu0 %v7288_v20  ;;  %v7368_v46 = vpop.f32.mrf.mxu0  ;;  %v6575_v31 = vld [vmem:[#allocation8 + $0x224] ss:$16 sps:$4 sm:$0xff]  }
 0x1f5   :  { %3135 = vmatpush1.bf16.msra.mxu0 %v6192_v39  ;;  %3152 = vmatprep.mubr.bf16.mxu0 %v7202_v35  ;;  %v6579_v39 = vld [vmem:[#allocation8 + $0x200] ss:$16 sps:$4 sm:$0xff]   ;;  %v6584_v40 = vld [vmem:[#allocation8 + $0x1e4] ss:$16 sps:$4 sm:$0xff]  }
 0x1f6   :  { %v7370_v49 = vpop.f32.mrf.mxu1  ;;  %v2828_v50 = vpop.f32.mrf.mxu0  ;;  %4843 = vmatprep.subr.bf16.mxu0 %v6536_v44  ;;  %v6585_v44 = vld [vmem:[#allocation8 + $0x3e0] ss:$16 sps:$4 sm:$0xff]  }
 0x1f7   :  { %3108 = vmatpush2.bf16.msra.mxu1 %v6136_v41  ;;  %v6587_v41 = vld [vmem:[#allocation8 + $0x3e4] ss:$16 sps:$4 sm:$0xff]  }
 0x1f8   :  { %v2787_v53 = vpop.f32.mrf.mxu1  ;;  %3109 = vmatprep.subr.bf16.mxu1 %v6129_v17  ;;  %v2830_v20 = vpop.f32.mrf.mxu0  ;;  %v6590_v17 = vld [vmem:[#allocation8 + $0x1c4] ss:$16 sps:$4 sm:$0xff]  }
 0x1f9   :  { %v2788_v55 = vadd.f32 %v2787_v53, %v2747_v15  ;;  %v6588_v15 = vld [vmem:[#allocation8 + $0x1c0] ss:$16 sps:$4 sm:$0xff]   ;;  %v7385_v53 = vsub.s32 2, %v7345_v47  ;;  %v6602_v20 = vld [vmem:[#allocation8 + $0x184] ss:$16 sps:$4 sm:$0xff]  }
 0x1fa   :  { %v2789_v57 = vpop.f32.mrf.mxu1  ;;  %v2831_v35 = vpop.f32.mrf.mxu0 }
 0x1fb   :  { %v2829_v63 = vadd.f32 %v2828_v50, %v2788_v55  ;;  %3110 = vmatpush2.bf16.msra.mxu1 %v6128_v52  ;;  %v6591_v50 = vld [vmem:[#allocation8 + $0x3c0] ss:$16 sps:$4 sm:$0xff]   ;;  %v6599_v52 = vld [vmem:[#allocation8 + $0x3a4] ss:$16 sps:$4 sm:$0xff]   ;;  %v3174_v57 = vrot.slane %v7350_v62, %v7362_v30  ;;  %v3182_v61 = vrot.slane %v7350_v62, %v7385_v53 }
 0x1fc   :  { %v2790_v12 = vpop.f32.mrf.mxu1  ;;  %4884 = vmatprep.subr.bf16.mxu1 %v6539_v54  ;;  %6197 = vmatmul.mubr.msk.bf16.vlgmr.msra.gmra.mxu0 %vm2501_vm0, %v7296_v38  ;;  %v6594_v54 = vld [vmem:[#allocation8 + $0x1a0] ss:$16 sps:$4 sm:$0xff]   ;;  %v6608_v35 = vld [vmem:[#allocation8 + $0x164] ss:$16 sps:$4 sm:$0xff]  }
 0x1fd   :  { %v3164_v4 = vpack.c.bf16 %v2829_v63, %v2829_v63  ;;  %4844 = vmatpush1.bf16.msra.mxu0 %v6534_v58  ;;  %4875 = vmatprep.mubr.bf16.mxu0 %v7378_v42  ;;  %v6597_v55 = vld [vmem:[#allocation8 + $0x3a0] ss:$16 sps:$4 sm:$0xff]   ;;  %v6605_v58 = vld [vmem:[#allocation8 + $0x384] ss:$16 sps:$4 sm:$0xff]  }
 0x1fe   :  { %3112 = vmatmul.mubr.bf16.vlgmr.msra.gmra.mxu1 %v7301_v36  ;;  %4845 = vmatprep.subr.bf16.mxu0 %v6542_v2  ;;  %v6549_v36 = vld [vmem:[#allocation8 + $0x2a0] ss:$16 sps:$4 sm:$0xff]   ;;  %v6611_v12 = vld [vmem:[#allocation8 + $0x364] ss:$16 sps:$4 sm:$0xff]   ;;  %v2786_v2 = vadd.f32 %v7370_v49, %v7356_v23  ;;  %v3161_v23 = vpack.c.bf16 %v7331_v56, %v7331_v56 }
 0x1ff   :  { %v3278_v25 = vadd.bf16 %v3246_v0, %v3164_v4  ;;  %4885 = vmatpush1.bf16.msra.mxu1 %v6537_v1  ;;  %v6600_v63 = vld [vmem:[#allocation8 + $0x180] ss:$16 sps:$4 sm:$0xff]   ;;  %v3211_v1 = vpack.c.bf16 %v3174_v57, %v3174_v57 }
 0x200   :  { %4886 = vmatprep.subr.bf16.mxu1 %v6545_v3  ;;  %v6603_v0 = vld [vmem:[#allocation8 + $0x380] ss:$16 sps:$4 sm:$0xff]   ;;  %v3213_v3 = vpack.c.bf16 %v3182_v61, %v3182_v61 }
 0x201   :  { %vm3286_vm2 = vcmp.ge.bf16.partialorder %v3278_v25, 0  ;;  %v3294_v45 = vmul.bf16 1045249613, %v3278_v25  ;;  %4846 = vmatpush1.bf16.msra.mxu0 %v6540_v5  ;;  %v6606_v4 = vld [vmem:[#allocation8 + $0x160] ss:$16 sps:$4 sm:$0xff]  }
 0x202   :  { %4847 = vmatprep.subr.bf16.mxu0 %v6548_v7  ;;  %v6609_v5 = vld [vmem:[#allocation8 + $0x360] ss:$16 sps:$4 sm:$0xff]   ;;  %v6617_v7 = vld [vmem:[#allocation8 + $0x344] ss:$16 sps:$4 sm:$0xff]  }
 0x203   :  { %4887 = vmatpush1.bf16.msra.mxu1 %v6543_v6  ;;  %v7381_v38 = vsel %vm3286_vm2, %v3278_v25, %v3294_v45  ;;  %v6614_v25 = vld [vmem:[#allocation8 + $0x144] ss:$16 sps:$4 sm:$0xff]   ;;  %v3220_v6 = vpack.i.b16 %v3211_v1, %v3211_v1  ;;  %v3234_v45 = vpack.i.b16 %v3213_v3, %v3213_v3  ;;  %v6624_v56 = vld [vmem:[#allocation8 + $0x100] ss:$16 sps:$4 sm:$0xff]  }
 0x204   :  { %4916 = vmatprep.mubr.bf16.mxu1 %v7381_v38  ;;  %4888 = vmatprep.subr.bf16.mxu1 %v6551_v8  ;;  %v2827_v8 = vadd.f32 %v7368_v46, %v2786_v2  ;;  %v6621_v46 = vld [vmem:[#allocation8 + $0x320] ss:$16 sps:$4 sm:$0xff]   ;;  %v6644_v3 = vld [vmem:[#allocation8 + $0x464] ss:$16 sps:$4 sm:$0xff]  }
 0x205   :  { %4848 = vmatpush1.bf16.msra.mxu0 %v6546_v10  ;;  %v6612_v10 = vld [vmem:[#allocation8 + $0x140] ss:$16 sps:$4 sm:$0xff]   ;;  %v3225_v49 = vrot.slane %v3220_v6, %v7362_v30  ;;  %v6647_v6 = vld [vmem:[#allocation8 + $0x444] ss:$16 sps:$4 sm:$0xff]  }
 0x206   :  { %4849 = vmatprep.subr.bf16.mxu0 %v6554_v11  ;;  %v6620_v11 = vld [vmem:[#allocation8 + $0x124] ss:$16 sps:$4 sm:$0xff]   ;;  %v6639_v2 = vld [vmem:[#allocation8 + $0x480] ss:$16 sps:$4 sm:$0xff]  }
 0x207   :  { %4889 = vmatpush1.bf16.msra.mxu1 %v6549_v36  ;;  %v6615_v36 = vld [vmem:[#allocation8 + $0x340] ss:$16 sps:$4 sm:$0xff]  }
 0x208   :  { %4890 = vmatprep.subr.bf16.mxu1 %v6557_v14  ;;  %v6623_v14 = vld [vmem:[#allocation8 + $0x324] ss:$16 sps:$4 sm:$0xff]  }
 0x209   :  { %4850 = vmatpush1.bf16.msra.mxu0 %v6552_v16  ;;  %v3163_v16 = vpack.c.bf16 %v2827_v8, %v2827_v8  ;;  %v6716_v8 = vld [vmem:[#allocation8 + $0x644] ss:$16 sps:$4 sm:$0xff]  }
 0x20a   :  { %4851 = vmatprep.subr.bf16.mxu0 %v6560_v18  ;;  %v6618_v18 = vld [vmem:[#allocation8 + $0x120] ss:$16 sps:$4 sm:$0xff]  }
 0x20b   :  { %4891 = vmatpush1.bf16.msra.mxu1 %v6555_v59  ;;  %v3239_v59 = vrot.slane %v3234_v45, %v7362_v30  ;;  %v6645_v45 = vld [vmem:[#allocation8 + $0x440] ss:$16 sps:$4 sm:$0xff]  }
 0x20c   :  { %4892 = vmatprep.subr.bf16.mxu1 %v6563_v19  ;;  %v6626_v19 = vld [vmem:[#allocation8 + $0x104] ss:$16 sps:$4 sm:$0xff]  }
 0x20d   :  { %4852 = vmatpush1.bf16.msra.mxu0 %v6558_v21  ;;  %v3275_v21 = vadd.bf16 %v3225_v49, %v3161_v23  ;;  %v6648_v23 = vld [vmem:[#allocation8 + $0x420] ss:$16 sps:$4 sm:$0xff]   ;;  %v6653_v49 = vld [vmem:[#allocation8 + $0x404] ss:$16 sps:$4 sm:$0xff]  }
 0x20e   :  { %4853 = vmatprep.subr.bf16.mxu0 %v6566_v60  ;;  %v3277_v60 = vadd.bf16 %v3239_v59, %v3163_v16  ;;  %v6728_v16 = vld [vmem:[#allocation8 + $0x604] ss:$16 sps:$4 sm:$0xff]   ;;  %v6651_v59 = vld [vmem:[#allocation8 + $0x400] ss:$16 sps:$4 sm:$0xff]  }
 0x20f   :  { %4893 = vmatpush1.bf16.msra.mxu1 %v6561_v22  ;;  %v6629_v22 = vld [vmem:[#allocation8 + $0x304] ss:$16 sps:$4 sm:$0xff]   ;;  %vm3283_vm3 = vcmp.ge.bf16.partialorder %v3275_v21, 0 }
 0x210   :  { %4894 = vmatprep.subr.bf16.mxu1 %v6569_v24  ;;  %vm3285_vm4 = vcmp.ge.bf16.partialorder %v3277_v60, 0 }
 0x211   :  { %4854 = vmatpush1.bf16.msra.mxu0 %v6564_v26 }
 0x212   :  { %4855 = vmatprep.subr.bf16.mxu0 %v6572_v28 }
 0x213   :  { %4895 = vmatpush1.bf16.msra.mxu1 %v6567_v27 }
 0x214   :  { %4896 = vmatprep.subr.bf16.mxu1 %v6575_v31  ;;  %v6627_v31 = vld [vmem:[#allocation8 + $0x300] ss:$16 sps:$4 sm:$0xff]  }
 0x215   :  { %4856 = vmatpush1.bf16.msra.mxu0 %v6570_v32  ;;  %v6632_v32 = vld [vmem:[#allocation8 + $0x4e4] ss:$16 sps:$4 sm:$0xff]  }
 0x216   :  { %4857 = vmatprep.subr.bf16.mxu0 %v6578_v9  ;;  %v3291_v9 = vmul.bf16 1045249613, %v3275_v21 }
 0x217   :  { %4897 = vmatpush1.bf16.msra.mxu1 %v6573_v33 }
 0x218   :  { %4898 = vmatprep.subr.bf16.mxu1 %v6581_v34  ;;  %v6686_v34 = vld [vmem:[#allocation8 + $0x6e4] ss:$16 sps:$4 sm:$0xff]  }
 0x219   :  { %4858 = vmatpush1.bf16.msra.mxu0 %v6576_v37  ;;  %v3293_v37 = vmul.bf16 1045249613, %v3277_v60 }
 0x21a   :  { %4859 = vmatprep.subr.bf16.mxu0 %v6584_v40 }
 0x21b   :  { %4899 = vmatpush1.bf16.msra.mxu1 %v6579_v39 }
 0x21c   :  { %4900 = vmatprep.subr.bf16.mxu1 %v6587_v41  ;;  %v6630_v41 = vld [vmem:[#allocation8 + $0x4e0] ss:$16 sps:$4 sm:$0xff]  }
 0x21d   :  { %4860 = vmatpush2.bf16.msra.mxu0 %v6582_v43 }
 0x21e   :  { %4861 = vmatprep.subr.bf16.mxu0 %v6590_v17  ;;  %v6684_v17 = vld [vmem:[#allocation8 + $0x6e0] ss:$16 sps:$4 sm:$0xff]  }
 0x21f   :  { %4901 = vmatpush2.bf16.msra.mxu1 %v6585_v44  ;;  %v6635_v44 = vld [vmem:[#allocation8 + $0x4c4] ss:$16 sps:$4 sm:$0xff]  }
 0x220   :  { %4902 = vmatprep.subr.bf16.mxu1 %v6593_v48 }
 0x221   :  { %4862 = vmatpush2.bf16.msra.mxu0 %v6588_v15  ;;  %v7404_v15 = vsel %vm3283_vm3, %v3275_v21, %v3291_v9  ;;  %v6654_v21 = vld [vmem:[#allocation8 + $0x5e0] ss:$16 sps:$4 sm:$0xff]  }
 0x222   :  { %4863 = vmatprep.subr.bf16.mxu0 %v6596_v51  ;;  %v7407_v51 = vsel %vm3285_vm4, %v3277_v60, %v3293_v37  ;;  %v6732_v60 = vld [vmem:[#allocation8 + $0x7e0] ss:$16 sps:$4 sm:$0xff]  }
 0x223   :  { %4903 = vmatpush2.bf16.msra.mxu1 %v6591_v50  ;;  %v6692_v50 = vld [vmem:[#allocation8 + $0x6c4] ss:$16 sps:$4 sm:$0xff]   ;;  %v6660_v9 = vld [vmem:[#allocation8 + $0x5a0] ss:$16 sps:$4 sm:$0xff]  }
 0x224   :  { %4904 = vmatprep.subr.bf16.mxu1 %v6599_v52  ;;  %v6744_v37 = vld [vmem:[#allocation8 + $0x7a0] ss:$16 sps:$4 sm:$0xff]  }
 0x225   :  { %4864 = vmatpush2.bf16.msra.mxu0 %v6594_v54  ;;  %v6633_v54 = vld [vmem:[#allocation8 + $0x4c0] ss:$16 sps:$4 sm:$0xff]  }
 0x226   :  { %4865 = vmatprep.subr.bf16.mxu0 %v6602_v20  ;;  %v6690_v20 = vld [vmem:[#allocation8 + $0x6c0] ss:$16 sps:$4 sm:$0xff]  }
 0x227   :  { %4905 = vmatpush2.bf16.msra.mxu1 %v6597_v55  ;;  %v6638_v55 = vld [vmem:[#allocation8 + $0x4a4] ss:$16 sps:$4 sm:$0xff]  }
 0x228   :  { %4906 = vmatprep.subr.bf16.mxu1 %v6605_v58  ;;  %v6698_v58 = vld [vmem:[#allocation8 + $0x6a4] ss:$16 sps:$4 sm:$0xff]  }
 0x229   :  { %4866 = vmatpush2.bf16.msra.mxu0 %v6600_v63  ;;  %v6636_v63 = vld [vmem:[#allocation8 + $0x4a0] ss:$16 sps:$4 sm:$0xff]  }
 0x22a   :  { %4867 = vmatprep.subr.bf16.mxu0 %v6608_v35  ;;  %v6696_v35 = vld [vmem:[#allocation8 + $0x6a0] ss:$16 sps:$4 sm:$0xff]  }
 0x22b   :  { %4907 = vmatpush2.bf16.msra.mxu1 %v6603_v0  ;;  %v6641_v0 = vld [vmem:[#allocation8 + $0x484] ss:$16 sps:$4 sm:$0xff]  }
 0x22c   :  { %4908 = vmatprep.subr.bf16.mxu1 %v6611_v12  ;;  %v6704_v12 = vld [vmem:[#allocation8 + $0x684] ss:$16 sps:$4 sm:$0xff]  }
 0x22d   :  { %4868 = vmatpush2.bf16.msra.mxu0 %v6606_v4  ;;  %v6702_v4 = vld [vmem:[#allocation8 + $0x680] ss:$16 sps:$4 sm:$0xff]  }
 0x22e   :  { %4869 = vmatprep.subr.bf16.mxu0 %v6614_v25  ;;  %v6642_v25 = vld [vmem:[#allocation8 + $0x460] ss:$16 sps:$4 sm:$0xff]  }
 0x22f   :  { %4909 = vmatpush2.bf16.msra.mxu1 %v6609_v5  ;;  %v6710_v5 = vld [vmem:[#allocation8 + $0x664] ss:$16 sps:$4 sm:$0xff]  }
 0x230   :  { %4910 = vmatprep.subr.bf16.mxu1 %v6617_v7  ;;  %v6708_v7 = vld [vmem:[#allocation8 + $0x660] ss:$16 sps:$4 sm:$0xff]  }
 0x231   :  { %4870 = vmatpush2.bf16.msra.mxu0 %v6612_v10  ;;  %v6650_v10 = vld [vmem:[#allocation8 + $0x424] ss:$16 sps:$4 sm:$0xff]  }
 0x232   :  { %4871 = vmatprep.subr.bf16.mxu0 %v6620_v11  ;;  %v6722_v11 = vld [vmem:[#allocation8 + $0x624] ss:$16 sps:$4 sm:$0xff]  }
 0x233   :  { %4911 = vmatpush2.bf16.msra.mxu1 %v6615_v36  ;;  %v6714_v36 = vld [vmem:[#allocation8 + $0x640] ss:$16 sps:$4 sm:$0xff]  }
 0x234   :  { %4912 = vmatprep.subr.bf16.mxu1 %v6623_v14  ;;  %v2867_v24 = vpop.f32.mrf.mxu0  ;;  %v6720_v14 = vld [vmem:[#allocation8 + $0x620] ss:$16 sps:$4 sm:$0xff]  }
 0x235   :  { %4872 = vmatpush2.bf16.msra.mxu0 %v6618_v18  ;;  %v6656_v18 = vld [vmem:[#allocation8 + $0x5e4] ss:$16 sps:$4 sm:$0xff]  }
 0x236   :  { %v2908_v26 = vpop.f32.mrf.mxu1  ;;  %v7400_v28 = vpop.f32.mrf.mxu0  ;;  %4873 = vmatprep.subr.bf16.mxu0 %v6626_v19  ;;  %v6734_v19 = vld [vmem:[#allocation8 + $0x7e4] ss:$16 sps:$4 sm:$0xff]  }
 0x237   :  { %v7398_v27 = vadd.f32 %v2908_v26, %v2867_v24  ;;  %4913 = vmatpush2.bf16.msra.mxu1 %v6621_v46  ;;  %v6726_v46 = vld [vmem:[#allocation8 + $0x600] ss:$16 sps:$4 sm:$0xff]   ;;  %v6740_v24 = vld [vmem:[#allocation8 + $0x7c4] ss:$16 sps:$4 sm:$0xff]  }
 0x238   :  { %v7402_v33 = vpop.f32.mrf.mxu1  ;;  %4914 = vmatprep.subr.bf16.mxu1 %v6629_v22  ;;  %v2871_v39 = vpop.f32.mrf.mxu0  ;;  %v6659_v22 = vld [vmem:[#allocation8 + $0x5c4] ss:$16 sps:$4 sm:$0xff]   ;;  %v6657_v26 = vld [vmem:[#allocation8 + $0x5c0] ss:$16 sps:$4 sm:$0xff]  }
 0x239   :  { %4874 = vmatpush2.bf16.msra.mxu0 %v6624_v56  ;;  %v6662_v56 = vld [vmem:[#allocation8 + $0x5a4] ss:$16 sps:$4 sm:$0xff]  }
 0x23a   :  { %v2912_v40 = vpop.f32.mrf.mxu1  ;;  %v2872_v43 = vpop.f32.mrf.mxu0  ;;  %4925 = vmatprep.subr.bf16.mxu0 %v6632_v32  ;;  %v6746_v32 = vld [vmem:[#allocation8 + $0x7a4] ss:$16 sps:$4 sm:$0xff]  }
 0x23b   :  { %4915 = vmatpush2.bf16.msra.mxu1 %v6627_v31  ;;  %v6738_v31 = vld [vmem:[#allocation8 + $0x7c0] ss:$16 sps:$4 sm:$0xff]   ;;  %v6752_v39 = vld [vmem:[#allocation8 + $0x784] ss:$16 sps:$4 sm:$0xff]  }
 0x23c   :  { %v2913_v48 = vpop.f32.mrf.mxu1  ;;  %4966 = vmatprep.subr.bf16.mxu1 %v6686_v34  ;;  %4876 = vmatmul.mubr.bf16.vlgmr.msra.gmra.mxu0 %v7404_v15  ;;  %v6665_v34 = vld [vmem:[#allocation8 + $0x584] ss:$16 sps:$4 sm:$0xff]   ;;  %v6663_v40 = vld [vmem:[#allocation8 + $0x580] ss:$16 sps:$4 sm:$0xff]  }
 0x23d   :  { %4926 = vmatpush1.bf16.msra.mxu0 %v6630_v41  ;;  %v6668_v41 = vld [vmem:[#allocation8 + $0x564] ss:$16 sps:$4 sm:$0xff]   ;;  %v6750_v43 = vld [vmem:[#allocation8 + $0x780] ss:$16 sps:$4 sm:$0xff]  }
 0x23e   :  { %4917 = vmatmul.mubr.bf16.vlgmr.msra.gmra.mxu1 %v7407_v51  ;;  %v7410_v52 = vpop.f32.mrf.mxu1  ;;  %4927 = vmatprep.subr.bf16.mxu0 %v6635_v44  ;;  %v3189_v44 = vsub.s32 4, %v7345_v47  ;;  %v6666_v48 = vld [vmem:[#allocation8 + $0x560] ss:$16 sps:$4 sm:$0xff]  }
 0x23f   :  { %4967 = vmatpush1.bf16.msra.mxu1 %v6684_v17  ;;  %v6758_v17 = vld [vmem:[#allocation8 + $0x764] ss:$16 sps:$4 sm:$0xff]  }
 0x240   :  { %v7412_v57 = vpop.f32.mrf.mxu1  ;;  %4968 = vmatprep.subr.bf16.mxu1 %v6692_v50  ;;  %v3193_v50 = vsub.s32 5, %v7345_v47 }
 0x241   :  { %4928 = vmatpush1.bf16.msra.mxu0 %v6633_v54  ;;  %v6671_v54 = vld [vmem:[#allocation8 + $0x544] ss:$16 sps:$4 sm:$0xff]  }
 0x242   :  { %v2994_v61 = vpop.f32.mrf.mxu1  ;;  %4929 = vmatprep.subr.bf16.mxu0 %v6638_v55  ;;  %v6756_v55 = vld [vmem:[#allocation8 + $0x760] ss:$16 sps:$4 sm:$0xff]  }
 0x243   :  { %4969 = vmatpush1.bf16.msra.mxu1 %v6690_v20  ;;  %v3190_v20 = vrot.slane %v7350_v62, %v3189_v44  ;;  %v3194_v61 = vrot.slane %v7350_v62, %v3193_v50  ;;  %v6693_v44 = vld [vmem:[#allocation8 + $0x88] ss:$16 sps:$4 sm:$0xff]   ;;  %v6707_v50 = vld [vmem:[#allocation8 + $0x4c] ss:$16 sps:$4 sm:$0xff]  }
 0x244   :  { %v2995_v1 = vpop.f32.mrf.mxu1  ;;  %4970 = vmatprep.subr.bf16.mxu1 %v6698_v58  ;;  %v6764_v58 = vld [vmem:[#allocation8 + $0x744] ss:$16 sps:$4 sm:$0xff]  }
 0x245   :  { %4930 = vmatpush1.bf16.msra.mxu0 %v6636_v63  ;;  %v6669_v63 = vld [vmem:[#allocation8 + $0x540] ss:$16 sps:$4 sm:$0xff]   ;;  %v3215_v1 = vpack.c.bf16 %v3190_v20, %v3190_v20  ;;  %v6719_v20 = vld [vmem:[#allocation8 + $0xc] ss:$16 sps:$4 sm:$0xff]  }
 0x246   :  { %4931 = vmatprep.subr.bf16.mxu0 %v6641_v0  ;;  %v6674_v0 = vld [vmem:[#allocation8 + $0x524] ss:$16 sps:$4 sm:$0xff]  }
 0x247   :  { %4971 = vmatpush1.bf16.msra.mxu1 %v6696_v35  ;;  %v6762_v35 = vld [vmem:[#allocation8 + $0x740] ss:$16 sps:$4 sm:$0xff]  }
 0x248   :  { %4972 = vmatprep.subr.bf16.mxu1 %v6704_v12  ;;  %v6770_v12 = vld [vmem:[#allocation8 + $0x724] ss:$16 sps:$4 sm:$0xff]  }
 0x249   :  { %4932 = vmatpush1.bf16.msra.mxu0 %v6639_v2  ;;  %v3216_v2 = vpack.c.bf16 %v3194_v61, %v3194_v61  ;;  %v6725_v61 = vld [vmem:[#allocation8 + $0x1ec] ss:$16 sps:$4 sm:$0xff]  }
 0x24a   :  { %4933 = vmatprep.subr.bf16.mxu0 %v6644_v3  ;;  %v6672_v3 = vld [vmem:[#allocation8 + $0x520] ss:$16 sps:$4 sm:$0xff]  }
 0x24b   :  { %4973 = vmatpush1.bf16.msra.mxu1 %v6702_v4  ;;  %v6677_v4 = vld [vmem:[#allocation8 + $0x504] ss:$16 sps:$4 sm:$0xff]  }
 0x24c   :  { %4974 = vmatprep.subr.bf16.mxu1 %v6710_v5  ;;  %v6768_v5 = vld [vmem:[#allocation8 + $0x720] ss:$16 sps:$4 sm:$0xff]  }
 0x24d   :  { %4934 = vmatpush1.bf16.msra.mxu0 %v6642_v25  ;;  %v3248_v25 = vpack.i.b16 %v3215_v1, %v3215_v1  ;;  %v6737_v1 = vld [vmem:[#allocation8 + $0x1ac] ss:$16 sps:$4 sm:$0xff]  }
 0x24e   :  { %4935 = vmatprep.subr.bf16.mxu0 %v6647_v6  ;;  %v6776_v6 = vld [vmem:[#allocation8 + $0x704] ss:$16 sps:$4 sm:$0xff]  }
 0x24f   :  { %4975 = vmatpush1.bf16.msra.mxu1 %v6708_v7 }
 0x250   :  { %4976 = vmatprep.subr.bf16.mxu1 %v6716_v8  ;;  %v2911_v8 = vadd.f32 %v7402_v33, %v7400_v28 }
 0x251   :  { %4936 = vmatpush1.bf16.msra.mxu0 %v6645_v45 }
 0x252   :  { %4937 = vmatprep.subr.bf16.mxu0 %v6650_v10  ;;  %v3255_v10 = vpack.i.b16 %v3216_v2, %v3216_v2  ;;  %v6743_v2 = vld [vmem:[#allocation8 + $0x18c] ss:$16 sps:$4 sm:$0xff]  }
 0x253   :  { %4977 = vmatpush1.bf16.msra.mxu1 %v6714_v36  ;;  %v6675_v36 = vld [vmem:[#allocation8 + $0x500] ss:$16 sps:$4 sm:$0xff]  }
 0x254   :  { %4978 = vmatprep.subr.bf16.mxu1 %v6722_v11 }
 0x255   :  { %4938 = vmatpush1.bf16.msra.mxu0 %v6648_v23  ;;  %v6680_v23 = vld [vmem:[#allocation8 + $0xec] ss:$16 sps:$4 sm:$0xff]  }
 0x256   :  { %4939 = vmatprep.subr.bf16.mxu0 %v6653_v49  ;;  %v6774_v49 = vld [vmem:[#allocation8 + $0x700] ss:$16 sps:$4 sm:$0xff]  }
 0x257   :  { %4979 = vmatpush1.bf16.msra.mxu1 %v6720_v14 }
 0x258   :  { %4980 = vmatprep.subr.bf16.mxu1 %v6728_v16  ;;  %v3253_v16 = vrot.slane %v3248_v25, %v7362_v30  ;;  %v3197_v25 = vsub.s32 6, %v7345_v47 }
 0x259   :  { %4940 = vmatpush1.bf16.msra.mxu0 %v6651_v59 }
 0x25a   :  { %4941 = vmatprep.subr.bf16.mxu0 %v6656_v18  ;;  %v6782_v18 = vld [vmem:[#allocation8 + $0x2ec] ss:$16 sps:$4 sm:$0xff]  }
 0x25b   :  { %4981 = vmatpush1.bf16.msra.mxu1 %v6726_v46 }
 0x25c   :  { %4982 = vmatprep.subr.bf16.mxu1 %v6734_v19 }
 0x25d   :  { %4942 = vmatpush2.bf16.msra.mxu0 %v6654_v21 }
 0x25e   :  { %4943 = vmatprep.subr.bf16.mxu0 %v6659_v22 }
 0x25f   :  { %4983 = vmatpush2.bf16.msra.mxu1 %v6732_v60 }
 0x260   :  { %4984 = vmatprep.subr.bf16.mxu1 %v6740_v24 }
 0x261   :  { %4944 = vmatpush2.bf16.msra.mxu0 %v6657_v26 }
 0x262   :  { %4945 = vmatprep.subr.bf16.mxu0 %v6662_v56 }
 0x263   :  { %4985 = vmatpush2.bf16.msra.mxu1 %v6738_v31  ;;  %v6678_v31 = vld [vmem:[#allocation8 + $0xe8] ss:$16 sps:$4 sm:$0xff]  }
 0x264   :  { %4986 = vmatprep.subr.bf16.mxu1 %v6746_v32 }
 0x265   :  { %4946 = vmatpush2.bf16.msra.mxu0 %v6660_v9  ;;  %v6683_v9 = vld [vmem:[#allocation8 + $0xcc] ss:$16 sps:$4 sm:$0xff]  }
 0x266   :  { %4947 = vmatprep.subr.bf16.mxu0 %v6665_v34 }
 0x267   :  { %4987 = vmatpush2.bf16.msra.mxu1 %v6744_v37 }
 0x268   :  { %4988 = vmatprep.subr.bf16.mxu1 %v6752_v39  ;;  %v6681_v39 = vld [vmem:[#allocation8 + $0xc8] ss:$16 sps:$4 sm:$0xff]  }
 0x269   :  { %4948 = vmatpush2.bf16.msra.mxu0 %v6663_v40  ;;  %v6689_v40 = vld [vmem:[#allocation8 + $0xac] ss:$16 sps:$4 sm:$0xff]  }
 0x26a   :  { %4949 = vmatprep.subr.bf16.mxu0 %v6668_v41  ;;  %v6687_v41 = vld [vmem:[#allocation8 + $0xa8] ss:$16 sps:$4 sm:$0xff]  }
 0x26b   :  { %4989 = vmatpush2.bf16.msra.mxu1 %v6750_v43  ;;  %v6695_v43 = vld [vmem:[#allocation8 + $0x8c] ss:$16 sps:$4 sm:$0xff]  }
 0x26c   :  { %4990 = vmatprep.subr.bf16.mxu1 %v6758_v17  ;;  %v6701_v17 = vld [vmem:[#allocation8 + $0x6c] ss:$16 sps:$4 sm:$0xff]  }
 0x26d   :  { %4950 = vmatpush2.bf16.msra.mxu0 %v6666_v48  ;;  %v6699_v48 = vld [vmem:[#allocation8 + $0x68] ss:$16 sps:$4 sm:$0xff]  }
 0x26e   :  { %4951 = vmatprep.subr.bf16.mxu0 %v6671_v54  ;;  %v6705_v54 = vld [vmem:[#allocation8 + $0x48] ss:$16 sps:$4 sm:$0xff]  }
 0x26f   :  { %4991 = vmatpush2.bf16.msra.mxu1 %v6756_v55  ;;  %v6713_v55 = vld [vmem:[#allocation8 + $0x2c] ss:$16 sps:$4 sm:$0xff]  }
 0x270   :  { %4992 = vmatprep.subr.bf16.mxu1 %v6764_v58  ;;  %v6717_v58 = vld [vmem:[#allocation8 + $0x8] ss:$16 sps:$4 sm:$0xff]  }
 0x271   :  { %4952 = vmatpush2.bf16.msra.mxu0 %v6669_v63  ;;  %v6723_v63 = vld [vmem:[#allocation8 + $0x1e8] ss:$16 sps:$4 sm:$0xff]  }
 0x272   :  { %4953 = vmatprep.subr.bf16.mxu0 %v6674_v0  ;;  %v6731_v0 = vld [vmem:[#allocation8 + $0x1cc] ss:$16 sps:$4 sm:$0xff]  }
 0x273   :  { %4993 = vmatpush2.bf16.msra.mxu1 %v6762_v35  ;;  %v6729_v35 = vld [vmem:[#allocation8 + $0x1c8] ss:$16 sps:$4 sm:$0xff]  }
 0x274   :  { %4994 = vmatprep.subr.bf16.mxu1 %v6770_v12  ;;  %v2949_v7 = vpop.f32.mrf.mxu0  ;;  %v6735_v12 = vld [vmem:[#allocation8 + $0x1a8] ss:$16 sps:$4 sm:$0xff]  }
 0x275   :  { %v2950_v45 = vadd.f32 %v2949_v7, %v7398_v27  ;;  %4954 = vmatpush2.bf16.msra.mxu0 %v6672_v3  ;;  %v3260_v27 = vrot.slane %v3255_v10, %v7362_v30  ;;  %v6741_v3 = vld [vmem:[#allocation8 + $0x188] ss:$16 sps:$4 sm:$0xff]   ;;  %v3201_v7 = vsub.s32 7, %v7345_v47  ;;  %v3198_v10 = vrot.slane %v7350_v62, %v3197_v25 }
 0x276   :  { %v2951_v11 = vpop.f32.mrf.mxu0  ;;  %4955 = vmatprep.subr.bf16.mxu0 %v6677_v4  ;;  %v6749_v4 = vld [vmem:[#allocation8 + $0x16c] ss:$16 sps:$4 sm:$0xff]   ;;  %v6792_v25 = vld [vmem:[#allocation8 + $0x2a8] ss:$16 sps:$4 sm:$0xff]  }
 0x277   :  { %4995 = vmatpush2.bf16.msra.mxu1 %v6768_v5  ;;  %v2991_v14 = vadd.f32 %v7410_v52, %v2950_v45  ;;  %v2952_v59 = vadd.f32 %v2951_v11, %v2911_v8  ;;  %v6747_v5 = vld [vmem:[#allocation8 + $0x168] ss:$16 sps:$4 sm:$0xff]  }
 0x278   :  { %4996 = vmatprep.subr.bf16.mxu1 %v6776_v6  ;;  %v2953_v46 = vpop.f32.mrf.mxu0  ;;  %v6755_v6 = vld [vmem:[#allocation8 + $0x14c] ss:$16 sps:$4 sm:$0xff]   ;;  %v6753_v45 = vld [vmem:[#allocation8 + $0x148] ss:$16 sps:$4 sm:$0xff]  }
 0x279   :  { %v3165_v19 = vpack.c.bf16 %v2991_v14, %v2991_v14  ;;  %v2993_v28 = vadd.f32 %v7412_v57, %v2952_v59  ;;  %4956 = vmatpush2.bf16.msra.mxu0 %v6675_v36  ;;  %v6761_v36 = vld [vmem:[#allocation8 + $0x12c] ss:$16 sps:$4 sm:$0xff]   ;;  %v6759_v14 = vld [vmem:[#allocation8 + $0x128] ss:$16 sps:$4 sm:$0xff]  }
 0x27a   :  { %v2954_v33 = vpop.f32.mrf.mxu0  ;;  %5007 = vmatprep.subr.bf16.mxu0 %v6680_v23  ;;  %v3202_v23 = vrot.slane %v7350_v62, %v3201_v7  ;;  %v6767_v59 = vld [vmem:[#allocation8 + $0x10c] ss:$16 sps:$4 sm:$0xff]  }
 0x27b   :  { %4997 = vmatpush2.bf16.msra.mxu1 %v6774_v49  ;;  %v3279_v21 = vadd.bf16 %v3253_v16, %v3165_v19  ;;  %v3166_v22 = vpack.c.bf16 %v2993_v28, %v2993_v28  ;;  %v3217_v16 = vpack.c.bf16 %v3198_v10, %v3198_v10  ;;  %v6765_v33 = vld [vmem:[#allocation8 + $0x108] ss:$16 sps:$4 sm:$0xff]   ;;  %v6800_v7 = vld [vmem:[#allocation8 + $0x28c] ss:$16 sps:$4 sm:$0xff]  }
 0x27c   :  { %5048 = vmatprep.subr.bf16.mxu1 %v6782_v18  ;;  %v3218_v46 = vpack.c.bf16 %v3202_v23, %v3202_v23  ;;  %v6809_v10 = vld [vmem:[#allocation8 + $0x42c] ss:$16 sps:$4 sm:$0xff]  }
 0x27d   :  { %v3280_v60 = vadd.bf16 %v3260_v27, %v3166_v22  ;;  %v3295_v24 = vmul.bf16 1045249613, %v3279_v21  ;;  %vm3287_vm6 = vcmp.ge.bf16.partialorder %v3279_v21, 0  ;;  %v3262_v27 = vpack.i.b16 %v3217_v16, %v3217_v16  ;;  %v6773_v22 = vld [vmem:[#allocation8 + $0x4ec] ss:$16 sps:$4 sm:$0xff]  }
 0x27e   :  { %v7425_v52 = vpop.f32.mrf.mxu1  ;;  %v6815_v23 = vld [vmem:[#allocation8 + $0x40c] ss:$16 sps:$4 sm:$0xff]   ;;  %v6810_v16 = vld [vmem:[#allocation8 + $0x248] ss:$16 sps:$4 sm:$0xff]  }
 0x27f   :  { %vm3288_vm5 = vcmp.ge.bf16.partialorder %v3280_v60, 0  ;;  %v3296_v56 = vmul.bf16 1045249613, %v3280_v60  ;;  %v7432_v34 = vsel %vm3287_vm6, %v3279_v21, %v3295_v24 }
 0x280   :  { %v7427_v26 = vpop.f32.mrf.mxu1 }
 0x281   :  { %v7429_v32 = vsel %vm3288_vm5, %v3280_v60, %v3296_v56  ;;  %v3269_v56 = vpack.i.b16 %v3218_v46, %v3218_v46  ;;  %v6819_v46 = vld [vmem:[#allocation8 + $0x5e8] ss:$16 sps:$4 sm:$0xff]  }
 0x282   :  { %v3035_v57 = vpop.f32.mrf.mxu1  ;;  %4957 = vmatprep.mubr.bf16.mxu0 %v7429_v32 }
 0x283   :  { %4958 = vmatmul.mubr.bf16.vlgmr.msra.gmra.mxu0 %v7432_v34 }
 0x284   :  { %v3036_v37 = vpop.f32.mrf.mxu1  ;;  %5008 = vmatpush1.bf16.msra.mxu0 %v6678_v31  ;;  %5039 = vmatprep.mubr.bf16.mxu0 %v7378_v42  ;;  %v6711_v42 = vld [vmem:[#allocation8 + $0x28] ss:$16 sps:$4 sm:$0xff]  }
 0x285   :  { %5009 = vmatprep.subr.bf16.mxu0 %v6683_v9  ;;  %v3267_v9 = vrot.slane %v3262_v27, %v7362_v30  ;;  %v6824_v27 = vld [vmem:[#allocation8 + $0x20c] ss:$16 sps:$4 sm:$0xff]  }
 0x288   :  { %5010 = vmatpush1.bf16.msra.mxu0 %v6681_v39 }
 0x289   :  { %5011 = vmatprep.subr.bf16.mxu0 %v6689_v40 }
 0x28c   :  { %5012 = vmatpush1.bf16.msra.mxu0 %v6687_v41  ;;  %v6779_v41 = vld [vmem:[#allocation8 + $0x4cc] ss:$16 sps:$4 sm:$0xff]  }
 0x28d   :  { %5013 = vmatprep.subr.bf16.mxu0 %v6695_v43 }
 0x290   :  { %5014 = vmatpush1.bf16.msra.mxu0 %v6693_v44 }
 0x291   :  { %5015 = vmatprep.subr.bf16.mxu0 %v6701_v17  ;;  %v3274_v17 = vrot.slane %v3269_v56, %v7362_v30  ;;  %v6839_v56 = vld [vmem:[#allocation8 + $0x58c] ss:$16 sps:$4 sm:$0xff]  }
 0x294   :  { %5016 = vmatpush1.bf16.msra.mxu0 %v6699_v48 }
 0x295   :  { %5017 = vmatprep.subr.bf16.mxu0 %v6707_v50 }
 0x298   :  { %5018 = vmatpush1.bf16.msra.mxu0 %v6705_v54 }
 0x299   :  { %5019 = vmatprep.subr.bf16.mxu0 %v6713_v55  ;;  %v6777_v55 = vld [vmem:[#allocation8 + $0x4c8] ss:$16 sps:$4 sm:$0xff]  }
 0x29c   :  { %5020 = vmatpush1.bf16.msra.mxu0 %v6711_v42  ;;  %v6785_v42 = vld [vmem:[#allocation8 + $0x4ac] ss:$16 sps:$4 sm:$0xff]  }
 0x29d   :  { %5021 = vmatprep.subr.bf16.mxu0 %v6719_v20 }
 0x2a0   :  { %5022 = vmatpush1.bf16.msra.mxu0 %v6717_v58 }
 0x2a1   :  { %5023 = vmatprep.subr.bf16.mxu0 %v6725_v61 }
 0x2a4   :  { %5024 = vmatpush2.bf16.msra.mxu0 %v6723_v63  ;;  %v6783_v63 = vld [vmem:[#allocation8 + $0x4a8] ss:$16 sps:$4 sm:$0xff]  }
 0x2a5   :  { %5025 = vmatprep.subr.bf16.mxu0 %v6731_v0  ;;  %v6780_v0 = vld [vmem:[#allocation8 + $0x2e8] ss:$16 sps:$4 sm:$0xff]  }
 0x2a8   :  { %5026 = vmatpush2.bf16.msra.mxu0 %v6729_v35 }
 0x2a9   :  { %5027 = vmatprep.subr.bf16.mxu0 %v6737_v1  ;;  %v6791_v1 = vld [vmem:[#allocation8 + $0x48c] ss:$16 sps:$4 sm:$0xff]  }
 0x2ac   :  { %5028 = vmatpush2.bf16.msra.mxu0 %v6735_v12 }
 0x2ad   :  { %5029 = vmatprep.subr.bf16.mxu0 %v6743_v2  ;;  %v6786_v2 = vld [vmem:[#allocation8 + $0x2c8] ss:$16 sps:$4 sm:$0xff]  }
 0x2b0   :  { %5030 = vmatpush2.bf16.msra.mxu0 %v6741_v3  ;;  %v6797_v3 = vld [vmem:[#allocation8 + $0x46c] ss:$16 sps:$4 sm:$0xff]  }
 0x2b1   :  { %5031 = vmatprep.subr.bf16.mxu0 %v6749_v4  ;;  %v6794_v4 = vld [vmem:[#allocation8 + $0x2ac] ss:$16 sps:$4 sm:$0xff]  }
 0x2b4   :  { %5032 = vmatpush2.bf16.msra.mxu0 %v6747_v5  ;;  %v3072_v8 = vpop.f32.mrf.mxu0  ;;  %v6795_v5 = vld [vmem:[#allocation8 + $0x468] ss:$16 sps:$4 sm:$0xff]  }
 0x2b5   :  { %5033 = vmatprep.subr.bf16.mxu0 %v6755_v6  ;;  %v3073_v19 = vadd.f32 %v3072_v8, %v7425_v52  ;;  %v6771_v52 = vld [vmem:[#allocation8 + $0x4e8] ss:$16 sps:$4 sm:$0xff]   ;;  %v6803_v6 = vld [vmem:[#allocation8 + $0x44c] ss:$16 sps:$4 sm:$0xff]  }
 0x2b6   :  { %v3074_v11 = vpop.f32.mrf.mxu0  ;;  %v6801_v8 = vld [vmem:[#allocation8 + $0x448] ss:$16 sps:$4 sm:$0xff]  }
 0x2b7   :  { %v3075_v60 = vadd.f32 %v3074_v11, %v7427_v26  ;;  %v6804_v11 = vld [vmem:[#allocation8 + $0x268] ss:$16 sps:$4 sm:$0xff]  }
 0x2b8   :  { %5034 = vmatpush2.bf16.msra.mxu0 %v6753_v45  ;;  %v3076_v49 = vpop.f32.mrf.mxu0  ;;  %v6798_v45 = vld [vmem:[#allocation8 + $0x288] ss:$16 sps:$4 sm:$0xff]  }
 0x2b9   :  { %5035 = vmatprep.subr.bf16.mxu0 %v6761_v36  ;;  %v6807_v36 = vld [vmem:[#allocation8 + $0x428] ss:$16 sps:$4 sm:$0xff]   ;;  %v6812_v49 = vld [vmem:[#allocation8 + $0x24c] ss:$16 sps:$4 sm:$0xff]  }
 0x2ba   :  { %v3077_v18 = vpop.f32.mrf.mxu0 }
 0x2bb   :  { %v6818_v18 = vld [vmem:[#allocation8 + $0x22c] ss:$16 sps:$4 sm:$0xff]  }
 0x2bc   :  { %5036 = vmatpush2.bf16.msra.mxu0 %v6759_v14  ;;  %v3154_v28 = vpop.f32.mrf.mxu0  ;;  %v6813_v14 = vld [vmem:[#allocation8 + $0x408] ss:$16 sps:$4 sm:$0xff]  }
 0x2bd   :  { %5037 = vmatprep.subr.bf16.mxu0 %v6767_v59  ;;  %v6821_v59 = vld [vmem:[#allocation8 + $0x5ec] ss:$16 sps:$4 sm:$0xff]  }
 0x2be   :  { %v3113_v21 = vpop.f32.mrf.mxu1  ;;  %v3156_v24 = vpop.f32.mrf.mxu0 }
 0x2bf   :  { %v3114_v62 = vadd.f32 %v3113_v21, %v3073_v19  ;;  %v6816_v19 = vld [vmem:[#allocation8 + $0x228] ss:$16 sps:$4 sm:$0xff]  }
 0x2c0   :  { %v3115_v31 = vpop.f32.mrf.mxu1  ;;  %5038 = vmatpush2.bf16.msra.mxu0 %v6765_v33  ;;  %v3158_v39 = vpop.f32.mrf.mxu0  ;;  %v6825_v33 = vld [vmem:[#allocation8 + $0x5c8] ss:$16 sps:$4 sm:$0xff]  }
 0x2c1   :  { %v3155_v57 = vadd.f32 %v3154_v28, %v3114_v62  ;;  %v3116_v37 = vadd.f32 %v3115_v31, %v3075_v60  ;;  %5089 = vmatprep.subr.bf16.mxu0 %v6773_v22  ;;  %v6827_v28 = vld [vmem:[#allocation8 + $0x5cc] ss:$16 sps:$4 sm:$0xff]   ;;  %v6822_v21 = vld [vmem:[#allocation8 + $0x208] ss:$16 sps:$4 sm:$0xff]  }
 0x2c2   :  { %v3117_v40 = vpop.f32.mrf.mxu1  ;;  %v3159_v48 = vpop.f32.mrf.mxu0  ;;  %v6833_v22 = vld [vmem:[#allocation8 + $0x5ac] ss:$16 sps:$4 sm:$0xff]   ;;  %v6831_v62 = vld [vmem:[#allocation8 + $0x5a8] ss:$16 sps:$4 sm:$0xff]  }
 0x2c3   :  { %v3167_v43 = vpack.c.bf16 %v3155_v57, %v3155_v57  ;;  %v3157_v44 = vadd.f32 %v3156_v24, %v3116_v37  ;;  %5040 = vmatmul.mubr.bf16.vlgmr.msra.gmra.mxu0 %v7404_v15  ;;  %v6788_v15 = vld [vmem:[#allocation8 + $0x2cc] ss:$16 sps:$4 sm:$0xff]   ;;  %v6828_v24 = vld [vmem:[#allocation8 + $0x3e8] ss:$16 sps:$4 sm:$0xff]  }
 0x2c4   :  { %v3118_v26 = vpop.f32.mrf.mxu1  ;;  %5090 = vmatpush1.bf16.msra.mxu0 %v6771_v52  ;;  %5121 = vmatprep.mubr.bf16.mxu0 %v7429_v32  ;;  %v6789_v32 = vld [vmem:[#allocation8 + $0x488] ss:$16 sps:$4 sm:$0xff]   ;;  %v6830_v60 = vld [vmem:[#allocation8 + $0x3ec] ss:$16 sps:$4 sm:$0xff]  }
 0x2c5   :  { %v3281_v50 = vadd.bf16 %v3267_v9, %v3167_v43  ;;  %v3168_v54 = vpack.c.bf16 %v3157_v44, %v3157_v44  ;;  %5091 = vmatprep.subr.bf16.mxu0 %v6779_v41  ;;  %v6836_v31 = vld [vmem:[#allocation8 + $0x3cc] ss:$16 sps:$4 sm:$0xff]   ;;  %v6837_v57 = vld [vmem:[#allocation8 + $0x588] ss:$16 sps:$4 sm:$0xff]  }
 0x2c6   :  { %v6834_v9 = vld [vmem:[#allocation8 + $0x3c8] ss:$16 sps:$4 sm:$0xff]   ;;  %v6845_v37 = vld [vmem:[#allocation8 + $0x56c] ss:$16 sps:$4 sm:$0xff]  }
 0x2c7   :  { %v3282_v20 = vadd.bf16 %v3274_v17, %v3168_v54  ;;  %v3297_v58 = vmul.bf16 1045249613, %v3281_v50  ;;  %vm3289_vm8 = vcmp.ge.bf16.partialorder %v3281_v50, 0  ;;  %v6842_v39 = vld [vmem:[#allocation8 + $0x3ac] ss:$16 sps:$4 sm:$0xff]  }
 0x2c8   :  { %5092 = vmatpush1.bf16.msra.mxu0 %v6777_v55  ;;  %v6843_v52 = vld [vmem:[#allocation8 + $0x568] ss:$16 sps:$4 sm:$0xff]   ;;  %v6851_v41 = vld [vmem:[#allocation8 + $0x54c] ss:$16 sps:$4 sm:$0xff]  }
 0x2c9   :  { %vm3290_vm7 = vcmp.ge.bf16.partialorder %v3282_v20, 0  ;;  %v3298_v61 = vmul.bf16 1045249613, %v3282_v20  ;;  %5093 = vmatprep.subr.bf16.mxu0 %v6785_v42  ;;  %v7449_v12 = vsel %vm3289_vm8, %v3281_v50, %v3297_v58  ;;  %v6840_v40 = vld [vmem:[#allocation8 + $0x3a8] ss:$16 sps:$4 sm:$0xff]  }
 0x2ca   :  { %v6848_v43 = vld [vmem:[#allocation8 + $0x38c] ss:$16 sps:$4 sm:$0xff]   ;;  %v6849_v44 = vld [vmem:[#allocation8 + $0x548] ss:$16 sps:$4 sm:$0xff]  }
 0x2cb   :  { %v7446_v35 = vsel %vm3290_vm7, %v3282_v20, %v3298_v61  ;;  %v6846_v17 = vld [vmem:[#allocation8 + $0x388] ss:$16 sps:$4 sm:$0xff]   ;;  %v6857_v48 = vld [vmem:[#allocation8 + $0x52c] ss:$16 sps:$4 sm:$0xff]  }
 0x2cc   :  { %4998 = vmatprep.mubr.bf16.mxu1 %v7446_v35  ;;  %5094 = vmatpush1.bf16.msra.mxu0 %v6783_v63  ;;  %v6854_v26 = vld [vmem:[#allocation8 + $0x36c] ss:$16 sps:$4 sm:$0xff]   ;;  %v6855_v50 = vld [vmem:[#allocation8 + $0x528] ss:$16 sps:$4 sm:$0xff]  }
 0x2cd   :  { %4999 = vmatmul.mubr.bf16.vlgmr.msra.gmra.mxu1 %v7449_v12  ;;  %5095 = vmatprep.subr.bf16.mxu0 %v6791_v1  ;;  %v6852_v54 = vld [vmem:[#allocation8 + $0x368] ss:$16 sps:$4 sm:$0xff]   ;;  %v6863_v55 = vld [vmem:[#allocation8 + $0x50c] ss:$16 sps:$4 sm:$0xff]  }
 0x2ce   :  { %5049 = vmatpush1.bf16.msra.mxu1 %v6780_v0  ;;  %5080 = vmatprep.mubr.bf16.mxu1 %v7381_v38  ;;  %v6806_v38 = vld [vmem:[#allocation8 + $0x26c] ss:$16 sps:$4 sm:$0xff]   ;;  %v6861_v58 = vld [vmem:[#allocation8 + $0x508] ss:$16 sps:$4 sm:$0xff]  }
 0x2cf   :  { %5050 = vmatprep.subr.bf16.mxu1 %v6788_v15  ;;  %v6860_v42 = vld [vmem:[#allocation8 + $0x34c] ss:$16 sps:$4 sm:$0xff]   ;;  %v6858_v63 = vld [vmem:[#allocation8 + $0x348] ss:$16 sps:$4 sm:$0xff]  }
 0x2d0   :  { %5096 = vmatpush1.bf16.msra.mxu0 %v6789_v32  ;;  %v6920_v0 = vld [vmem:[#allocation11 + $0x74] ss:$8 sps:$4 sm:$0xff]   ;;  %v6866_v32 = vld [vmem:[#allocation8 + $0x32c] ss:$16 sps:$4 sm:$0xff]  }
 0x2d1   :  { %5097 = vmatprep.subr.bf16.mxu0 %v6797_v3 }
 0x2d2   :  { %5051 = vmatpush1.bf16.msra.mxu1 %v6786_v2 }
 0x2d3   :  { %5052 = vmatprep.subr.bf16.mxu1 %v6794_v4 }
 0x2d4   :  { %5098 = vmatpush1.bf16.msra.mxu0 %v6795_v5  ;;  %v6918_v5 = vld [vmem:[#allocation11 + $0x70] ss:$8 sps:$4 sm:$0xff]  }
 0x2d5   :  { %5099 = vmatprep.subr.bf16.mxu0 %v6803_v6  ;;  %v6864_v6 = vld [vmem:[#allocation8 + $0x328] ss:$16 sps:$4 sm:$0xff]  }
 0x2d6   :  { %5053 = vmatpush1.bf16.msra.mxu1 %v6792_v25 }
 0x2d7   :  { %5054 = vmatprep.subr.bf16.mxu1 %v6800_v7  ;;  %v6923_v7 = vld [vmem:[#allocation11 + $0x64] ss:$8 sps:$4 sm:$0xff]  }
 0x2d8   :  { %5100 = vmatpush1.bf16.msra.mxu0 %v6801_v8 }
 0x2d9   :  { %5101 = vmatprep.subr.bf16.mxu0 %v6809_v10 }
 0x2da   :  { %5055 = vmatpush1.bf16.msra.mxu1 %v6798_v45  ;;  %v6869_v45 = vld [vmem:[#allocation8 + $0x30c] ss:$16 sps:$4 sm:$0xff]  }
 0x2db   :  { %5056 = vmatprep.subr.bf16.mxu1 %v6806_v38  ;;  %v6921_v38 = vld [vmem:[#allocation11 + $0x60] ss:$8 sps:$4 sm:$0xff]  }
 0x2dc   :  { %5102 = vmatpush1.bf16.msra.mxu0 %v6807_v36  ;;  %v6867_v36 = vld [vmem:[#allocation8 + $0x308] ss:$16 sps:$4 sm:$0xff]  }
 0x2dd   :  { %5103 = vmatprep.subr.bf16.mxu0 %v6815_v23  ;;  %v6872_v23 = vld [vmem:[#allocation8 + $0x6ec] ss:$16 sps:$4 sm:$0xff]  }
 0x2de   :  { %5057 = vmatpush1.bf16.msra.mxu1 %v6804_v11  ;;  %v6926_v11 = vld [vmem:[#allocation11 + $0x54] ss:$8 sps:$4 sm:$0xff]  }
 0x2df   :  { %5058 = vmatprep.subr.bf16.mxu1 %v6812_v49  ;;  %v6924_v49 = vld [vmem:[#allocation11 + $0x50] ss:$8 sps:$4 sm:$0xff]  }
 0x2e0   :  { %5104 = vmatpush1.bf16.msra.mxu0 %v6813_v14  ;;  %v6870_v14 = vld [vmem:[#allocation8 + $0x6e8] ss:$16 sps:$4 sm:$0xff]  }
 0x2e1   :  { %5105 = vmatprep.subr.bf16.mxu0 %v6821_v59  ;;  %v6929_v59 = vld [vmem:[#allocation11 + $0x44] ss:$8 sps:$4 sm:$0xff]  }
 0x2e2   :  { %5059 = vmatpush1.bf16.msra.mxu1 %v6810_v16  ;;  %v6875_v16 = vld [vmem:[#allocation8 + $0x6cc] ss:$16 sps:$4 sm:$0xff]  }
 0x2e3   :  { %5060 = vmatprep.subr.bf16.mxu1 %v6818_v18  ;;  %v6873_v18 = vld [vmem:[#allocation8 + $0x6c8] ss:$16 sps:$4 sm:$0xff]  }
 0x2e4   :  { %5106 = vmatpush2.bf16.msra.mxu0 %v6819_v46  ;;  %v6932_v46 = vld [vmem:[#allocation11 + $0x34] ss:$8 sps:$4 sm:$0xff]  }
 0x2e5   :  { %5107 = vmatprep.subr.bf16.mxu0 %v6827_v28  ;;  %v6930_v28 = vld [vmem:[#allocation11 + $0x30] ss:$8 sps:$4 sm:$0xff]  }
 0x2e6   :  { %5061 = vmatpush1.bf16.msra.mxu1 %v6816_v19  ;;  %v6878_v19 = vld [vmem:[#allocation8 + $0x6ac] ss:$16 sps:$4 sm:$0xff]  }
 0x2e7   :  { %5062 = vmatprep.subr.bf16.mxu1 %v6824_v27  ;;  %v6876_v27 = vld [vmem:[#allocation8 + $0x6a8] ss:$16 sps:$4 sm:$0xff]  }
 0x2e8   :  { %5108 = vmatpush2.bf16.msra.mxu0 %v6825_v33  ;;  %v6935_v33 = vld [vmem:[#allocation11 + $0x24] ss:$8 sps:$4 sm:$0xff]  }
 0x2e9   :  { %5109 = vmatprep.subr.bf16.mxu0 %v6833_v22  ;;  %v6879_v22 = vld [vmem:[#allocation8 + $0x688] ss:$16 sps:$4 sm:$0xff]  }
 0x2ea   :  { %5063 = vmatpush1.bf16.msra.mxu1 %v6822_v21  ;;  %v6881_v21 = vld [vmem:[#allocation8 + $0x68c] ss:$16 sps:$4 sm:$0xff]  }
 0x2eb   :  { %5064 = vmatprep.subr.bf16.mxu1 %v6830_v60  ;;  %v6938_v60 = vld [vmem:[#allocation11 + $0x14] ss:$8 sps:$4 sm:$0xff]  }
 0x2ec   :  { %5110 = vmatpush2.bf16.msra.mxu0 %v6831_v62  ;;  %v6936_v62 = vld [vmem:[#allocation11 + $0x10] ss:$8 sps:$4 sm:$0xff]  }
 0x2ed   :  { %5111 = vmatprep.subr.bf16.mxu0 %v6839_v56  ;;  %v6941_v56 = vld [vmem:[#allocation11 + $0x4] ss:$8 sps:$4 sm:$0xff]  }
 0x2ee   :  { %5065 = vmatpush2.bf16.msra.mxu1 %v6828_v24  ;;  %v6882_v24 = vld [vmem:[#allocation8 + $0x668] ss:$16 sps:$4 sm:$0xff]  }
 0x2ef   :  { %5066 = vmatprep.subr.bf16.mxu1 %v6836_v31  ;;  %v6887_v31 = vld [vmem:[#allocation8 + $0x64c] ss:$16 sps:$4 sm:$0xff]  }
 0x2f0   :  { %5112 = vmatpush2.bf16.msra.mxu0 %v6837_v57  ;;  %v6939_v57 = vld [vmem:[#allocation11] ss:$8 sps:$4 sm:$0xff]  }
 0x2f1   :  { %5113 = vmatprep.subr.bf16.mxu0 %v6845_v37  ;;  %v6944_v37 = vld [vmem:[#allocation11 + $0xf4] ss:$8 sps:$4 sm:$0xff]  }
 0x2f2   :  { %5067 = vmatpush2.bf16.msra.mxu1 %v6834_v9  ;;  %v6885_v9 = vld [vmem:[#allocation8 + $0x648] ss:$16 sps:$4 sm:$0xff]  }
 0x2f3   :  { %5068 = vmatprep.subr.bf16.mxu1 %v6842_v39  ;;  %v6890_v39 = vld [vmem:[#allocation8 + $0x62c] ss:$16 sps:$4 sm:$0xff]  }
 0x2f4   :  { %5114 = vmatpush2.bf16.msra.mxu0 %v6843_v52  ;;  %v6942_v52 = vld [vmem:[#allocation11 + $0xf0] ss:$8 sps:$4 sm:$0xff]  }
 0x2f5   :  { %5115 = vmatprep.subr.bf16.mxu0 %v6851_v41  ;;  %v6947_v41 = vld [vmem:[#allocation11 + $0xe4] ss:$8 sps:$4 sm:$0xff]  }
 0x2f6   :  { %5069 = vmatpush2.bf16.msra.mxu1 %v6840_v40  ;;  %v6888_v40 = vld [vmem:[#allocation8 + $0x628] ss:$16 sps:$4 sm:$0xff]  }
 0x2f7   :  { %5070 = vmatprep.subr.bf16.mxu1 %v6848_v43  ;;  %v6893_v43 = vld [vmem:[#allocation8 + $0x60c] ss:$16 sps:$4 sm:$0xff]  }
 0x2f8   :  { %5116 = vmatpush2.bf16.msra.mxu0 %v6849_v44  ;;  %v6945_v44 = vld [vmem:[#allocation11 + $0xe0] ss:$8 sps:$4 sm:$0xff]  }
 0x2f9   :  { %5117 = vmatprep.subr.bf16.mxu0 %v6857_v48  ;;  %v6950_v48 = vld [vmem:[#allocation11 + $0xd4] ss:$8 sps:$4 sm:$0xff]  }
 0x2fa   :  { %5071 = vmatpush2.bf16.msra.mxu1 %v6846_v17  ;;  %v6891_v17 = vld [vmem:[#allocation8 + $0x608] ss:$16 sps:$4 sm:$0xff]  }
 0x2fb   :  { %5072 = vmatprep.subr.bf16.mxu1 %v6854_v26  ;;  %v6896_v26 = vld [vmem:[#allocation8 + $0x7ec] ss:$16 sps:$4 sm:$0xff]  }
 0x2fc   :  { %v4877_v20 = vpop.f32.mrf.mxu0  ;;  %5118 = vmatpush2.bf16.msra.mxu0 %v6855_v50  ;;  %v6948_v50 = vld [vmem:[#allocation11 + $0xd0] ss:$8 sps:$4 sm:$0xff]  }
 0x2fd   :  { %5119 = vmatprep.subr.bf16.mxu0 %v6863_v55  ;;  %v6953_v55 = vld [vmem:[#allocation11 + $0xc4] ss:$8 sps:$4 sm:$0xff]  }
 0x2fe   :  { %5073 = vmatpush2.bf16.msra.mxu1 %v6852_v54  ;;  %v4918_v61 = vpop.f32.mrf.mxu1  ;;  %v4879_v1 = vpop.f32.mrf.mxu0  ;;  %v6894_v54 = vld [vmem:[#allocation8 + $0x7e8] ss:$16 sps:$4 sm:$0xff]  }
 0x2ff   :  { %v7453_v15 = vadd.f32 %v4918_v61, %v4877_v20  ;;  %5074 = vmatprep.subr.bf16.mxu1 %v6860_v42  ;;  %v6899_v42 = vld [vmem:[#allocation8 + $0x7cc] ss:$16 sps:$4 sm:$0xff]   ;;  %v6956_v61 = vld [vmem:[#allocation11 + $0xb4] ss:$8 sps:$4 sm:$0xff]  }
 0x300   :  { %v4920_v2 = vpop.f32.mrf.mxu1  ;;  %v4881_v4 = vpop.f32.mrf.mxu0  ;;  %5120 = vmatpush2.bf16.msra.mxu0 %v6861_v58  ;;  %v6951_v20 = vld [vmem:[#allocation11 + $0xc0] ss:$8 sps:$4 sm:$0xff]   ;;  %v6897_v58 = vld [vmem:[#allocation8 + $0x7c8] ss:$16 sps:$4 sm:$0xff]  }
 0x301   :  { %v7455_v3 = vadd.f32 %v4920_v2, %v4879_v1  ;;  %5629 = vmatprep.subr.bf16.mxu0 %v6920_v0  ;;  %v6954_v0 = vld [vmem:[#allocation11 + $0xb0] ss:$8 sps:$4 sm:$0xff]   ;;  %v6900_v1 = vld [vmem:[#allocation8 + $0x7a8] ss:$16 sps:$4 sm:$0xff]   ;;  %v6957_v4 = vld [vmem:[#allocation11 + $0xa0] ss:$8 sps:$4 sm:$0xff]  }
 0x302   :  { %5075 = vmatpush2.bf16.msra.mxu1 %v6858_v63  ;;  %v4922_v25 = vpop.f32.mrf.mxu1  ;;  %v4882_v8 = vpop.f32.mrf.mxu0  ;;  %v6902_v63 = vld [vmem:[#allocation8 + $0x7ac] ss:$16 sps:$4 sm:$0xff]  }
 0x303   :  { %5076 = vmatprep.subr.bf16.mxu1 %v6866_v32  ;;  %5122 = vmatmul.mubr.bf16.vlgmr.msra.gmra.mxu0 %v7432_v34  ;;  %v6927_v34 = vld [vmem:[#allocation11 + $0x40] ss:$8 sps:$4 sm:$0xff]   ;;  %v6959_v32 = vld [vmem:[#allocation11 + $0xa4] ss:$8 sps:$4 sm:$0xff]   ;;  %v6962_v25 = vld [vmem:[#allocation11 + $0x94] ss:$8 sps:$4 sm:$0xff]  }
 0x304   :  { %v4923_v10 = vpop.f32.mrf.mxu1  ;;  %5630 = vmatpush1.bf16.msra.mxu0 %v6918_v5  ;;  %v6905_v2 = vld [vmem:[#allocation8 + $0x78c] ss:$16 sps:$4 sm:$0xff]   ;;  %v6903_v5 = vld [vmem:[#allocation8 + $0x788] ss:$16 sps:$4 sm:$0xff]  }
 0x305   :  { %5631 = vmatprep.subr.bf16.mxu0 %v6923_v7  ;;  %v6960_v7 = vld [vmem:[#allocation11 + $0x90] ss:$8 sps:$4 sm:$0xff]   ;;  %v6906_v8 = vld [vmem:[#allocation8 + $0x768] ss:$16 sps:$4 sm:$0xff]  }
 0x306   :  { %5077 = vmatpush2.bf16.msra.mxu1 %v6864_v6  ;;  %v6908_v6 = vld [vmem:[#allocation8 + $0x76c] ss:$16 sps:$4 sm:$0xff]  }
 0x307   :  { %5078 = vmatprep.subr.bf16.mxu1 %v6869_v45  ;;  %v6965_v45 = vld [vmem:[#allocation11 + $0x84] ss:$8 sps:$4 sm:$0xff]   ;;  %v6911_v10 = vld [vmem:[#allocation8 + $0x74c] ss:$16 sps:$4 sm:$0xff]  }
 0x308   :  { %5632 = vmatpush1.bf16.msra.mxu0 %v6921_v38  ;;  %v6963_v38 = vld [vmem:[#allocation11 + $0x80] ss:$8 sps:$4 sm:$0xff]  }
 0x309   :  { %5633 = vmatprep.subr.bf16.mxu0 %v6926_v11  ;;  %v6914_v11 = vld [vmem:[#allocation8 + $0x72c] ss:$16 sps:$4 sm:$0xff]  }
 0x30a   :  { %5079 = vmatpush2.bf16.msra.mxu1 %v6867_v36  ;;  %v6909_v36 = vld [vmem:[#allocation8 + $0x748] ss:$16 sps:$4 sm:$0xff]  }
 0x30b   :  { %5130 = vmatprep.subr.bf16.mxu1 %v6872_v23  ;;  %v6912_v23 = vld [vmem:[#allocation8 + $0x728] ss:$16 sps:$4 sm:$0xff]  }
 0x30c   :  { %5634 = vmatpush1.bf16.msra.mxu0 %v6924_v49  ;;  %v6917_v49 = vld [vmem:[#allocation8 + $0x70c] ss:$16 sps:$4 sm:$0xff]  }
 0x30d   :  { %5081 = vmatmul.mubr.bf16.vlgmr.msra.gmra.mxu1 %v7407_v51  ;;  %5635 = vmatprep.subr.bf16.mxu0 %v6929_v59  ;;  %v6933_v51 = vld [vmem:[#allocation11 + $0x20] ss:$8 sps:$4 sm:$0xff]  }
 0x30e   :  { %5131 = vmatpush1.bf16.msra.mxu1 %v6870_v14  ;;  %5162 = vmatprep.mubr.bf16.mxu1 %v7446_v35  ;;  %v6884_v35 = vld [vmem:[#allocation8 + $0x66c] ss:$16 sps:$4 sm:$0xff]  }
 0x30f   :  { %5132 = vmatprep.subr.bf16.mxu1 %v6875_v16 }
 0x310   :  { %5636 = vmatpush1.bf16.msra.mxu0 %v6927_v34  ;;  %v6915_v34 = vld [vmem:[#allocation8 + $0x708] ss:$16 sps:$4 sm:$0xff]  }
 0x311   :  { %5637 = vmatprep.subr.bf16.mxu0 %v6932_v46 }
 0x312   :  { %5133 = vmatpush1.bf16.msra.mxu1 %v6873_v18 }
 0x313   :  { %5134 = vmatprep.subr.bf16.mxu1 %v6878_v19 }
 0x314   :  { %5638 = vmatpush1.bf16.msra.mxu0 %v6930_v28  ;;  %v6966_v28 = vld [vmem:[#allocation11 + $0x170] ss:$8 sps:$4 sm:$0xff]  }
 0x315   :  { %5639 = vmatprep.subr.bf16.mxu0 %v6935_v33  ;;  %v6971_v33 = vld [vmem:[#allocation11 + $0x164] ss:$8 sps:$4 sm:$0xff]  }
 0x316   :  { %5135 = vmatpush1.bf16.msra.mxu1 %v6876_v27  ;;  %v6968_v27 = vld [vmem:[#allocation11 + $0x174] ss:$8 sps:$4 sm:$0xff]  }
 0x317   :  { %5136 = vmatprep.subr.bf16.mxu1 %v6881_v21  ;;  %v6969_v21 = vld [vmem:[#allocation11 + $0x160] ss:$8 sps:$4 sm:$0xff]  }
 0x318   :  { %5640 = vmatpush1.bf16.msra.mxu0 %v6933_v51  ;;  %v6972_v51 = vld [vmem:[#allocation11 + $0x150] ss:$8 sps:$4 sm:$0xff]  }
 0x319   :  { %5641 = vmatprep.subr.bf16.mxu0 %v6938_v60  ;;  %v6980_v60 = vld [vmem:[#allocation11 + $0x134] ss:$8 sps:$4 sm:$0xff]  }
 0x31a   :  { %5137 = vmatpush1.bf16.msra.mxu1 %v6879_v22  ;;  %v6977_v22 = vld [vmem:[#allocation11 + $0x144] ss:$8 sps:$4 sm:$0xff]  }
 0x31b   :  { %5138 = vmatprep.subr.bf16.mxu1 %v6884_v35  ;;  %v6978_v35 = vld [vmem:[#allocation11 + $0x130] ss:$8 sps:$4 sm:$0xff]  }
 0x31c   :  { %5642 = vmatpush1.bf16.msra.mxu0 %v6936_v62  ;;  %v6981_v62 = vld [vmem:[#allocation11 + $0x120] ss:$8 sps:$4 sm:$0xff]  }
 0x31d   :  { %5643 = vmatprep.subr.bf16.mxu0 %v6941_v56  ;;  %v6984_v56 = vld [vmem:[#allocation11 + $0x110] ss:$8 sps:$4 sm:$0xff]  }
 0x31e   :  { %5139 = vmatpush1.bf16.msra.mxu1 %v6882_v24  ;;  %v6986_v24 = vld [vmem:[#allocation11 + $0x114] ss:$8 sps:$4 sm:$0xff]  }
 0x31f   :  { %5140 = vmatprep.subr.bf16.mxu1 %v6887_v31  ;;  %v6989_v31 = vld [vmem:[#allocation11 + $0x104] ss:$8 sps:$4 sm:$0xff]  }
 0x320   :  { %5644 = vmatpush1.bf16.msra.mxu0 %v6939_v57  ;;  %v6987_v57 = vld [vmem:[#allocation11 + $0x100] ss:$8 sps:$4 sm:$0xff]  }
 0x321   :  { %5645 = vmatprep.subr.bf16.mxu0 %v6944_v37  ;;  %v6990_v37 = vld [vmem:[#allocation11 + $0x1f0] ss:$8 sps:$4 sm:$0xff]  }
 0x322   :  { %5141 = vmatpush1.bf16.msra.mxu1 %v6885_v9  ;;  %v6992_v9 = vld [vmem:[#allocation11 + $0x1f4] ss:$8 sps:$4 sm:$0xff]  }
 0x323   :  { %5142 = vmatprep.subr.bf16.mxu1 %v6890_v39  ;;  %v6995_v39 = vld [vmem:[#allocation11 + $0x1e4] ss:$8 sps:$4 sm:$0xff]  }
 0x324   :  { %5646 = vmatpush2.bf16.msra.mxu0 %v6942_v52  ;;  %v6993_v52 = vld [vmem:[#allocation11 + $0x1e0] ss:$8 sps:$4 sm:$0xff]  }
 0x325   :  { %5647 = vmatprep.subr.bf16.mxu0 %v6947_v41  ;;  %v6996_v41 = vld [vmem:[#allocation11 + $0x1d0] ss:$8 sps:$4 sm:$0xff]  }
 0x326   :  { %5143 = vmatpush1.bf16.msra.mxu1 %v6888_v40  ;;  %v6998_v40 = vld [vmem:[#allocation11 + $0x1d4] ss:$8 sps:$4 sm:$0xff]  }
 0x327   :  { %5144 = vmatprep.subr.bf16.mxu1 %v6893_v43  ;;  %v7001_v43 = vld [vmem:[#allocation11 + $0x1c4] ss:$8 sps:$4 sm:$0xff]  }
 0x328   :  { %5648 = vmatpush2.bf16.msra.mxu0 %v6945_v44  ;;  %v6999_v44 = vld [vmem:[#allocation11 + $0x1c0] ss:$8 sps:$4 sm:$0xff]  }
 0x329   :  { %5649 = vmatprep.subr.bf16.mxu0 %v6950_v48  ;;  %v7004_v48 = vld [vmem:[#allocation11 + $0x1b4] ss:$8 sps:$4 sm:$0xff]  }
 0x32a   :  { %5145 = vmatpush1.bf16.msra.mxu1 %v6891_v17  ;;  %v5175_v17 = vld [vmem:[#allocation10] sm:$0xf] }
 0x32b   :  { %5146 = vmatprep.subr.bf16.mxu1 %v6896_v26  ;;  %v5180_v26 = vrot.slane %v5175_v17, %v7362_v30 }
 0x32c   :  { %5650 = vmatpush2.bf16.msra.mxu0 %v6948_v50  ;;  %v7002_v50 = vld [vmem:[#allocation11 + $0x1b0] ss:$8 sps:$4 sm:$0xff]  }
 0x32d   :  { %5651 = vmatprep.subr.bf16.mxu0 %v6953_v55  ;;  %v5184_v55 = vrot.slane %v5175_v17, %v7348_v29 }
 0x32e   :  { %5147 = vmatpush2.bf16.msra.mxu1 %v6894_v54 }
 0x32f   :  { %5148 = vmatprep.subr.bf16.mxu1 %v6899_v42 }
 0x330   :  { %5652 = vmatpush2.bf16.msra.mxu0 %v6951_v20  ;;  %v5197_v20 = vpack.c.bf16 %v5180_v26, %v5180_v26 }
 0x331   :  { %5653 = vmatprep.subr.bf16.mxu0 %v6956_v61  ;;  %v5198_v61 = vpack.c.bf16 %v5184_v55, %v5184_v55 }
 0x332   :  { %5149 = vmatpush2.bf16.msra.mxu1 %v6897_v58 }
 0x333   :  { %5150 = vmatprep.subr.bf16.mxu1 %v6902_v63 }
 0x334   :  { %5654 = vmatpush2.bf16.msra.mxu0 %v6954_v0  ;;  %v5202_v0 = vpack.i.b16 %v5197_v20, %v5197_v20 }
 0x335   :  { %5655 = vmatprep.subr.bf16.mxu0 %v6959_v32  ;;  %v7007_v32 = vld [vmem:[#allocation11 + $0x1a4] ss:$8 sps:$4 sm:$0xff]  }
 0x336   :  { %5151 = vmatpush2.bf16.msra.mxu1 %v6900_v1  ;;  %v5209_v1 = vpack.i.b16 %v5198_v61, %v5198_v61 }
 0x337   :  { %5152 = vmatprep.subr.bf16.mxu1 %v6905_v2 }
 0x338   :  { %5656 = vmatpush2.bf16.msra.mxu0 %v6957_v4  ;;  %v7005_v4 = vld [vmem:[#allocation11 + $0x1a0] ss:$8 sps:$4 sm:$0xff]  }
 0x339   :  { %5657 = vmatprep.subr.bf16.mxu0 %v6962_v25  ;;  %v5207_v25 = vrot.slane %v5202_v0, %v7362_v30 }
 0x33a   :  { %5153 = vmatpush2.bf16.msra.mxu1 %v6903_v5 }
 0x33b   :  { %5154 = vmatprep.subr.bf16.mxu1 %v6908_v6 }
 0x33c   :  { %5658 = vmatpush2.bf16.msra.mxu0 %v6960_v7 }
 0x33d   :  { %5659 = vmatprep.subr.bf16.mxu0 %v6965_v45  ;;  %v5214_v45 = vrot.slane %v5209_v1, %v7362_v30  ;;  %v5713_v1 = vld [vmem:[#allocation13] sm:$0x3] }
 0x33e   :  { %5155 = vmatpush2.bf16.msra.mxu1 %v6906_v8 }
 0x33f   :  { %5156 = vmatprep.subr.bf16.mxu1 %v6911_v10  ;;  %v7010_v10 = vld [vmem:[#allocation11 + $0x194] ss:$8 sps:$4 sm:$0xff]  }
 0x340   :  { %5660 = vmatpush2.bf16.msra.mxu0 %v6963_v38 }
 0x342   :  { %5157 = vmatpush2.bf16.msra.mxu1 %v6909_v36  ;;  %v7008_v36 = vld [vmem:[#allocation11 + $0x190] ss:$8 sps:$4 sm:$0xff]  }
 0x343   :  { %5158 = vmatprep.subr.bf16.mxu1 %v6914_v11  ;;  %v4959_v14 = vpop.f32.mrf.mxu0 }
 0x344   :  { %v7461_v16 = vadd.f32 %v4959_v14, %v7453_v15  ;;  %v6974_v15 = vld [vmem:[#allocation11 + $0x154] ss:$8 sps:$4 sm:$0xff]  }
 0x345   :  { %v4961_v59 = vpop.f32.mrf.mxu0 }
 0x346   :  { %5159 = vmatpush2.bf16.msra.mxu1 %v6912_v23  ;;  %v7464_v18 = vadd.f32 %v4961_v59, %v7455_v3  ;;  %v6975_v3 = vld [vmem:[#allocation11 + $0x140] ss:$8 sps:$4 sm:$0xff]  }
 0x347   :  { %5160 = vmatprep.subr.bf16.mxu1 %v6917_v49  ;;  %v4963_v46 = vpop.f32.mrf.mxu0 }
 0x349   :  { %v4964_v19 = vpop.f32.mrf.mxu0 }
 0x34a   :  { %5161 = vmatpush2.bf16.msra.mxu1 %v6915_v34  ;;  %v7013_v34 = vld [vmem:[#allocation11 + $0x184] ss:$8 sps:$4 sm:$0xff]  }
 0x34b   :  { %5670 = vmatprep.subr.bf16.mxu1 %v6968_v27 }
 0x34d   :  { %5163 = vmatmul.mubr.bf16.vlgmr.msra.gmra.mxu1 %v7449_v12  ;;  %v6983_v12 = vld [vmem:[#allocation11 + $0x124] ss:$8 sps:$4 sm:$0xff]  }
 0x34e   :  { %5671 = vmatpush1.bf16.msra.mxu1 %v6966_v28 }
 0x34f   :  { %5672 = vmatprep.subr.bf16.mxu1 %v6971_v33 }
 0x352   :  { %5673 = vmatpush1.bf16.msra.mxu1 %v6969_v21 }
 0x353   :  { %5674 = vmatprep.subr.bf16.mxu1 %v6974_v15 }
 0x356   :  { %5675 = vmatpush1.bf16.msra.mxu1 %v6972_v51 }
 0x357   :  { %5676 = vmatprep.subr.bf16.mxu1 %v6977_v22 }
 0x35a   :  { %5677 = vmatpush1.bf16.msra.mxu1 %v6975_v3 }
 0x35b   :  { %5678 = vmatprep.subr.bf16.mxu1 %v6980_v60  ;;  %v5188_v60 = vrot.slane %v5175_v17, %v7385_v53 }
 0x35e   :  { %5679 = vmatpush1.bf16.msra.mxu1 %v6978_v35  ;;  %v5192_v35 = vrot.slane %v5175_v17, %v3185_v13 }
 0x35f   :  { %5680 = vmatprep.subr.bf16.mxu1 %v6983_v12  ;;  %v5199_v12 = vpack.c.bf16 %v5188_v60, %v5188_v60 }
 0x362   :  { %5681 = vmatpush1.bf16.msra.mxu1 %v6981_v62 }
 0x363   :  { %5682 = vmatprep.subr.bf16.mxu1 %v6986_v24  ;;  %v5200_v24 = vpack.c.bf16 %v5192_v35, %v5192_v35 }
 0x366   :  { %5683 = vmatpush1.bf16.msra.mxu1 %v6984_v56 }
 0x367   :  { %5684 = vmatprep.subr.bf16.mxu1 %v6989_v31  ;;  %v5216_v31 = vpack.i.b16 %v5199_v12, %v5199_v12  ;;  %v6518_v12 = vld [vmem:[#allocation2] ss:$0 sm:$0xff] }
 0x36a   :  { %5685 = vmatpush1.bf16.msra.mxu1 %v6987_v57 }
 0x36b   :  { %5686 = vmatprep.subr.bf16.mxu1 %v6992_v9  ;;  %v5223_v9 = vpack.i.b16 %v5200_v24, %v5200_v24 }
 0x36e   :  { %5687 = vmatpush2.bf16.msra.mxu1 %v6990_v37 }
 0x36f   :  { %5688 = vmatprep.subr.bf16.mxu1 %v6995_v39 }
 0x372   :  { %5689 = vmatpush2.bf16.msra.mxu1 %v6993_v52  ;;  %v5221_v52 = vrot.slane %v5216_v31, %v7362_v30 }
 0x373   :  { %5690 = vmatprep.subr.bf16.mxu1 %v6998_v40 }
 0x376   :  { %5691 = vmatpush2.bf16.msra.mxu1 %v6996_v41 }
 0x377   :  { %5692 = vmatprep.subr.bf16.mxu1 %v7001_v43 }
 0x37a   :  { %5693 = vmatpush2.bf16.msra.mxu1 %v6999_v44 }
 0x37b   :  { %5694 = vmatprep.subr.bf16.mxu1 %v7004_v48  ;;  %v5228_v48 = vrot.slane %v5223_v9, %v7362_v30 }
 0x37e   :  { %5695 = vmatpush2.bf16.msra.mxu1 %v7002_v50 }
 0x37f   :  { %5696 = vmatprep.subr.bf16.mxu1 %v7007_v32  ;;  %v5718_v32 = vrot.slane %v5713_v1, %v7362_v30 }
 0x382   :  { %5697 = vmatpush2.bf16.msra.mxu1 %v7005_v4  ;;  %v5725_v4 = vpack.c.bf16 %v5718_v32, %v5718_v32 }
 0x383   :  { %v5041_v54 = vpop.f32.mrf.mxu0  ;;  %5698 = vmatprep.subr.bf16.mxu1 %v7010_v10 }
 0x385   :  { %v5043_v42 = vpop.f32.mrf.mxu0 }
 0x386   :  { %5699 = vmatpush2.bf16.msra.mxu1 %v7008_v36 }
 0x387   :  { %v5045_v58 = vpop.f32.mrf.mxu0  ;;  %5700 = vmatprep.subr.bf16.mxu1 %v7013_v34 }
 0x389   :  { %v5046_v63 = vpop.f32.mrf.mxu0 }
 0x38d   :  { %v5000_v2 = vpop.f32.mrf.mxu1 }
 0x38e   :  { %v5001_v5 = vadd.f32 %v5000_v2, %v7461_v16  ;;  %v7011_v16 = vld [vmem:[#allocation11 + $0x180] ss:$8 sps:$4 sm:$0xff]   ;;  %v5722_v2 = vrot.slane %v5713_v1, %v7348_v29 }
 0x38f   :  { %v5002_v6 = vpop.f32.mrf.mxu1  ;;  %5701 = vmatpush2.bf16.msra.mxu1 %v7011_v16 }
 0x390   :  { %v5171_v7 = vpack.c.bf16 %v5001_v5, %v5001_v5  ;;  %v5003_v8 = vadd.f32 %v5002_v6, %v7464_v18  ;;  %v5726_v5 = vpack.c.bf16 %v5722_v2, %v5722_v2 }
 0x391   :  { %v5004_v38 = vpop.f32.mrf.mxu1 }
 0x392   :  { %v5229_v11 = vadd.bf16 %v5207_v25, %v5171_v7  ;;  %v5172_v23 = vpack.c.bf16 %v5003_v8, %v5003_v8  ;;  %v5728_v25 = vpack.i.b16 %v5725_v4, %v5725_v4  ;;  %v5735_v6 = vpack.i.b16 %v5726_v5, %v5726_v5  ;;  %v5749_v7 = vld [vmem:[#allocation14] sm:$0x3] }
 0x393   :  { %v5005_v49 = vpop.f32.mrf.mxu1  ;;  %v5750_v36 = vunpack.c.l.bf16 %v5749_v7 }
 0x394   :  { %v5230_v14 = vadd.bf16 %v5214_v45, %v5172_v23  ;;  %v5237_v59 = vmul.bf16 1045249613, %v5229_v11  ;;  %vm5233_vm10 = vcmp.ge.bf16.partialorder %v5229_v11, 0  ;;  %v5733_v10 = vrot.slane %v5728_v25, %v7362_v30 }
 0x395   :  { %v5740_v49 = vrot.slane %v5735_v6, %v7362_v30  ;;  %v5757_v29 = vrot.slane %v5750_v36, %v7362_v30 }
 0x396   :  { %vm5234_vm9 = vcmp.ge.bf16.partialorder %v5230_v14, 0  ;;  %v5238_v46 = vmul.bf16 1045249613, %v5230_v14  ;;  %v5241_v18 = vsel %vm5233_vm10, %v5229_v11, %v5237_v59 }
 0x398   :  { %v5242_v19 = vsel %vm5234_vm9, %v5230_v14, %v5238_v46  ;;  %v5761_v46 = vrot.slane %v5750_v36, %v7385_v53 }
 0x399   :  { %5661 = vmatprep.mubr.bf16.mxu0 %v5242_v19 }
 0x39a   :  { %5662 = vmatmul.mubr.bf16.vlgmr.msra.gmra.mxu0 %v5241_v18 }
 0x3c3   :  { %v5123_v28 = vpop.f32.mrf.mxu0 }
 0x3c5   :  { %v5125_v27 = vpop.f32.mrf.mxu0 }
 0x3c7   :  { %v5127_v33 = vpop.f32.mrf.mxu0 }
 0x3c9   :  { %v5128_v21 = vpop.f32.mrf.mxu0 }
 0x3ca   :  { %v5767_v21 = vrot.slane %v5757_v29, %v7362_v30 }
 0x3cd   :  { %v5082_v15 = vpop.f32.mrf.mxu1 }
 0x3ce   :  { %v5083_v62 = vadd.f32 %v5082_v15, %v5041_v54  ;;  %v5771_v15 = vrot.slane %v5761_v46, %v7362_v30 }
 0x3cf   :  { %v5084_v51 = vpop.f32.mrf.mxu1 }
 0x3d0   :  { %v5085_v56 = vadd.f32 %v5084_v51, %v5043_v42  ;;  %v5124_v57 = vadd.f32 %v5123_v28, %v5083_v62 }
 0x3d1   :  { %v5086_v22 = vpop.f32.mrf.mxu1 }
 0x3d2   :  { %v5126_v40 = vadd.f32 %v5125_v27, %v5085_v56 }
 0x3d3   :  { %v5087_v3 = vpop.f32.mrf.mxu1 }
 0x40d   :  { %v5164_v37 = vpop.f32.mrf.mxu1 }
 0x40e   :  { %v5165_v39 = vadd.f32 %v5164_v37, %v5124_v57 }
 0x40f   :  { %v5166_v41 = vpop.f32.mrf.mxu1 }
 0x410   :  { %v5173_v43 = vpack.c.bf16 %v5165_v39, %v5165_v39  ;;  %v5167_v44 = vadd.f32 %v5166_v41, %v5126_v40 }
 0x411   :  { %v5168_v26 = vpop.f32.mrf.mxu1 }
 0x412   :  { %v5231_v47 = vadd.bf16 %v5221_v52, %v5173_v43  ;;  %v5174_v13 = vpack.c.bf16 %v5167_v44, %v5167_v44 }
 0x413   :  { %v5169_v17 = vpop.f32.mrf.mxu1 }
 0x414   :  { %v5232_v50 = vadd.bf16 %v5228_v48, %v5174_v13  ;;  %v5239_v54 = vmul.bf16 1045249613, %v5231_v47  ;;  %vm5235_vm12 = vcmp.ge.bf16.partialorder %v5231_v47, 0 }
 0x416   :  { %vm5236_vm11 = vcmp.ge.bf16.partialorder %v5232_v50, 0  ;;  %v5240_v55 = vmul.bf16 1045249613, %v5232_v50  ;;  %v5243_v20 = vsel %vm5235_vm12, %v5231_v47, %v5239_v54 }
 0x418   :  { %v5244_v42 = vsel %vm5236_vm11, %v5232_v50, %v5240_v55 }
 0x419   :  { %5702 = vmatprep.mubr.bf16.mxu1 %v5244_v42 }
 0x41a   :  { %5703 = vmatmul.mubr.bf16.vlgmr.msra.gmra.mxu1 %v5243_v20 }
 0x45a   :  { %v5663_v58 = vpop.f32.mrf.mxu0 }
 0x45c   :  { %v5665_v61 = vpop.f32.mrf.mxu0 }
 0x45e   :  { %v5667_v63 = vpop.f32.mrf.mxu0 }
 0x460   :  { %v5668_v0 = vpop.f32.mrf.mxu0 }
 0x4da   :  { %v5704_v8 = vpop.f32.mrf.mxu1 }
 0x4db   :  { %v5705_v45 = vadd.f32 %v5704_v8, %v5663_v58 }
 0x4dc   :  { %v5706_v38 = vpop.f32.mrf.mxu1 }
 0x4dd   :  { %v5711_v11 = vpack.c.bf16 %v5705_v45, %v5705_v45  ;;  %v5707_v23 = vadd.f32 %v5706_v38, %v5665_v61 }
 0x4de   :  { %v5708_v14 = vpop.f32.mrf.mxu1 }
 0x4df   :  { %v5741_v16 = vadd.bf16 %v5733_v10, %v5711_v11  ;;  %v5712_v59 = vpack.c.bf16 %v5707_v23, %v5707_v23 }
 0x4e0   :  { %v5709_v34 = vpop.f32.mrf.mxu1 }
 0x4e1   :  { %v5745_v19 = vmul.bf16 1045249613, %v5741_v16  ;;  %v5742_v18 = vadd.bf16 %v5740_v49, %v5712_v59  ;;  %vm5743_vm13 = vcmp.ge.bf16.partialorder %v5741_v16, 0 }
 0x4e3   :  { %v5746_v28 = vmul.bf16 1045249613, %v5742_v18  ;;  %vm5744_vm14 = vcmp.ge.bf16.partialorder %v5742_v18, 0  ;;  %v5747_v27 = vsel %vm5743_vm13, %v5741_v16, %v5745_v19 }
 0x4e4   :  { %v5751_v33 = vunpack.c.l.bf16 %v5747_v27 }
 0x4e5   :  { %v5748_v51 = vsel %vm5744_vm14, %v5742_v18, %v5746_v28 }
 0x4e6   :  { %v5752_v22 = vunpack.c.l.bf16 %v5748_v51  ;;  %v5772_v3 = vmul.f32 %v5767_v21, %v5751_v33 }
 0x4e8   :  { %v5773_v60 = vmul.f32 %v5771_v15, %v5752_v22 }
 0x4ea   :  { %v5774_v35 = vadd.f32 %v5773_v60, %v5772_v3 }
 0x4ec   :  { %5775 = vadd.xlane.f32.xlu0 %v5774_v35 }
 0x575   :  { %v5776_v62 = vpop.xlane.xlu0 %5775 }
 0x576   :  { %v5784_v53 = vadd.f32 %v6518_v12, %v5776_v62 }
 0x578   :  { %v5785_v24 = vsub.f32 0.0, %v5784_v53 }
 0x57a   :  { %v5786_v56 = vmul.f32 1.442695, %v5785_v24 }
 0x57c   :  { %7014 = vpow2.f32 %v5786_v56 }
 0x589   :  { %v7015_v31 = vpop.eup %7014 }
 0x58a   :  { %v5788_v57 = vadd.f32 1.0, %v7015_v31 }
 0x58c   :  { %7016 = vrcp.f32 %v5788_v57 }
 0x599   :  { %v7017_v9 = vpop.eup %7016 }
 0x59a   :  { %5792 = vst.msk [vmem:[%s7498_s9] sm:$0xff] %vm5791_vm15, %v7017_v9 }
 0x59b   :  { %5797 = vsyncpa [#allocation4], 1 }
 0x59c   :  { %5798 = vsyncpa [#allocation6], 1 }
 0x59d   :  { %5799 = vsyncpa [#allocation9], 1 }
 0x59e   :  { %5800 = vsyncpa [#allocation12], 1 }
 0x59f   :  { %5801 = vsyncpa [#allocation15], 1 }

</bundles_post_ra>
